<compile_context>
chip_gen: v7x
topology: tpu7x:2x2x1
jax: 0.10.0
libtpu: 0.0.40
codegen_flags: <defaults>
</compile_context>

<pallas_src>
import functools
import math

import numpy as np
import jax
import jax.numpy as jnp
from jax.experimental import pallas as pl
from jax.experimental.pallas import tpu as pltpu

NEG_INF = -1e30                         # stand-in for float('-inf') additive masks
F32_MIN = float(jnp.finfo(jnp.float32).min)


# ----------------------------------------------------------------------------
# The fused kernel (one grid step == a tile of TB batch elements)
# ----------------------------------------------------------------------------
def _convexnet_kernel(len_ref, hlen_ref,            # SMEM scalar-prefetch: (B,), (B*H,)
                      data_ref, onehot_ref,         # (TB,S,Cin) f32, (TB,L,S) f32
                      wmat_ref, wvec_ref,           # packed weight slabs (VMEM-resident)
                      logp_ref,                     # (TB,L,S_PAD) f32 lane-dense output
                      *, TB, S, L, E, H, S_PAD, moff, voff, eps_ln, eps_ptr):
    f32 = jnp.float32
    Dh = E // H
    scale = 1.0 / math.sqrt(Dh)
    b0 = pl.program_id(0) * TB

    def M(name):                                    # static slice of the matrix slab
        r, m, n = moff[name]
        return wmat_ref[r:r + m, :n]

    def V(name):                                    # static row of the vector slab
        r, n = voff[name]
        return wvec_ref[r:r + 1, :n]

    def dot(a, b):
        return jnp.dot(a, b, preferred_element_type=f32)

    def bdot(eq, a, b):
        return jnp.einsum(eq, a, b, preferred_element_type=f32)

    def layer_norm(x2, g, b):                       # x2: (rows, E)
        mu = jnp.mean(x2, axis=-1, keepdims=True)
        var = jnp.mean(jnp.square(x2 - mu), axis=-1, keepdims=True)
        return (x2 - mu) * jax.lax.rsqrt(var + eps_ln) * V(g) + V(b)

    def softmax(s):                                 # exact division (review note)
        m = jnp.max(s, axis=-1, keepdims=True)
        p = jnp.exp(s - m)
        return p / jnp.sum(p, axis=-1, keepdims=True)

    def heads(q3, k3, v3, masks):
        # q3: (TB,Lq,E), k3/v3: (TB,Skv,E), heads packed along the last dim.
        outs = []
        for h in range(H):
            q = q3[..., h * Dh:(h + 1) * Dh] * scale
            k = k3[..., h * Dh:(h + 1) * Dh]
            v = v3[..., h * Dh:(h + 1) * Dh]
            s = bdot('bqd,bkd->bqk', q, k)
            if masks is not None:
                s = s + (masks[h] if isinstance(masks, (list, tuple)) else masks)
            outs.append(bdot('bqk,bkd->bqd', softmax(s), v))
        return jnp.concatenate(outs, axis=-1)       # (TB, Lq, E)

    def self_attn(x2, N, wqkv, bqkv, wo, bo, masks):
        qkv = (dot(x2, M(wqkv)) + V(bqkv)).reshape(TB, N, 3 * E)     # fused QKV matmul
        ho = heads(qkv[..., :E], qkv[..., E:2 * E], qkv[..., 2 * E:], masks)
        return dot(ho.reshape(TB * N, E), M(wo)) + V(bo)             # (TB*N, E)

    def cross_attn(y2, m2, wq, bq, wkv, bkv, wo, bo, masks):
        q3 = (dot(y2, M(wq)) + V(bq)).reshape(TB, L, E)
        kv = (dot(m2, M(wkv)) + V(bkv)).reshape(TB, S, 2 * E)        # fused KV matmul
        ho = heads(q3, kv[..., :E], kv[..., E:], masks)
        return dot(ho.reshape(TB * L, E), M(wo)) + V(bo)             # (TB*L, E)

    def ffn(x2, w1, b1, w2, b2):
        h1 = jnp.maximum(dot(x2, M(w1)) + V(b1), 0.0)
        return dot(h1, M(w2)) + V(b2)

    # ---------------- masks from SMEM scalar lengths ----------------
    iota_s = jax.lax.broadcasted_iota(jnp.int32, (1, 1, S), 2)
    valid = jnp.concatenate(
        [(iota_s < len_ref[b0 + t]).astype(f32) for t in range(TB)], axis=0)   # (TB,1,S)
    causal = jnp.where(
        jax.lax.broadcasted_iota(jnp.int32, (1, L, L), 2)
        > jax.lax.broadcasted_iota(jnp.int32, (1, L, L), 1), NEG_INF, 0.0)     # (1,L,L)
    # decoder memory mask for (batch b, head h) uses length of batch (b*H+h) % B
    mem_masks = [
        jnp.concatenate(
            [jnp.where(iota_s < hlen_ref[(b0 + t) * H + h], 0.0, NEG_INF)
             for t in range(TB)], axis=0)                                       # (TB,1,S)
        for h in range(H)]

    # ---------------- embedding (no bias) ----------------
    d = data_ref[...]
    x2 = dot(d.reshape(TB * S, d.shape[-1]), M('embed'))             # (TB*S, E)

    # ---------------- encoder layer (post-norm) ----------------
    x2 = layer_norm(x2 + self_attn(x2, S, 'enc_sa_qkv', 'enc_sa_qkv_b',
                                   'enc_sa_o', 'enc_sa_o_b', None),
                    'enc_ln1_g', 'enc_ln1_b')
    enc2 = layer_norm(x2 + ffn(x2, 'enc_ff1', 'enc_ff_b1', 'enc_ff2', 'enc_ff_b2'),
                      'enc_ln2_g', 'enc_ln2_b')                      # (TB*S, E)
    enc3 = enc2.reshape(TB, S, E)

    # ---------------- decoder input: per-batch gather via one-hot matmul ----------------
    y2 = bdot('bls,bse->ble', onehot_ref[...], enc3).reshape(TB * L, E)

    # ---------------- decoder layer (post-norm) ----------------
    y2 = layer_norm(y2 + self_attn(y2, L, 'dec_sa_qkv', 'dec_sa_qkv_b',
                                   'dec_sa_o', 'dec_sa_o_b', causal),
                    'dec_ln1_g', 'dec_ln1_b')
    y2 = layer_norm(y2 + cross_attn(y2, enc2, 'dec_ca_q', 'dec_ca_q_b',
                                    'dec_ca_kv', 'dec_ca_kv_b',
                                    'dec_ca_o', 'dec_ca_o_b', mem_masks),
                    'dec_ln2_g', 'dec_ln2_b')
    y2 = layer_norm(y2 + ffn(y2, 'dec_ff1', 'dec_ff_b1', 'dec_ff2', 'dec_ff_b2'),
                    'dec_ln3_g', 'dec_ln3_b')                        # (TB*L, E)

    # ---------------- pointer head: masked log-softmax, lane-dense store ----------------
    enc_t = dot(enc2, M('ptr_w1')).reshape(TB, S, E)
    dec_t = dot(y2, M('ptr_w2')).reshape(TB, L, E)
    t = jnp.tanh(dec_t[:, :, None, :] + enc_t[:, None, :, :])        # (TB,L,S,E)
    prod = jnp.sum(t * V('ptr_v').reshape(1, 1, 1, E), axis=-1)      # (TB,L,S)

    z = prod + jnp.log(valid + eps_ptr)                              # masked_log_softmax
    zmax = jnp.max(z, axis=-1, keepdims=True)
    lse = jnp.log(jnp.sum(jnp.exp(z - zmax), axis=-1, keepdims=True)) + zmax
    logp = z - lse                                                   # (TB,L,S)
    if S_PAD > S:                                                    # pad to 128 lanes
        logp = jnp.concatenate(
            [logp, jnp.full((TB, L, S_PAD - S), NEG_INF, f32)], axis=-1)
    logp_ref[...] = logp


# ----------------------------------------------------------------------------
# Parameters (deterministic synthetic init, PyTorch layout)
# ----------------------------------------------------------------------------
def init_params(key, c_inputs=5, c_embed=8, c_hidden=2):
    keys = iter(jax.random.split(key, 32))
    E = c_embed

    def w(shape, scale=0.3):
        return jax.random.uniform(next(keys), shape, jnp.float32, -1.0, 1.0) * scale

    def attn_params():
        return dict(in_w=w((3 * E, E)), in_b=w((3 * E,)),
                    out_w=w((E, E)), out_b=w((E,)))

    def ln_params():
        return dict(g=jnp.ones((E,), jnp.float32), b=jnp.zeros((E,), jnp.float32))

    return dict(
        embed_w=w((E, c_inputs)),
        enc=dict(sa=attn_params(), ln1=ln_params(), ln2=ln_params(),
                 ff_w1=w((c_hidden, E)), ff_b1=w((c_hidden,)),
                 ff_w2=w((E, c_hidden)), ff_b2=w((E,))),
        dec=dict(sa=attn_params(), ca=attn_params(),
                 ln1=ln_params(), ln2=ln_params(), ln3=ln_params(),
                 ff_w1=w((c_hidden, E)), ff_b1=w((c_hidden,)),
                 ff_w2=w((E, c_hidden)), ff_b2=w((E,))),
        ptr=dict(w1=w((E, E)), w2=w((E, E)), v=w((1, E))),
    )


def prepare_params(params, *, c_embed):
    """One-time host-side repack of all weights into two contiguous VMEM slabs."""
    E = c_embed
    enc, dec, ptr = params["enc"], params["dec"], params["ptr"]

    mat_vals = {                                   # everything pre-transposed ("x @ W")
        'embed': params['embed_w'].T,
        'enc_sa_qkv': enc['sa']['in_w'].T, 'enc_sa_o': enc['sa']['out_w'].T,
        'enc_ff1': enc['ff_w1'].T, 'enc_ff2': enc['ff_w2'].T,
        'dec_sa_qkv': dec['sa']['in_w'].T, 'dec_sa_o': dec['sa']['out_w'].T,
        'dec_ca_q': dec['ca']['in_w'][:E].T, 'dec_ca_kv': dec['ca']['in_w'][E:].T,
        'dec_ca_o': dec['ca']['out_w'].T,
        'dec_ff1': dec['ff_w1'].T, 'dec_ff2': dec['ff_w2'].T,
        'ptr_w1': ptr['w1'].T, 'ptr_w2': ptr['w2'].T,
    }
    vec_vals = {
        'enc_sa_qkv_b': enc['sa']['in_b'], 'enc_sa_o_b': enc['sa']['out_b'],
        'dec_sa_qkv_b': dec['sa']['in_b'], 'dec_sa_o_b': dec['sa']['out_b'],
        'dec_ca_q_b': dec['ca']['in_b'][:E], 'dec_ca_kv_b': dec['ca']['in_b'][E:],
        'dec_ca_o_b': dec['ca']['out_b'],
        'enc_ff_b1': enc['ff_b1'], 'enc_ff_b2': enc['ff_b2'],
        'dec_ff_b1': dec['ff_b1'], 'dec_ff_b2': dec['ff_b2'],
        'enc_ln1_g': enc['ln1']['g'], 'enc_ln1_b': enc['ln1']['b'],
        'enc_ln2_g': enc['ln2']['g'], 'enc_ln2_b': enc['ln2']['b'],
        'dec_ln1_g': dec['ln1']['g'], 'dec_ln1_b': dec['ln1']['b'],
        'dec_ln2_g': dec['ln2']['g'], 'dec_ln2_b': dec['ln2']['b'],
        'dec_ln3_g': dec['ln3']['g'], 'dec_ln3_b': dec['ln3']['b'],
        'ptr_v': ptr['v'].reshape(-1),
    }

    # matrix slab: each matrix in its own 8-row-aligned slot, common lane width
    mat_w = max(int(a.shape[1]) for a in mat_vals.values())
    moff, r = {}, 0
    for name, a in mat_vals.items():
        m, n = int(a.shape[0]), int(a.shape[1])
        moff[name] = (r, m, n)
        r += -(-m // 8) * 8
    wmat = np.zeros((r, mat_w), np.float32)
    for name, a in mat_vals.items():
        rr, m, n = moff[name]
        wmat[rr:rr + m, :n] = np.asarray(a, np.float32)

    # vector slab: one row per bias / LN parameter
    vec_w = max(int(a.shape[0]) for a in vec_vals.values())
    voff = {name: (i, int(a.shape[0])) for i, (name, a) in enumerate(vec_vals.items())}
    wvec = np.zeros((len(vec_vals), vec_w), np.float32)
    for name, a in vec_vals.items():
        i, n = voff[name]
        wvec[i, :n] = np.asarray(a, np.float32)

    return jnp.asarray(wmat), jnp.asarray(wvec), moff, voff


# ----------------------------------------------------------------------------
# ConvexNet forward (teacher-forced branch) — one fused pallas_call
# ----------------------------------------------------------------------------
def make_convexnet_forward(moff, voff, *, n_heads, c_embed):
    H, E = n_heads, c_embed

    @jax.jit
    def forward(wmat, wvec, batch_data, batch_lengths, batch_labels):
        B, S, C_in = batch_data.shape
        L = S - 1
        # Keep the grid a multiple of 2 ("parallel") so both v7x TensorCores get a
        # tile; fold the remaining batch elements into the matmul M-dimension.
        n_steps = 2 if (B % 2 == 0 and B >= 2) else 1
        TB = B // n_steps
        S_PAD = max(128, ((S + 127) // 128) * 128)      # lane-dense output width

        lengths = batch_lengths.astype(jnp.int32)
        # PyTorch mask-tiling bug: (batch b, head h) gets the memory mask of batch
        # (b*H + h) % B  (decoder_mask = mask_tensor.repeat((n_heads, 1, 1))).
        perm = (jnp.arange(B, dtype=jnp.int32)[:, None] * H
                + jnp.arange(H, dtype=jnp.int32)[None, :]) % B
        hlen = lengths[perm].reshape(B * H)

        shifted = jnp.concatenate(
            [jnp.zeros_like(batch_labels[:, :1]), batch_labels[:, :-1]],
            axis=1).astype(jnp.int32)                                       # (B, L)
        onehot = (shifted[:, :, None] ==
                  jnp.arange(S, dtype=jnp.int32)[None, None, :]).astype(jnp.float32)

        kernel = functools.partial(
            _convexnet_kernel, TB=TB, S=S, L=L, E=E, H=H, S_PAD=S_PAD,
            moff=moff, voff=voff, eps_ln=1e-5, eps_ptr=1e-16)

        logp_pad = pl.pallas_call(
            kernel,
            out_shape=jax.ShapeDtypeStruct((B, L, S_PAD), jnp.float32),
            grid_spec=pltpu.PrefetchScalarGridSpec(
                num_scalar_prefetch=2,                 # lengths, hlen -> SMEM
                grid=(n_steps,),
                in_specs=[
                    pl.BlockSpec((TB, S, C_in), lambda b, lens, hl: (b, 0, 0)),
                    pl.BlockSpec((TB, L, S), lambda b, lens, hl: (b, 0, 0)),
                    pl.BlockSpec(tuple(wmat.shape), lambda b, lens, hl: (0, 0)),
                    pl.BlockSpec(tuple(wvec.shape), lambda b, lens, hl: (0, 0)),
                ],
                out_specs=pl.BlockSpec((TB, L, S_PAD), lambda b, lens, hl: (b, 0, 0)),
            ),
            compiler_params=pltpu.CompilerParams(dimension_semantics=("parallel",)),
        )(lengths, hlen, batch_data.astype(jnp.float32), onehot, wmat, wvec)

        log_scores = logp_pad[:, :, :S]                                     # (B, L, S)
        # masked_max argmax computed in XLA (review: drop lane-1 store / XLU chain).
        valid = jnp.arange(S, dtype=jnp.int32)[None, None, :] < lengths[:, None, None]
        argmaxs = jnp.argmax(jnp.where(valid, log_scores, F32_MIN),
                             axis=-1).astype(jnp.int32)                     # (B, L)
        return log_scores, argmaxs

    return forward


# ----------------------------------------------------------------------------
if __name__ == "__main__":
    key = jax.random.PRNGKey(0)
    k_param, k_data, k_len, k_labels = jax.random.split(key, 4)

    B, S, C_IN, E, HID, H = 8, 8, 5, 8, 2, 2
    params = init_params(k_param, c_inputs=C_IN, c_embed=E, c_hidden=HID)
    wmat, wvec, moff, voff = prepare_params(params, c_embed=E)   # one-time weight repack
    forward = make_convexnet_forward(moff, voff, n_heads=H, c_embed=E)

    batch_data = jax.random.normal(k_data, (B, S, C_IN), dtype=jnp.float32)
    batch_lengths = jax.random.randint(k_len, (B,), 3, S + 1).astype(jnp.int32)
    batch_labels = jax.random.randint(k_labels, (B, S - 1), 0, S, dtype=jnp.int32)

    log_scores, argmaxs = forward(wmat, wvec, batch_data, batch_lengths, batch_labels)
    jax.block_until_ready((log_scores, argmaxs))

    assert log_scores.shape == (B, S - 1, S) and log_scores.dtype == jnp.float32
    assert argmaxs.shape == (B, S - 1) and argmaxs.dtype == jnp.int32
    assert bool(jnp.all(jnp.isfinite(log_scores)))
    assert bool(jnp.all((argmaxs >= 0) & (argmaxs < S)))
    print("KERNEL_OK")
</pallas_src>

<mosaic_0001>
module attributes {stable_mosaic.version = 11 : i64} {
  func.func @_convexnet_kernel(%arg0: i32, %arg1: memref<8xi32, #tpu.memory_space<smem>>, %arg2: memref<16xi32, #tpu.memory_space<smem>>, %arg3: memref<4x8x5xf32, #tpu.memory_space<vmem>>, %arg4: memref<4x7x8xf32, #tpu.memory_space<vmem>>, %arg5: memref<112x24xf32, #tpu.memory_space<vmem>>, %arg6: memref<22x24xf32, #tpu.memory_space<vmem>>, %arg7: memref<4x7x128xf32, #tpu.memory_space<vmem>>) attributes {dimension_semantics = [#tpu.dimension_semantics<parallel>], iteration_bounds = array<i64: 2>, scalar_prefetch = 2 : i64, scratch_operands = 0 : i64, tpu.core_type = #tpu.core_type<tc>, window_params = [{transform_indices = @transform_0, window_bounds = array<i64: 4, 8, 5>}, {transform_indices = @transform_1, window_bounds = array<i64: 4, 7, 8>}, {pipeline_mode = #tpu.pipeline_mode<synchronous>, transform_indices = @transform_2, window_bounds = array<i64: 112, 24>}, {pipeline_mode = #tpu.pipeline_mode<synchronous>, transform_indices = @transform_3, window_bounds = array<i64: 22, 24>}, {transform_indices = @transform_4, window_bounds = array<i64: 4, 7, 128>}]} {
    %c4_i32 = arith.constant 4 : i32
    %0 = arith.muli %arg0, %c4_i32 : i32
    %1 = tpu.iota {dimensions = array<i32: 2>} : vector<1x1x8xi32>
    %c0_i32 = arith.constant 0 : i32
    %2 = arith.addi %0, %c0_i32 : i32
    %3 = arith.index_cast %2 : i32 to index
    %4 = memref.load %arg1[%3] : memref<8xi32, #tpu.memory_space<smem>>
    %5 = vector.broadcast %4 : i32 to vector<1x1x8xi32>
    %6 = arith.cmpi slt, %1, %5 : vector<1x1x8xi32>
    %7 = arith.extui %6 : vector<1x1x8xi1> to vector<1x1x8xi32>
    %8 = arith.sitofp %7 : vector<1x1x8xi32> to vector<1x1x8xf32>
    %c1_i32 = arith.constant 1 : i32
    %9 = arith.addi %0, %c1_i32 : i32
    %10 = arith.index_cast %9 : i32 to index
    %11 = memref.load %arg1[%10] : memref<8xi32, #tpu.memory_space<smem>>
    %12 = vector.broadcast %11 : i32 to vector<1x1x8xi32>
    %13 = arith.cmpi slt, %1, %12 : vector<1x1x8xi32>
    %14 = arith.extui %13 : vector<1x1x8xi1> to vector<1x1x8xi32>
    %15 = arith.sitofp %14 : vector<1x1x8xi32> to vector<1x1x8xf32>
    %c2_i32 = arith.constant 2 : i32
    %16 = arith.addi %0, %c2_i32 : i32
    %17 = arith.index_cast %16 : i32 to index
    %18 = memref.load %arg1[%17] : memref<8xi32, #tpu.memory_space<smem>>
    %19 = vector.broadcast %18 : i32 to vector<1x1x8xi32>
    %20 = arith.cmpi slt, %1, %19 : vector<1x1x8xi32>
    %21 = arith.extui %20 : vector<1x1x8xi1> to vector<1x1x8xi32>
    %22 = arith.sitofp %21 : vector<1x1x8xi32> to vector<1x1x8xf32>
    %c3_i32 = arith.constant 3 : i32
    %23 = arith.addi %0, %c3_i32 : i32
    %24 = arith.index_cast %23 : i32 to index
    %25 = memref.load %arg1[%24] : memref<8xi32, #tpu.memory_space<smem>>
    %26 = vector.broadcast %25 : i32 to vector<1x1x8xi32>
    %27 = arith.cmpi slt, %1, %26 : vector<1x1x8xi32>
    %28 = arith.extui %27 : vector<1x1x8xi1> to vector<1x1x8xi32>
    %29 = arith.sitofp %28 : vector<1x1x8xi32> to vector<1x1x8xf32>
    %30 = tpu.concatenate %8, %15, %22, %29 in 0 : vector<1x1x8xf32>, vector<1x1x8xf32>, vector<1x1x8xf32>, vector<1x1x8xf32> -> vector<4x1x8xf32>
    %31 = tpu.iota {dimensions = array<i32: 2>} : vector<1x7x7xi32>
    %32 = tpu.iota {dimensions = array<i32: 1>} : vector<1x7x7xi32>
    %33 = arith.cmpi sgt, %31, %32 : vector<1x7x7xi32>
    %cst = arith.constant -1.000000e+30 : f32
    %cst_0 = arith.constant 0.000000e+00 : f32
    %34 = vector.broadcast %cst : f32 to vector<1x7x7xf32>
    %35 = vector.broadcast %cst_0 : f32 to vector<1x7x7xf32>
    %36 = arith.select %33, %34, %35 : vector<1x7x7xi1>, vector<1x7x7xf32>
    %c0_i32_1 = arith.constant 0 : i32
    %37 = arith.addi %0, %c0_i32_1 : i32
    %c2_i32_2 = arith.constant 2 : i32
    %38 = arith.muli %37, %c2_i32_2 : i32
    %c0_i32_3 = arith.constant 0 : i32
    %39 = arith.addi %38, %c0_i32_3 : i32
    %40 = arith.index_cast %39 : i32 to index
    %41 = memref.load %arg2[%40] : memref<16xi32, #tpu.memory_space<smem>>
    %42 = vector.broadcast %41 : i32 to vector<1x1x8xi32>
    %43 = arith.cmpi slt, %1, %42 : vector<1x1x8xi32>
    %cst_4 = arith.constant 0.000000e+00 : f32
    %cst_5 = arith.constant -1.000000e+30 : f32
    %44 = vector.broadcast %cst_4 : f32 to vector<1x1x8xf32>
    %45 = vector.broadcast %cst_5 : f32 to vector<1x1x8xf32>
    %46 = arith.select %43, %44, %45 : vector<1x1x8xi1>, vector<1x1x8xf32>
    %c1_i32_6 = arith.constant 1 : i32
    %47 = arith.addi %0, %c1_i32_6 : i32
    %c2_i32_7 = arith.constant 2 : i32
    %48 = arith.muli %47, %c2_i32_7 : i32
    %c0_i32_8 = arith.constant 0 : i32
    %49 = arith.addi %48, %c0_i32_8 : i32
    %50 = arith.index_cast %49 : i32 to index
    %51 = memref.load %arg2[%50] : memref<16xi32, #tpu.memory_space<smem>>
    %52 = vector.broadcast %51 : i32 to vector<1x1x8xi32>
    %53 = arith.cmpi slt, %1, %52 : vector<1x1x8xi32>
    %cst_9 = arith.constant 0.000000e+00 : f32
    %cst_10 = arith.constant -1.000000e+30 : f32
    %54 = vector.broadcast %cst_9 : f32 to vector<1x1x8xf32>
    %55 = vector.broadcast %cst_10 : f32 to vector<1x1x8xf32>
    %56 = arith.select %53, %54, %55 : vector<1x1x8xi1>, vector<1x1x8xf32>
    %c2_i32_11 = arith.constant 2 : i32
    %57 = arith.addi %0, %c2_i32_11 : i32
    %c2_i32_12 = arith.constant 2 : i32
    %58 = arith.muli %57, %c2_i32_12 : i32
    %c0_i32_13 = arith.constant 0 : i32
    %59 = arith.addi %58, %c0_i32_13 : i32
    %60 = arith.index_cast %59 : i32 to index
    %61 = memref.load %arg2[%60] : memref<16xi32, #tpu.memory_space<smem>>
    %62 = vector.broadcast %61 : i32 to vector<1x1x8xi32>
    %63 = arith.cmpi slt, %1, %62 : vector<1x1x8xi32>
    %cst_14 = arith.constant 0.000000e+00 : f32
    %cst_15 = arith.constant -1.000000e+30 : f32
    %64 = vector.broadcast %cst_14 : f32 to vector<1x1x8xf32>
    %65 = vector.broadcast %cst_15 : f32 to vector<1x1x8xf32>
    %66 = arith.select %63, %64, %65 : vector<1x1x8xi1>, vector<1x1x8xf32>
    %c3_i32_16 = arith.constant 3 : i32
    %67 = arith.addi %0, %c3_i32_16 : i32
    %c2_i32_17 = arith.constant 2 : i32
    %68 = arith.muli %67, %c2_i32_17 : i32
    %c0_i32_18 = arith.constant 0 : i32
    %69 = arith.addi %68, %c0_i32_18 : i32
    %70 = arith.index_cast %69 : i32 to index
    %71 = memref.load %arg2[%70] : memref<16xi32, #tpu.memory_space<smem>>
    %72 = vector.broadcast %71 : i32 to vector<1x1x8xi32>
    %73 = arith.cmpi slt, %1, %72 : vector<1x1x8xi32>
    %cst_19 = arith.constant 0.000000e+00 : f32
    %cst_20 = arith.constant -1.000000e+30 : f32
    %74 = vector.broadcast %cst_19 : f32 to vector<1x1x8xf32>
    %75 = vector.broadcast %cst_20 : f32 to vector<1x1x8xf32>
    %76 = arith.select %73, %74, %75 : vector<1x1x8xi1>, vector<1x1x8xf32>
    %77 = tpu.concatenate %46, %56, %66, %76 in 0 : vector<1x1x8xf32>, vector<1x1x8xf32>, vector<1x1x8xf32>, vector<1x1x8xf32> -> vector<4x1x8xf32>
    %c0_i32_21 = arith.constant 0 : i32
    %78 = arith.addi %0, %c0_i32_21 : i32
    %c2_i32_22 = arith.constant 2 : i32
    %79 = arith.muli %78, %c2_i32_22 : i32
    %c1_i32_23 = arith.constant 1 : i32
    %80 = arith.addi %79, %c1_i32_23 : i32
    %81 = arith.index_cast %80 : i32 to index
    %82 = memref.load %arg2[%81] : memref<16xi32, #tpu.memory_space<smem>>
    %83 = vector.broadcast %82 : i32 to vector<1x1x8xi32>
    %84 = arith.cmpi slt, %1, %83 : vector<1x1x8xi32>
    %cst_24 = arith.constant 0.000000e+00 : f32
    %cst_25 = arith.constant -1.000000e+30 : f32
    %85 = vector.broadcast %cst_24 : f32 to vector<1x1x8xf32>
    %86 = vector.broadcast %cst_25 : f32 to vector<1x1x8xf32>
    %87 = arith.select %84, %85, %86 : vector<1x1x8xi1>, vector<1x1x8xf32>
    %c1_i32_26 = arith.constant 1 : i32
    %88 = arith.addi %0, %c1_i32_26 : i32
    %c2_i32_27 = arith.constant 2 : i32
    %89 = arith.muli %88, %c2_i32_27 : i32
    %c1_i32_28 = arith.constant 1 : i32
    %90 = arith.addi %89, %c1_i32_28 : i32
    %91 = arith.index_cast %90 : i32 to index
    %92 = memref.load %arg2[%91] : memref<16xi32, #tpu.memory_space<smem>>
    %93 = vector.broadcast %92 : i32 to vector<1x1x8xi32>
    %94 = arith.cmpi slt, %1, %93 : vector<1x1x8xi32>
    %cst_29 = arith.constant 0.000000e+00 : f32
    %cst_30 = arith.constant -1.000000e+30 : f32
    %95 = vector.broadcast %cst_29 : f32 to vector<1x1x8xf32>
    %96 = vector.broadcast %cst_30 : f32 to vector<1x1x8xf32>
    %97 = arith.select %94, %95, %96 : vector<1x1x8xi1>, vector<1x1x8xf32>
    %c2_i32_31 = arith.constant 2 : i32
    %98 = arith.addi %0, %c2_i32_31 : i32
    %c2_i32_32 = arith.constant 2 : i32
    %99 = arith.muli %98, %c2_i32_32 : i32
    %c1_i32_33 = arith.constant 1 : i32
    %100 = arith.addi %99, %c1_i32_33 : i32
    %101 = arith.index_cast %100 : i32 to index
    %102 = memref.load %arg2[%101] : memref<16xi32, #tpu.memory_space<smem>>
    %103 = vector.broadcast %102 : i32 to vector<1x1x8xi32>
    %104 = arith.cmpi slt, %1, %103 : vector<1x1x8xi32>
    %cst_34 = arith.constant 0.000000e+00 : f32
    %cst_35 = arith.constant -1.000000e+30 : f32
    %105 = vector.broadcast %cst_34 : f32 to vector<1x1x8xf32>
    %106 = vector.broadcast %cst_35 : f32 to vector<1x1x8xf32>
    %107 = arith.select %104, %105, %106 : vector<1x1x8xi1>, vector<1x1x8xf32>
    %c3_i32_36 = arith.constant 3 : i32
    %108 = arith.addi %0, %c3_i32_36 : i32
    %c2_i32_37 = arith.constant 2 : i32
    %109 = arith.muli %108, %c2_i32_37 : i32
    %c1_i32_38 = arith.constant 1 : i32
    %110 = arith.addi %109, %c1_i32_38 : i32
    %111 = arith.index_cast %110 : i32 to index
    %112 = memref.load %arg2[%111] : memref<16xi32, #tpu.memory_space<smem>>
    %113 = vector.broadcast %112 : i32 to vector<1x1x8xi32>
    %114 = arith.cmpi slt, %1, %113 : vector<1x1x8xi32>
    %cst_39 = arith.constant 0.000000e+00 : f32
    %cst_40 = arith.constant -1.000000e+30 : f32
    %115 = vector.broadcast %cst_39 : f32 to vector<1x1x8xf32>
    %116 = vector.broadcast %cst_40 : f32 to vector<1x1x8xf32>
    %117 = arith.select %114, %115, %116 : vector<1x1x8xi1>, vector<1x1x8xf32>
    %118 = tpu.concatenate %87, %97, %107, %117 in 0 : vector<1x1x8xf32>, vector<1x1x8xf32>, vector<1x1x8xf32>, vector<1x1x8xf32> -> vector<4x1x8xf32>
    %c0 = arith.constant 0 : index
    %c0_41 = arith.constant 0 : index
    %c0_42 = arith.constant 0 : index
    %119 = vector.load %arg3[%c0, %c0_41, %c0_42] : memref<4x8x5xf32, #tpu.memory_space<vmem>>, vector<4x8x5xf32>
    %120 = vector.shape_cast %119 : vector<4x8x5xf32> to vector<32x5xf32>
    %c0_43 = arith.constant 0 : index
    %c0_44 = arith.constant 0 : index
    %121 = vector.load %arg5[%c0_43, %c0_44] : memref<112x24xf32, #tpu.memory_space<vmem>>, vector<5x8xf32>
    %cst_45 = arith.constant dense<0.000000e+00> : vector<32x8xf32>
    %122 = tpu.matmul %120, %121, %cst_45 {dimension_numbers = #tpu.dot_dimension_numbers<[1], [0], [0], [1], [0, 0, 1, 1], [], []>} : vector<32x5xf32>, vector<5x8xf32>, vector<32x8xf32> -> vector<32x8xf32>
    %c8 = arith.constant 8 : index
    %c0_46 = arith.constant 0 : index
    %123 = vector.load %arg5[%c8, %c0_46] : memref<112x24xf32, #tpu.memory_space<vmem>>, vector<8x24xf32>
    %cst_47 = arith.constant dense<0.000000e+00> : vector<32x24xf32>
    %124 = tpu.matmul %122, %123, %cst_47 {dimension_numbers = #tpu.dot_dimension_numbers<[1], [0], [0], [1], [0, 0, 1, 1], [], []>} : vector<32x8xf32>, vector<8x24xf32>, vector<32x24xf32> -> vector<32x24xf32>
    %c0_48 = arith.constant 0 : index
    %c0_49 = arith.constant 0 : index
    %125 = vector.load %arg6[%c0_48, %c0_49] : memref<22x24xf32, #tpu.memory_space<vmem>>, vector<1x24xf32>
    %126 = vector.broadcast %125 : vector<1x24xf32> to vector<32x24xf32>
    %127 = arith.addf %124, %126 : vector<32x24xf32>
    %128 = vector.shape_cast %127 : vector<32x24xf32> to vector<4x8x24xf32>
    %129 = vector.extract_strided_slice %128 {offsets = [0, 0, 0], sizes = [4, 8, 8], strides = [1, 1, 1]} : vector<4x8x24xf32> to vector<4x8x8xf32>
    %130 = vector.extract_strided_slice %128 {offsets = [0, 0, 8], sizes = [4, 8, 8], strides = [1, 1, 1]} : vector<4x8x24xf32> to vector<4x8x8xf32>
    %131 = vector.extract_strided_slice %128 {offsets = [0, 0, 16], sizes = [4, 8, 8], strides = [1, 1, 1]} : vector<4x8x24xf32> to vector<4x8x8xf32>
    %132 = vector.extract_strided_slice %129 {offsets = [0, 0, 0], sizes = [4, 8, 4], strides = [1, 1, 1]} : vector<4x8x8xf32> to vector<4x8x4xf32>
    %cst_50 = arith.constant 5.000000e-01 : f32
    %133 = vector.broadcast %cst_50 : f32 to vector<4x8x4xf32>
    %134 = arith.mulf %132, %133 : vector<4x8x4xf32>
    %135 = vector.extract_strided_slice %130 {offsets = [0, 0, 0], sizes = [4, 8, 4], strides = [1, 1, 1]} : vector<4x8x8xf32> to vector<4x8x4xf32>
    %136 = vector.extract_strided_slice %131 {offsets = [0, 0, 0], sizes = [4, 8, 4], strides = [1, 1, 1]} : vector<4x8x8xf32> to vector<4x8x4xf32>
    "tpu.trace_start"() <{level = 10 : i32, message = "bqd,bkd->bqk"}> : () -> ()
    %cst_51 = arith.constant dense<0.000000e+00> : vector<4x8x8xf32>
    %137 = tpu.matmul %134, %135, %cst_51 {dimension_numbers = #tpu.dot_dimension_numbers<[2], [2], [1], [1], [0, 0, 0, 1, 1, 1], [0], [0]>} : vector<4x8x4xf32>, vector<4x8x4xf32>, vector<4x8x8xf32> -> vector<4x8x8xf32>
    "tpu.trace_stop"() : () -> ()
    %cst_52 = arith.constant dense<0xFF800000> : vector<4x8xf32>
    %138 = vector.multi_reduction <maximumf>, %137, %cst_52 [2] : vector<4x8x8xf32> to vector<4x8xf32>
    %139 = vector.shape_cast %138 : vector<4x8xf32> to vector<4x8x1xf32>
    %140 = vector.broadcast %139 : vector<4x8x1xf32> to vector<4x8x8xf32>
    %141 = arith.subf %137, %140 : vector<4x8x8xf32>
    %142 = math.exp %141 : vector<4x8x8xf32>
    %cst_53 = arith.constant dense<0.000000e+00> : vector<4x8xf32>
    %143 = vector.multi_reduction <add>, %142, %cst_53 [2] : vector<4x8x8xf32> to vector<4x8xf32>
    %144 = vector.shape_cast %143 : vector<4x8xf32> to vector<4x8x1xf32>
    %145 = vector.broadcast %144 : vector<4x8x1xf32> to vector<4x8x8xf32>
    %146 = arith.divf %142, %145 : vector<4x8x8xf32>
    "tpu.trace_start"() <{level = 10 : i32, message = "bqk,bkd->bqd"}> : () -> ()
    %cst_54 = arith.constant dense<0.000000e+00> : vector<4x8x4xf32>
    %147 = tpu.matmul %146, %136, %cst_54 {dimension_numbers = #tpu.dot_dimension_numbers<[2], [1], [1], [2], [0, 0, 0, 1, 1, 2], [0], [0]>} : vector<4x8x8xf32>, vector<4x8x4xf32>, vector<4x8x4xf32> -> vector<4x8x4xf32>
    "tpu.trace_stop"() : () -> ()
    %148 = vector.extract_strided_slice %129 {offsets = [0, 0, 4], sizes = [4, 8, 4], strides = [1, 1, 1]} : vector<4x8x8xf32> to vector<4x8x4xf32>
    %cst_55 = arith.constant 5.000000e-01 : f32
    %149 = vector.broadcast %cst_55 : f32 to vector<4x8x4xf32>
    %150 = arith.mulf %148, %149 : vector<4x8x4xf32>
    %151 = vector.extract_strided_slice %130 {offsets = [0, 0, 4], sizes = [4, 8, 4], strides = [1, 1, 1]} : vector<4x8x8xf32> to vector<4x8x4xf32>
    %152 = vector.extract_strided_slice %131 {offsets = [0, 0, 4], sizes = [4, 8, 4], strides = [1, 1, 1]} : vector<4x8x8xf32> to vector<4x8x4xf32>
    "tpu.trace_start"() <{level = 10 : i32, message = "bqd,bkd->bqk"}> : () -> ()
    %cst_56 = arith.constant dense<0.000000e+00> : vector<4x8x8xf32>
    %153 = tpu.matmul %150, %151, %cst_56 {dimension_numbers = #tpu.dot_dimension_numbers<[2], [2], [1], [1], [0, 0, 0, 1, 1, 1], [0], [0]>} : vector<4x8x4xf32>, vector<4x8x4xf32>, vector<4x8x8xf32> -> vector<4x8x8xf32>
    "tpu.trace_stop"() : () -> ()
    %cst_57 = arith.constant dense<0xFF800000> : vector<4x8xf32>
    %154 = vector.multi_reduction <maximumf>, %153, %cst_57 [2] : vector<4x8x8xf32> to vector<4x8xf32>
    %155 = vector.shape_cast %154 : vector<4x8xf32> to vector<4x8x1xf32>
    %156 = vector.broadcast %155 : vector<4x8x1xf32> to vector<4x8x8xf32>
    %157 = arith.subf %153, %156 : vector<4x8x8xf32>
    %158 = math.exp %157 : vector<4x8x8xf32>
    %cst_58 = arith.constant dense<0.000000e+00> : vector<4x8xf32>
    %159 = vector.multi_reduction <add>, %158, %cst_58 [2] : vector<4x8x8xf32> to vector<4x8xf32>
    %160 = vector.shape_cast %159 : vector<4x8xf32> to vector<4x8x1xf32>
    %161 = vector.broadcast %160 : vector<4x8x1xf32> to vector<4x8x8xf32>
    %162 = arith.divf %158, %161 : vector<4x8x8xf32>
    "tpu.trace_start"() <{level = 10 : i32, message = "bqk,bkd->bqd"}> : () -> ()
    %cst_59 = arith.constant dense<0.000000e+00> : vector<4x8x4xf32>
    %163 = tpu.matmul %162, %152, %cst_59 {dimension_numbers = #tpu.dot_dimension_numbers<[2], [1], [1], [2], [0, 0, 0, 1, 1, 2], [0], [0]>} : vector<4x8x8xf32>, vector<4x8x4xf32>, vector<4x8x4xf32> -> vector<4x8x4xf32>
    "tpu.trace_stop"() : () -> ()
    %164 = tpu.concatenate %147, %163 in 2 : vector<4x8x4xf32>, vector<4x8x4xf32> -> vector<4x8x8xf32>
    %165 = vector.shape_cast %164 : vector<4x8x8xf32> to vector<32x8xf32>
    %c16 = arith.constant 16 : index
    %c0_60 = arith.constant 0 : index
    %166 = vector.load %arg5[%c16, %c0_60] : memref<112x24xf32, #tpu.memory_space<vmem>>, vector<8x8xf32>
    %cst_61 = arith.constant dense<0.000000e+00> : vector<32x8xf32>
    %167 = tpu.matmul %165, %166, %cst_61 {dimension_numbers = #tpu.dot_dimension_numbers<[1], [0], [0], [1], [0, 0, 1, 1], [], []>} : vector<32x8xf32>, vector<8x8xf32>, vector<32x8xf32> -> vector<32x8xf32>
    %c1 = arith.constant 1 : index
    %c0_62 = arith.constant 0 : index
    %168 = vector.load %arg6[%c1, %c0_62] : memref<22x24xf32, #tpu.memory_space<vmem>>, vector<1x8xf32>
    %169 = vector.broadcast %168 : vector<1x8xf32> to vector<32x8xf32>
    %170 = arith.addf %167, %169 : vector<32x8xf32>
    %171 = arith.addf %122, %170 : vector<32x8xf32>
    %cst_63 = arith.constant dense<0.000000e+00> : vector<32xf32>
    %172 = vector.multi_reduction <add>, %171, %cst_63 [1] : vector<32x8xf32> to vector<32xf32>
    %173 = vector.shape_cast %172 : vector<32xf32> to vector<32x1xf32>
    %cst_64 = arith.constant 8.000000e+00 : f32
    %174 = vector.broadcast %cst_64 : f32 to vector<32x1xf32>
    %175 = arith.divf %173, %174 : vector<32x1xf32>
    %176 = vector.broadcast %175 : vector<32x1xf32> to vector<32x8xf32>
    %177 = arith.subf %171, %176 : vector<32x8xf32>
    %178 = arith.mulf %177, %177 : vector<32x8xf32>
    %cst_65 = arith.constant dense<0.000000e+00> : vector<32xf32>
    %179 = vector.multi_reduction <add>, %178, %cst_65 [1] : vector<32x8xf32> to vector<32xf32>
    %180 = vector.shape_cast %179 : vector<32xf32> to vector<32x1xf32>
    %cst_66 = arith.constant 8.000000e+00 : f32
    %181 = vector.broadcast %cst_66 : f32 to vector<32x1xf32>
    %182 = arith.divf %180, %181 : vector<32x1xf32>
    %183 = vector.broadcast %175 : vector<32x1xf32> to vector<32x8xf32>
    %184 = arith.subf %171, %183 : vector<32x8xf32>
    %cst_67 = arith.constant 9.99999974E-6 : f32
    %185 = vector.broadcast %cst_67 : f32 to vector<32x1xf32>
    %186 = arith.addf %182, %185 : vector<32x1xf32>
    %187 = math.rsqrt %186 : vector<32x1xf32>
    %188 = vector.broadcast %187 : vector<32x1xf32> to vector<32x8xf32>
    %189 = arith.mulf %184, %188 : vector<32x8xf32>
    %c11 = arith.constant 11 : index
    %c0_68 = arith.constant 0 : index
    %190 = vector.load %arg6[%c11, %c0_68] : memref<22x24xf32, #tpu.memory_space<vmem>>, vector<1x8xf32>
    %191 = vector.broadcast %190 : vector<1x8xf32> to vector<32x8xf32>
    %192 = arith.mulf %189, %191 : vector<32x8xf32>
    %c12 = arith.constant 12 : index
    %c0_69 = arith.constant 0 : index
    %193 = vector.load %arg6[%c12, %c0_69] : memref<22x24xf32, #tpu.memory_space<vmem>>, vector<1x8xf32>
    %194 = vector.broadcast %193 : vector<1x8xf32> to vector<32x8xf32>
    %195 = arith.addf %192, %194 : vector<32x8xf32>
    %c24 = arith.constant 24 : index
    %c0_70 = arith.constant 0 : index
    %196 = vector.load %arg5[%c24, %c0_70] : memref<112x24xf32, #tpu.memory_space<vmem>>, vector<8x2xf32>
    %cst_71 = arith.constant dense<0.000000e+00> : vector<32x2xf32>
    %197 = tpu.matmul %195, %196, %cst_71 {dimension_numbers = #tpu.dot_dimension_numbers<[1], [0], [0], [1], [0, 0, 1, 1], [], []>} : vector<32x8xf32>, vector<8x2xf32>, vector<32x2xf32> -> vector<32x2xf32>
    %c7 = arith.constant 7 : index
    %c0_72 = arith.constant 0 : index
    %198 = vector.load %arg6[%c7, %c0_72] : memref<22x24xf32, #tpu.memory_space<vmem>>, vector<1x2xf32>
    %199 = vector.broadcast %198 : vector<1x2xf32> to vector<32x2xf32>
    %200 = arith.addf %197, %199 : vector<32x2xf32>
    %cst_73 = arith.constant 0.000000e+00 : f32
    %201 = vector.broadcast %cst_73 : f32 to vector<32x2xf32>
    %202 = arith.maximumf %200, %201 : vector<32x2xf32>
    %c32 = arith.constant 32 : index
    %c0_74 = arith.constant 0 : index
    %203 = vector.load %arg5[%c32, %c0_74] : memref<112x24xf32, #tpu.memory_space<vmem>>, vector<2x8xf32>
    %cst_75 = arith.constant dense<0.000000e+00> : vector<32x8xf32>
    %204 = tpu.matmul %202, %203, %cst_75 {dimension_numbers = #tpu.dot_dimension_numbers<[1], [0], [0], [1], [0, 0, 1, 1], [], []>} : vector<32x2xf32>, vector<2x8xf32>, vector<32x8xf32> -> vector<32x8xf32>
    %c8_76 = arith.constant 8 : index
    %c0_77 = arith.constant 0 : index
    %205 = vector.load %arg6[%c8_76, %c0_77] : memref<22x24xf32, #tpu.memory_space<vmem>>, vector<1x8xf32>
    %206 = vector.broadcast %205 : vector<1x8xf32> to vector<32x8xf32>
    %207 = arith.addf %204, %206 : vector<32x8xf32>
    %208 = arith.addf %195, %207 : vector<32x8xf32>
    %cst_78 = arith.constant dense<0.000000e+00> : vector<32xf32>
    %209 = vector.multi_reduction <add>, %208, %cst_78 [1] : vector<32x8xf32> to vector<32xf32>
    %210 = vector.shape_cast %209 : vector<32xf32> to vector<32x1xf32>
    %cst_79 = arith.constant 8.000000e+00 : f32
    %211 = vector.broadcast %cst_79 : f32 to vector<32x1xf32>
    %212 = arith.divf %210, %211 : vector<32x1xf32>
    %213 = vector.broadcast %212 : vector<32x1xf32> to vector<32x8xf32>
    %214 = arith.subf %208, %213 : vector<32x8xf32>
    %215 = arith.mulf %214, %214 : vector<32x8xf32>
    %cst_80 = arith.constant dense<0.000000e+00> : vector<32xf32>
    %216 = vector.multi_reduction <add>, %215, %cst_80 [1] : vector<32x8xf32> to vector<32xf32>
    %217 = vector.shape_cast %216 : vector<32xf32> to vector<32x1xf32>
    %cst_81 = arith.constant 8.000000e+00 : f32
    %218 = vector.broadcast %cst_81 : f32 to vector<32x1xf32>
    %219 = arith.divf %217, %218 : vector<32x1xf32>
    %220 = vector.broadcast %212 : vector<32x1xf32> to vector<32x8xf32>
    %221 = arith.subf %208, %220 : vector<32x8xf32>
    %cst_82 = arith.constant 9.99999974E-6 : f32
    %222 = vector.broadcast %cst_82 : f32 to vector<32x1xf32>
    %223 = arith.addf %219, %222 : vector<32x1xf32>
    %224 = math.rsqrt %223 : vector<32x1xf32>
    %225 = vector.broadcast %224 : vector<32x1xf32> to vector<32x8xf32>
    %226 = arith.mulf %221, %225 : vector<32x8xf32>
    %c13 = arith.constant 13 : index
    %c0_83 = arith.constant 0 : index
    %227 = vector.load %arg6[%c13, %c0_83] : memref<22x24xf32, #tpu.memory_space<vmem>>, vector<1x8xf32>
    %228 = vector.broadcast %227 : vector<1x8xf32> to vector<32x8xf32>
    %229 = arith.mulf %226, %228 : vector<32x8xf32>
    %c14 = arith.constant 14 : index
    %c0_84 = arith.constant 0 : index
    %230 = vector.load %arg6[%c14, %c0_84] : memref<22x24xf32, #tpu.memory_space<vmem>>, vector<1x8xf32>
    %231 = vector.broadcast %230 : vector<1x8xf32> to vector<32x8xf32>
    %232 = arith.addf %229, %231 : vector<32x8xf32>
    %233 = vector.shape_cast %232 : vector<32x8xf32> to vector<4x8x8xf32>
    %c0_85 = arith.constant 0 : index
    %c0_86 = arith.constant 0 : index
    %c0_87 = arith.constant 0 : index
    %234 = vector.load %arg4[%c0_85, %c0_86, %c0_87] : memref<4x7x8xf32, #tpu.memory_space<vmem>>, vector<4x7x8xf32>
    "tpu.trace_start"() <{level = 10 : i32, message = "bls,bse->ble"}> : () -> ()
    %cst_88 = arith.constant dense<0.000000e+00> : vector<4x7x8xf32>
    %235 = tpu.matmul %234, %233, %cst_88 {dimension_numbers = #tpu.dot_dimension_numbers<[2], [1], [1], [2], [0, 0, 0, 1, 1, 2], [0], [0]>} : vector<4x7x8xf32>, vector<4x8x8xf32>, vector<4x7x8xf32> -> vector<4x7x8xf32>
    "tpu.trace_stop"() : () -> ()
    %236 = vector.shape_cast %235 : vector<4x7x8xf32> to vector<28x8xf32>
    %c40 = arith.constant 40 : index
    %c0_89 = arith.constant 0 : index
    %237 = vector.load %arg5[%c40, %c0_89] : memref<112x24xf32, #tpu.memory_space<vmem>>, vector<8x24xf32>
    %cst_90 = arith.constant dense<0.000000e+00> : vector<28x24xf32>
    %238 = tpu.matmul %236, %237, %cst_90 {dimension_numbers = #tpu.dot_dimension_numbers<[1], [0], [0], [1], [0, 0, 1, 1], [], []>} : vector<28x8xf32>, vector<8x24xf32>, vector<28x24xf32> -> vector<28x24xf32>
    %c2 = arith.constant 2 : index
    %c0_91 = arith.constant 0 : index
    %239 = vector.load %arg6[%c2, %c0_91] : memref<22x24xf32, #tpu.memory_space<vmem>>, vector<1x24xf32>
    %240 = vector.broadcast %239 : vector<1x24xf32> to vector<28x24xf32>
    %241 = arith.addf %238, %240 : vector<28x24xf32>
    %242 = vector.shape_cast %241 : vector<28x24xf32> to vector<4x7x24xf32>
    %243 = vector.extract_strided_slice %242 {offsets = [0, 0, 0], sizes = [4, 7, 8], strides = [1, 1, 1]} : vector<4x7x24xf32> to vector<4x7x8xf32>
    %244 = vector.extract_strided_slice %242 {offsets = [0, 0, 8], sizes = [4, 7, 8], strides = [1, 1, 1]} : vector<4x7x24xf32> to vector<4x7x8xf32>
    %245 = vector.extract_strided_slice %242 {offsets = [0, 0, 16], sizes = [4, 7, 8], strides = [1, 1, 1]} : vector<4x7x24xf32> to vector<4x7x8xf32>
    %246 = vector.extract_strided_slice %243 {offsets = [0, 0, 0], sizes = [4, 7, 4], strides = [1, 1, 1]} : vector<4x7x8xf32> to vector<4x7x4xf32>
    %cst_92 = arith.constant 5.000000e-01 : f32
    %247 = vector.broadcast %cst_92 : f32 to vector<4x7x4xf32>
    %248 = arith.mulf %246, %247 : vector<4x7x4xf32>
    %249 = vector.extract_strided_slice %244 {offsets = [0, 0, 0], sizes = [4, 7, 4], strides = [1, 1, 1]} : vector<4x7x8xf32> to vector<4x7x4xf32>
    %250 = vector.extract_strided_slice %245 {offsets = [0, 0, 0], sizes = [4, 7, 4], strides = [1, 1, 1]} : vector<4x7x8xf32> to vector<4x7x4xf32>
    "tpu.trace_start"() <{level = 10 : i32, message = "bqd,bkd->bqk"}> : () -> ()
    %cst_93 = arith.constant dense<0.000000e+00> : vector<4x7x7xf32>
    %251 = tpu.matmul %248, %249, %cst_93 {dimension_numbers = #tpu.dot_dimension_numbers<[2], [2], [1], [1], [0, 0, 0, 1, 1, 1], [0], [0]>} : vector<4x7x4xf32>, vector<4x7x4xf32>, vector<4x7x7xf32> -> vector<4x7x7xf32>
    "tpu.trace_stop"() : () -> ()
    %252 = vector.broadcast %36 : vector<1x7x7xf32> to vector<4x7x7xf32>
    %253 = arith.addf %251, %252 : vector<4x7x7xf32>
    %cst_94 = arith.constant dense<0xFF800000> : vector<4x7xf32>
    %254 = vector.multi_reduction <maximumf>, %253, %cst_94 [2] : vector<4x7x7xf32> to vector<4x7xf32>
    %255 = vector.shape_cast %254 : vector<4x7xf32> to vector<4x7x1xf32>
    %256 = vector.broadcast %255 : vector<4x7x1xf32> to vector<4x7x7xf32>
    %257 = arith.subf %253, %256 : vector<4x7x7xf32>
    %258 = math.exp %257 : vector<4x7x7xf32>
    %cst_95 = arith.constant dense<0.000000e+00> : vector<4x7xf32>
    %259 = vector.multi_reduction <add>, %258, %cst_95 [2] : vector<4x7x7xf32> to vector<4x7xf32>
    %260 = vector.shape_cast %259 : vector<4x7xf32> to vector<4x7x1xf32>
    %261 = vector.broadcast %260 : vector<4x7x1xf32> to vector<4x7x7xf32>
    %262 = arith.divf %258, %261 : vector<4x7x7xf32>
    "tpu.trace_start"() <{level = 10 : i32, message = "bqk,bkd->bqd"}> : () -> ()
    %cst_96 = arith.constant dense<0.000000e+00> : vector<4x7x4xf32>
    %263 = tpu.matmul %262, %250, %cst_96 {dimension_numbers = #tpu.dot_dimension_numbers<[2], [1], [1], [2], [0, 0, 0, 1, 1, 2], [0], [0]>} : vector<4x7x7xf32>, vector<4x7x4xf32>, vector<4x7x4xf32> -> vector<4x7x4xf32>
    "tpu.trace_stop"() : () -> ()
    %264 = vector.extract_strided_slice %243 {offsets = [0, 0, 4], sizes = [4, 7, 4], strides = [1, 1, 1]} : vector<4x7x8xf32> to vector<4x7x4xf32>
    %cst_97 = arith.constant 5.000000e-01 : f32
    %265 = vector.broadcast %cst_97 : f32 to vector<4x7x4xf32>
    %266 = arith.mulf %264, %265 : vector<4x7x4xf32>
    %267 = vector.extract_strided_slice %244 {offsets = [0, 0, 4], sizes = [4, 7, 4], strides = [1, 1, 1]} : vector<4x7x8xf32> to vector<4x7x4xf32>
    %268 = vector.extract_strided_slice %245 {offsets = [0, 0, 4], sizes = [4, 7, 4], strides = [1, 1, 1]} : vector<4x7x8xf32> to vector<4x7x4xf32>
    "tpu.trace_start"() <{level = 10 : i32, message = "bqd,bkd->bqk"}> : () -> ()
    %cst_98 = arith.constant dense<0.000000e+00> : vector<4x7x7xf32>
    %269 = tpu.matmul %266, %267, %cst_98 {dimension_numbers = #tpu.dot_dimension_numbers<[2], [2], [1], [1], [0, 0, 0, 1, 1, 1], [0], [0]>} : vector<4x7x4xf32>, vector<4x7x4xf32>, vector<4x7x7xf32> -> vector<4x7x7xf32>
    "tpu.trace_stop"() : () -> ()
    %270 = vector.broadcast %36 : vector<1x7x7xf32> to vector<4x7x7xf32>
    %271 = arith.addf %269, %270 : vector<4x7x7xf32>
    %cst_99 = arith.constant dense<0xFF800000> : vector<4x7xf32>
    %272 = vector.multi_reduction <maximumf>, %271, %cst_99 [2] : vector<4x7x7xf32> to vector<4x7xf32>
    %273 = vector.shape_cast %272 : vector<4x7xf32> to vector<4x7x1xf32>
    %274 = vector.broadcast %273 : vector<4x7x1xf32> to vector<4x7x7xf32>
    %275 = arith.subf %271, %274 : vector<4x7x7xf32>
    %276 = math.exp %275 : vector<4x7x7xf32>
    %cst_100 = arith.constant dense<0.000000e+00> : vector<4x7xf32>
    %277 = vector.multi_reduction <add>, %276, %cst_100 [2] : vector<4x7x7xf32> to vector<4x7xf32>
    %278 = vector.shape_cast %277 : vector<4x7xf32> to vector<4x7x1xf32>
    %279 = vector.broadcast %278 : vector<4x7x1xf32> to vector<4x7x7xf32>
    %280 = arith.divf %276, %279 : vector<4x7x7xf32>
    "tpu.trace_start"() <{level = 10 : i32, message = "bqk,bkd->bqd"}> : () -> ()
    %cst_101 = arith.constant dense<0.000000e+00> : vector<4x7x4xf32>
    %281 = tpu.matmul %280, %268, %cst_101 {dimension_numbers = #tpu.dot_dimension_numbers<[2], [1], [1], [2], [0, 0, 0, 1, 1, 2], [0], [0]>} : vector<4x7x7xf32>, vector<4x7x4xf32>, vector<4x7x4xf32> -> vector<4x7x4xf32>
    "tpu.trace_stop"() : () -> ()
    %282 = tpu.concatenate %263, %281 in 2 : vector<4x7x4xf32>, vector<4x7x4xf32> -> vector<4x7x8xf32>
    %283 = vector.shape_cast %282 : vector<4x7x8xf32> to vector<28x8xf32>
    %c48 = arith.constant 48 : index
    %c0_102 = arith.constant 0 : index
    %284 = vector.load %arg5[%c48, %c0_102] : memref<112x24xf32, #tpu.memory_space<vmem>>, vector<8x8xf32>
    %cst_103 = arith.constant dense<0.000000e+00> : vector<28x8xf32>
    %285 = tpu.matmul %283, %284, %cst_103 {dimension_numbers = #tpu.dot_dimension_numbers<[1], [0], [0], [1], [0, 0, 1, 1], [], []>} : vector<28x8xf32>, vector<8x8xf32>, vector<28x8xf32> -> vector<28x8xf32>
    %c3 = arith.constant 3 : index
    %c0_104 = arith.constant 0 : index
    %286 = vector.load %arg6[%c3, %c0_104] : memref<22x24xf32, #tpu.memory_space<vmem>>, vector<1x8xf32>
    %287 = vector.broadcast %286 : vector<1x8xf32> to vector<28x8xf32>
    %288 = arith.addf %285, %287 : vector<28x8xf32>
    %289 = arith.addf %236, %288 : vector<28x8xf32>
    %cst_105 = arith.constant dense<0.000000e+00> : vector<28xf32>
    %290 = vector.multi_reduction <add>, %289, %cst_105 [1] : vector<28x8xf32> to vector<28xf32>
    %291 = vector.shape_cast %290 : vector<28xf32> to vector<28x1xf32>
    %cst_106 = arith.constant 8.000000e+00 : f32
    %292 = vector.broadcast %cst_106 : f32 to vector<28x1xf32>
    %293 = arith.divf %291, %292 : vector<28x1xf32>
    %294 = vector.broadcast %293 : vector<28x1xf32> to vector<28x8xf32>
    %295 = arith.subf %289, %294 : vector<28x8xf32>
    %296 = arith.mulf %295, %295 : vector<28x8xf32>
    %cst_107 = arith.constant dense<0.000000e+00> : vector<28xf32>
    %297 = vector.multi_reduction <add>, %296, %cst_107 [1] : vector<28x8xf32> to vector<28xf32>
    %298 = vector.shape_cast %297 : vector<28xf32> to vector<28x1xf32>
    %cst_108 = arith.constant 8.000000e+00 : f32
    %299 = vector.broadcast %cst_108 : f32 to vector<28x1xf32>
    %300 = arith.divf %298, %299 : vector<28x1xf32>
    %301 = vector.broadcast %293 : vector<28x1xf32> to vector<28x8xf32>
    %302 = arith.subf %289, %301 : vector<28x8xf32>
    %cst_109 = arith.constant 9.99999974E-6 : f32
    %303 = vector.broadcast %cst_109 : f32 to vector<28x1xf32>
    %304 = arith.addf %300, %303 : vector<28x1xf32>
    %305 = math.rsqrt %304 : vector<28x1xf32>
    %306 = vector.broadcast %305 : vector<28x1xf32> to vector<28x8xf32>
    %307 = arith.mulf %302, %306 : vector<28x8xf32>
    %c15 = arith.constant 15 : index
    %c0_110 = arith.constant 0 : index
    %308 = vector.load %arg6[%c15, %c0_110] : memref<22x24xf32, #tpu.memory_space<vmem>>, vector<1x8xf32>
    %309 = vector.broadcast %308 : vector<1x8xf32> to vector<28x8xf32>
    %310 = arith.mulf %307, %309 : vector<28x8xf32>
    %c16_111 = arith.constant 16 : index
    %c0_112 = arith.constant 0 : index
    %311 = vector.load %arg6[%c16_111, %c0_112] : memref<22x24xf32, #tpu.memory_space<vmem>>, vector<1x8xf32>
    %312 = vector.broadcast %311 : vector<1x8xf32> to vector<28x8xf32>
    %313 = arith.addf %310, %312 : vector<28x8xf32>
    %c56 = arith.constant 56 : index
    %c0_113 = arith.constant 0 : index
    %314 = vector.load %arg5[%c56, %c0_113] : memref<112x24xf32, #tpu.memory_space<vmem>>, vector<8x8xf32>
    %cst_114 = arith.constant dense<0.000000e+00> : vector<28x8xf32>
    %315 = tpu.matmul %313, %314, %cst_114 {dimension_numbers = #tpu.dot_dimension_numbers<[1], [0], [0], [1], [0, 0, 1, 1], [], []>} : vector<28x8xf32>, vector<8x8xf32>, vector<28x8xf32> -> vector<28x8xf32>
    %c4 = arith.constant 4 : index
    %c0_115 = arith.constant 0 : index
    %316 = vector.load %arg6[%c4, %c0_115] : memref<22x24xf32, #tpu.memory_space<vmem>>, vector<1x8xf32>
    %317 = vector.broadcast %316 : vector<1x8xf32> to vector<28x8xf32>
    %318 = arith.addf %315, %317 : vector<28x8xf32>
    %319 = vector.shape_cast %318 : vector<28x8xf32> to vector<4x7x8xf32>
    %c64 = arith.constant 64 : index
    %c0_116 = arith.constant 0 : index
    %320 = vector.load %arg5[%c64, %c0_116] : memref<112x24xf32, #tpu.memory_space<vmem>>, vector<8x16xf32>
    %cst_117 = arith.constant dense<0.000000e+00> : vector<32x16xf32>
    %321 = tpu.matmul %232, %320, %cst_117 {dimension_numbers = #tpu.dot_dimension_numbers<[1], [0], [0], [1], [0, 0, 1, 1], [], []>} : vector<32x8xf32>, vector<8x16xf32>, vector<32x16xf32> -> vector<32x16xf32>
    %c5 = arith.constant 5 : index
    %c0_118 = arith.constant 0 : index
    %322 = vector.load %arg6[%c5, %c0_118] : memref<22x24xf32, #tpu.memory_space<vmem>>, vector<1x16xf32>
    %323 = vector.broadcast %322 : vector<1x16xf32> to vector<32x16xf32>
    %324 = arith.addf %321, %323 : vector<32x16xf32>
    %325 = vector.shape_cast %324 : vector<32x16xf32> to vector<4x8x16xf32>
    %326 = vector.extract_strided_slice %325 {offsets = [0, 0, 0], sizes = [4, 8, 8], strides = [1, 1, 1]} : vector<4x8x16xf32> to vector<4x8x8xf32>
    %327 = vector.extract_strided_slice %325 {offsets = [0, 0, 8], sizes = [4, 8, 8], strides = [1, 1, 1]} : vector<4x8x16xf32> to vector<4x8x8xf32>
    %328 = vector.extract_strided_slice %319 {offsets = [0, 0, 0], sizes = [4, 7, 4], strides = [1, 1, 1]} : vector<4x7x8xf32> to vector<4x7x4xf32>
    %cst_119 = arith.constant 5.000000e-01 : f32
    %329 = vector.broadcast %cst_119 : f32 to vector<4x7x4xf32>
    %330 = arith.mulf %328, %329 : vector<4x7x4xf32>
    %331 = vector.extract_strided_slice %326 {offsets = [0, 0, 0], sizes = [4, 8, 4], strides = [1, 1, 1]} : vector<4x8x8xf32> to vector<4x8x4xf32>
    %332 = vector.extract_strided_slice %327 {offsets = [0, 0, 0], sizes = [4, 8, 4], strides = [1, 1, 1]} : vector<4x8x8xf32> to vector<4x8x4xf32>
    "tpu.trace_start"() <{level = 10 : i32, message = "bqd,bkd->bqk"}> : () -> ()
    %cst_120 = arith.constant dense<0.000000e+00> : vector<4x7x8xf32>
    %333 = tpu.matmul %330, %331, %cst_120 {dimension_numbers = #tpu.dot_dimension_numbers<[2], [2], [1], [1], [0, 0, 0, 1, 1, 1], [0], [0]>} : vector<4x7x4xf32>, vector<4x8x4xf32>, vector<4x7x8xf32> -> vector<4x7x8xf32>
    "tpu.trace_stop"() : () -> ()
    %334 = vector.broadcast %77 : vector<4x1x8xf32> to vector<4x7x8xf32>
    %335 = arith.addf %333, %334 : vector<4x7x8xf32>
    %cst_121 = arith.constant dense<0xFF800000> : vector<4x7xf32>
    %336 = vector.multi_reduction <maximumf>, %335, %cst_121 [2] : vector<4x7x8xf32> to vector<4x7xf32>
    %337 = vector.shape_cast %336 : vector<4x7xf32> to vector<4x7x1xf32>
    %338 = vector.broadcast %337 : vector<4x7x1xf32> to vector<4x7x8xf32>
    %339 = arith.subf %335, %338 : vector<4x7x8xf32>
    %340 = math.exp %339 : vector<4x7x8xf32>
    %cst_122 = arith.constant dense<0.000000e+00> : vector<4x7xf32>
    %341 = vector.multi_reduction <add>, %340, %cst_122 [2] : vector<4x7x8xf32> to vector<4x7xf32>
    %342 = vector.shape_cast %341 : vector<4x7xf32> to vector<4x7x1xf32>
    %343 = vector.broadcast %342 : vector<4x7x1xf32> to vector<4x7x8xf32>
    %344 = arith.divf %340, %343 : vector<4x7x8xf32>
    "tpu.trace_start"() <{level = 10 : i32, message = "bqk,bkd->bqd"}> : () -> ()
    %cst_123 = arith.constant dense<0.000000e+00> : vector<4x7x4xf32>
    %345 = tpu.matmul %344, %332, %cst_123 {dimension_numbers = #tpu.dot_dimension_numbers<[2], [1], [1], [2], [0, 0, 0, 1, 1, 2], [0], [0]>} : vector<4x7x8xf32>, vector<4x8x4xf32>, vector<4x7x4xf32> -> vector<4x7x4xf32>
    "tpu.trace_stop"() : () -> ()
    %346 = vector.extract_strided_slice %319 {offsets = [0, 0, 4], sizes = [4, 7, 4], strides = [1, 1, 1]} : vector<4x7x8xf32> to vector<4x7x4xf32>
    %cst_124 = arith.constant 5.000000e-01 : f32
    %347 = vector.broadcast %cst_124 : f32 to vector<4x7x4xf32>
    %348 = arith.mulf %346, %347 : vector<4x7x4xf32>
    %349 = vector.extract_strided_slice %326 {offsets = [0, 0, 4], sizes = [4, 8, 4], strides = [1, 1, 1]} : vector<4x8x8xf32> to vector<4x8x4xf32>
    %350 = vector.extract_strided_slice %327 {offsets = [0, 0, 4], sizes = [4, 8, 4], strides = [1, 1, 1]} : vector<4x8x8xf32> to vector<4x8x4xf32>
    "tpu.trace_start"() <{level = 10 : i32, message = "bqd,bkd->bqk"}> : () -> ()
    %cst_125 = arith.constant dense<0.000000e+00> : vector<4x7x8xf32>
    %351 = tpu.matmul %348, %349, %cst_125 {dimension_numbers = #tpu.dot_dimension_numbers<[2], [2], [1], [1], [0, 0, 0, 1, 1, 1], [0], [0]>} : vector<4x7x4xf32>, vector<4x8x4xf32>, vector<4x7x8xf32> -> vector<4x7x8xf32>
    "tpu.trace_stop"() : () -> ()
    %352 = vector.broadcast %118 : vector<4x1x8xf32> to vector<4x7x8xf32>
    %353 = arith.addf %351, %352 : vector<4x7x8xf32>
    %cst_126 = arith.constant dense<0xFF800000> : vector<4x7xf32>
    %354 = vector.multi_reduction <maximumf>, %353, %cst_126 [2] : vector<4x7x8xf32> to vector<4x7xf32>
    %355 = vector.shape_cast %354 : vector<4x7xf32> to vector<4x7x1xf32>
    %356 = vector.broadcast %355 : vector<4x7x1xf32> to vector<4x7x8xf32>
    %357 = arith.subf %353, %356 : vector<4x7x8xf32>
    %358 = math.exp %357 : vector<4x7x8xf32>
    %cst_127 = arith.constant dense<0.000000e+00> : vector<4x7xf32>
    %359 = vector.multi_reduction <add>, %358, %cst_127 [2] : vector<4x7x8xf32> to vector<4x7xf32>
    %360 = vector.shape_cast %359 : vector<4x7xf32> to vector<4x7x1xf32>
    %361 = vector.broadcast %360 : vector<4x7x1xf32> to vector<4x7x8xf32>
    %362 = arith.divf %358, %361 : vector<4x7x8xf32>
    "tpu.trace_start"() <{level = 10 : i32, message = "bqk,bkd->bqd"}> : () -> ()
    %cst_128 = arith.constant dense<0.000000e+00> : vector<4x7x4xf32>
    %363 = tpu.matmul %362, %350, %cst_128 {dimension_numbers = #tpu.dot_dimension_numbers<[2], [1], [1], [2], [0, 0, 0, 1, 1, 2], [0], [0]>} : vector<4x7x8xf32>, vector<4x8x4xf32>, vector<4x7x4xf32> -> vector<4x7x4xf32>
    "tpu.trace_stop"() : () -> ()
    %364 = tpu.concatenate %345, %363 in 2 : vector<4x7x4xf32>, vector<4x7x4xf32> -> vector<4x7x8xf32>
    %365 = vector.shape_cast %364 : vector<4x7x8xf32> to vector<28x8xf32>
    %c72 = arith.constant 72 : index
    %c0_129 = arith.constant 0 : index
    %366 = vector.load %arg5[%c72, %c0_129] : memref<112x24xf32, #tpu.memory_space<vmem>>, vector<8x8xf32>
    %cst_130 = arith.constant dense<0.000000e+00> : vector<28x8xf32>
    %367 = tpu.matmul %365, %366, %cst_130 {dimension_numbers = #tpu.dot_dimension_numbers<[1], [0], [0], [1], [0, 0, 1, 1], [], []>} : vector<28x8xf32>, vector<8x8xf32>, vector<28x8xf32> -> vector<28x8xf32>
    %c6 = arith.constant 6 : index
    %c0_131 = arith.constant 0 : index
    %368 = vector.load %arg6[%c6, %c0_131] : memref<22x24xf32, #tpu.memory_space<vmem>>, vector<1x8xf32>
    %369 = vector.broadcast %368 : vector<1x8xf32> to vector<28x8xf32>
    %370 = arith.addf %367, %369 : vector<28x8xf32>
    %371 = arith.addf %313, %370 : vector<28x8xf32>
    %cst_132 = arith.constant dense<0.000000e+00> : vector<28xf32>
    %372 = vector.multi_reduction <add>, %371, %cst_132 [1] : vector<28x8xf32> to vector<28xf32>
    %373 = vector.shape_cast %372 : vector<28xf32> to vector<28x1xf32>
    %cst_133 = arith.constant 8.000000e+00 : f32
    %374 = vector.broadcast %cst_133 : f32 to vector<28x1xf32>
    %375 = arith.divf %373, %374 : vector<28x1xf32>
    %376 = vector.broadcast %375 : vector<28x1xf32> to vector<28x8xf32>
    %377 = arith.subf %371, %376 : vector<28x8xf32>
    %378 = arith.mulf %377, %377 : vector<28x8xf32>
    %cst_134 = arith.constant dense<0.000000e+00> : vector<28xf32>
    %379 = vector.multi_reduction <add>, %378, %cst_134 [1] : vector<28x8xf32> to vector<28xf32>
    %380 = vector.shape_cast %379 : vector<28xf32> to vector<28x1xf32>
    %cst_135 = arith.constant 8.000000e+00 : f32
    %381 = vector.broadcast %cst_135 : f32 to vector<28x1xf32>
    %382 = arith.divf %380, %381 : vector<28x1xf32>
    %383 = vector.broadcast %375 : vector<28x1xf32> to vector<28x8xf32>
    %384 = arith.subf %371, %383 : vector<28x8xf32>
    %cst_136 = arith.constant 9.99999974E-6 : f32
    %385 = vector.broadcast %cst_136 : f32 to vector<28x1xf32>
    %386 = arith.addf %382, %385 : vector<28x1xf32>
    %387 = math.rsqrt %386 : vector<28x1xf32>
    %388 = vector.broadcast %387 : vector<28x1xf32> to vector<28x8xf32>
    %389 = arith.mulf %384, %388 : vector<28x8xf32>
    %c17 = arith.constant 17 : index
    %c0_137 = arith.constant 0 : index
    %390 = vector.load %arg6[%c17, %c0_137] : memref<22x24xf32, #tpu.memory_space<vmem>>, vector<1x8xf32>
    %391 = vector.broadcast %390 : vector<1x8xf32> to vector<28x8xf32>
    %392 = arith.mulf %389, %391 : vector<28x8xf32>
    %c18 = arith.constant 18 : index
    %c0_138 = arith.constant 0 : index
    %393 = vector.load %arg6[%c18, %c0_138] : memref<22x24xf32, #tpu.memory_space<vmem>>, vector<1x8xf32>
    %394 = vector.broadcast %393 : vector<1x8xf32> to vector<28x8xf32>
    %395 = arith.addf %392, %394 : vector<28x8xf32>
    %c80 = arith.constant 80 : index
    %c0_139 = arith.constant 0 : index
    %396 = vector.load %arg5[%c80, %c0_139] : memref<112x24xf32, #tpu.memory_space<vmem>>, vector<8x2xf32>
    %cst_140 = arith.constant dense<0.000000e+00> : vector<28x2xf32>
    %397 = tpu.matmul %395, %396, %cst_140 {dimension_numbers = #tpu.dot_dimension_numbers<[1], [0], [0], [1], [0, 0, 1, 1], [], []>} : vector<28x8xf32>, vector<8x2xf32>, vector<28x2xf32> -> vector<28x2xf32>
    %c9 = arith.constant 9 : index
    %c0_141 = arith.constant 0 : index
    %398 = vector.load %arg6[%c9, %c0_141] : memref<22x24xf32, #tpu.memory_space<vmem>>, vector<1x2xf32>
    %399 = vector.broadcast %398 : vector<1x2xf32> to vector<28x2xf32>
    %400 = arith.addf %397, %399 : vector<28x2xf32>
    %cst_142 = arith.constant 0.000000e+00 : f32
    %401 = vector.broadcast %cst_142 : f32 to vector<28x2xf32>
    %402 = arith.maximumf %400, %401 : vector<28x2xf32>
    %c88 = arith.constant 88 : index
    %c0_143 = arith.constant 0 : index
    %403 = vector.load %arg5[%c88, %c0_143] : memref<112x24xf32, #tpu.memory_space<vmem>>, vector<2x8xf32>
    %cst_144 = arith.constant dense<0.000000e+00> : vector<28x8xf32>
    %404 = tpu.matmul %402, %403, %cst_144 {dimension_numbers = #tpu.dot_dimension_numbers<[1], [0], [0], [1], [0, 0, 1, 1], [], []>} : vector<28x2xf32>, vector<2x8xf32>, vector<28x8xf32> -> vector<28x8xf32>
    %c10 = arith.constant 10 : index
    %c0_145 = arith.constant 0 : index
    %405 = vector.load %arg6[%c10, %c0_145] : memref<22x24xf32, #tpu.memory_space<vmem>>, vector<1x8xf32>
    %406 = vector.broadcast %405 : vector<1x8xf32> to vector<28x8xf32>
    %407 = arith.addf %404, %406 : vector<28x8xf32>
    %408 = arith.addf %395, %407 : vector<28x8xf32>
    %cst_146 = arith.constant dense<0.000000e+00> : vector<28xf32>
    %409 = vector.multi_reduction <add>, %408, %cst_146 [1] : vector<28x8xf32> to vector<28xf32>
    %410 = vector.shape_cast %409 : vector<28xf32> to vector<28x1xf32>
    %cst_147 = arith.constant 8.000000e+00 : f32
    %411 = vector.broadcast %cst_147 : f32 to vector<28x1xf32>
    %412 = arith.divf %410, %411 : vector<28x1xf32>
    %413 = vector.broadcast %412 : vector<28x1xf32> to vector<28x8xf32>
    %414 = arith.subf %408, %413 : vector<28x8xf32>
    %415 = arith.mulf %414, %414 : vector<28x8xf32>
    %cst_148 = arith.constant dense<0.000000e+00> : vector<28xf32>
    %416 = vector.multi_reduction <add>, %415, %cst_148 [1] : vector<28x8xf32> to vector<28xf32>
    %417 = vector.shape_cast %416 : vector<28xf32> to vector<28x1xf32>
    %cst_149 = arith.constant 8.000000e+00 : f32
    %418 = vector.broadcast %cst_149 : f32 to vector<28x1xf32>
    %419 = arith.divf %417, %418 : vector<28x1xf32>
    %420 = vector.broadcast %412 : vector<28x1xf32> to vector<28x8xf32>
    %421 = arith.subf %408, %420 : vector<28x8xf32>
    %cst_150 = arith.constant 9.99999974E-6 : f32
    %422 = vector.broadcast %cst_150 : f32 to vector<28x1xf32>
    %423 = arith.addf %419, %422 : vector<28x1xf32>
    %424 = math.rsqrt %423 : vector<28x1xf32>
    %425 = vector.broadcast %424 : vector<28x1xf32> to vector<28x8xf32>
    %426 = arith.mulf %421, %425 : vector<28x8xf32>
    %c19 = arith.constant 19 : index
    %c0_151 = arith.constant 0 : index
    %427 = vector.load %arg6[%c19, %c0_151] : memref<22x24xf32, #tpu.memory_space<vmem>>, vector<1x8xf32>
    %428 = vector.broadcast %427 : vector<1x8xf32> to vector<28x8xf32>
    %429 = arith.mulf %426, %428 : vector<28x8xf32>
    %c20 = arith.constant 20 : index
    %c0_152 = arith.constant 0 : index
    %430 = vector.load %arg6[%c20, %c0_152] : memref<22x24xf32, #tpu.memory_space<vmem>>, vector<1x8xf32>
    %431 = vector.broadcast %430 : vector<1x8xf32> to vector<28x8xf32>
    %432 = arith.addf %429, %431 : vector<28x8xf32>
    %c96 = arith.constant 96 : index
    %c0_153 = arith.constant 0 : index
    %433 = vector.load %arg5[%c96, %c0_153] : memref<112x24xf32, #tpu.memory_space<vmem>>, vector<8x8xf32>
    %cst_154 = arith.constant dense<0.000000e+00> : vector<32x8xf32>
    %434 = tpu.matmul %232, %433, %cst_154 {dimension_numbers = #tpu.dot_dimension_numbers<[1], [0], [0], [1], [0, 0, 1, 1], [], []>} : vector<32x8xf32>, vector<8x8xf32>, vector<32x8xf32> -> vector<32x8xf32>
    %435 = vector.shape_cast %434 : vector<32x8xf32> to vector<4x8x8xf32>
    %c104 = arith.constant 104 : index
    %c0_155 = arith.constant 0 : index
    %436 = vector.load %arg5[%c104, %c0_155] : memref<112x24xf32, #tpu.memory_space<vmem>>, vector<8x8xf32>
    %cst_156 = arith.constant dense<0.000000e+00> : vector<28x8xf32>
    %437 = tpu.matmul %432, %436, %cst_156 {dimension_numbers = #tpu.dot_dimension_numbers<[1], [0], [0], [1], [0, 0, 1, 1], [], []>} : vector<28x8xf32>, vector<8x8xf32>, vector<28x8xf32> -> vector<28x8xf32>
    %438 = vector.shape_cast %437 : vector<28x8xf32> to vector<4x7x8xf32>
    %439 = vector.shape_cast %438 : vector<4x7x8xf32> to vector<4x7x1x8xf32>
    %440 = vector.shape_cast %435 : vector<4x8x8xf32> to vector<4x1x8x8xf32>
    %441 = vector.broadcast %439 : vector<4x7x1x8xf32> to vector<4x7x8x8xf32>
    %442 = vector.broadcast %440 : vector<4x1x8x8xf32> to vector<4x7x8x8xf32>
    %443 = arith.addf %441, %442 : vector<4x7x8x8xf32>
    %444 = math.tanh %443 : vector<4x7x8x8xf32>
    %c21 = arith.constant 21 : index
    %c0_157 = arith.constant 0 : index
    %445 = vector.load %arg6[%c21, %c0_157] : memref<22x24xf32, #tpu.memory_space<vmem>>, vector<1x8xf32>
    %446 = vector.shape_cast %445 : vector<1x8xf32> to vector<1x1x1x8xf32>
    %447 = vector.broadcast %446 : vector<1x1x1x8xf32> to vector<4x7x8x8xf32>
    %448 = arith.mulf %444, %447 : vector<4x7x8x8xf32>
    %cst_158 = arith.constant dense<0.000000e+00> : vector<4x7x8xf32>
    %449 = vector.multi_reduction <add>, %448, %cst_158 [3] : vector<4x7x8x8xf32> to vector<4x7x8xf32>
    %cst_159 = arith.constant 1.000000e-16 : f32
    %450 = vector.broadcast %cst_159 : f32 to vector<4x1x8xf32>
    %451 = arith.addf %30, %450 : vector<4x1x8xf32>
    %452 = math.log %451 : vector<4x1x8xf32>
    %453 = vector.broadcast %452 : vector<4x1x8xf32> to vector<4x7x8xf32>
    %454 = arith.addf %449, %453 : vector<4x7x8xf32>
    %cst_160 = arith.constant dense<0xFF800000> : vector<4x7xf32>
    %455 = vector.multi_reduction <maximumf>, %454, %cst_160 [2] : vector<4x7x8xf32> to vector<4x7xf32>
    %456 = vector.shape_cast %455 : vector<4x7xf32> to vector<4x7x1xf32>
    %457 = vector.broadcast %456 : vector<4x7x1xf32> to vector<4x7x8xf32>
    %458 = arith.subf %454, %457 : vector<4x7x8xf32>
    %459 = math.exp %458 : vector<4x7x8xf32>
    %cst_161 = arith.constant dense<0.000000e+00> : vector<4x7xf32>
    %460 = vector.multi_reduction <add>, %459, %cst_161 [2] : vector<4x7x8xf32> to vector<4x7xf32>
    %461 = vector.shape_cast %460 : vector<4x7xf32> to vector<4x7x1xf32>
    %462 = math.log %461 : vector<4x7x1xf32>
    %463 = arith.addf %462, %456 : vector<4x7x1xf32>
    %464 = vector.broadcast %463 : vector<4x7x1xf32> to vector<4x7x8xf32>
    %465 = arith.subf %454, %464 : vector<4x7x8xf32>
    %cst_162 = arith.constant -1.000000e+30 : f32
    %466 = vector.broadcast %cst_162 : f32 to vector<4x7x120xf32>
    %467 = tpu.concatenate %465, %466 in 2 : vector<4x7x8xf32>, vector<4x7x120xf32> -> vector<4x7x128xf32>
    %c0_163 = arith.constant 0 : index
    %c0_164 = arith.constant 0 : index
    %c0_165 = arith.constant 0 : index
    %468 = vector.load %arg7[%c0_163, %c0_164, %c0_165] : memref<4x7x128xf32, #tpu.memory_space<vmem>>, vector<4x7x128xf32>
    tpu.vector_store %arg7[%c0_163, %c0_164, %c0_165], %467 {strides = array<i32>} : memref<4x7x128xf32, #tpu.memory_space<vmem>>, vector<4x7x128xf32>,
    return
  }
  func.func @transform_0(%arg0: i32, %arg1: memref<8xi32, #tpu.memory_space<smem>>, %arg2: memref<16xi32, #tpu.memory_space<smem>>) -> (i32, i32, i32) {
    %c0_i32 = arith.constant 0 : i32
    %c0_i32_0 = arith.constant 0 : i32
    %c0_i32_1 = arith.constant 0 : i32
    return %arg0, %c0_i32, %c0_i32_0 : i32, i32, i32
  }
  func.func @transform_1(%arg0: i32, %arg1: memref<8xi32, #tpu.memory_space<smem>>, %arg2: memref<16xi32, #tpu.memory_space<smem>>) -> (i32, i32, i32) {
    %c0_i32 = arith.constant 0 : i32
    %c0_i32_0 = arith.constant 0 : i32
    %c0_i32_1 = arith.constant 0 : i32
    return %arg0, %c0_i32, %c0_i32_0 : i32, i32, i32
  }
  func.func @transform_2(%arg0: i32, %arg1: memref<8xi32, #tpu.memory_space<smem>>, %arg2: memref<16xi32, #tpu.memory_space<smem>>) -> (i32, i32) {
    %c0_i32 = arith.constant 0 : i32
    %c0_i32_0 = arith.constant 0 : i32
    %c0_i32_1 = arith.constant 0 : i32
    return %c0_i32, %c0_i32_0 : i32, i32
  }
  func.func @transform_3(%arg0: i32, %arg1: memref<8xi32, #tpu.memory_space<smem>>, %arg2: memref<16xi32, #tpu.memory_space<smem>>) -> (i32, i32) {
    %c0_i32 = arith.constant 0 : i32
    %c0_i32_0 = arith.constant 0 : i32
    %c0_i32_1 = arith.constant 0 : i32
    return %c0_i32, %c0_i32_0 : i32, i32
  }
  func.func @transform_4(%arg0: i32, %arg1: memref<8xi32, #tpu.memory_space<smem>>, %arg2: memref<16xi32, #tpu.memory_space<smem>>) -> (i32, i32, i32) {
    %c0_i32 = arith.constant 0 : i32
    %c0_i32_0 = arith.constant 0 : i32
    %c0_i32_1 = arith.constant 0 : i32
    return %arg0, %c0_i32, %c0_i32_0 : i32, i32, i32
  }
}

</mosaic_0001>

<bundles_post_ra>
// kernel: forward.1
= control target key start
LH: loop header
LB: loop body
LE: loop exit
PB: predicated region body
PF: predicated region fallthrough
CT: control target
= control target key end

     0   :  { %s19523_s0 = inlined_call_operand.vmem [shape: s32[8], index: 0, kind: input, shape index: {}]   ;;  %s19524_s2 = inlined_call_operand.vmem [shape: f32[8,8,5], index: 2, kind: input, shape index: {}]   ;;  %s19525_s3 = inlined_call_operand.vmem [shape: f32[8,7,8], index: 3, kind: input, shape index: {}]   ;;  %s19526_s4 = inlined_call_operand.vmem [shape: f32[112,24], index: 4, kind: input, shape index: {}]   ;;  %s19527_s5 = inlined_call_operand.vmem [shape: f32[22,24], index: 5, kind: input, shape index: {}]   ;;  %s19528_s6 = inlined_call_operand.vmem [shape: f32[8,7,128], index: 6, kind: output, shape index: {}]   ;;  %s19529_s1 = inlined_call_operand.vmem [shape: s32[16], index: 1, kind: input, shape index: {}]  }
   0x1   :  { %s11_s23 = sshll.u32 %s19523_s0, 4  ;;  %s15_s26 = sshll.u32 %s19529_s1, 4  ;;  %s12_s23 = int_to_ptr.vmem [resolvable:$true] %s11_s23  ;;  %s16_s26 = int_to_ptr.vmem [resolvable:$true] %s15_s26 }
   0x2   :  { %s15608_s27 = scalar_lea.vmem %s12_s23, 16  ;;  %p15613_p1 = scmp.lt.s32.totalorder %s12_s23, %s12_s23 }
   0x3   :  { %p15609_p0 = scmp.ne.s32.totalorder %s12_s23, %s15608_s27  ;;  %p15614_p2 = scmp.lt.s32.totalorder %s15608_s27, %s15608_s27 }
   0x5   :  { %p15615_p3 = por %p15614_p2, %p15613_p1 }
   0x7   :  { %p15616_p4 = pnand %p15615_p3, %p15609_p0 }
   0x9   :  { %15619 = shalt.err (!%p15616_p4)  }
   0xa   :  { %s15642_s28 = smov [#allocation3]   ;;  %s15620_s29 = scalar_lea.vmem %s16_s26, 16 }
   0xb   :  { %14 = dma.vmem_to_smem %s12_s23, 16, %s15642_s28, [#allocation2] }
   0xc   :  { %p15621_p5 = scmp.ne.s32.totalorder %s16_s26, %s15620_s29  ;;  %p15625_p6 = scmp.lt.s32.totalorder %s16_s26, %s16_s26 }
   0xd   :  { %p15626_p7 = scmp.lt.s32.totalorder %s15620_s29, %s15620_s29 }
   0xf   :  { %p15627_p8 = por %p15626_p7, %p15625_p6 }
  0x11   :  { %p15628_p9 = pnand %p15627_p8, %p15621_p5 }
  0x13   :  { %15631 = shalt.err (!%p15628_p9)  }
  0x14   :  { %s15643_s0 = smov [#allocation4]  }
  0x15   :  { %18 = dma.vmem_to_smem %s16_s26, 16, %s15643_s0, [#allocation2] }
  0x16   :  { %15636 = dma.done.wait [#allocation2], 32 }
  0x17   :  { %15637 = vsyncadd [#allocation2], 4294967264 }
  0x18   :  { %20 = sfence }
  0x19   :  { %s15696_s1 = smov 0  }
  0x1a LB: > { %s14568_s30 = sadd.s32 4294967295, %s15640_s1   ;;  %p14572_p10 = scmp.ge.s32.totalorder %s15640_s1, 1  ;;  %s15640_s1 = sphi %s15696_s1, %s26_s1  }
  0x1b   : > { %p186_p11 = scmp.lt.s32.totalorder %s15640_s1, 3 }
  0x1d   : > { %p187_p12 = pnand %p14572_p10, %p186_p11 }
  0x1f   : > { %190 = sbr.rel (%p187_p12) target bundleno = 10327 (0x2857), region = 36 }
  0x26   : > { %v309_v0 = vld [vmem:[%s19526_s4] sm:$0x1f]  ;;  %vm323_vm0 = vcmask 1044480   ;;  %s15709_s9 = sshll.u32 %s14568_s30, 2  ;;  %vm310_vm1 = vcmask 39936   ;;  %v412_v5 = vld [vmem:[%s19526_s4 + $0x8] sm:$0xff] }
  0x27   : > { %14947 = vmatprep.subr.msk.mxu0 %vm323_vm0, %v309_v0  ;;  %p218_p13 = scmp.lt.s32.totalorder %s15709_s9, 7  ;;  %15319 = vmatprep.subr.msk.mxu1 %vm323_vm0, %v309_v0  ;;  %vm418_vm2 = vcmask 64512   ;;  %v19531_v10 = vmov 0.0   ;;  %vm15645_vm3 = vmmov 0   ;;  %v14593_v11 = vld [vmem:[%s19527_s5] ss:$0 sm:$0xff] }
  0x28   : > { %14948 = vmatpush3.msk.msra.mxu0 %vm323_vm0, %v309_v0  ;;  %15320 = vmatpush3.msk.msra.mxu1 %vm323_vm0, %v309_v0  ;;  %s15646_s19 = smov 120   ;;  %vm523_vm4 = vcmask 31744   ;;  %s15647_s20 = smov 112   ;;  %vm2165_vm5 = vcmask 1041408   ;;  %vm2152_vm6 = vcmask 15360   ;;  %vm4065_vm8 = vcmask 55296  }
  0x29   : > { %s219_s10 = scalar_select %p218_p13, %s15709_s9, 7  ;;  %14955 = vmatprep.subr.mxu1 %v412_v5  ;;  %14963 = vmatprep.subr.mxu0 %v19531_v10  ;;  %vm4116_vm9 = vcmask 1046528   ;;  %vm4112_vm10 = vcmask 56320   ;;  %vm6013_vm11 = vcmask 60416   ;;  %vm7970_vm14 = vcmask 63488  }
  0x2a   : > { %s15648_s21 = smov 116   ;;  %s15649_s22 = smov 124  }
  0x2b   : > { %s15713_s11 = sshll.u32 %s219_s10, 3  ;;  %s15650_s23 = smov 108  }
  0x2c   : > { %s221_s14 = scalar_lea.vmem %s19524_s2, %s15713_s11  ;;  %s15651_s26 = smov 4  }
  0x2d   : > { %v305_v1 = vld [vmem:[%s221_s14] sm:$0xff]  ;;  %v306_v2 = vld [vmem:[%s221_s14 + $0x8] sm:$0xff]  ;;  %v307_v3 = vld [vmem:[%s221_s14 + $0x10] sm:$0xff]  ;;  %s15984_s29 = scalar_lea.vmem %s19525_s3, %s15713_s11  ;;  %s17400_s12 = sshll.u32 %s14568_s30, 3 }
  0x2e   : > { %14949 = vmatprep.mubr.msk.f32.mxu0 %vm310_vm1, %v305_v1  ;;  %14952 = vmatprep.mubr.msk.f32.mxu1 %vm310_vm1, %v307_v3  ;;  %v308_v4 = vld [vmem:[%s221_s14 + $0x18] sm:$0xff]  ;;  %s266_s13 = sld [smem:[#allocation4 + %s17400_s12]]  ;;  %s14767_s14 = sadd.s32 4, %s17400_s12 }
  0x2f   : > { %14950 = vmatmul.mubr.msk.f32.vlgmr.msra.gmra.mrb[0].mxu0 %vm310_vm1, %v306_v2  ;;  %14953 = vmatmul.mubr.msk.f32.vlgmr.msra.gmra.mrb[0].mxu1 %vm310_vm1, %v308_v4  ;;  %s14769_s30 = sadd.s32 6, %s17400_s12  ;;  %s276_s15 = sld [smem:[#allocation4 + %s14767_s14]] }
  0x30   : > { %14956 = vmatpush3.msra.mxu1 %v412_v5  ;;  %14965 = vmatprep.mubr.msk.f32.mxu0 %vm15645_vm3, %v19531_v10  ;;  %s281_s16 = sld [smem:[#allocation4 + %s14769_s30]]  ;;  %s295_s18 = sadd.s32 1, %s14767_s14 }
  0x31   : > { %14968 = vmatprep.subr.mxu1 %v19531_v10  ;;  %s300_s25 = sadd.s32 1, %s14769_s30  ;;  %s296_s27 = sld [smem:[#allocation4 + %s295_s18]] }
  0x32   : > { %s301_s28 = sld [smem:[#allocation4 + %s300_s25]]  ;;  %s19469_s14 = scalar_lea.vmem %s19528_s6, %s15713_s11 }
  0x33   : > { %s238_s25 = sld [smem:[#allocation3 + %s15709_s9]] }
 0x102   : > { %v15722_v6 = vpop.f32.mrb[0].mxu0  ;;  %v15724_v7 = vpop.f32.mrb[0].mxu1 }
 0x103   : > { %v15726_v8 = vpop.f32.mrb[1].mxu0  ;;  %v15728_v9 = vpop.f32.mrb[1].mxu1 }
 0x104   : > { %14957 = vmatprep.mubr.msk.f32.mxu1 %vm418_vm2, %v15726_v8 }
 0x105   : > { %14958 = vmatmul.mubr.msk.f32.vlgmr.msra.gmra.mrb[2].mxu1 %vm418_vm2, %v15722_v6 }
 0x106   : > { %14960 = vmatprep.mubr.msk.f32.mxu1 %vm418_vm2, %v15728_v9 }
 0x109   : > { %14961 = vmatmul.mubr.msk.f32.gmra.mrb[4].mxu1 %vm418_vm2, %v15724_v7 }
 0x10a   : > { %14970 = vmatprep.mubr.msk.f32.mxu1 %vm15645_vm3, %v19531_v10 }
 0x1d8   : > { %v14959_v12 = vpop.f32.mrb[2].mxu1 }
 0x1d9   : > { %v497_v13 = vpop.f32.mrb[3].mxu1  ;;  %v15751_v17 = vadd.f32 %v14959_v12, %v14593_v11 }
 0x1da   : > { %v15747_v14 = vadd.f32 %v14593_v11, %v497_v13 }
 0x1db   : > { %v15773_v24 = vmul.f32 0.5, %v15751_v17 }
 0x1dc   : > { %v14962_v15 = vpop.f32.mrb[4].mxu1  ;;  %521 = vrot.lane.b32.xlu0 %v15747_v14, %s15646_s19  ;;  %v15766_v21 = vmul.f32 0.5, %v15747_v14 }
 0x1dd   : > { %v507_v16 = vpop.f32.mrb[5].mxu1  ;;  %v15755_v19 = vadd.f32 %v14962_v15, %v14593_v11 }
 0x1de   : > { %v15753_v18 = vadd.f32 %v14593_v11, %v507_v16 }
 0x1df   : > { %v15790_v27 = vmul.f32 0.5, %v15755_v19 }
 0x1e0   : > { %678 = vrot.lane.b32.xlu1 %v15753_v18, %s15646_s19  ;;  %600 = vrot.lane.b32.xlu0 %v15751_v17, %s15646_s19  ;;  %v15778_v25 = vmul.f32 0.5, %v15753_v18 }
 0x1e4   : > { %756 = vrot.lane.b32.xlu1 %v15755_v19, %s15646_s19 }
 0x24e   : > { %v522_v20 = vpop.permute.xlu0 %521 }
 0x24f   : > { %14964 = vmatpush3.xpose.msk.msra.mxu0 %vm523_vm4, %v522_v20 }
 0x250   : > { %14973 = vmatprep.subr.mxu0 %v19531_v10 }
 0x252   : > { %v679_v22 = vpop.permute.xlu1 %678  ;;  %v601_v23 = vpop.permute.xlu0 %600  ;;  %14966 = vmatmul.mubr.msk.f32.vlgmr.msra.gmra.mrb[2].mxu0 %vm523_vm4, %v15766_v21 }
 0x253   : > { %14969 = vmatpush3.xpose.msk.msra.mxu1 %vm523_vm4, %v601_v23  ;;  %14974 = vmatpush3.xpose.msk.msra.mxu0 %vm523_vm4, %v679_v22 }
 0x254   : > { %14975 = vmatprep.mubr.msk.f32.mxu0 %vm15645_vm3, %v19531_v10  ;;  %14978 = vmatprep.subr.mxu1 %v19531_v10 }
 0x255   : > { %14983 = vmatprep.subr.mxu0 %v19531_v10 }
 0x256   : > { %v757_v26 = vpop.permute.xlu1 %756  ;;  %14971 = vmatmul.mubr.msk.f32.vlgmr.msra.gmra.mrb[6].mxu1 %vm523_vm4, %v15773_v24  ;;  %14976 = vmatmul.mubr.msk.f32.vlgmr.msra.gmra.mrb[4].mxu0 %vm523_vm4, %v15778_v25 }
 0x257   : > { %14979 = vmatpush3.xpose.msk.msra.mxu1 %vm523_vm4, %v757_v26  ;;  %14980 = vmatprep.mubr.msk.f32.mxu1 %vm15645_vm3, %v19531_v10 }
 0x258   : > { %14988 = vmatprep.subr.mxu1 %v19531_v10  ;;  %14985 = vmatprep.mubr.msk.f32.mxu0 %vm15645_vm3, %v19531_v10 }
 0x25a   : > { %14981 = vmatmul.mubr.msk.f32.vlgmr.msra.gmra.mrb[8].mxu1 %vm523_vm4, %v15790_v27 }
 0x25b   : > { %14990 = vmatprep.mubr.msk.f32.mxu1 %vm15645_vm3, %v19531_v10 }
 0x325   : > { %v595_v28 = vpop.f32.mrb[2].mxu0 }
 0x326   : > { %v14967_v29 = vpop.f32.mrb[3].mxu0  ;;  %v833_v30 = vsel %vm418_vm2, %v595_v28, -inf }
 0x327   : > { %834 = vmax.xlane.f32.xlu0 %v833_v30 }
 0x329   : > { %v673_v31 = vpop.f32.mrb[6].mxu1  ;;  %v751_v32 = vpop.f32.mrb[4].mxu0 }
 0x32a   : > { %v14972_v33 = vpop.f32.mrb[7].mxu1  ;;  %v14977_v34 = vpop.f32.mrb[5].mxu0  ;;  %v836_v35 = vsel %vm418_vm2, %v673_v31, -inf  ;;  %v839_v36 = vsel %vm418_vm2, %v751_v32, -inf }
 0x32b   : > { %837 = vmax.xlane.f32.xlu1 %v836_v35  ;;  %840 = vmax.xlane.f32.xlu0 %v839_v36 }
 0x32d   : > { %v829_v37 = vpop.f32.mrb[8].mxu1 }
 0x32e   : > { %v14982_v38 = vpop.f32.mrb[9].mxu1  ;;  %v842_v39 = vsel %vm418_vm2, %v829_v37, -inf }
 0x32f   : > { %843 = vmax.xlane.f32.xlu0 %v842_v39 }
 0x33c   : > { %877 = vrot.lane.b32.xlu1 %v15747_v14, %s15647_s20 }
 0x340   : > { %1029 = vrot.lane.b32.xlu1 %v15753_v18, %s15647_s20 }
 0x344   : > { %1105 = vrot.lane.b32.xlu1 %v15755_v19, %s15647_s20 }
 0x345   : > { %953 = vrot.lane.b32.xlu0 %v15751_v17, %s15647_s20 }
 0x348   : > { %1261 = vrot.lane.b32.xlu1 %v15751_v17, %s15648_s21 }
 0x349   : > { %1183 = vrot.lane.b32.xlu0 %v15747_v14, %s15648_s21 }
 0x3b4   : > { %v835_v40 = vpop.xlane.xlu0 %834 }
 0x3b5   : > { %v845_v41 = vsub.f32 %v595_v28, %v835_v40 }
 0x3b7   : > { %v849_v42 = vmul.f32 1.442695, %v845_v41 }
 0x3b8   : > { %v838_v43 = vpop.xlane.xlu1 %837  ;;  %v841_v44 = vpop.xlane.xlu0 %840 }
 0x3b9   : > { %15344 = vpow2.f32 %v849_v42  ;;  %v846_v45 = vsub.f32 %v673_v31, %v838_v43  ;;  %v847_v58 = vsub.f32 %v751_v32, %v841_v44 }
 0x3bb   : > { %v851_v46 = vmul.f32 1.442695, %v846_v45  ;;  %v853_v59 = vmul.f32 1.442695, %v847_v58 }
 0x3bc   : > { %v878_v47 = vpop.permute.xlu1 %877  ;;  %v844_v48 = vpop.xlane.xlu0 %843 }
 0x3bd   : > { %15346 = vpow2.f32 %v851_v46  ;;  %v848_v49 = vsub.f32 %v829_v37, %v844_v48  ;;  %14984 = vmatpush3.msra.mxu0 %v878_v47 }
 0x3be   : > { %14993 = vmatprep.subr.mxu0 %v19531_v10 }
 0x3bf   : > { %v855_v50 = vmul.f32 1.442695, %v848_v49 }
 0x3c0   : > { %v954_v51 = vpop.permute.xlu0 %953  ;;  %v1030_v62 = vpop.permute.xlu1 %1029 }
 0x3c1   : > { %15348 = vpow2.f32 %v855_v50  ;;  %14989 = vmatpush3.msra.mxu1 %v954_v51 }
 0x3c2   : > { %14998 = vmatprep.subr.mxu1 %v19531_v10  ;;  %15350 = vpow2.f32 %v853_v59 }
 0x3c3   : > { %v15345_v52 = vpop.eup %15344 }
 0x3c4   : > { %v857_v53 = vsel %vm418_vm2, %v15345_v52, 0.0  ;;  %v1106_v63 = vpop.permute.xlu1 %1105  ;;  %v1184_v1 = vpop.permute.xlu0 %1183 }
 0x3c5   : > { %858 = vadd.xlane.f32.xlu1 %v857_v53 }
 0x3c7   : > { %v15347_v54 = vpop.eup %15346 }
 0x3c8   : > { %v860_v55 = vsel %vm418_vm2, %v15347_v54, 0.0  ;;  %v1262_v0 = vpop.permute.xlu1 %1261 }
 0x3c9   : > { %861 = vadd.xlane.f32.xlu0 %v860_v55 }
 0x3cb   : > { %v15349_v56 = vpop.eup %15348 }
 0x3cc   : > { %v866_v57 = vsel %vm418_vm2, %v15349_v56, 0.0  ;;  %v15351_v60 = vpop.eup %15350 }
 0x3cd   : > { %867 = vadd.xlane.f32.xlu0 %v866_v57  ;;  %v863_v61 = vsel %vm418_vm2, %v15351_v60, 0.0 }
 0x3d6   : > { %1259 = vrot.lane.b32.xlu1 %v15773_v24, %s15649_s22 }
 0x3e3   : > { %1181 = vrot.lane.b32.xlu0 %v15766_v21, %s15649_s22 }
 0x3e7   : > { %1339 = vrot.lane.b32.xlu0 %v15753_v18, %s15648_s21 }
 0x3eb   : > { %1337 = vrot.lane.b32.xlu0 %v15778_v25, %s15649_s22 }
 0x3fa   : > { %864 = vadd.xlane.f32.xlu1 %v863_v61 }
 0x40b   : > { %1417 = vrot.lane.b32.xlu1 %v15755_v19, %s15648_s21 }
 0x40f   : > { %1415 = vrot.lane.b32.xlu1 %v15790_v27, %s15649_s22 }
 0x452   : > { %v859_v2 = vpop.xlane.xlu1 %858 }
 0x453   : > { %15352 = vrcp.f32 %v859_v2 }
 0x456   : > { %v862_v3 = vpop.xlane.xlu0 %861  ;;  %v1260_v20 = vpop.permute.xlu1 %1259 }
 0x457   : > { %15354 = vrcp.f32 %v862_v3 }
 0x45a   : > { %v868_v4 = vpop.xlane.xlu0 %867 }
 0x45b   : > { %15356 = vrcp.f32 %v868_v4 }
 0x45d   : > { %v15353_v5 = vpop.eup %15352 }
 0x45e   : > { %v870_v11 = vmul.f32 %v15353_v5, %v15345_v52  ;;  %v1182_v24 = vpop.permute.xlu0 %1181 }
 0x460   : > { %14986 = vmatmul.mubr.msk.f32.vlgmr.msra.gmra.mrb[6].mxu0 %vm418_vm2, %v870_v11 }
 0x461   : > { %v15355_v12 = vpop.eup %15354  ;;  %14994 = vmatpush3.msra.mxu0 %v1030_v62  ;;  %14995 = vmatprep.mubr.msk.f32.mxu0 %vm15645_vm3, %v19531_v10 }
 0x462   : > { %v872_v13 = vmul.f32 %v15355_v12, %v15347_v54  ;;  %15003 = vmatprep.subr.mxu0 %v19531_v10  ;;  %v1340_v27 = vpop.permute.xlu0 %1339 }
 0x464   : > { %14991 = vmatmul.mubr.msk.f32.vlgmr.msra.gmra.mrb[10].mxu1 %vm418_vm2, %v872_v13 }
 0x465   : > { %v15357_v15 = vpop.eup %15356  ;;  %14999 = vmatpush3.msra.mxu1 %v1106_v63  ;;  %15000 = vmatprep.mubr.msk.f32.mxu1 %vm15645_vm3, %v19531_v10 }
 0x466   : > { %v876_v16 = vmul.f32 %v15357_v15, %v15349_v56  ;;  %15008 = vmatprep.subr.mxu1 %v19531_v10  ;;  %v1338_v28 = vpop.permute.xlu0 %1337 }
 0x468   : > { %15001 = vmatmul.mubr.msk.f32.vlgmr.msra.gmra.mrb[12].mxu1 %vm418_vm2, %v876_v16 }
 0x469   : > { %15010 = vmatprep.mubr.msk.f32.mxu1 %vm15645_vm3, %v19531_v10 }
 0x46c   : > { %15009 = vmatpush3.xpose.msk.msra.mxu1 %vm523_vm4, %v1262_v0 }
 0x46d   : > { %15018 = vmatprep.subr.mxu1 %v19531_v10 }
 0x46f   : > { %15011 = vmatmul.mubr.msk.f32.vlgmr.msra.gmra.mrb[14].mxu1 %vm523_vm4, %v1260_v20 }
 0x470   : > { %15020 = vmatprep.mubr.msk.f32.mxu1 %vm15645_vm3, %v19531_v10 }
 0x487   : > { %v865_v21 = vpop.xlane.xlu1 %864 }
 0x488   : > { %15358 = vrcp.f32 %v865_v21 }
 0x48b   : > { %v1418_v22 = vpop.permute.xlu1 %1417 }
 0x48c   : > { %15019 = vmatpush3.xpose.msk.msra.mxu1 %vm523_vm4, %v1418_v22 }
 0x48d   : > { %15028 = vmatprep.subr.mxu1 %v19531_v10 }
 0x48f   : > { %v1416_v23 = vpop.permute.xlu1 %1415 }
 0x490   : > { %15021 = vmatmul.mubr.msk.f32.vlgmr.msra.gmra.mrb[16].mxu1 %vm523_vm4, %v1416_v23 }
 0x491   : > { %15030 = vmatprep.mubr.msk.f32.mxu1 %vm15645_vm3, %v19531_v10 }
 0x492   : > { %v15359_v25 = vpop.eup %15358 }
 0x493   : > { %v874_v26 = vmul.f32 %v15359_v25, %v15351_v60 }
 0x495   : > { %14996 = vmatmul.mubr.msk.f32.vlgmr.msra.gmra.mrb[8].mxu0 %vm418_vm2, %v874_v26  ;;  %v1861_v26 = vld [vmem:[%s19526_s4 + $0x10] sm:$0xff] }
 0x496   : > { %15004 = vmatpush3.xpose.msk.msra.mxu0 %vm523_vm4, %v1184_v1  ;;  %15005 = vmatprep.mubr.msk.f32.mxu0 %vm15645_vm3, %v19531_v10 }
 0x497   : > { %15013 = vmatprep.subr.mxu0 %v19531_v10 }
 0x499   : > { %15006 = vmatmul.mubr.msk.f32.vlgmr.msra.gmra.mrb[10].mxu0 %vm523_vm4, %v1182_v24 }
 0x49a   : > { %15014 = vmatpush3.xpose.msk.msra.mxu0 %vm523_vm4, %v1340_v27  ;;  %15015 = vmatprep.mubr.msk.f32.mxu0 %vm15645_vm3, %v19531_v10 }
 0x49b   : > { %15023 = vmatprep.subr.mxu0 %v19531_v10 }
 0x49d   : > { %15016 = vmatmul.mubr.msk.f32.vlgmr.msra.gmra.mrb[12].mxu0 %vm523_vm4, %v1338_v28 }
 0x49e   : > { %15025 = vmatprep.mubr.msk.f32.mxu0 %vm15645_vm3, %v19531_v10 }
 0x533   : > { %v15867_v29 = vpop.f32.mrb[6].mxu0 }
 0x534   : > { %v14987_v30 = vpop.f32.mrb[7].mxu0 }
 0x537   : > { %v15869_v31 = vpop.f32.mrb[10].mxu1 }
 0x538   : > { %v14992_v32 = vpop.f32.mrb[11].mxu1 }
 0x53b   : > { %v15871_v33 = vpop.f32.mrb[12].mxu1 }
 0x53c   : > { %v15002_v34 = vpop.f32.mrb[13].mxu1 }
 0x542   : > { %v1333_v35 = vpop.f32.mrb[14].mxu1 }
 0x543   : > { %v15012_v36 = vpop.f32.mrb[15].mxu1  ;;  %v1496_v37 = vsel %vm418_vm2, %v1333_v35, -inf }
 0x544   : > { %1497 = vmax.xlane.f32.xlu1 %v1496_v37 }
 0x555   : > { %1537 = vrot.lane.b32.xlu1 %v15747_v14, %s15650_s23 }
 0x563   : > { %v1489_v38 = vpop.f32.mrb[16].mxu1 }
 0x564   : > { %v15022_v39 = vpop.f32.mrb[17].mxu1  ;;  %v1502_v48 = vsel %vm418_vm2, %v1489_v38, -inf }
 0x568   : > { %v15876_v40 = vpop.f32.mrb[8].mxu0 }
 0x569   : > { %v14997_v41 = vpop.f32.mrb[9].mxu0 }
 0x56c   : > { %v1255_v42 = vpop.f32.mrb[10].mxu0 }
 0x56d   : > { %v15007_v43 = vpop.f32.mrb[11].mxu0  ;;  %v1493_v44 = vsel %vm418_vm2, %v1255_v42, -inf }
 0x56e   : > { %1494 = vmax.xlane.f32.xlu0 %v1493_v44 }
 0x570   : > { %v1411_v45 = vpop.f32.mrb[12].mxu0 }
 0x571   : > { %v15017_v46 = vpop.f32.mrb[13].mxu0  ;;  %v1499_v47 = vsel %vm418_vm2, %v1411_v45, -inf }
 0x572   : > { %1500 = vmax.xlane.f32.xlu0 %v1499_v47 }
 0x576   : > { %1503 = vmax.xlane.f32.xlu0 %v1502_v48 }
 0x5d1   : > { %v1498_v49 = vpop.xlane.xlu1 %1497 }
 0x5d2   : > { %v1506_v14 = vsub.f32 %v1333_v35, %v1498_v49 }
 0x5d4   : > { %v1511_v50 = vmul.f32 1.442695, %v1506_v14 }
 0x5d5   : > { %v1538_v51 = vpop.permute.xlu1 %1537 }
 0x5d6   : > { %15360 = vpow2.f32 %v1511_v50  ;;  %15024 = vmatpush3.msra.mxu0 %v1538_v51 }
 0x5d7   : > { %15033 = vmatprep.subr.mxu0 %v19531_v10 }
 0x5e0   : > { %v15361_v52 = vpop.eup %15360 }
 0x5e1   : > { %v1520_v53 = vsel %vm418_vm2, %v15361_v52, 0.0 }
 0x5e2   : > { %1521 = vadd.xlane.f32.xlu0 %v1520_v53 }
 0x5fb   : > { %v1495_v54 = vpop.xlane.xlu0 %1494 }
 0x5fc   : > { %v1505_v55 = vsub.f32 %v1255_v42, %v1495_v54 }
 0x5fe   : > { %v1509_v56 = vmul.f32 1.442695, %v1505_v55 }
 0x5ff   : > { %v1501_v57 = vpop.xlane.xlu0 %1500 }
 0x600   : > { %15362 = vpow2.f32 %v1509_v56  ;;  %v1507_v1 = vsub.f32 %v1411_v45, %v1501_v57 }
 0x602   : > { %v1513_v2 = vmul.f32 1.442695, %v1507_v1 }
 0x603   : > { %v1504_v58 = vpop.xlane.xlu0 %1503 }
 0x604   : > { %v1508_v59 = vsub.f32 %v1489_v38, %v1504_v58 }
 0x606   : > { %v1515_v60 = vmul.f32 1.442695, %v1508_v59 }
 0x608   : > { %15364 = vpow2.f32 %v1515_v60 }
 0x609   : > { %15366 = vpow2.f32 %v1513_v2 }
 0x60a   : > { %v15363_v61 = vpop.eup %15362 }
 0x60b   : > { %v1517_v62 = vsel %vm418_vm2, %v15363_v61, 0.0 }
 0x60c   : > { %1518 = vadd.xlane.f32.xlu1 %v1517_v62 }
 0x612   : > { %v15365_v63 = vpop.eup %15364 }
 0x613   : > { %v1526_v0 = vsel %vm418_vm2, %v15365_v63, 0.0  ;;  %v15367_v3 = vpop.eup %15366 }
 0x614   : > { %1527 = vadd.xlane.f32.xlu0 %v1526_v0  ;;  %v1523_v4 = vsel %vm418_vm2, %v15367_v3, 0.0 }
 0x61d   : > { %1689 = vrot.lane.b32.xlu1 %v15753_v18, %s15650_s23 }
 0x62a   : > { %1613 = vrot.lane.b32.xlu0 %v15751_v17, %s15650_s23 }
 0x641   : > { %1524 = vadd.xlane.f32.xlu1 %v1523_v4 }
 0x652   : > { %1765 = vrot.lane.b32.xlu1 %v15755_v19, %s15650_s23 }
 0x66f   : > { %v1522_v5 = vpop.xlane.xlu0 %1521 }
 0x670   : > { %15368 = vrcp.f32 %v1522_v5 }
 0x67a   : > { %v15369_v13 = vpop.eup %15368 }
 0x67b   : > { %v1532_v17 = vmul.f32 %v15369_v13, %v15361_v52 }
 0x699   : > { %v1519_v11 = vpop.xlane.xlu1 %1518 }
 0x69a   : > { %15370 = vrcp.f32 %v1519_v11 }
 0x69d   : > { %v1690_v20 = vpop.permute.xlu1 %1689 }
 0x6a1   : > { %v1528_v12 = vpop.xlane.xlu0 %1527 }
 0x6a2   : > { %15372 = vrcp.f32 %v1528_v12 }
 0x6a4   : > { %v15371_v18 = vpop.eup %15370 }
 0x6a5   : > { %v1614_v15 = vpop.permute.xlu0 %1613  ;;  %v1530_v16 = vmul.f32 %v15371_v18, %v15363_v61 }
 0x6a6   : > { %15029 = vmatpush3.msra.mxu1 %v1614_v15 }
 0x6a7   : > { %15026 = vmatmul.mubr.msk.f32.vlgmr.msra.gmra.mrb[14].mxu0 %vm418_vm2, %v1530_v16  ;;  %15031 = vmatmul.mubr.msk.f32.vlgmr.msra.gmra.mrb[18].mxu1 %vm418_vm2, %v1532_v17 }
 0x6a8   : > { %15034 = vmatpush3.msra.mxu0 %v1690_v20  ;;  %15038 = vmatprep.subr.mxu1 %v19531_v10 }
 0x6a9   : > { %15040 = vmatprep.mubr.msk.f32.mxu1 %vm15645_vm3, %v19531_v10  ;;  %15035 = vmatprep.mubr.msk.f32.mxu0 %vm15645_vm3, %v19531_v10 }
 0x6aa   : > { %15043 = vmatprep.subr.mxu0 %v1861_v26 }
 0x6ac   : > { %v15373_v21 = vpop.eup %15372 }
 0x6ad   : > { %v1536_v23 = vmul.f32 %v15373_v21, %v15365_v63 }
 0x6ce   : > { %v1525_v19 = vpop.xlane.xlu1 %1524 }
 0x6cf   : > { %15374 = vrcp.f32 %v1525_v19 }
 0x6d2   : > { %v1766_v22 = vpop.permute.xlu1 %1765 }
 0x6d3   : > { %15039 = vmatpush3.msra.mxu1 %v1766_v22 }
 0x6d4   : > { %15041 = vmatmul.mubr.msk.f32.vlgmr.msra.gmra.mrb[20].mxu1 %vm418_vm2, %v1536_v23 }
 0x6d9   : > { %v15375_v24 = vpop.eup %15374 }
 0x6da   : > { %v1534_v25 = vmul.f32 %v15375_v24, %v15367_v3 }
 0x6dc   : > { %15036 = vmatmul.mubr.msk.f32.vlgmr.msra.gmra.mrb[16].mxu0 %vm418_vm2, %v1534_v25  ;;  %v14627_v25 = vld [vmem:[%s19527_s5 + $0xb] ss:$0 sm:$0xff] }
 0x6dd   : > { %15044 = vmatpush3.msra.mxu0 %v1861_v26 }
 0x77a   : > { %v1609_v27 = vpop.f32.mrb[14].mxu0  ;;  %v1685_v28 = vpop.f32.mrb[18].mxu1 }
 0x77b   : > { %1847 = vrot.lane.b32.xlu1 %v1685_v28, %s15651_s26  ;;  %v15032_v30 = vpop.f32.mrb[19].mxu1  ;;  %1845 = vrot.lane.b32.xlu0 %v1609_v27, %s15651_s26  ;;  %v15027_v32 = vpop.f32.mrb[15].mxu0 }
 0x77c   : > { %v14628_v30 = vld [vmem:[%s19527_s5 + $0xc] ss:$0 sm:$0xff] }
 0x7a7   : > { %v1837_v34 = vpop.f32.mrb[20].mxu1 }
 0x7a8   : > { %1851 = vrot.lane.b32.xlu1 %v1837_v34, %s15651_s26  ;;  %v15042_v35 = vpop.f32.mrb[21].mxu1 }
 0x7af   : > { %v1761_v36 = vpop.f32.mrb[16].mxu0 }
 0x7b0   : > { %1849 = vrot.lane.b32.xlu0 %v1761_v36, %s15651_s26  ;;  %v15037_v37 = vpop.f32.mrb[17].mxu0 }
 0x7ed   : > { %v1848_v38 = vpop.permute.xlu1 %1847  ;;  %v1846_v39 = vpop.permute.xlu0 %1845 }
 0x7ee   : > { %v1858_v41 = vsel %vm523_vm4, %v15869_v31, %v1848_v38  ;;  %v1857_v42 = vsel %vm523_vm4, %v15867_v29, %v1846_v39  ;;  %v14622_v29 = vld [vmem:[%s19527_s5 + $0x1] ss:$0 sm:$0xff] }
 0x7ef   : > { %15045 = vmatprep.mubr.msk.f32.mxu0 %vm418_vm2, %v1857_v42 }
 0x7f0   : > { %15046 = vmatmul.mubr.msk.f32.vlgmr.msra.gmra.mrb[18].mxu0 %vm418_vm2, %v1858_v41 }
 0x81a   : > { %v1852_v43 = vpop.permute.xlu1 %1851 }
 0x81b   : > { %v1860_v46 = vsel %vm523_vm4, %v15871_v33, %v1852_v43 }
 0x822   : > { %v1850_v44 = vpop.permute.xlu0 %1849 }
 0x823   : > { %v1859_v45 = vsel %vm523_vm4, %v15876_v40, %v1850_v44 }
 0x824   : > { %15048 = vmatprep.mubr.msk.f32.mxu0 %vm418_vm2, %v1859_v45 }
 0x825   : > { %15049 = vmatmul.mubr.msk.f32.gmra.mrb[20].mxu0 %vm418_vm2, %v1860_v46 }
 0x8c3   : > { %v15047_v31 = vpop.f32.mrb[18].mxu0 }
 0x8c4   : > { %v1951_v47 = vadd.f32 %v15047_v31, %v14622_v29  ;;  %v1945_v48 = vpop.f32.mrb[19].mxu0 }
 0x8c5   : > { %v1946_v49 = vadd.f32 %v14622_v29, %v1945_v48 }
 0x8c6   : > { %v1965_v14 = vadd.f32 %v15722_v6, %v1951_v47 }
 0x8c7   : > { %v1964_v50 = vadd.f32 %v1946_v49, %v15726_v8 }
 0x8c8   : > { %v1971_v40 = vsel %vm418_vm2, %v1965_v14, 0.0 }
 0x8c9   : > { %1972 = vadd.xlane.f32.xlu1 %v1971_v40  ;;  %v1968_v33 = vsel %vm418_vm2, %v1964_v50, 0.0 }
 0x8ca   : > { %1969 = vadd.xlane.f32.xlu0 %v1968_v33 }
 0x8f8   : > { %v15050_v51 = vpop.f32.mrb[20].mxu0 }
 0x8f9   : > { %v1961_v52 = vadd.f32 %v15050_v51, %v14622_v29  ;;  %v1955_v53 = vpop.f32.mrb[21].mxu0 }
 0x8fa   : > { %v1956_v54 = vadd.f32 %v14622_v29, %v1955_v53 }
 0x8fb   : > { %v1967_v55 = vadd.f32 %v15724_v7, %v1961_v52 }
 0x8fc   : > { %v1966_v56 = vadd.f32 %v1956_v54, %v15728_v9  ;;  %v2039_v9 = vld [vmem:[%s19526_s4 + $0x18] sm:$0xff] }
 0x8fd   : > { %v1977_v6 = vsel %vm418_vm2, %v1967_v55, 0.0  ;;  %15051 = vmatprep.subr.mxu1 %v2039_v9 }
 0x8fe   : > { %v1974_v57 = vsel %vm418_vm2, %v1966_v56, 0.0  ;;  %15052 = vmatpush3.msra.mxu1 %v2039_v9 }
 0x8ff   : > { %1975 = vadd.xlane.f32.xlu0 %v1974_v57  ;;  %15067 = vmatprep.subr.mxu1 %v19531_v10 }
 0x903   : > { %1978 = vadd.xlane.f32.xlu0 %v1977_v6 }
 0x956   : > { %v1973_v8 = vpop.xlane.xlu1 %1972 }
 0x957   : > { %v1982_v58 = vmul.f32 0.125, %v1973_v8  ;;  %v1970_v59 = vpop.xlane.xlu0 %1969 }
 0x958   : > { %v1981_v60 = vmul.f32 0.125, %v1970_v59  ;;  %v14634_v59 = vld [vmem:[%s19527_s5 + $0x8] ss:$0 sm:$0xff] }
 0x959   : > { %v1986_v61 = vsub.f32 %v1965_v14, %v1982_v58  ;;  %v2146_v14 = vld [vmem:[%s19526_s4 + $0x20] sm:$0x3] }
 0x95a   : > { %v1985_v62 = vsub.f32 %v1964_v50, %v1981_v60  ;;  %15059 = vmatprep.subr.msk.mxu0 %vm2165_vm5, %v2146_v14  ;;  %v14629_v50 = vld [vmem:[%s19527_s5 + $0x7] ss:$0 sm:$0xff] }
 0x95b   : > { %v1990_v63 = vmul.f32 %v1986_v61, %v1986_v61  ;;  %15060 = vmatpush3.msk.msra.mxu0 %vm2165_vm5, %v2146_v14 }
 0x95c   : > { %v1989_v0 = vmul.f32 %v1985_v62, %v1985_v62  ;;  %15077 = vmatprep.subr.mxu0 %v19531_v10 }
 0x95d   : > { %v1996_v1 = vsel %vm418_vm2, %v1990_v63, 0.0 }
 0x95e   : > { %1997 = vadd.xlane.f32.xlu0 %v1996_v1  ;;  %v1993_v7 = vsel %vm418_vm2, %v1989_v0, 0.0 }
 0x95f   : > { %1994 = vadd.xlane.f32.xlu1 %v1993_v7 }
 0x98c   : > { %v1976_v2 = vpop.xlane.xlu0 %1975 }
 0x98d   : > { %v1983_v3 = vmul.f32 0.125, %v1976_v2 }
 0x98f   : > { %v1987_v4 = vsub.f32 %v1966_v56, %v1983_v3 }
 0x990   : > { %v1979_v5 = vpop.xlane.xlu0 %1978 }
 0x991   : > { %v1984_v11 = vmul.f32 0.125, %v1979_v5  ;;  %v1991_v12 = vmul.f32 %v1987_v4, %v1987_v4 }
 0x993   : > { %v1988_v13 = vsub.f32 %v1967_v55, %v1984_v11  ;;  %v1999_v18 = vsel %vm418_vm2, %v1991_v12, 0.0 }
 0x994   : > { %2000 = vadd.xlane.f32.xlu1 %v1999_v18 }
 0x995   : > { %v1992_v15 = vmul.f32 %v1988_v13, %v1988_v13 }
 0x997   : > { %v2002_v16 = vsel %vm418_vm2, %v1992_v15, 0.0 }
 0x998   : > { %2003 = vadd.xlane.f32.xlu0 %v2002_v16 }
 0x9eb   : > { %v1998_v17 = vpop.xlane.xlu0 %1997 }
 0x9ec   : > { %v2006_v20 = vmul.f32 0.125, %v1998_v17  ;;  %v1995_v19 = vpop.xlane.xlu1 %1994 }
 0x9ed   : > { %v2005_v21 = vmul.f32 0.125, %v1995_v19 }
 0x9ee   : > { %v2010_v22 = vadd.f32 1e-05, %v2006_v20 }
 0x9ef   : > { %v2009_v23 = vadd.f32 1e-05, %v2005_v21 }
 0x9f0   : > { %15376 = vrsqrt.f32 %v2010_v22 }
 0x9f1   : > { %15378 = vrsqrt.f32 %v2009_v23 }
 0x9fa   : > { %v15377_v24 = vpop.eup %15376 }
 0x9fb   : > { %v15379_v26 = vpop.eup %15378  ;;  %v2018_v27 = vmul.f32 %v15377_v24, %v1986_v61 }
 0x9fc   : > { %v2017_v28 = vmul.f32 %v15379_v26, %v1985_v62 }
 0x9fd   : > { %v2027_v32 = vmul.f32 %v14627_v25, %v2018_v27 }
 0x9fe   : > { %v2026_v34 = vmul.f32 %v14627_v25, %v2017_v28 }
 0x9ff   : > { %v2036_v36 = vadd.f32 %v14628_v30, %v2027_v32 }
 0xa00   : > { %v2035_v35 = vadd.f32 %v14628_v30, %v2026_v34 }
 0xa02   : > { %15053 = vmatprep.mubr.msk.f32.mxu1 %vm418_vm2, %v2035_v35 }
 0xa03   : > { %15054 = vmatmul.mubr.msk.f32.vlgmr.msra.gmra.mrb[22].mxu1 %vm418_vm2, %v2036_v36 }
 0xa21   : > { %v2001_v37 = vpop.xlane.xlu1 %2000 }
 0xa22   : > { %v2007_v38 = vmul.f32 0.125, %v2001_v37 }
 0xa24   : > { %v2011_v39 = vadd.f32 1e-05, %v2007_v38 }
 0xa25   : > { %v2004_v41 = vpop.xlane.xlu0 %2003 }
 0xa26   : > { %15380 = vrsqrt.f32 %v2011_v39  ;;  %v2008_v42 = vmul.f32 0.125, %v2004_v41 }
 0xa28   : > { %v2012_v43 = vadd.f32 1e-05, %v2008_v42 }
 0xa2a   : > { %15382 = vrsqrt.f32 %v2012_v43 }
 0xa30   : > { %v15381_v44 = vpop.eup %15380 }
 0xa31   : > { %v2019_v45 = vmul.f32 %v15381_v44, %v1987_v4 }
 0xa33   : > { %v2028_v46 = vmul.f32 %v14627_v25, %v2019_v45 }
 0xa34   : > { %v15383_v29 = vpop.eup %15382 }
 0xa35   : > { %v2037_v31 = vadd.f32 %v14628_v30, %v2028_v46  ;;  %v2020_v47 = vmul.f32 %v15383_v29, %v1988_v13 }
 0xa37   : > { %15056 = vmatprep.mubr.msk.f32.mxu1 %vm418_vm2, %v2037_v31  ;;  %v2029_v48 = vmul.f32 %v14627_v25, %v2020_v47 }
 0xa39   : > { %v2038_v49 = vadd.f32 %v14628_v30, %v2029_v48 }
 0xa3b   : > { %15057 = vmatmul.mubr.msk.f32.gmra.mrb[24].mxu1 %vm418_vm2, %v2038_v49 }
 0xa3c   : > { %15069 = vmatprep.mubr.msk.f32.mxu1 %vm15645_vm3, %v19531_v10 }
 0xad6   : > { %v15055_v40 = vpop.f32.mrb[22].mxu1 }
 0xad7   : > { %v2129_v33 = vadd.f32 %v15055_v40, %v14629_v50  ;;  %v2123_v51 = vpop.f32.mrb[23].mxu1 }
 0xad8   : > { %v2124_v52 = vadd.f32 %v14629_v50, %v2123_v51 }
 0xad9   : > { %v2143_v54 = vmax.f32 %v2129_v33, 0.0  ;;  %v2328_v33 = vld [vmem:[%s15984_s29] sm:$0x7f] }
 0xada   : > { %v2142_v53 = vmax.f32 %v2124_v52, 0.0  ;;  %v2329_v52 = vld [vmem:[%s15984_s29 + $0x8] sm:$0x7f] }
 0xadc   : > { %15061 = vmatprep.mubr.msk.f32.mxu0 %vm2152_vm6, %v2142_v53 }
 0xadd   : > { %15062 = vmatmul.mubr.msk.f32.vlgmr.msra.gmra.mrb[22].mxu0 %vm2152_vm6, %v2143_v54 }
 0xb0e   : > { %v15058_v55 = vpop.f32.mrb[24].mxu1 }
 0xb0f   : > { %v2139_v56 = vadd.f32 %v15058_v55, %v14629_v50  ;;  %v2133_v57 = vpop.f32.mrb[25].mxu1 }
 0xb10   : > { %v2134_v6 = vadd.f32 %v14629_v50, %v2133_v57 }
 0xb11   : > { %v2145_v58 = vmax.f32 %v2139_v56, 0.0 }
 0xb12   : > { %v2144_v8 = vmax.f32 %v2134_v6, 0.0 }
 0xb14   : > { %15064 = vmatprep.mubr.msk.f32.mxu0 %vm2152_vm6, %v2144_v8 }
 0xb15   : > { %15065 = vmatmul.mubr.msk.f32.gmra.mrb[24].mxu0 %vm2152_vm6, %v2145_v58 }
 0xb16   : > { %15079 = vmatprep.mubr.msk.f32.mxu0 %vm15645_vm3, %v19531_v10 }
 0xbb0   : > { %v15063_v60 = vpop.f32.mrb[22].mxu0 }
 0xbb1   : > { %v2241_v61 = vadd.f32 %v15063_v60, %v14634_v59  ;;  %v2235_v62 = vpop.f32.mrb[23].mxu0 }
 0xbb2   : > { %v2236_v63 = vadd.f32 %v14634_v59, %v2235_v62 }
 0xbb3   : > { %v2255_v0 = vadd.f32 %v2241_v61, %v2036_v36 }
 0xbb4   : > { %v2254_v1 = vadd.f32 %v2236_v63, %v2035_v35 }
 0xbb5   : > { %v2261_v7 = vsel %vm418_vm2, %v2255_v0, 0.0 }
 0xbb6   : > { %2262 = vadd.xlane.f32.xlu0 %v2261_v7  ;;  %v2258_v9 = vsel %vm418_vm2, %v2254_v1, 0.0  ;;  %v2330_v7 = vld [vmem:[%s15984_s29 + $0x10] sm:$0x7f] }
 0xbb7   : > { %2259 = vadd.xlane.f32.xlu1 %v2258_v9  ;;  %v2848_v9 = vld [vmem:[%s19526_s4 + $0x28] sm:$0xff] }
 0xbe8   : > { %v15066_v2 = vpop.f32.mrb[24].mxu0 }
 0xbe9   : > { %v2251_v3 = vadd.f32 %v15066_v2, %v14634_v59  ;;  %v2245_v4 = vpop.f32.mrb[25].mxu0  ;;  %v19530_v2 = vlaneseq }
 0xbea   : > { %v2246_v5 = vadd.f32 %v14634_v59, %v2245_v4 }
 0xbeb   : > { %v2257_v11 = vadd.f32 %v2251_v3, %v2038_v49  ;;  %v14641_v49 = vld [vmem:[%s19527_s5 + $0xe] ss:$0 sm:$0xff]  ;;  %v15652_v3 = vmov 1966171168  }
 0xbec   : > { %v2256_v12 = vadd.f32 %v2246_v5, %v2037_v31  ;;  %v14640_v31 = vld [vmem:[%s19527_s5 + $0xd] ss:$0 sm:$0xff]  ;;  %v2630_v4 = vunpack.c.l.s4 %v15652_v3  ;;  %v16023_v5 = vshrl.u32 %v19530_v2, 7 }
 0xbed   : > { %v2267_v13 = vsel %vm418_vm2, %v2257_v11, 0.0 }
 0xbee   : > { %2268 = vadd.xlane.f32.xlu0 %v2267_v13  ;;  %v2264_v18 = vsel %vm418_vm2, %v2256_v12, 0.0  ;;  %19621 = vst [vmem:[#allocation10_spill] sm:$0xff] %v16023_v5 }
 0xbef   : > { %2265 = vadd.xlane.f32.xlu1 %v2264_v18 }
 0xc43   : > { %v2263_v15 = vpop.xlane.xlu0 %2262 }
 0xc44   : > { %v2271_v16 = vmul.f32 0.125, %v2263_v15  ;;  %v2260_v17 = vpop.xlane.xlu1 %2259 }
 0xc45   : > { %v2270_v20 = vmul.f32 0.125, %v2260_v17 }
 0xc46   : > { %v2275_v19 = vsub.f32 %v2255_v0, %v2271_v16  ;;  %v2331_v0 = vld [vmem:[%s15984_s29 + $0x18] sm:$0x7f] }
 0xc47   : > { %v2274_v21 = vsub.f32 %v2254_v1, %v2270_v20 }
 0xc48   : > { %v2279_v22 = vmul.f32 %v2275_v19, %v2275_v19 }
 0xc49   : > { %v2278_v23 = vmul.f32 %v2274_v21, %v2274_v21 }
 0xc4a   : > { %v2285_v24 = vsel %vm418_vm2, %v2279_v22, 0.0 }
 0xc4b   : > { %2286 = vadd.xlane.f32.xlu0 %v2285_v24  ;;  %v2282_v25 = vsel %vm418_vm2, %v2278_v23, 0.0 }
 0xc4c   : > { %2283 = vadd.xlane.f32.xlu1 %v2282_v25 }
 0xc7b   : > { %v2269_v26 = vpop.xlane.xlu0 %2268 }
 0xc7c   : > { %v2273_v27 = vmul.f32 0.125, %v2269_v26  ;;  %v2266_v28 = vpop.xlane.xlu1 %2265 }
 0xc7d   : > { %v2272_v30 = vmul.f32 0.125, %v2266_v28 }
 0xc7e   : > { %v2277_v32 = vsub.f32 %v2257_v11, %v2273_v27  ;;  %v2631_v11 = vunpack.c.0.s8 %v2630_v4 }
 0xc7f   : > { %v2276_v34 = vsub.f32 %v2256_v12, %v2272_v30 }
 0xc80   : > { %v2281_v35 = vmul.f32 %v2277_v32, %v2277_v32  ;;  %v16026_v12 = vsub.s32 %v2631_v11, %v16023_v5 }
 0xc81   : > { %v2280_v36 = vmul.f32 %v2276_v34, %v2276_v34 }
 0xc82   : > { %v2291_v37 = vsel %vm418_vm2, %v2281_v35, 0.0 }
 0xc83   : > { %2292 = vadd.xlane.f32.xlu0 %v2291_v37  ;;  %v2288_v38 = vsel %vm418_vm2, %v2280_v36, 0.0 }
 0xc84   : > { %2289 = vadd.xlane.f32.xlu1 %v2288_v38 }
 0xcd8   : > { %v2287_v39 = vpop.xlane.xlu0 %2286 }
 0xcd9   : > { %v2295_v41 = vmul.f32 0.125, %v2287_v39  ;;  %v2284_v42 = vpop.xlane.xlu1 %2283 }
 0xcda   : > { %v2294_v43 = vmul.f32 0.125, %v2284_v42 }
 0xcdb   : > { %v2299_v44 = vadd.f32 1e-05, %v2295_v41 }
 0xcdc   : > { %v2298_v45 = vadd.f32 1e-05, %v2294_v43 }
 0xcdd   : > { %15384 = vrsqrt.f32 %v2299_v44 }
 0xcde   : > { %15386 = vrsqrt.f32 %v2298_v45 }
 0xce7   : > { %v15385_v46 = vpop.eup %15384 }
 0xce8   : > { %v15387_v29 = vpop.eup %15386  ;;  %v2307_v47 = vmul.f32 %v15385_v46, %v2275_v19 }
 0xce9   : > { %v2306_v48 = vmul.f32 %v15387_v29, %v2274_v21 }
 0xcea   : > { %v2316_v50 = vmul.f32 %v14640_v31, %v2307_v47 }
 0xceb   : > { %v2315_v14 = vmul.f32 %v14640_v31, %v2306_v48 }
 0xcec   : > { %v15993_v51 = vadd.f32 %v14641_v49, %v2316_v50 }
 0xced   : > { %v15989_v40 = vadd.f32 %v14641_v49, %v2315_v14 }
 0xcee   : > { %19618 = vst [vmem:[#allocation7_spill] sm:$0xff] %v15993_v51 }
 0xcef   : > { %19617 = vst [vmem:[#allocation6_spill] sm:$0xff] %v15989_v40  ;;  %15068 = vmatpush3.msra.mxu1 %v15989_v40 }
 0xcf0   : > { %15072 = vmatprep.subr.mxu1 %v19531_v10  ;;  %15070 = vmatmul.mubr.msk.f32.vlgmr.msra.gmra.mrb[26].mxu1 %vm418_vm2, %v2328_v33 }
 0xcf1   : > { %15073 = vmatpush3.msra.mxu1 %v15993_v51  ;;  %15074 = vmatprep.mubr.msk.f32.mxu1 %vm15645_vm3, %v19531_v10 }
 0xcf2   : > { %15082 = vmatprep.subr.mxu1 %v19531_v10 }
 0xcf4   : > { %15075 = vmatmul.mubr.msk.f32.vlgmr.msra.gmra.mrb[28].mxu1 %vm418_vm2, %v2329_v52 }
 0xcf5   : > { %15084 = vmatprep.mubr.msk.f32.mxu1 %vm15645_vm3, %v19531_v10 }
 0xd10   : > { %v2293_v53 = vpop.xlane.xlu0 %2292 }
 0xd11   : > { %v2297_v54 = vmul.f32 0.125, %v2293_v53  ;;  %v2290_v55 = vpop.xlane.xlu1 %2289 }
 0xd12   : > { %v2296_v56 = vmul.f32 0.125, %v2290_v55 }
 0xd13   : > { %v2301_v57 = vadd.f32 1e-05, %v2297_v54 }
 0xd14   : > { %v2300_v6 = vadd.f32 1e-05, %v2296_v56 }
 0xd15   : > { %15388 = vrsqrt.f32 %v2301_v57 }
 0xd16   : > { %15390 = vrsqrt.f32 %v2300_v6 }
 0xd1f   : > { %v15389_v8 = vpop.eup %15388 }
 0xd20   : > { %v15391_v58 = vpop.eup %15390  ;;  %v2309_v59 = vmul.f32 %v15389_v8, %v2277_v32 }
 0xd21   : > { %v2308_v60 = vmul.f32 %v15391_v58, %v2276_v34 }
 0xd22   : > { %v2318_v61 = vmul.f32 %v14640_v31, %v2309_v59 }
 0xd23   : > { %v2317_v62 = vmul.f32 %v14640_v31, %v2308_v60 }
 0xd24   : > { %v16005_v63 = vadd.f32 %v14641_v49, %v2318_v61 }
 0xd25   : > { %v16008_v1 = vadd.f32 %v14641_v49, %v2317_v62 }
 0xd26   : > { %19619 = vst [vmem:[#allocation8_spill] sm:$0xff] %v16005_v63  ;;  %15083 = vmatpush3.msra.mxu1 %v16005_v63 }
 0xd27   : > { %19620 = vst [vmem:[#allocation9_spill] sm:$0xff] %v16008_v1  ;;  %15078 = vmatpush3.msra.mxu0 %v16008_v1  ;;  %15085 = vmatmul.mubr.msk.f32.vlgmr.msra.gmra.mrb[30].mxu1 %vm418_vm2, %v2331_v0 }
 0xd28   : > { %15080 = vmatmul.mubr.msk.f32.vlgmr.msra.gmra.mrb[26].mxu0 %vm418_vm2, %v2330_v7  ;;  %15095 = vmatprep.subr.mxu1 %v19531_v10 }
 0xd29   : > { %15097 = vmatprep.mubr.msk.f32.mxu1 %vm15645_vm3, %v19531_v10  ;;  %15087 = vmatprep.subr.mxu0 %v2848_v9 }
 0xd2a   : > { %15088 = vmatpush3.msra.mxu0 %v2848_v9 }
 0xd2b   : > { %15105 = vmatprep.subr.mxu0 %v19531_v10 }
 0xdc3   : > { %v2401_v13 = vpop.f32.mrb[26].mxu1 }
 0xdc4   : > { %v2628_v18 = vcombine.high %v2401_v13, %v2401_v13  ;;  %v2635_v15 = vrot.slane %v2401_v13, %v16026_v12  ;;  %v15071_v16 = vpop.f32.mrb[27].mxu1 }
 0xdc6   : > { %v2642_v17 = vrot.slane %v2628_v18, %v16026_v12  ;;  %v2643_v20 = vcombine.high %v2635_v15, %v2635_v15  ;;  %v16031_v19 = vrot.slane %v2635_v15, %v16026_v12 }
 0xdc7   : > { %v2474_v21 = vpop.f32.mrb[28].mxu1 }
 0xdc8   : > { %v2644_v22 = vcombine.high %v2642_v17, %v2642_v17  ;;  %v16034_v23 = vrot.slane %v2642_v17, %v16026_v12  ;;  %v16037_v24 = vrot.slane %v2643_v20, %v16026_v12  ;;  %v15076_v25 = vpop.f32.mrb[29].mxu1  ;;  %v2683_v26 = vrot.slane %v2474_v21, %v16026_v12 }
 0xdc9   : > { %v2676_v29 = vcombine.high %v2474_v21, %v2474_v21 }
 0xdca   : > { %19622 = vst [vmem:[#allocation11_spill] sm:$0xff] %v16034_v23  ;;  %v16041_v27 = vrot.slane %v2644_v22, %v16026_v12  ;;  %v2854_v28 = vcombine.low %v16031_v19, %v16037_v24  ;;  %v14647_v30 = vcombine.high %v16031_v19, %v16037_v24  ;;  %v16049_v32 = vcombine.high %v16034_v23, %v16034_v23 }
 0xdcb   : > { %v16052_v34 = vrot.slane %v2683_v26, %v16026_v12  ;;  %v2690_v31 = vrot.slane %v2676_v29, %v16026_v12  ;;  %v2691_v47 = vcombine.high %v2683_v26, %v2683_v26 }
 0xdcc   : > { %19623 = vst [vmem:[#allocation12_spill] sm:$0xff] %v16041_v27  ;;  %19624 = vst [vmem:[#allocation13_spill] sm:$0xff] %v16049_v32  ;;  %v2856_v35 = vcombine.low %v16034_v23, %v16041_v27  ;;  %v2864_v36 = vrot.slane %v2854_v28, %v16026_v12  ;;  %v2871_v37 = vrot.slane %v14647_v30, %v16026_v12 }
 0xdcd   : > { %19625 = vst [vmem:[#allocation14_spill] sm:$0xff] %v16052_v34  ;;  %v2857_v39 = vcombine.low %v16049_v32, %v16052_v34  ;;  %v2692_v48 = vcombine.high %v2690_v31, %v2690_v31  ;;  %v16067_v49 = vrot.slane %v2690_v31, %v16026_v12  ;;  %v16070_v14 = vrot.slane %v2691_v47, %v16026_v12 }
 0xdce   : > { %v2878_v38 = vrot.slane %v2856_v35, %v16026_v12  ;;  %v2886_v41 = vcombine.low %v2864_v36, %v2871_v37  ;;  %v16074_v50 = vcombine.high %v16052_v34, %v16052_v34 }
 0xdcf   : > { %v2885_v42 = vrot.slane %v2857_v39, %v16026_v12  ;;  %v16077_v33 = vrot.slane %v2692_v48, %v16026_v12  ;;  %v16081_v52 = vcombine.high %v16067_v49, %v16067_v49  ;;  %v16085_v53 = vcombine.high %v16070_v14, %v16070_v14 }
 0xdd0   : > { %v2894_v44 = vrot.slane %v2886_v41, %v16026_v12  ;;  %v2903_v54 = vcombine.low %v16070_v14, %v16074_v50 }
 0xdd1   : > { %v2887_v43 = vcombine.low %v2878_v38, %v2885_v42  ;;  %19626 = vst [vmem:[#allocation15_spill] sm:$0xff] %v16077_v33  ;;  %19627 = vst [vmem:[#allocation16_spill] sm:$0xff] %v16081_v52  ;;  %v2904_v55 = vcombine.low %v16085_v53, %v16067_v49  ;;  %v2905_v56 = vcombine.low %v16077_v33, %v16081_v52 }
 0xdd2   : > { %v2913_v0 = vrot.slane %v2903_v54, %v16026_v12 }
 0xdd3   : > { %v2901_v45 = vrot.slane %v2887_v43, %v16026_v12  ;;  %v2920_v4 = vrot.slane %v2904_v55, %v16026_v12  ;;  %v2927_v11 = vrot.slane %v2905_v56, %v16026_v12 }
 0xdd5   : > { %v2902_v46 = vcombine.low %v2894_v44, %v2901_v45  ;;  %v2935_v42 = vcombine.low %v2913_v0, %v2920_v4  ;;  %v14646_v4 = vld [vmem:[%s19527_s5 + $0x2] ss:$0 sm:$0xff] }
 0xdd7   : > { %15089 = vmatprep.mubr.msk.f32.mxu0 %vm418_vm2, %v2902_v46 }
 0xdfa   : > { %v2620_v57 = vpop.f32.mrb[30].mxu1 }
 0xdfb   : > { %v2547_v6 = vpop.f32.mrb[26].mxu0  ;;  %v2772_v8 = vcombine.high %v2620_v57, %v2620_v57  ;;  %v2779_v58 = vrot.slane %v2620_v57, %v16026_v12  ;;  %v15086_v59 = vpop.f32.mrb[31].mxu1 }
 0xdfc   : > { %v2724_v60 = vcombine.high %v2547_v6, %v2547_v6  ;;  %v2731_v61 = vrot.slane %v2547_v6, %v16026_v12  ;;  %v15081_v62 = vpop.f32.mrb[27].mxu0  ;;  %v2943_v6 = vrot.slane %v2935_v42, %v16026_v12 }
 0xdfd   : > { %v2786_v7 = vrot.slane %v2772_v8, %v16026_v12  ;;  %v2787_v9 = vcombine.high %v2779_v58, %v2779_v58  ;;  %v16098_v3 = vrot.slane %v2779_v58, %v16026_v12 }
 0xdfe   : > { %v2738_v13 = vrot.slane %v2724_v60, %v16026_v12  ;;  %v2739_v18 = vcombine.high %v2731_v61, %v2731_v61  ;;  %v16114_v22 = vrot.slane %v2731_v61, %v16026_v12 }
 0xdff   : > { %19628 = vst [vmem:[#allocation17_spill] sm:$0xff] %v16098_v3  ;;  %v2788_v15 = vcombine.high %v2786_v7, %v2786_v7  ;;  %v16104_v16 = vrot.slane %v2786_v7, %v16026_v12  ;;  %v16107_v17 = vrot.slane %v2787_v9, %v16026_v12  ;;  %v16111_v20 = vcombine.high %v16098_v3, %v16098_v3 }
 0xe00   : > { %v2740_v21 = vcombine.high %v2738_v13, %v2738_v13  ;;  %v16117_v25 = vrot.slane %v2738_v13, %v16026_v12  ;;  %v16120_v26 = vrot.slane %v2739_v18, %v16026_v12 }
 0xe01   : > { %19629 = vst [vmem:[#allocation18_spill] sm:$0xff] %v16104_v16  ;;  %19630 = vst [vmem:[#allocation19_spill] sm:$0xff] %v16107_v17  ;;  %v16123_v28 = vrot.slane %v2788_v15, %v16026_v12  ;;  %v16127_v30 = vcombine.high %v16104_v16, %v16104_v16  ;;  %v16131_v35 = vcombine.high %v16107_v17, %v16107_v17 }
 0xe02   : > { %19631 = vst [vmem:[#allocation20_spill] sm:$0xff] %v16111_v20  ;;  %19632 = vst [vmem:[#allocation21_spill] sm:$0xff] %v16117_v25  ;;  %v2955_v36 = vcombine.low %v16107_v17, %v16111_v20  ;;  %v16136_v37 = vrot.slane %v2740_v21, %v16026_v12  ;;  %v2906_v38 = vcombine.low %v16114_v22, %v16120_v26 }
 0xe03   : > { %19633 = vst [vmem:[#allocation22_spill] sm:$0xff] %v16123_v28  ;;  %19634 = vst [vmem:[#allocation23_spill] sm:$0xff] %v16127_v30  ;;  %v14648_v39 = vcombine.high %v16114_v22, %v16120_v26  ;;  %v16144_v41 = vcombine.high %v16117_v25, %v16117_v25  ;;  %v3001_v43 = vcombine.low %v16131_v35, %v16104_v16 }
 0xe04   : > { %19635 = vst [vmem:[#allocation24_spill] sm:$0xff] %v16131_v35  ;;  %19636 = vst [vmem:[#allocation25_spill] sm:$0xff] %v16136_v37  ;;  %v3002_v44 = vcombine.low %v16123_v28, %v16127_v30  ;;  %v2934_v45 = vrot.slane %v2906_v38, %v16026_v12  ;;  %v2953_v46 = vcombine.low %v16117_v25, %v16136_v37 }
 0xe05   : > { %19637 = vst [vmem:[#allocation26_spill] sm:$0xff] %v16144_v41  ;;  %v2954_v29 = vcombine.low %v16144_v41, %v16098_v3  ;;  %v2983_v31 = vrot.slane %v2955_v36, %v16026_v12  ;;  %v3009_v47 = vrot.slane %v3001_v43, %v16026_v12  ;;  %v2962_v57 = vrot.slane %v14648_v39, %v16026_v12 }
 0xe06   : > { %v3016_v48 = vrot.slane %v3002_v44, %v16026_v12  ;;  %v2936_v54 = vcombine.low %v2927_v11, %v2934_v45  ;;  %v2969_v55 = vrot.slane %v2953_v46, %v16026_v12 }
 0xe07   : > { %v2976_v56 = vrot.slane %v2954_v29, %v16026_v12 }
 0xe08   : > { %v2950_v8 = vrot.slane %v2936_v54, %v16026_v12  ;;  %v2984_v58 = vcombine.low %v2962_v57, %v2969_v55  ;;  %v3017_v60 = vcombine.low %v3009_v47, %v3016_v48 }
 0xe09   : > { %v2985_v59 = vcombine.low %v2976_v56, %v2983_v31 }
 0xe0a   : > { %v2951_v61 = vcombine.low %v2943_v6, %v2950_v8  ;;  %v2992_v62 = vrot.slane %v2984_v58, %v16026_v12  ;;  %v3024_v9 = vrot.slane %v3017_v60, %v16026_v12 }
 0xe0b   : > { %v2999_v0 = vrot.slane %v2985_v59, %v16026_v12 }
 0xe0c   : > { %15090 = vmatmul.mubr.msk.f32.vlgmr.msra.gmra.mrb[28].mxu0 %vm418_vm2, %v2951_v61 }
 0xe0d   : > { %v3000_v7 = vcombine.low %v2992_v62, %v2999_v0 }
 0xe0f   : > { %15092 = vmatprep.mubr.msk.f32.mxu0 %vm418_vm2, %v3000_v7 }
 0xe10   : > { %15093 = vmatmul.mubr.msk.f32.gmra.mrb[30].mxu0 %vm418_vm2, %v3024_v9 }
 0xe11   : > { %15107 = vmatprep.mubr.msk.f32.mxu0 %vm15645_vm3, %v19531_v10 }
 0xedf   : > { %v15091_v11 = vpop.f32.mrb[28].mxu0 }
 0xee0   : > { %v3105_v13 = vadd.f32 %v15091_v11, %v14646_v4  ;;  %v3099_v18 = vpop.f32.mrb[29].mxu0 }
 0xee1   : > { %v3100_v15 = vadd.f32 %v14646_v4, %v3099_v18 }
 0xee2   : > { %v3171_v21 = vcombine.high %v3105_v13, %v3105_v13  ;;  %v3178_v36 = vrot.slane %v3105_v13, %v16026_v12 }
 0xee3   : > { %v3122_v38 = vcombine.high %v3100_v15, %v3100_v15  ;;  %v3129_v39 = vrot.slane %v3100_v15, %v16026_v12  ;;  %v15094_v42 = vpop.f32.mrb[30].mxu0 }
 0xee4   : > { %v3185_v43 = vrot.slane %v3171_v21, %v16026_v12  ;;  %v3186_v44 = vcombine.high %v3178_v36, %v3178_v36  ;;  %v16178_v45 = vrot.slane %v3178_v36, %v16026_v12  ;;  %v3115_v46 = vadd.f32 %v15094_v42, %v14646_v4  ;;  %v3109_v29 = vpop.f32.mrb[31].mxu0 }
 0xee5   : > { %v3136_v31 = vrot.slane %v3122_v38, %v16026_v12  ;;  %v3137_v47 = vcombine.high %v3129_v39, %v3129_v39  ;;  %v16182_v48 = vrot.slane %v3129_v39, %v16026_v12  ;;  %v16184_v54 = vadd.f32 %v14646_v4, %v3109_v29 }
 0xee6   : > { %v3187_v55 = vcombine.high %v3185_v43, %v3185_v43  ;;  %v16187_v56 = vrot.slane %v3185_v43, %v16026_v12  ;;  %v3208_v57 = vrot.slane %v3186_v44, %v16026_v12  ;;  %v3216_v6 = vcombine.high %v16178_v45, %v16178_v45 }
 0xee7   : > { %v16193_v8 = vmul.f32 0.5, %v16178_v45  ;;  %v3138_v58 = vcombine.high %v3136_v31, %v3136_v31  ;;  %v3152_v59 = vrot.slane %v3136_v31, %v16026_v12  ;;  %v3159_v60 = vrot.slane %v3137_v47, %v16026_v12 }
 0xee8   : > { %v16198_v61 = vrot.slane %v3187_v55, %v16026_v12  ;;  %v3217_v62 = vcombine.high %v16187_v56, %v16187_v56  ;;  %v16202_v0 = vcombine.high %v3208_v57, %v3208_v57  ;;  %v3330_v7 = vmul.f32 0.5, %v3208_v57 }
 0xee9   : > { %v3331_v9 = vmul.f32 0.5, %v3216_v6  ;;  %v3333_v4 = vmul.f32 0.5, %v16187_v56  ;;  %v3584_v11 = vcombine.low %v3208_v57, %v3216_v6  ;;  %v3166_v13 = vrot.slane %v3138_v58, %v16026_v12 }
 0xeea   : > { %v3219_v18 = vcombine.high %v16198_v61, %v16198_v61  ;;  %v3332_v15 = vmul.f32 0.5, %v16202_v0  ;;  %v16210_v21 = vmul.f32 0.5, %v16198_v61  ;;  %v3335_v36 = vmul.f32 0.5, %v3217_v62 }
 0xeeb   : > { %v3536_v38 = vcombine.low %v3330_v7, %v3331_v9  ;;  %v16215_v42 = vrot.slane %v3584_v11, %v16026_v12  ;;  %v3167_v31 = vcombine.high %v16182_v48, %v16182_v48  ;;  %v3168_v47 = vcombine.high %v3152_v59, %v3152_v59 }
 0xeec   : > { %v3336_v44 = vmul.f32 0.5, %v3219_v18  ;;  %v3537_v29 = vcombine.low %v3332_v15, %v3333_v4  ;;  %v3169_v57 = vcombine.high %v3159_v60, %v3159_v60  ;;  %v3170_v6 = vcombine.high %v3166_v13, %v3166_v13 }
 0xeed   : > { %v16222_v55 = vrot.slane %v3536_v38, %v16026_v12  ;;  %v3321_v58 = vmul.f32 0.5, %v16182_v48  ;;  %v3322_v9 = vmul.f32 0.5, %v3159_v60  ;;  %v3323_v11 = vmul.f32 0.5, %v3167_v31 }
 0xeee   : > { %v16226_v62 = vrot.slane %v3537_v29, %v16026_v12  ;;  %v3714_v7 = vcombine.low %v3335_v36, %v3336_v44  ;;  %v3324_v2 = vmul.f32 0.5, %v3169_v57  ;;  %v3325_v18 = vmul.f32 0.5, %v3152_v59 }
 0xeef   : > { %v3326_v4 = vmul.f32 0.5, %v3166_v13  ;;  %v16228_v15 = vmul.f32 0.5, %v3168_v47  ;;  %v16233_v38 = vmul.f32 0.5, %v3170_v6  ;;  %v3356_v43 = vcombine.low %v3321_v58, %v3322_v9 }
 0xef0   : > { %v16231_v10 = vrot.slane %v3714_v7, %v16026_v12  ;;  %v3404_v39 = vcombine.low %v16182_v48, %v3159_v60  ;;  %v3357_v20 = vcombine.low %v3323_v11, %v3324_v2  ;;  %v14653_v44 = vcombine.high %v16182_v48, %v3159_v60 }
 0xef1   : > { %v3358_v34 = vcombine.low %v3325_v18, %v3326_v4  ;;  %v16240_v29 = vrot.slane %v3356_v43, %v16026_v12  ;;  %v3406_v31 = vcombine.low %v3152_v59, %v3166_v13  ;;  %v3434_v57 = vrot.slane %v3168_v47, %v16026_v12 }
 0xef2   : > { %v16246_v58 = vrot.slane %v3357_v20, %v16026_v12  ;;  %v3583_v9 = vcombine.low %v3170_v6, %v16178_v45  ;;  %v3275_v11 = vrot.slane %v3115_v46, %v16026_v12  ;;  %v3220_v59 = vcombine.high %v16184_v54, %v16184_v54 }
 0xef3   : > { %v16249_v2 = vrot.slane %v3358_v34, %v16026_v12  ;;  %v3427_v48 = vrot.slane %v3406_v31, %v16026_v12  ;;  %v3227_v60 = vrot.slane %v16184_v54, %v16026_v12  ;;  %v3413_v13 = vrot.slane %v3404_v39, %v16026_v12 }
 0xef4   : > { %v3276_v43 = vcombine.high %v3275_v11, %v3275_v11  ;;  %v16260_v20 = vrot.slane %v3275_v11, %v16026_v12  ;;  %v3420_v34 = vrot.slane %v14653_v44, %v16026_v12  ;;  %v16264_v45 = vrot.slane %v3583_v9, %v16026_v12 }
 0xef5   : > { %v3234_v46 = vrot.slane %v3220_v59, %v16026_v12  ;;  %v3235_v47 = vcombine.high %v3227_v60, %v3227_v60  ;;  %v3243_v6 = vrot.slane %v3227_v60, %v16026_v12  ;;  %v3436_v18 = vcombine.low %v3427_v48, %v3434_v57 }
 0xef6   : > { %v3290_v4 = vrot.slane %v3276_v43, %v16026_v12  ;;  %v3291_v54 = vcombine.high %v16260_v20, %v16260_v20  ;;  %v16272_v39 = vmul.f32 0.5, %v16260_v20  ;;  %v3435_v31 = vcombine.low %v3413_v13, %v3420_v34 }
 0xef7   : > { %v3236_v11 = vcombine.high %v3234_v46, %v3234_v46  ;;  %v3250_v44 = vrot.slane %v3234_v46, %v16026_v12  ;;  %v3257_v9 = vrot.slane %v3235_v47, %v16026_v12  ;;  %v3265_v7 = vcombine.high %v3243_v6, %v3243_v6 }
 0xef8   : > { %v3292_v59 = vcombine.high %v3290_v4, %v3290_v4  ;;  %v3346_v36 = vmul.f32 0.5, %v3290_v4  ;;  %v3347_v17 = vmul.f32 0.5, %v3291_v54  ;;  %v3943_v60 = vcombine.low %v3290_v4, %v3291_v54 }
 0xef9   : > { %v3264_v57 = vrot.slane %v3236_v11, %v16026_v12  ;;  %v3266_v48 = vcombine.high %v3250_v44, %v3250_v44  ;;  %v3267_v43 = vcombine.high %v3257_v9, %v3257_v9  ;;  %v3337_v3 = vmul.f32 0.5, %v3243_v6 }
 0xefa   : > { %v16277_v37 = vmul.f32 0.5, %v3292_v59  ;;  %v3895_v41 = vcombine.low %v3346_v36, %v3347_v17  ;;  %v3964_v13 = vrot.slane %v3943_v60, %v16026_v12  ;;  %v3971_v34 = vrot.slane %v3292_v59, %v16026_v12 }
 0xefb   : > { %v3268_v46 = vcombine.high %v3264_v57, %v3264_v57  ;;  %v3338_v25 = vmul.f32 0.5, %v3257_v9  ;;  %v3339_v47 = vmul.f32 0.5, %v3265_v7  ;;  %v3340_v30 = vmul.f32 0.5, %v3267_v43 }
 0xefc   : > { %v3916_v28 = vrot.slane %v3895_v41, %v16026_v12  ;;  %v3923_v4 = vrot.slane %v16277_v37, %v16026_v12  ;;  %v3341_v54 = vmul.f32 0.5, %v3250_v44  ;;  %v3342_v11 = vmul.f32 0.5, %v3264_v57 }
 0xefd   : > { %v3343_v16 = vmul.f32 0.5, %v3266_v48  ;;  %v3344_v35 = vmul.f32 0.5, %v3268_v46  ;;  %v3715_v32 = vcombine.low %v3337_v3, %v3338_v25  ;;  %v3716_v27 = vcombine.low %v3339_v47, %v3340_v30 }
 0xefe   : > { %v3744_v17 = vrot.slane %v3341_v54, %v16026_v12  ;;  %v3763_v36 = vcombine.low %v3243_v6, %v3257_v9  ;;  %v14659_v60 = vcombine.high %v3243_v6, %v3257_v9  ;;  %v3792_v59 = vrot.slane %v3250_v44, %v16026_v12 }
 0xeff   : > { %v3730_v7 = vrot.slane %v3715_v32, %v16026_v12  ;;  %v3737_v43 = vrot.slane %v3716_v27, %v16026_v12  ;;  %v3893_v41 = vcombine.low %v3342_v11, %v3343_v16  ;;  %v3894_v23 = vcombine.low %v3344_v35, %v16272_v39 }
 0xf00   : > { %v3941_v37 = vcombine.low %v3264_v57, %v3266_v48  ;;  %v3942_v52 = vcombine.low %v3268_v46, %v16260_v20  ;;  %v3443_v33 = vrot.slane %v3435_v31, %v16026_v12  ;;  %v3450_v3 = vrot.slane %v3436_v18, %v16026_v12 }
 0xf01   : > { %v3745_v25 = vcombine.low %v16231_v10, %v3730_v7  ;;  %v3746_v30 = vcombine.low %v3737_v43, %v3744_v17  ;;  %v3902_v6 = vrot.slane %v3893_v41, %v16026_v12  ;;  %v19638_v32 = vcombine.low %v16202_v0, %v16187_v56 }
 0xf02   : > { %v16298_v16 = vcombine.low %v3443_v33, %v3450_v3  ;;  %v3613_v35 = vrot.slane %v16198_v61, %v16026_v12  ;;  %v3614_v20 = vcombine.low %v16264_v45, %v16215_v42  ;;  %v19639_v10 = vcombine.high %v16187_v56, %v16198_v61 }
 0xf03   : > { %v3606_v27 = vrot.slane %v19638_v32, %v16026_v12  ;;  %v3760_v39 = vrot.slane %v3746_v30, %v16026_v12  ;;  %v3778_v31 = vrot.slane %v3763_v36, %v16026_v12  ;;  %v3785_v0 = vrot.slane %v14659_v60, %v16026_v12 }
 0xf04   : > { %v3771_v18 = vrot.slane %v19639_v10, %v16026_v12  ;;  %v3950_v33 = vrot.slane %v3941_v37, %v16026_v12  ;;  %3452 = vrot.lane.b32.xlu1 %v16298_v16, %s15646_s19  ;;  %v3622_v9 = vrot.slane %v3614_v20, %v16026_v12  ;;  %v3957_v42 = vrot.slane %v3942_v52, %v16026_v12 }
 0xf05   : > { %v3615_v44 = vcombine.low %v3606_v27, %v3613_v35  ;;  %v3973_v45 = vcombine.low %v3964_v13, %v3971_v34  ;;  %v3794_v56 = vcombine.low %v3785_v0, %v3792_v59  ;;  %v3387_v61 = vcombine.low %v16240_v29, %v16246_v58 }
 0xf06   : > { %v3793_v57 = vcombine.low %v3771_v18, %v3778_v31  ;;  %v19640_v48 = vrot.slane %v16228_v15, %v16026_v12  ;;  %v3972_v54 = vcombine.low %v3950_v33, %v3957_v42  ;;  %v3753_v17 = vrot.slane %v3745_v25, %v16026_v12 }
 0xf07   : > { %v3629_v47 = vrot.slane %v3615_v44, %v16026_v12  ;;  %v3987_v11 = vrot.slane %v3973_v45, %v16026_v12  ;;  %v3808_v13 = vrot.slane %v3794_v56, %v16026_v12  ;;  %v3395_v34 = vrot.slane %v3387_v61, %v16026_v12 }
 0xf08   : > { %v3388_v46 = vcombine.low %v16249_v2, %v19640_v48  ;;  %v3801_v52 = vrot.slane %v3793_v57, %v16026_v12  ;;  %v3980_v15 = vrot.slane %v3972_v54, %v16026_v12  ;;  %v16332_v2 = vcombine.low %v3753_v17, %v3760_v39 }
 0xf09   : > { %v16329_v58 = vcombine.low %v3622_v9, %v3629_v47  ;;  %v19641_v36 = vcombine.low %v16233_v38, %v16193_v8  ;;  %v3565_v43 = vrot.slane %v16210_v21, %v16026_v12  ;;  %v3909_v41 = vrot.slane %v3894_v23, %v16026_v12 }
 0xf0a   : > { %v3402_v29 = vrot.slane %v3388_v46, %v16026_v12  ;;  %v16338_v59 = vcombine.low %v3801_v52, %v3808_v13  ;;  %v16347_v37 = vcombine.low %v3980_v15, %v3987_v11  ;;  %v3925_v25 = vcombine.low %v3916_v28, %v3923_v4 }
 0xf0b   : > { %v3544_v60 = vrot.slane %v19641_v36, %v16026_v12  ;;  %3631 = vrot.lane.b32.xlu0 %v16329_v58, %s15646_s19  ;;  %v3567_v8 = vcombine.low %v16226_v62, %v3565_v43  ;;  %v3924_v38 = vcombine.low %v3902_v6, %v3909_v41  ;;  %v19642_v62 = vmov 0.0  }
 0xf0c   : > { %v16340_v7 = vcombine.low %v3395_v34, %v3402_v29  ;;  %3810 = vrot.lane.b32.xlu1 %v16338_v59, %s15646_s19  ;;  %v3939_v32 = vrot.slane %v3925_v25, %v16026_v12  ;;  %v19643_v20 = vlaneseq }
 0xf0d   : > { %v3566_v3 = vcombine.low %v3544_v60, %v16222_v55  ;;  %v3581_v21 = vrot.slane %v3567_v8, %v16026_v12  ;;  %v3932_v23 = vrot.slane %v3924_v38, %v16026_v12 }
 0xf0e   : > { %v16388_v10 = vand.u32 127, %v19643_v20 }
 0xf0f   : > { %v3574_v30 = vrot.slane %v3566_v3, %v16026_v12  ;;  %v16361_v28 = vcombine.low %v3932_v23, %v3939_v32 }
 0xf10   : > { %3989 = vrot.lane.b32.xlu1 %v16347_v37, %s15646_s19  ;;  %19644 = vst [vmem:[#allocation27_spill] sm:$0xff] %v16388_v10  ;;  %vm263_vm7 = vcmp.gt.s32.totalorder %v16388_v10, %v16023_v5 }
 0xf11   : > { %v16359_v27 = vcombine.low %v3574_v30, %v3581_v21  ;;  %v16393_v18 = vsel %vm263_vm7, -1e+30, %v19642_v62 }
 0xf76   : > { %v3453_v55 = vpop.permute.xlu1 %3452 }
 0xf77   : > { %15096 = vmatpush3.xpose.msk.msra.mxu1 %vm523_vm4, %v3453_v55 }
 0xf78   : > { %15100 = vmatprep.subr.mxu1 %v19642_v62 }
 0xf7a   : > { %15098 = vmatmul.mubr.msk.f32.vlgmr.msra.gmra.mrb[32].mxu1 %vm523_vm4, %v16340_v7 }
 0xf7b   : > { %15102 = vmatprep.mubr.msk.f32.mxu1 %vm15645_vm3, %v19642_v62 }
 0xf7d   : > { %v3632_v4 = vpop.permute.xlu0 %3631 }
 0xf7e   : > { %v3811_v6 = vpop.permute.xlu1 %3810  ;;  %15101 = vmatpush3.xpose.msk.msra.mxu1 %vm523_vm4, %v3632_v4 }
 0xf7f   : > { %15106 = vmatpush3.xpose.msk.msra.mxu0 %vm523_vm4, %v3811_v6  ;;  %15110 = vmatprep.subr.mxu1 %v19642_v62 }
 0xf80   : > { %15115 = vmatprep.subr.mxu0 %v19642_v62 }
 0xf81   : > { %15103 = vmatmul.mubr.msk.f32.vlgmr.msra.gmra.mrb[34].mxu1 %vm523_vm4, %v16359_v27 }
 0xf82   : > { %15108 = vmatmul.mubr.msk.f32.vlgmr.msra.gmra.mrb[32].mxu0 %vm523_vm4, %v16332_v2  ;;  %v3990_v35 = vpop.permute.xlu1 %3989  ;;  %15112 = vmatprep.mubr.msk.f32.mxu1 %vm15645_vm3, %v19642_v62 }
 0xf83   : > { %15111 = vmatpush3.xpose.msk.msra.mxu1 %vm523_vm4, %v3990_v35  ;;  %15117 = vmatprep.mubr.msk.f32.mxu0 %vm15645_vm3, %v19642_v62 }
 0xf84   : > { %15120 = vmatprep.subr.mxu1 %v19642_v62 }
 0xf86   : > { %15113 = vmatmul.mubr.msk.f32.vlgmr.msra.gmra.mrb[36].mxu1 %vm523_vm4, %v16361_v28 }
 0xf87   : > { %15122 = vmatprep.mubr.msk.f32.mxu1 %vm15645_vm3, %v19642_v62 }
0x104d   : > { %v3524_v39 = vpop.f32.mrb[32].mxu1 }
0x104e   : > { %v3525_v31 = vadd.f32 %v3524_v39, %v16393_v18  ;;  %v15099_v0 = vpop.f32.mrb[33].mxu1 }
0x1050   : > { %v4066_v33 = vsel %vm4065_vm8, %v3525_v31, -inf }
0x1051   : > { %4067 = vmax.xlane.f32.xlu0 %v4066_v33 }
0x1054   : > { %v3703_v44 = vpop.f32.mrb[34].mxu1 }
0x1055   : > { %v3882_v9 = vpop.f32.mrb[32].mxu0  ;;  %v3704_v42 = vadd.f32 %v3703_v44, %v16393_v18  ;;  %v15104_v45 = vpop.f32.mrb[35].mxu1 }
0x1056   : > { %v3883_v57 = vadd.f32 %v3882_v9, %v16393_v18  ;;  %v15109_v56 = vpop.f32.mrb[33].mxu0 }
0x1057   : > { %v4069_v61 = vsel %vm4065_vm8, %v3704_v42, -inf }
0x1058   : > { %v4072_v48 = vsel %vm4065_vm8, %v3883_v57, -inf  ;;  %4070 = vmax.xlane.f32.xlu1 %v4069_v61 }
0x1059   : > { %4073 = vmax.xlane.f32.xlu0 %v4072_v48  ;;  %v4061_v46 = vpop.f32.mrb[36].mxu1 }
0x105a   : > { %v15114_v47 = vpop.f32.mrb[37].mxu1  ;;  %v4062_v54 = vadd.f32 %v4061_v46, %v16393_v18 }
0x105c   : > { %v4075_v11 = vsel %vm4065_vm8, %v4062_v54, -inf }
0x1069   : > { %4110 = vrot.lane.b32.xlu1 %v16298_v16, %s15647_s20 }
0x106d   : > { %4266 = vrot.lane.b32.xlu1 %v16338_v59, %s15647_s20 }
0x106f   : > { %4189 = vrot.lane.b32.xlu0 %v16329_v58, %s15647_s20 }
0x1071   : > { %4343 = vrot.lane.b32.xlu1 %v16347_v37, %s15647_s20  ;;  %s14765_s20 = sadd.s32 2, %s17400_s12 }
0x1075   : > { %4500 = vrot.lane.b32.xlu1 %v16329_v58, %s15648_s21 }
0x108e   : > { %4076 = vmax.xlane.f32.xlu0 %v4075_v11 }
0x10a4   : > { %4422 = vrot.lane.b32.xlu0 %v16298_v16, %s15648_s21 }
0x10de   : > { %v4068_v17 = vpop.xlane.xlu0 %4067 }
0x10df   : > { %v4078_v52 = vsub.f32 %v3525_v31, %v4068_v17 }
0x10e1   : > { %v4082_v13 = vmul.f32 1.442695, %v4078_v52 }
0x10e3   : > { %15392 = vpow2.f32 %v4082_v13 }
0x10e5   : > { %v4071_v34 = vpop.xlane.xlu1 %4070 }
0x10e6   : > { %v4079_v29 = vsub.f32 %v3704_v42, %v4071_v34  ;;  %v4074_v15 = vpop.xlane.xlu0 %4073 }
0x10e7   : > { %v4080_v36 = vsub.f32 %v3883_v57, %v4074_v15 }
0x10e8   : > { %v4084_v60 = vmul.f32 1.442695, %v4079_v29 }
0x10e9   : > { %v4086_v43 = vmul.f32 1.442695, %v4080_v36  ;;  %v4111_v41 = vpop.permute.xlu1 %4110 }
0x10ea   : > { %15394 = vpow2.f32 %v4084_v60  ;;  %v4190_v3 = vpop.permute.xlu0 %4189  ;;  %15116 = vmatpush3.msk.msra.mxu0 %vm4116_vm9, %v4111_v41 }
0x10eb   : > { %15396 = vpow2.f32 %v4086_v43  ;;  %15121 = vmatpush3.msk.msra.mxu1 %vm4116_vm9, %v4190_v3  ;;  %15125 = vmatprep.subr.mxu0 %v19642_v62 }
0x10ec   : > { %15130 = vmatprep.subr.mxu1 %v19642_v62 }
0x10ed   : > { %v15393_v25 = vpop.eup %15392 }
0x10ee   : > { %v4090_v8 = vsel %vm4065_vm8, %v15393_v25, 0.0 }
0x10ef   : > { %4091 = vadd.xlane.f32.xlu1 %v4090_v8 }
0x10f4   : > { %v15395_v38 = vpop.eup %15394 }
0x10f5   : > { %v15397_v30 = vpop.eup %15396  ;;  %v4093_v21 = vsel %vm4065_vm8, %v15395_v38, 0.0 }
0x10f6   : > { %4094 = vadd.xlane.f32.xlu0 %v4093_v21  ;;  %v4096_v23 = vsel %vm4065_vm8, %v15397_v30, 0.0 }
0x10f7   : > { %4097 = vadd.xlane.f32.xlu1 %v4096_v23 }
0x1108   : > { %4578 = vrot.lane.b32.xlu1 %v16338_v59, %s15648_s21 }
0x110c   : > { %4576 = vrot.lane.b32.xlu1 %v16332_v2, %s15649_s22  ;;  %4420 = vrot.lane.b32.xlu0 %v16340_v7, %s15649_s22  ;;  %v4267_v2 = vpop.permute.xlu1 %4266 }
0x1110   : > { %4654 = vrot.lane.b32.xlu1 %v16361_v28, %s15649_s22  ;;  %v4344_v20 = vpop.permute.xlu1 %4343 }
0x1114   : > { %v4501_v7 = vpop.permute.xlu1 %4500 }
0x111b   : > { %v4077_v32 = vpop.xlane.xlu0 %4076 }
0x111c   : > { %v4081_v55 = vsub.f32 %v4062_v54, %v4077_v32 }
0x111e   : > { %v4088_v4 = vmul.f32 1.442695, %v4081_v55 }
0x111f   : > { %v4423_v28 = vpop.permute.xlu0 %4422 }
0x1120   : > { %15398 = vpow2.f32 %v4088_v4 }
0x112a   : > { %v15399_v6 = vpop.eup %15398 }
0x112b   : > { %v4099_v35 = vsel %vm4065_vm8, %v15399_v6, 0.0 }
0x112c   : > { %4100 = vadd.xlane.f32.xlu0 %v4099_v35 }
0x1142   : > { %4498 = vrot.lane.b32.xlu0 %v16359_v27, %s15649_s22 }
0x1146   : > { %4656 = vrot.lane.b32.xlu0 %v16347_v37, %s15648_s21 }
0x117c   : > { %v4092_v39 = vpop.xlane.xlu1 %4091 }
0x117d   : > { %15400 = vrcp.f32 %v4092_v39 }
0x1183   : > { %v4095_v31 = vpop.xlane.xlu0 %4094 }
0x1184   : > { %v4098_v0 = vpop.xlane.xlu1 %4097  ;;  %15402 = vrcp.f32 %v4095_v31 }
0x1185   : > { %15404 = vrcp.f32 %v4098_v0 }
0x1187   : > { %v15401_v33 = vpop.eup %15400  ;;  %v4421_v56 = vpop.permute.xlu0 %4420 }
0x1188   : > { %v4103_v44 = vmul.f32 %v15401_v33, %v15393_v25  ;;  %v4579_v57 = vpop.permute.xlu1 %4578 }
0x118a   : > { %15118 = vmatmul.mubr.msk.f32.vlgmr.msra.gmra.mrb[34].mxu0 %vm4112_vm10, %v4103_v44 }
0x118b   : > { %15126 = vmatpush3.msk.msra.mxu0 %vm4116_vm9, %v4267_v2  ;;  %15127 = vmatprep.mubr.msk.f32.mxu0 %vm15645_vm3, %v19642_v62 }
0x118c   : > { %15135 = vmatprep.subr.mxu0 %v19642_v62  ;;  %v4577_v61 = vpop.permute.xlu1 %4576 }
0x118e   : > { %v15403_v27 = vpop.eup %15402 }
0x118f   : > { %v15405_v9 = vpop.eup %15404  ;;  %v4105_v42 = vmul.f32 %v15403_v27, %v15395_v38 }
0x1190   : > { %v4107_v45 = vmul.f32 %v15405_v9, %v15397_v30  ;;  %v4655_v17 = vpop.permute.xlu1 %4654 }
0x1191   : > { %15123 = vmatmul.mubr.msk.f32.vlgmr.msra.gmra.mrb[38].mxu1 %vm4112_vm10, %v4105_v42 }
0x1192   : > { %15128 = vmatmul.mubr.msk.f32.vlgmr.msra.gmra.mrb[36].mxu0 %vm4112_vm10, %v4107_v45  ;;  %15131 = vmatpush3.msk.msra.mxu1 %vm4116_vm9, %v4344_v20 }
0x1193   : > { %15136 = vmatpush3.xpose.msk.msra.mxu0 %vm523_vm4, %v4423_v28  ;;  %15137 = vmatprep.mubr.msk.f32.mxu0 %vm15645_vm3, %v19642_v62 }
0x1194   : > { %15145 = vmatprep.subr.mxu0 %v19642_v62  ;;  %15132 = vmatprep.mubr.msk.f32.mxu1 %vm15645_vm3, %v19642_v62 }
0x1195   : > { %15140 = vmatprep.subr.mxu1 %v19642_v62 }
0x1196   : > { %15138 = vmatmul.mubr.msk.f32.vlgmr.msra.gmra.mrb[38].mxu0 %vm523_vm4, %v4421_v56 }
0x1197   : > { %15146 = vmatpush3.xpose.msk.msra.mxu0 %vm523_vm4, %v4579_v57  ;;  %15147 = vmatprep.mubr.msk.f32.mxu0 %vm15645_vm3, %v19642_v62 }
0x1198   : > { %15155 = vmatprep.subr.mxu0 %v19642_v62 }
0x119a   : > { %15148 = vmatmul.mubr.msk.f32.vlgmr.msra.gmra.mrb[40].mxu0 %vm523_vm4, %v4577_v61 }
0x119b   : > { %15157 = vmatprep.mubr.msk.f32.mxu0 %vm15645_vm3, %v19642_v62 }
0x11b9   : > { %v4101_v48 = vpop.xlane.xlu0 %4100 }
0x11ba   : > { %15406 = vrcp.f32 %v4101_v48 }
0x11bd   : > { %v4499_v47 = vpop.permute.xlu0 %4498 }
0x11c1   : > { %v4657_v11 = vpop.permute.xlu0 %4656 }
0x11c4   : > { %v15407_v46 = vpop.eup %15406 }
0x11c5   : > { %v4109_v54 = vmul.f32 %v15407_v46, %v15399_v6 }
0x11c7   : > { %15133 = vmatmul.mubr.msk.f32.vlgmr.msra.gmra.mrb[40].mxu1 %vm4112_vm10, %v4109_v54 }
0x11c8   : > { %15141 = vmatpush3.xpose.msk.msra.mxu1 %vm523_vm4, %v4501_v7  ;;  %15142 = vmatprep.mubr.msk.f32.mxu1 %vm15645_vm3, %v19642_v62 }
0x11c9   : > { %15150 = vmatprep.subr.mxu1 %v19642_v62 }
0x11cb   : > { %15143 = vmatmul.mubr.msk.f32.vlgmr.msra.gmra.mrb[42].mxu1 %vm523_vm4, %v4499_v47 }
0x11cc   : > { %15151 = vmatpush3.xpose.msk.msra.mxu1 %vm523_vm4, %v4657_v11  ;;  %15152 = vmatprep.mubr.msk.f32.mxu1 %vm15645_vm3, %v19642_v62 }
0x11cd   : > { %15160 = vmatprep.subr.mxu1 %v19642_v62 }
0x11cf   : > { %15153 = vmatmul.mubr.msk.f32.vlgmr.msra.gmra.mrb[44].mxu1 %vm523_vm4, %v4655_v17 }
0x11d0   : > { %15162 = vmatprep.mubr.msk.f32.mxu1 %vm15645_vm3, %v19642_v62 }
0x125d   : > { %v16471_v52 = vpop.f32.mrb[34].mxu0 }
0x125e   : > { %v15119_v13 = vpop.f32.mrb[35].mxu0 }
0x1264   : > { %v16473_v34 = vpop.f32.mrb[38].mxu1 }
0x1265   : > { %v16475_v29 = vpop.f32.mrb[36].mxu0  ;;  %v15124_v15 = vpop.f32.mrb[39].mxu1 }
0x1266   : > { %v15129_v36 = vpop.f32.mrb[37].mxu0 }
0x1269   : > { %v4494_v60 = vpop.f32.mrb[38].mxu0 }
0x126a   : > { %v4495_v43 = vadd.f32 %v4494_v60, %v16393_v18  ;;  %v15139_v41 = vpop.f32.mrb[39].mxu0 }
0x126c   : > { %v4732_v3 = vsel %vm4065_vm8, %v4495_v43, -inf }
0x126d   : > { %4733 = vmax.xlane.f32.xlu0 %v4732_v3  ;;  %v4650_v25 = vpop.f32.mrb[40].mxu0 }
0x126e   : > { %v4651_v8 = vadd.f32 %v4650_v25, %v16393_v18  ;;  %v15149_v38 = vpop.f32.mrb[41].mxu0 }
0x1270   : > { %v4738_v30 = vsel %vm4065_vm8, %v4651_v8, -inf }
0x1271   : > { %4739 = vmax.xlane.f32.xlu0 %v4738_v30 }
0x129a   : > { %v16481_v21 = vpop.f32.mrb[40].mxu1 }
0x129b   : > { %v15134_v23 = vpop.f32.mrb[41].mxu1 }
0x129e   : > { %v4572_v32 = vpop.f32.mrb[42].mxu1 }
0x129f   : > { %v4573_v55 = vadd.f32 %v4572_v32, %v16393_v18  ;;  %v15144_v4 = vpop.f32.mrb[43].mxu1 }
0x12a1   : > { %v4735_v6 = vsel %vm4065_vm8, %v4573_v55, -inf }
0x12a2   : > { %4736 = vmax.xlane.f32.xlu1 %v4735_v6  ;;  %v4728_v35 = vpop.f32.mrb[44].mxu1 }
0x12a3   : > { %v4729_v2 = vadd.f32 %v4728_v35, %v16393_v18  ;;  %v15154_v20 = vpop.f32.mrb[45].mxu1 }
0x12a5   : > { %v4741_v7 = vsel %vm4065_vm8, %v4729_v2, -inf }
0x12a6   : > { %4742 = vmax.xlane.f32.xlu0 %v4741_v7 }
0x12b3   : > { %4776 = vrot.lane.b32.xlu1 %v16298_v16, %s15650_s23 }
0x12fa   : > { %v4734_v39 = vpop.xlane.xlu0 %4733 }
0x12fb   : > { %v4744_v28 = vsub.f32 %v4495_v43, %v4734_v39  ;;  %v5300_v39 = vld [vmem:[%s19526_s4 + $0x30] sm:$0xff] }
0x12fd   : > { %v4748_v31 = vmul.f32 1.442695, %v4744_v28  ;;  %v16523_v28 = vld [vmem:[%s19526_s4 + $0x40] sm:$0xff] }
0x12fe   : > { %v4740_v0 = vpop.xlane.xlu0 %4739 }
0x12ff   : > { %15408 = vpow2.f32 %v4748_v31  ;;  %v4746_v33 = vsub.f32 %v4651_v8, %v4740_v0 }
0x1301   : > { %v4752_v44 = vmul.f32 1.442695, %v4746_v33 }
0x1303   : > { %15410 = vpow2.f32 %v4752_v44 }
0x1309   : > { %v15409_v27 = vpop.eup %15408 }
0x130a   : > { %v4756_v9 = vsel %vm4065_vm8, %v15409_v27, 0.0 }
0x130b   : > { %4757 = vadd.xlane.f32.xlu1 %v4756_v9 }
0x130d   : > { %v15411_v18 = vpop.eup %15410 }
0x130e   : > { %v4762_v42 = vsel %vm4065_vm8, %v15411_v18, 0.0 }
0x130f   : > { %4763 = vadd.xlane.f32.xlu1 %v4762_v42 }
0x1320   : > { %4930 = vrot.lane.b32.xlu1 %v16338_v59, %s15650_s23 }
0x1324   : > { %5007 = vrot.lane.b32.xlu1 %v16347_v37, %s15650_s23 }
0x132f   : > { %v4737_v16 = vpop.xlane.xlu1 %4736 }
0x1330   : > { %v4745_v45 = vsub.f32 %v4573_v55, %v4737_v16 }
0x1332   : > { %v4750_v57 = vmul.f32 1.442695, %v4745_v45 }
0x1333   : > { %v4777_v56 = vpop.permute.xlu1 %4776  ;;  %v4743_v61 = vpop.xlane.xlu0 %4742 }
0x1334   : > { %15412 = vpow2.f32 %v4750_v57  ;;  %v4747_v48 = vsub.f32 %v4729_v2, %v4743_v61  ;;  %15156 = vmatpush3.msk.msra.mxu0 %vm4116_vm9, %v4777_v56 }
0x1335   : > { %15165 = vmatprep.subr.mxu0 %v19642_v62 }
0x1336   : > { %v4754_v46 = vmul.f32 1.442695, %v4747_v48 }
0x1338   : > { %15414 = vpow2.f32 %v4754_v46 }
0x133e   : > { %v15413_v47 = vpop.eup %15412 }
0x133f   : > { %v4759_v54 = vsel %vm4065_vm8, %v15413_v47, 0.0 }
0x1340   : > { %4760 = vadd.xlane.f32.xlu0 %v4759_v54 }
0x1342   : > { %v15415_v59 = vpop.eup %15414 }
0x1343   : > { %v4765_v37 = vsel %vm4065_vm8, %v15415_v59, 0.0 }
0x1344   : > { %4766 = vadd.xlane.f32.xlu0 %v4765_v37 }
0x135a   : > { %4853 = vrot.lane.b32.xlu0 %v16329_v58, %s15650_s23  ;;  %s271_s23 = sld [smem:[#allocation4 + %s14765_s20]] }
0x1398   : > { %v4758_v11 = vpop.xlane.xlu1 %4757 }
0x1399   : > { %15416 = vrcp.f32 %v4758_v11 }
0x139c   : > { %v4764_v17 = vpop.xlane.xlu1 %4763 }
0x139d   : > { %15418 = vrcp.f32 %v4764_v17 }
0x13a0   : > { %v4931_v36 = vpop.permute.xlu1 %4930 }
0x13a3   : > { %v15417_v13 = vpop.eup %15416 }
0x13a4   : > { %v4769_v15 = vmul.f32 %v15417_v13, %v15409_v27  ;;  %v5008_v38 = vpop.permute.xlu1 %5007 }
0x13a6   : > { %15158 = vmatmul.mubr.msk.f32.vlgmr.msra.gmra.mrb[42].mxu0 %vm4112_vm10, %v4769_v15 }
0x13a7   : > { %v15419_v60 = vpop.eup %15418  ;;  %15166 = vmatpush3.msk.msra.mxu0 %vm4116_vm9, %v4931_v36  ;;  %15167 = vmatprep.mubr.msk.f32.mxu0 %vm15645_vm3, %v19642_v62 }
0x13a8   : > { %v4773_v43 = vmul.f32 %v15419_v60, %v15411_v18  ;;  %15175 = vmatprep.subr.mxu0 %v5300_v39 }
0x13aa   : > { %15168 = vmatmul.mubr.msk.f32.vlgmr.msra.gmra.mrb[44].mxu0 %vm4112_vm10, %v4773_v43 }
0x13ab   : > { %15176 = vmatpush3.msra.mxu0 %v5300_v39 }
0x13ac   : > { %15191 = vmatprep.subr.mxu0 %v16523_v28 }
0x13cd   : > { %v4761_v41 = vpop.xlane.xlu0 %4760 }
0x13ce   : > { %15420 = vrcp.f32 %v4761_v41 }
0x13d1   : > { %v4767_v58 = vpop.xlane.xlu0 %4766 }
0x13d2   : > { %15422 = vrcp.f32 %v4767_v58 }
0x13d5   : > { %v4854_v3 = vpop.permute.xlu0 %4853 }
0x13d6   : > { %15161 = vmatpush3.msk.msra.mxu1 %vm4116_vm9, %v4854_v3 }
0x13d7   : > { %15170 = vmatprep.subr.mxu1 %v19642_v62 }
0x13d8   : > { %v15421_v25 = vpop.eup %15420 }
0x13d9   : > { %v4771_v8 = vmul.f32 %v15421_v25, %v15413_v47 }
0x13db   : > { %15163 = vmatmul.mubr.msk.f32.vlgmr.msra.gmra.mrb[46].mxu1 %vm4112_vm10, %v4771_v8 }
0x13dc   : > { %v15423_v30 = vpop.eup %15422  ;;  %15171 = vmatpush3.msk.msra.mxu1 %vm4116_vm9, %v5008_v38  ;;  %15172 = vmatprep.mubr.msk.f32.mxu1 %vm15645_vm3, %v19642_v62 }
0x13dd   : > { %v4775_v23 = vmul.f32 %v15423_v30, %v15415_v59 }
0x13df   : > { %15173 = vmatmul.mubr.msk.f32.vlgmr.msra.gmra.mrb[48].mxu1 %vm4112_vm10, %v4775_v23  ;;  %vm13518_vm10 = vcmask 1041409  }
0x1479   : > { %v4849_v32 = vpop.f32.mrb[42].mxu0 }
0x147a   : > { %v15159_v55 = vpop.f32.mrb[43].mxu0  ;;  %5088 = vrot.lane.b32.xlu0 %v4849_v32, %s15651_s26 }
0x147d   : > { %v5003_v4 = vpop.f32.mrb[44].mxu0 }
0x147e   : > { %v15169_v6 = vpop.f32.mrb[45].mxu0  ;;  %5092 = vrot.lane.b32.xlu0 %v5003_v4, %s15651_s26 }
0x14ae   : > { %v4926_v35 = vpop.f32.mrb[46].mxu1 }
0x14af   : > { %5090 = vrot.lane.b32.xlu1 %v4926_v35, %s15651_s26  ;;  %v15164_v2 = vpop.f32.mrb[47].mxu1 }
0x14b2   : > { %v5080_v20 = vpop.f32.mrb[48].mxu1 }
0x14b3   : > { %5094 = vrot.lane.b32.xlu1 %v5080_v20, %s15651_s26  ;;  %v15174_v7 = vpop.f32.mrb[49].mxu1 }
0x14ec   : > { %v5089_v31 = vpop.permute.xlu0 %5088 }
0x14ed   : > { %v5100_v0 = vsel %vm523_vm4, %v16471_v52, %v5089_v31 }
0x14ee   : > { %v5115_v33 = vrot.slane %v5100_v0, %v16026_v12  ;;  %v5108_v44 = vcombine.high %v5100_v0, %v5100_v0 }
0x14f0   : > { %v5093_v27 = vpop.permute.xlu0 %5092  ;;  %v5123_v9 = vcombine.high %v5115_v33, %v5115_v33  ;;  %v5122_v42 = vrot.slane %v5108_v44, %v16026_v12  ;;  %v5131_v61 = vrot.slane %v5115_v33, %v16026_v12 }
0x14f1   : > { %v5102_v18 = vsel %vm523_vm4, %v16475_v29, %v5093_v27 }
0x14f2   : > { %v5145_v16 = vrot.slane %v5123_v9, %v16026_v12  ;;  %v5204_v45 = vcombine.high %v5102_v18, %v5102_v18  ;;  %v5211_v57 = vrot.slane %v5102_v18, %v16026_v12  ;;  %v5124_v56 = vcombine.high %v5122_v42, %v5122_v42 }
0x14f3   : > { %v5138_v59 = vrot.slane %v5122_v42, %v16026_v12 }
0x14f4   : > { %v5306_v48 = vcombine.low %v5131_v61, %v5145_v16  ;;  %v14689_v52 = vcombine.high %v5131_v61, %v5145_v16  ;;  %v5218_v46 = vrot.slane %v5204_v45, %v16026_v12  ;;  %v5219_v47 = vcombine.high %v5211_v57, %v5211_v57 }
0x14f5   : > { %v5152_v54 = vrot.slane %v5124_v56, %v16026_v12  ;;  %v5227_v15 = vrot.slane %v5211_v57, %v16026_v12  ;;  %v5154_v23 = vcombine.high %v5138_v59, %v5138_v59 }
0x14f6   : > { %v5316_v29 = vrot.slane %v5306_v48, %v16026_v12  ;;  %v5323_v37 = vrot.slane %v14689_v52, %v16026_v12  ;;  %v5220_v11 = vcombine.high %v5218_v46, %v5218_v46  ;;  %v5241_v17 = vrot.slane %v5219_v47, %v16026_v12 }
0x14f7   : > { %v5308_v13 = vcombine.low %v5138_v59, %v5152_v54  ;;  %v5234_v36 = vrot.slane %v5218_v46, %v16026_v12 }
0x14f8   : > { %v5338_v43 = vcombine.low %v5316_v29, %v5323_v37  ;;  %v5248_v41 = vrot.slane %v5220_v11, %v16026_v12  ;;  %v5358_v58 = vcombine.low %v5227_v15, %v5241_v17  ;;  %v14690_v30 = vcombine.high %v5227_v15, %v5241_v17 }
0x14f9   : > { %v5330_v38 = vrot.slane %v5308_v13, %v16026_v12  ;;  %v5250_v35 = vcombine.high %v5234_v36, %v5234_v36 }
0x14fa   : > { %v5386_v2 = vrot.slane %v5358_v58, %v16026_v12  ;;  %v5405_v20 = vcombine.low %v5234_v36, %v5248_v41  ;;  %v5346_v7 = vrot.slane %v5338_v43, %v16026_v12  ;;  %v5414_v44 = vrot.slane %v14690_v30, %v16026_v12 }
0x14fc   : > { %v5421_v52 = vrot.slane %v5405_v20, %v16026_v12 }
0x1521   : > { %v5091_v60 = vpop.permute.xlu1 %5090 }
0x1522   : > { %v5101_v3 = vsel %vm523_vm4, %v16473_v34, %v5091_v60 }
0x1523   : > { %v5156_v25 = vcombine.high %v5101_v3, %v5101_v3  ;;  %v5163_v8 = vrot.slane %v5101_v3, %v16026_v12 }
0x1525   : > { %v5170_v32 = vrot.slane %v5156_v25, %v16026_v12  ;;  %v5171_v55 = vcombine.high %v5163_v8, %v5163_v8  ;;  %v5179_v4 = vrot.slane %v5163_v8, %v16026_v12  ;;  %v5095_v6 = vpop.permute.xlu1 %5094 }
0x1526   : > { %v5103_v34 = vsel %vm523_vm4, %v16481_v21, %v5095_v6 }
0x1527   : > { %v5172_v39 = vcombine.high %v5170_v32, %v5170_v32  ;;  %v5186_v31 = vrot.slane %v5170_v32, %v16026_v12  ;;  %v5193_v0 = vrot.slane %v5171_v55, %v16026_v12  ;;  %v5201_v33 = vcombine.high %v5179_v4, %v5179_v4 }
0x1528   : > { %v5309_v27 = vcombine.low %v5154_v23, %v5179_v4  ;;  %v5252_v9 = vcombine.high %v5103_v34, %v5103_v34  ;;  %v5259_v18 = vrot.slane %v5103_v34, %v16026_v12 }
0x1529   : > { %v5200_v42 = vrot.slane %v5172_v39, %v16026_v12  ;;  %v5202_v16 = vcombine.high %v5186_v31, %v5186_v31  ;;  %v5203_v45 = vcombine.high %v5193_v0, %v5193_v0  ;;  %v5355_v57 = vcombine.low %v5193_v0, %v5201_v33 }
0x152a   : > { %v5337_v21 = vrot.slane %v5309_v27, %v16026_v12  ;;  %v5266_v56 = vrot.slane %v5252_v9, %v16026_v12  ;;  %v5267_v61 = vcombine.high %v5259_v18, %v5259_v18  ;;  %v5275_v48 = vrot.slane %v5259_v18, %v16026_v12 }
0x152b   : > { %v5356_v46 = vcombine.low %v5203_v45, %v5186_v31  ;;  %v5357_v47 = vcombine.low %v5200_v42, %v5202_v16  ;;  %v5365_v54 = vrot.slane %v5355_v57, %v16026_v12  ;;  %v2673_v57 = vcombine.high %v16031_v19, %v16031_v19 }
0x152c   : > { %v5339_v59 = vcombine.low %v5330_v38, %v5337_v21  ;;  %v5268_v29 = vcombine.high %v5266_v56, %v5266_v56  ;;  %v5282_v37 = vrot.slane %v5266_v56, %v16026_v12  ;;  %v5289_v11 = vrot.slane %v5267_v61, %v16026_v12 }
0x152d   : > { %v5372_v17 = vrot.slane %v5356_v46, %v16026_v12  ;;  %v5379_v13 = vrot.slane %v5357_v47, %v16026_v12  ;;  %v5297_v15 = vcombine.high %v5275_v48, %v5275_v48  ;;  %v5406_v36 = vcombine.low %v5250_v35, %v5275_v48 }
0x152e   : > { %v5296_v60 = vrot.slane %v5268_v29, %v16026_v12  ;;  %v5298_v43 = vcombine.high %v5282_v37, %v5282_v37  ;;  %v5299_v41 = vcombine.high %v5289_v11, %v5289_v11  ;;  %v5353_v58 = vrot.slane %v5339_v59, %v16026_v12 }
0x152f   : > { %v5387_v3 = vcombine.low %v5365_v54, %v5372_v17  ;;  %v5388_v25 = vcombine.low %v5379_v13, %v5386_v2  ;;  %v5407_v8 = vcombine.low %v5289_v11, %v5297_v15  ;;  %v5436_v38 = vcombine.low %v5414_v44, %v5421_v52 }
0x1530   : > { %v5453_v30 = vcombine.low %v5299_v41, %v5282_v37  ;;  %v5454_v23 = vcombine.low %v5296_v60, %v5298_v43  ;;  %v5354_v32 = vcombine.low %v5346_v7, %v5353_v58  ;;  %v5428_v55 = vrot.slane %v5406_v36, %v16026_v12 }
0x1531   : > { %v5435_v4 = vrot.slane %v5407_v8, %v16026_v12  ;;  %v5395_v6 = vrot.slane %v5387_v3, %v16026_v12  ;;  %v5402_v35 = vrot.slane %v5388_v25, %v16026_v12  ;;  %v5444_v7 = vrot.slane %v5436_v38, %v16026_v12 }
0x1532   : > { %v5461_v20 = vrot.slane %v5453_v30, %v16026_v12  ;;  %15177 = vmatprep.mubr.msk.f32.mxu0 %vm418_vm2, %v5354_v32  ;;  %v5468_v34 = vrot.slane %v5454_v23, %v16026_v12  ;;  %v2675_v21 = vcombine.high %v16037_v24, %v16037_v24  ;;  %v2769_v54 = vcombine.high %v16114_v22, %v16114_v22 }
0x1533   : > { %v5437_v2 = vcombine.low %v5428_v55, %v5435_v4  ;;  %v5403_v39 = vcombine.low %v5395_v6, %v5402_v35  ;;  %v2771_v11 = vcombine.high %v16120_v26, %v16120_v26 }
0x1534   : > { %v5469_v31 = vcombine.low %v5461_v20, %v5468_v34 }
0x1535   : > { %15178 = vmatmul.mubr.msk.f32.vlgmr.msra.gmra.mrb[46].mxu0 %vm418_vm2, %v5403_v39  ;;  %v5451_v0 = vrot.slane %v5437_v2, %v16026_v12  ;;  %v19645_v2 = vld [vmem:[#allocation15_spill] sm:$0xff] }
0x1536   : > { %15192 = vmatpush3.msra.mxu0 %v16523_v28  ;;  %v5476_v44 = vrot.slane %v5469_v31, %v16026_v12  ;;  %v14688_v28 = vld [vmem:[%s19527_s5 + $0x3] ss:$0 sm:$0xff] }
0x1537   : > { %v5452_v33 = vcombine.low %v5444_v7, %v5451_v0  ;;  %15209 = vmatprep.subr.mxu0 %v19642_v62 }
0x1539   : > { %15180 = vmatprep.mubr.msk.f32.mxu0 %vm418_vm2, %v5452_v33  ;;  %v14702_v33 = vld [vmem:[%s19527_s5 + $0x5] ss:$0 sm:$0xff] }
0x153a   : > { %15181 = vmatmul.mubr.msk.f32.gmra.mrb[48].mxu0 %vm418_vm2, %v5476_v44 }
0x153b   : > { %15193 = vmatprep.mubr.msk.f32.mxu0 %vm418_vm2, %v15989_v40 }
0x153e   : > { %15194 = vmatmul.mubr.msk.f32.vlgmr.msra.gmra.mrb[50].mxu0 %vm418_vm2, %v15993_v51 }
0x153f   : > { %15196 = vmatprep.mubr.msk.f32.mxu0 %vm418_vm2, %v16008_v1 }
0x1542   : > { %15197 = vmatmul.mubr.msk.f32.gmra.mrb[52].mxu0 %vm418_vm2, %v16005_v63 }
0x1543   : > { %15211 = vmatprep.mubr.msk.f32.mxu0 %vm15645_vm3, %v19642_v62 }
0x1608   : > { %v15179_v27 = vpop.f32.mrb[46].mxu0 }
0x1609   : > { %v5557_v9 = vadd.f32 %v15179_v27, %v14688_v28  ;;  %v5551_v18 = vpop.f32.mrb[47].mxu0 }
0x160a   : > { %v5552_v42 = vadd.f32 %v14688_v28, %v5551_v18 }
0x160b   : > { %v5623_v16 = vcombine.high %v5557_v9, %v5557_v9  ;;  %v5630_v45 = vrot.slane %v5557_v9, %v16026_v12 }
0x160c   : > { %v5574_v56 = vcombine.high %v5552_v42, %v5552_v42  ;;  %v5581_v61 = vrot.slane %v5552_v42, %v16026_v12 }
0x160d   : > { %v5637_v48 = vrot.slane %v5623_v16, %v16026_v12  ;;  %v5638_v52 = vcombine.high %v5630_v45, %v5630_v45  ;;  %v5646_v46 = vrot.slane %v5630_v45, %v16026_v12  ;;  %v15182_v47 = vpop.f32.mrb[48].mxu0  ;;  %v19647_v16 = vld [vmem:[#allocation11_spill] sm:$0xff] }
0x160e   : > { %v5588_v59 = vrot.slane %v5574_v56, %v16026_v12  ;;  %v5589_v29 = vcombine.high %v5581_v61, %v5581_v61  ;;  %v5597_v37 = vrot.slane %v5581_v61, %v16026_v12  ;;  %v5561_v17 = vpop.f32.mrb[49].mxu0  ;;  %v5567_v3 = vadd.f32 %v15182_v47, %v14688_v28  ;;  %v19648_v56 = vld [vmem:[#allocation12_spill] sm:$0xff] }
0x160f   : > { %v5639_v13 = vcombine.high %v5637_v48, %v5637_v48  ;;  %v5653_v15 = vrot.slane %v5637_v48, %v16026_v12  ;;  %v5660_v36 = vrot.slane %v5638_v52, %v16026_v12  ;;  %v5668_v60 = vcombine.high %v5646_v46, %v5646_v46 }
0x1610   : > { %v5590_v43 = vcombine.high %v5588_v59, %v5588_v59  ;;  %v5604_v41 = vrot.slane %v5588_v59, %v16026_v12  ;;  %v5611_v58 = vrot.slane %v5589_v29, %v16026_v12  ;;  %v16621_v32 = vadd.f32 %v5646_v46, %v16070_v14 }
0x1611   : > { %v5667_v25 = vrot.slane %v5639_v13, %v16026_v12  ;;  %v5669_v8 = vcombine.high %v5653_v15, %v5653_v15  ;;  %v5670_v38 = vcombine.high %v5660_v36, %v5660_v36  ;;  %v16618_v30 = vadd.f32 %v5660_v36, %v16074_v50  ;;  %v15195_v23 = vpop.f32.mrb[50].mxu0  ;;  %v19646_v50 = vld [vmem:[#allocation16_spill] sm:$0xff] }
0x1612   : > { %v16624_v55 = vadd.f32 %v5668_v60, %v16085_v53  ;;  %v16627_v4 = vrot.slane %v5590_v43, %v16026_v12  ;;  %v5619_v6 = vcombine.high %v5597_v37, %v5597_v37  ;;  %v7387_v35 = vpop.f32.mrb[51].mxu0  ;;  %v16633_v39 = vadd.f32 %v5653_v15, %v19645_v2  ;;  %v19654_v43 = vld [vmem:[#allocation24_spill] sm:$0xff] }
0x1613   : > { %v5671_v20 = vcombine.high %v5667_v25, %v5667_v25  ;;  %v16630_v34 = vadd.f32 %v5670_v38, %v16067_v49  ;;  %v16636_v31 = vadd.f32 %v5667_v25, %v19646_v50  ;;  %v16639_v14 = vadd.f32 %v5669_v8, %v16114_v22 }
0x1614   : > { %v5878_v53 = vcombine.low %v16621_v32, %v16618_v30  ;;  %v5620_v7 = vcombine.high %v5604_v41, %v5604_v41  ;;  %v5621_v0 = vcombine.high %v5611_v58, %v5611_v58  ;;  %v5622_v49 = vcombine.high %v16627_v4, %v16627_v4 }
0x1615   : > { %v16649_v44 = vadd.f32 %v5597_v37, %v16031_v19  ;;  %v16652_v27 = vadd.f32 %v5611_v58, %v16037_v24  ;;  %v16654_v9 = vadd.f32 %v5619_v6, %v2673_v57  ;;  %v15198_v18 = vpop.f32.mrb[52].mxu0  ;;  %v16659_v45 = vadd.f32 %v5604_v41, %v19647_v16  ;;  %v19649_v19 = vld [vmem:[#allocation13_spill] sm:$0xff] }
0x1616   : > { %v16656_v42 = vadd.f32 %v5621_v0, %v2675_v21  ;;  %v16663_v61 = vadd.f32 %v16627_v4, %v19648_v56  ;;  %v5727_v48 = vrot.slane %v5567_v3, %v16026_v12  ;;  %v7397_v52 = vpop.f32.mrb[53].mxu0  ;;  %v16667_v46 = vadd.f32 %v5620_v7, %v19649_v19  ;;  %v19655_v4 = vld [vmem:[#allocation18_spill] sm:$0xff] }
0x1617   : > { %v5562_v24 = vadd.f32 %v14688_v28, %v5561_v17  ;;  %v16669_v47 = vadd.f32 %v15195_v23, %v14702_v33  ;;  %v16671_v57 = vadd.f32 %v14702_v33, %v7387_v35  ;;  %v16674_v29 = vadd.f32 %v15198_v18, %v14702_v33  ;;  %v19656_v35 = vld [vmem:[#allocation22_spill] sm:$0xff]  ;;  %v19657_v18 = vld [vmem:[#allocation23_spill] sm:$0xff] }
0x1618   : > { %v5728_v21 = vcombine.high %v5727_v48, %v5727_v48  ;;  %v5735_v59 = vrot.slane %v5727_v48, %v16026_v12  ;;  %v16676_v37 = vadd.f32 %v14702_v33, %v7397_v52  ;;  %v5829_v13 = vcombine.low %v16649_v44, %v16652_v27 }
0x1619   : > { %19650 = vst [vmem:[#allocation15_spill] sm:$0xff] %v16669_v47  ;;  %19651 = vst [vmem:[#allocation16_spill] sm:$0xff] %v16671_v57  ;;  %v5672_v15 = vcombine.high %v5562_v24, %v5562_v24  ;;  %v5679_v36 = vrot.slane %v5562_v24, %v16026_v12  ;;  %v16682_v60 = vadd.f32 %v5671_v20, %v16120_v26  ;;  %v19662_v26 = vld [vmem:[#allocation19_spill] sm:$0xff] }
0x161a   : > { %19652 = vst [vmem:[#allocation11_spill] sm:$0xff] %v16674_v29  ;;  %19653 = vst [vmem:[#allocation12_spill] sm:$0xff] %v16676_v37  ;;  %v5742_v28 = vrot.slane %v5728_v21, %v16026_v12  ;;  %v5743_v17 = vcombine.high %v5735_v59, %v5735_v59  ;;  %v16686_v41 = vadd.f32 %v5735_v59, %v19654_v43  ;;  %15210 = vmatpush3.xpose.msk.msra.mxu0 %vm523_vm4, %v16676_v37  ;;  %v19660_v43 = vld [vmem:[#allocation25_spill] sm:$0xff] }
0x161b   : > { %v5879_v58 = vcombine.low %v16624_v55, %v16630_v34  ;;  %v5686_v3 = vrot.slane %v5672_v15, %v16026_v12  ;;  %v5687_v25 = vcombine.high %v5679_v36, %v5679_v36  ;;  %v5695_v8 = vrot.slane %v5679_v36, %v16026_v12  ;;  %15219 = vmatprep.subr.mxu0 %v19642_v62  ;;  %v19658_v15 = vld [vmem:[#allocation21_spill] sm:$0xff] }
0x161c   : > { %v5880_v38 = vcombine.low %v16633_v39, %v16636_v31  ;;  %v5744_v23 = vcombine.high %v5742_v28, %v5742_v28  ;;  %v16698_v6 = vadd.f32 %v5742_v28, %v19655_v4  ;;  %v16701_v20 = vadd.f32 %v5743_v17, %v19656_v35  ;;  %v19659_v28 = vld [vmem:[#allocation26_spill] sm:$0xff] }
0x161d   : > { %v5881_v2 = vcombine.low %v16639_v14, %v16682_v60  ;;  %v5688_v50 = vcombine.high %v5686_v3, %v5686_v3  ;;  %v5702_v7 = vrot.slane %v5686_v3, %v16026_v12  ;;  %v5709_v0 = vrot.slane %v5687_v25, %v16026_v12  ;;  %v19661_v3 = vld [vmem:[#allocation17_spill] sm:$0xff]  ;;  %v19663_v35 = vld [vmem:[#allocation14_spill] sm:$0xff] }
0x161e   : > { %v5717_v33 = vcombine.high %v5695_v8, %v5695_v8  ;;  %v16708_v16 = vadd.f32 %v5744_v23, %v19657_v18  ;;  %v16713_v56 = vadd.f32 %v5695_v8, %v2769_v54  ;;  %v5888_v48 = vrot.slane %v5878_v53, %v16026_v12 }
0x161f   : > { %v5895_v52 = vrot.slane %v5879_v58, %v16026_v12  ;;  %v5716_v19 = vrot.slane %v5688_v50, %v16026_v12  ;;  %v5718_v24 = vcombine.high %v5702_v7, %v5702_v7  ;;  %v5719_v21 = vcombine.high %v5709_v0, %v5709_v0 }
0x1620   : > { %v16721_v59 = vadd.f32 %v5709_v0, %v2771_v11  ;;  %v16724_v36 = vadd.f32 %v5717_v33, %v19658_v15  ;;  %v16727_v22 = vadd.f32 %v5702_v7, %v19659_v28  ;;  %v5902_v54 = vrot.slane %v5880_v38, %v16026_v12  ;;  %v19664_v38 = vld [vmem:[#allocation20_spill] sm:$0xff] }
0x1621   : > { %v5909_v53 = vrot.slane %v5881_v2, %v16026_v12  ;;  %v5720_v17 = vcombine.high %v5716_v19, %v5716_v19  ;;  %v16732_v58 = vadd.f32 %v5719_v21, %v19660_v43  ;;  %v16735_v25 = vadd.f32 %v5716_v19, %v19661_v3 }
0x1622   : > { %v16738_v11 = vadd.f32 %v5718_v24, %v19662_v26  ;;  %v5927_v8 = vcombine.low %v16713_v56, %v16721_v59  ;;  %v5910_v23 = vcombine.low %v5888_v48, %v5895_v52  ;;  %v16743_v50 = vadd.f32 %v5622_v49, %v19663_v35 }
0x1623   : > { %v5911_v4 = vcombine.low %v5902_v54, %v5909_v53  ;;  %v16746_v2 = vadd.f32 %v5720_v17, %v19664_v38  ;;  %v5928_v7 = vcombine.low %v16724_v36, %v16732_v58  ;;  %v5929_v0 = vcombine.low %v16727_v22, %v16735_v25 }
0x1624   : > { %v5830_v33 = vcombine.low %v16654_v9, %v16656_v42  ;;  %v5918_v18 = vrot.slane %v5910_v23, %v16026_v12  ;;  %v5831_v49 = vcombine.low %v16659_v45, %v16663_v61  ;;  %v5832_v52 = vcombine.low %v16667_v46, %v16743_v50 }
0x1625   : > { %v5925_v48 = vrot.slane %v5911_v4, %v16026_v12  ;;  %v5839_v19 = vrot.slane %v5829_v13, %v16026_v12  ;;  %v5930_v21 = vcombine.low %v16738_v11, %v16746_v2  ;;  %v5937_v15 = vrot.slane %v5927_v8, %v16026_v12 }
0x1626   : > { %v5846_v24 = vrot.slane %v5830_v33, %v16026_v12  ;;  %v5853_v54 = vrot.slane %v5831_v49, %v16026_v12  ;;  %v5860_v53 = vrot.slane %v5832_v52, %v16026_v12  ;;  %v5944_v17 = vrot.slane %v5928_v7, %v16026_v12 }
0x1627   : > { %v5926_v28 = vcombine.low %v5918_v18, %v5925_v48  ;;  %v5951_v3 = vrot.slane %v5929_v0, %v16026_v12  ;;  %v5958_v26 = vrot.slane %v5930_v21, %v16026_v12  ;;  %v5977_v13 = vcombine.low %v16701_v20, %v16708_v16 }
0x1628   : > { %v5861_v43 = vcombine.low %v5839_v19, %v5846_v24  ;;  %v5976_v23 = vcombine.low %v16686_v41, %v16698_v6  ;;  %v5862_v4 = vcombine.low %v5853_v54, %v5860_v53  ;;  %v5959_v35 = vcombine.low %v5937_v15, %v5944_v17 }
0x1629   : > { %v6007_v8 = vsel %vm418_vm2, %v5926_v28, 0.0  ;;  %v5960_v38 = vcombine.low %v5951_v3, %v5958_v26  ;;  %v5991_v0 = vrot.slane %v5977_v13, %v16026_v12  ;;  %v16786_v53 = vsub.s32 0, %v16023_v5 }
0x162a   : > { %6008 = vadd.xlane.f32.xlu1 %v6007_v8  ;;  %v5869_v33 = vrot.slane %v5861_v43, %v16026_v12  ;;  %v5876_v7 = vrot.slane %v5862_v4, %v16026_v12  ;;  %v5967_v18 = vrot.slane %v5959_v35, %v16026_v12  ;;  %v5984_v52 = vrot.slane %v5976_v23, %v16026_v12 }
0x162b   : > { %v5974_v48 = vrot.slane %v5960_v38, %v16026_v12  ;;  %v16789_v17 = vsub.s32 1, %v16023_v5  ;;  %v16792_v43 = vsub.s32 2, %v16023_v5  ;;  %v16795_v3 = vsub.s32 3, %v16023_v5 }
0x162c   : > { %v5877_v49 = vcombine.low %v5869_v33, %v5876_v7  ;;  %v5992_v21 = vcombine.low %v5984_v52, %v5991_v0  ;;  %v16798_v13 = vsub.s32 4, %v16023_v5  ;;  %v16801_v23 = vsub.s32 5, %v16023_v5 }
0x162d   : > { %v5975_v19 = vcombine.low %v5967_v18, %v5974_v48  ;;  %v16804_v8 = vsub.s32 6, %v16023_v5  ;;  %v16807_v4 = vsub.s32 7, %v16023_v5 }
0x162e   : > { %v6004_v24 = vsel %vm418_vm2, %v5877_v49, 0.0  ;;  %v5999_v28 = vrot.slane %v5992_v21, %v16026_v12  ;;  %19665 = vst [vmem:[#allocation13_spill] sm:$0xff] %v16798_v13  ;;  %19666 = vst [vmem:[#allocation24_spill] sm:$0xff] %v16801_v23 }
0x162f   : > { %6005 = vadd.xlane.f32.xlu0 %v6004_v24  ;;  %v6010_v15 = vsel %vm418_vm2, %v5975_v19, 0.0  ;;  %19667 = vst [vmem:[#allocation18_spill] sm:$0xff] %v16804_v8  ;;  %19668 = vst [vmem:[#allocation22_spill] sm:$0xff] %v16807_v4 }
0x1630   : > { %v6014_v54 = vsel %vm6013_vm11, %v5999_v28, 0.0 }
0x1633   : > { %6011 = vadd.xlane.f32.xlu0 %v6010_v15 }
0x1637   : > { %6015 = vadd.xlane.f32.xlu0 %v6014_v54 }
0x16b7   : > { %v6009_v26 = vpop.xlane.xlu1 %6008 }
0x16b8   : > { %v6018_v35 = vmul.f32 0.125, %v6009_v26 }
0x16ba   : > { %v6060_v38 = vrot.slane %v6018_v35, %v16786_v53  ;;  %v6064_v33 = vrot.slane %v6018_v35, %v16789_v17  ;;  %v6068_v7 = vrot.slane %v6018_v35, %v16792_v43  ;;  %v6072_v0 = vrot.slane %v6018_v35, %v16795_v3 }
0x16bb   : > { %v6076_v18 = vrot.slane %v6018_v35, %v16798_v13  ;;  %v6080_v48 = vrot.slane %v6018_v35, %v16801_v23  ;;  %v6084_v49 = vrot.slane %v6018_v35, %v16804_v8  ;;  %v6088_v52 = vrot.slane %v6018_v35, %v16807_v4 }
0x16bc   : > { %v16818_v19 = vsub.f32 %v16621_v32, %v6060_v38  ;;  %v16821_v24 = vsub.f32 %v16618_v30, %v6064_v33  ;;  %v16824_v21 = vsub.f32 %v16624_v55, %v6068_v7  ;;  %v16827_v15 = vsub.f32 %v16630_v34, %v6072_v0  ;;  %v6006_v28 = vpop.xlane.xlu0 %6005 }
0x16bd   : > { %v16830_v54 = vsub.f32 %v16633_v39, %v6076_v18  ;;  %v16833_v26 = vsub.f32 %v16636_v31, %v6080_v48  ;;  %v16836_v35 = vsub.f32 %v16639_v14, %v6084_v49  ;;  %v16839_v32 = vsub.f32 %v16682_v60, %v6088_v52 }
0x16be   : > { %v6017_v30 = vmul.f32 0.125, %v6006_v28  ;;  %v6201_v55 = vmul.f32 %v16818_v19, %v16818_v19  ;;  %v6202_v34 = vmul.f32 %v16821_v24, %v16821_v24  ;;  %v6203_v39 = vmul.f32 %v16824_v21, %v16824_v21 }
0x16bf   : > { %v6204_v31 = vmul.f32 %v16827_v15, %v16827_v15  ;;  %v6205_v14 = vmul.f32 %v16830_v54, %v16830_v54  ;;  %v6206_v60 = vmul.f32 %v16833_v26, %v16833_v26  ;;  %v6207_v38 = vmul.f32 %v16836_v35, %v16836_v35 }
0x16c0   : > { %v6208_v33 = vmul.f32 %v16839_v32, %v16839_v32  ;;  %v6298_v7 = vcombine.low %v6201_v55, %v6202_v34  ;;  %v6028_v0 = vrot.slane %v6017_v30, %v16786_v53  ;;  %v6032_v18 = vrot.slane %v6017_v30, %v16789_v17  ;;  %v6012_v48 = vpop.xlane.xlu0 %6011 }
0x16c1   : > { %v6299_v49 = vcombine.low %v6203_v39, %v6204_v31  ;;  %v6300_v52 = vcombine.low %v6205_v14, %v6206_v60  ;;  %v6036_v28 = vrot.slane %v6017_v30, %v16792_v43  ;;  %v6040_v5 = vrot.slane %v6017_v30, %v16795_v3 }
0x16c2   : > { %v16861_v63 = vmul.f32 0.125, %v6012_v48  ;;  %v6301_v1 = vcombine.low %v6207_v38, %v6208_v33  ;;  %v6308_v51 = vrot.slane %v6298_v7, %v16026_v12  ;;  %v6044_v40 = vrot.slane %v6017_v30, %v16798_v13 }
0x16c3   : > { %v6315_v55 = vrot.slane %v6299_v49, %v16026_v12  ;;  %v6322_v34 = vrot.slane %v6300_v52, %v16026_v12  ;;  %v6048_v37 = vrot.slane %v6017_v30, %v16801_v23  ;;  %v6052_v39 = vrot.slane %v6017_v30, %v16804_v8 }
0x16c4   : > { %v6329_v31 = vrot.slane %v6301_v1, %v16026_v12  ;;  %v6056_v14 = vrot.slane %v6017_v30, %v16807_v4  ;;  %v16872_v60 = vsub.f32 %v16649_v44, %v6028_v0  ;;  %v16875_v38 = vsub.f32 %v16652_v27, %v6032_v18  ;;  %v6016_v33 = vpop.xlane.xlu0 %6015 }
0x16c5   : > { %v6330_v7 = vcombine.low %v6308_v51, %v6315_v55  ;;  %v16878_v48 = vsub.f32 %v16654_v9, %v6036_v28  ;;  %v16881_v49 = vsub.f32 %v16656_v42, %v6040_v5  ;;  %v16884_v52 = vsub.f32 %v16659_v45, %v6044_v40 }
0x16c6   : > { %v6020_v1 = vmul.f32 0.125, %v6016_v33  ;;  %v6331_v10 = vcombine.low %v6322_v34, %v6329_v31  ;;  %v16887_v30 = vsub.f32 %v16663_v61, %v6048_v37  ;;  %v16890_v44 = vsub.f32 %v16667_v46, %v6052_v39 }
0x16c7   : > { %v6338_v27 = vrot.slane %v6330_v7, %v16026_v12  ;;  %v16894_v51 = vsub.f32 %v16743_v50, %v6056_v14  ;;  %v6193_v5 = vmul.f32 %v16872_v60, %v16872_v60  ;;  %v6194_v40 = vmul.f32 %v16875_v38, %v16875_v38 }
0x16c8   : > { %v6124_v9 = vrot.slane %v6020_v1, %v16786_v53  ;;  %v6128_v42 = vrot.slane %v6020_v1, %v16789_v17  ;;  %v6132_v45 = vrot.slane %v6020_v1, %v16792_v43  ;;  %v6136_v61 = vrot.slane %v6020_v1, %v16795_v3 }
0x16c9   : > { %v6345_v46 = vrot.slane %v6331_v10, %v16026_v12  ;;  %v6195_v37 = vmul.f32 %v16878_v48, %v16878_v48  ;;  %v6196_v50 = vmul.f32 %v16881_v49, %v16881_v49  ;;  %v6197_v0 = vmul.f32 %v16884_v52, %v16884_v52 }
0x16ca   : > { %v16912_v18 = vsub.f32 %v16686_v41, %v6124_v9  ;;  %v16915_v28 = vsub.f32 %v16698_v6, %v6128_v42  ;;  %v16918_v55 = vsub.f32 %v16701_v20, %v6132_v45  ;;  %v16921_v10 = vsub.f32 %v16708_v16, %v6136_v61 }
0x16cb   : > { %v6346_v34 = vcombine.low %v6338_v27, %v6345_v46  ;;  %v6198_v39 = vmul.f32 %v16887_v30, %v16887_v30  ;;  %v6199_v31 = vmul.f32 %v16890_v44, %v16890_v44  ;;  %v6200_v41 = vmul.f32 %v16894_v51, %v16894_v51 }
0x16cc   : > { %19669 = vst [vmem:[#allocation23_spill] sm:$0xff] %v16912_v18  ;;  %19670 = vst [vmem:[#allocation21_spill] sm:$0xff] %v16915_v28  ;;  %v6249_v14 = vcombine.low %v6193_v5, %v6194_v40  ;;  %v6250_v33 = vcombine.low %v6195_v37, %v6196_v50  ;;  %v6092_v6 = vrot.slane %v16861_v63, %v16786_v53 }
0x16cd   : > { %19671 = vst [vmem:[#allocation26_spill] sm:$0xff] %v16918_v55  ;;  %19672 = vst [vmem:[#allocation25_spill] sm:$0xff] %v16921_v10  ;;  %v6096_v20 = vrot.slane %v16861_v63, %v16789_v17  ;;  %v6427_v16 = vsel %vm418_vm2, %v6346_v34, 0.0  ;;  %v6251_v7 = vcombine.low %v6197_v0, %v6198_v39  ;;  %v6252_v1 = vcombine.low %v6199_v31, %v6200_v41 }
0x16ce   : > { %v6100_v27 = vrot.slane %v16861_v63, %v16792_v43  ;;  %6428 = vadd.xlane.f32.xlu0 %v6427_v16  ;;  %v6259_v9 = vrot.slane %v6249_v14, %v16026_v12  ;;  %v6266_v42 = vrot.slane %v6250_v33, %v16026_v12  ;;  %v6104_v5 = vrot.slane %v16861_v63, %v16795_v3 }
0x16cf   : > { %v6108_v40 = vrot.slane %v16861_v63, %v16798_v13  ;;  %v6273_v45 = vrot.slane %v6251_v7, %v16026_v12  ;;  %v6280_v61 = vrot.slane %v6252_v1, %v16026_v12  ;;  %v6112_v46 = vrot.slane %v16861_v63, %v16801_v23 }
0x16d0   : > { %v6116_v37 = vrot.slane %v16861_v63, %v16804_v8  ;;  %v6281_v50 = vcombine.low %v6259_v9, %v6266_v42  ;;  %v6120_v0 = vrot.slane %v16861_v63, %v16807_v4  ;;  %v16951_v34 = vsub.f32 %v16713_v56, %v6092_v6 }
0x16d1   : > { %v16954_v39 = vsub.f32 %v16721_v59, %v6096_v20  ;;  %v6282_v31 = vcombine.low %v6273_v45, %v6280_v61  ;;  %v16957_v41 = vsub.f32 %v16724_v36, %v6100_v27  ;;  %v16960_v14 = vsub.f32 %v16732_v58, %v6104_v5 }
0x16d2   : > { %v16963_v33 = vsub.f32 %v16727_v22, %v6108_v40  ;;  %v6289_v16 = vrot.slane %v6281_v50, %v16026_v12  ;;  %v16967_v63 = vsub.f32 %v16735_v25, %v6112_v46  ;;  %v16970_v56 = vsub.f32 %v16738_v11, %v6116_v37 }
0x16d3   : > { %v16973_v59 = vsub.f32 %v16746_v2, %v6120_v0  ;;  %v6296_v36 = vrot.slane %v6282_v31, %v16026_v12  ;;  %v6209_v58 = vmul.f32 %v16951_v34, %v16951_v34  ;;  %v6210_v22 = vmul.f32 %v16954_v39, %v16954_v39 }
0x16d4   : > { %19673 = vst [vmem:[#allocation17_spill] sm:$0xff] %v16963_v33  ;;  %19674 = vst [vmem:[#allocation19_spill] sm:$0xff] %v16967_v63  ;;  %v6211_v6 = vmul.f32 %v16957_v41, %v16957_v41  ;;  %v6212_v25 = vmul.f32 %v16960_v14, %v16960_v14  ;;  %v6213_v11 = vmul.f32 %v16963_v33, %v16963_v33 }
0x16d5   : > { %19675 = vst [vmem:[#allocation14_spill] sm:$0xff] %v16970_v56  ;;  %19676 = vst [vmem:[#allocation20_spill] sm:$0xff] %v16973_v59  ;;  %v6214_v2 = vmul.f32 %v16967_v63, %v16967_v63  ;;  %v6215_v20 = vmul.f32 %v16970_v56, %v16970_v56  ;;  %v6297_v7 = vcombine.low %v6289_v16, %v6296_v36 }
0x16d6   : > { %v6216_v1 = vmul.f32 %v16973_v59, %v16973_v59  ;;  %v6347_v27 = vcombine.low %v6209_v58, %v6210_v22  ;;  %v6217_v9 = vmul.f32 %v16912_v18, %v16912_v18  ;;  %v6348_v42 = vcombine.low %v6211_v6, %v6212_v25 }
0x16d7   : > { %v6349_v5 = vcombine.low %v6213_v11, %v6214_v2  ;;  %v6218_v40 = vmul.f32 %v16915_v28, %v16915_v28  ;;  %v6219_v45 = vmul.f32 %v16918_v55, %v16918_v55  ;;  %v6424_v61 = vsel %vm418_vm2, %v6297_v7, 0.0 }
0x16d8   : > { %v6350_v46 = vcombine.low %v6215_v20, %v6216_v1  ;;  %v6357_v37 = vrot.slane %v6347_v27, %v16026_v12  ;;  %v6220_v50 = vmul.f32 %v16921_v10, %v16921_v10  ;;  %6425 = vadd.xlane.f32.xlu1 %v6424_v61  ;;  %v6364_v0 = vrot.slane %v6348_v42, %v16026_v12 }
0x16d9   : > { %v6371_v31 = vrot.slane %v6349_v5, %v16026_v12  ;;  %v6396_v16 = vcombine.low %v6217_v9, %v6218_v40  ;;  %v6802_v5 = vld [vmem:[%s19526_s4 + $0x38] sm:$0xff]  ;;  %v14695_v40 = vld [vmem:[%s19527_s5 + $0xf] ss:$0 sm:$0xff] }
0x16da   : > { %v6378_v36 = vrot.slane %v6350_v46, %v16026_v12  ;;  %v6397_v58 = vcombine.low %v6219_v45, %v6220_v50  ;;  %v6379_v22 = vcombine.low %v6357_v37, %v6364_v0  ;;  %15183 = vmatprep.subr.mxu1 %v6802_v5  ;;  %v14696_v45 = vld [vmem:[%s19527_s5 + $0x10] ss:$0 sm:$0xff]  ;;  %v6626_v61 = vcombine.high %v14695_v40, %v14695_v40 }
0x16db   : > { %v6404_v6 = vrot.slane %v6396_v16, %v16026_v12  ;;  %15184 = vmatpush3.msra.mxu1 %v6802_v5  ;;  %v6717_v46 = vcombine.high %v14696_v45, %v14696_v45  ;;  %v6633_v0 = vrot.slane %v14695_v40, %v16026_v12 }
0x16dc   : > { %v6380_v25 = vcombine.low %v6371_v31, %v6378_v36  ;;  %v6411_v11 = vrot.slane %v6397_v58, %v16026_v12  ;;  %v6387_v2 = vrot.slane %v6379_v22, %v16026_v12  ;;  %15199 = vmatprep.subr.mxu1 %v19642_v62  ;;  %v6640_v31 = vrot.slane %v6626_v61, %v16026_v12 }
0x16dd   : > { %v6724_v36 = vrot.slane %v14696_v45, %v16026_v12  ;;  %v6731_v58 = vrot.slane %v6717_v46, %v16026_v12  ;;  %v6641_v22 = vcombine.high %v6633_v0, %v6633_v0 }
0x16de   : > { %v6394_v20 = vrot.slane %v6380_v25, %v16026_v12  ;;  %v6412_v7 = vcombine.low %v6404_v6, %v6411_v11  ;;  %v6642_v6 = vcombine.high %v6640_v31, %v6640_v31 }
0x16df   : > { %v6732_v25 = vcombine.high %v6724_v36, %v6724_v36  ;;  %v6733_v11 = vcombine.high %v6731_v58, %v6731_v58  ;;  %v17042_v5 = vrot.slane %v6731_v58, %v16026_v12 }
0x16e0   : > { %v6395_v1 = vcombine.low %v6387_v2, %v6394_v20  ;;  %v6419_v27 = vrot.slane %v6412_v7, %v16026_v12  ;;  %v17027_v2 = vrot.slane %v6633_v0, %v16026_v12  ;;  %v17030_v7 = vrot.slane %v6640_v31, %v16026_v12 }
0x16e1   : > { %v17045_v40 = vrot.slane %v6732_v25, %v16026_v12  ;;  %v17048_v45 = vrot.slane %v6733_v11, %v16026_v12 }
0x16e2   : > { %v6430_v42 = vsel %vm418_vm2, %v6395_v1, 0.0  ;;  %v6433_v9 = vsel %vm6013_vm11, %v6419_v27, 0.0  ;;  %v17033_v1 = vrot.slane %v6641_v22, %v16026_v12  ;;  %v17036_v27 = vrot.slane %v6642_v6, %v16026_v12 }
0x16e3   : > { %6431 = vadd.xlane.f32.xlu1 %v6430_v42  ;;  %6434 = vadd.xlane.f32.xlu0 %v6433_v9  ;;  %v17039_v42 = vrot.slane %v6724_v36, %v16026_v12  ;;  %v17052_v46 = vcombine.high %v17027_v2, %v17027_v2  ;;  %v17072_v36 = vcombine.high %v17042_v5, %v17042_v5 }
0x16e4   : > { %v17064_v0 = vcombine.high %v17036_v27, %v17036_v27  ;;  %v17076_v58 = vcombine.high %v17045_v40, %v17045_v40  ;;  %v17080_v22 = vcombine.high %v17048_v45, %v17048_v45 }
0x16e5   : > { %v17068_v31 = vcombine.high %v17039_v42, %v17039_v42 }
0x175b   : > { %v6429_v37 = vpop.xlane.xlu0 %6428 }
0x175c   : > { %v6437_v50 = vmul.f32 0.125, %v6429_v37  ;;  %v17056_v37 = vcombine.high %v17030_v7, %v17030_v7 }
0x175e   : > { %v6441_v16 = vadd.f32 1e-05, %v6437_v50  ;;  %v17060_v50 = vcombine.high %v17033_v1, %v17033_v1 }
0x1760   : > { %15424 = vrsqrt.f32 %v6441_v16 }
0x1765   : > { %v6426_v20 = vpop.xlane.xlu1 %6425 }
0x1766   : > { %v6436_v9 = vmul.f32 0.125, %v6426_v20 }
0x1768   : > { %v6440_v61 = vadd.f32 1e-05, %v6436_v9 }
0x176a   : > { %v15425_v16 = vpop.eup %15424  ;;  %15426 = vrsqrt.f32 %v6440_v61 }
0x176b   : > { %v6487_v6 = vrot.slane %v15425_v16, %v16786_v53  ;;  %v6491_v25 = vrot.slane %v15425_v16, %v16789_v17  ;;  %v6495_v11 = vrot.slane %v15425_v16, %v16792_v43  ;;  %v6499_v20 = vrot.slane %v15425_v16, %v16795_v3 }
0x176c   : > { %v6503_v9 = vrot.slane %v15425_v16, %v16798_v13  ;;  %v6507_v61 = vrot.slane %v15425_v16, %v16801_v23  ;;  %v6511_v29 = vrot.slane %v15425_v16, %v16804_v8  ;;  %v6515_v47 = vrot.slane %v15425_v16, %v16807_v4 }
0x176d   : > { %v6600_v10 = vmul.f32 %v6487_v6, %v16818_v19  ;;  %v6601_v55 = vmul.f32 %v6491_v25, %v16821_v24  ;;  %v6602_v28 = vmul.f32 %v6495_v11, %v16824_v21  ;;  %v6603_v18 = vmul.f32 %v6499_v20, %v16827_v15 }
0x176e   : > { %v6604_v62 = vmul.f32 %v6503_v9, %v16830_v54  ;;  %v6605_v57 = vmul.f32 %v6507_v61, %v16833_v26  ;;  %v6606_v59 = vmul.f32 %v6511_v29, %v16836_v35  ;;  %v6607_v56 = vmul.f32 %v6515_v47, %v16839_v32 }
0x176f   : > { %v6691_v16 = vmul.f32 %v17027_v2, %v6600_v10  ;;  %v6692_v19 = vmul.f32 %v17033_v1, %v6601_v55  ;;  %v6693_v24 = vmul.f32 %v17052_v46, %v6602_v28  ;;  %v6694_v21 = vmul.f32 %v17060_v50, %v6603_v18 }
0x1770   : > { %v6432_v63 = vpop.xlane.xlu1 %6431  ;;  %v6435_v33 = vpop.xlane.xlu0 %6434  ;;  %v6695_v54 = vmul.f32 %v17030_v7, %v6604_v62  ;;  %v6696_v26 = vmul.f32 %v17036_v27, %v6605_v57  ;;  %v6697_v29 = vmul.f32 %v17056_v37, %v6606_v59  ;;  %v6698_v47 = vmul.f32 %v17064_v0, %v6607_v56 }
0x1771   : > { %v6438_v6 = vmul.f32 0.125, %v6432_v63  ;;  %v6439_v15 = vmul.f32 0.125, %v6435_v33  ;;  %v17107_v35 = vadd.f32 %v17039_v42, %v6691_v16  ;;  %v17110_v32 = vadd.f32 %v17045_v40, %v6692_v19 }
0x1772   : > { %v17113_v18 = vadd.f32 %v17068_v31, %v6693_v24  ;;  %v17116_v10 = vadd.f32 %v17076_v58, %v6694_v21  ;;  %v17119_v62 = vadd.f32 %v17042_v5, %v6695_v54  ;;  %v17122_v57 = vadd.f32 %v17048_v45, %v6696_v26 }
0x1773   : > { %v6442_v55 = vadd.f32 1e-05, %v6438_v6  ;;  %v6443_v28 = vadd.f32 1e-05, %v6439_v15  ;;  %v17125_v33 = vadd.f32 %v17072_v36, %v6697_v29  ;;  %v17128_v56 = vadd.f32 %v17080_v22, %v6698_v47 }
0x1774   : > { %19677 = vst [vmem:[#allocation28_spill] sm:$0xff] %v17116_v10  ;;  %v15427_v63 = vpop.eup %15426  ;;  %v6885_v59 = vcombine.low %v17107_v35, %v17110_v32  ;;  %v6886_v25 = vcombine.low %v17113_v18, %v17116_v10 }
0x1775   : > { %15428 = vrsqrt.f32 %v6442_v55  ;;  %v6455_v11 = vrot.slane %v15427_v63, %v16786_v53  ;;  %v6459_v20 = vrot.slane %v15427_v63, %v16789_v17  ;;  %v6463_v9 = vrot.slane %v15427_v63, %v16792_v43 }
0x1776   : > { %15430 = vrsqrt.f32 %v6443_v28  ;;  %v6467_v61 = vrot.slane %v15427_v63, %v16795_v3  ;;  %v6471_v16 = vrot.slane %v15427_v63, %v16798_v13  ;;  %v6475_v19 = vrot.slane %v15427_v63, %v16801_v23 }
0x1777   : > { %v6479_v24 = vrot.slane %v15427_v63, %v16804_v8  ;;  %v6483_v21 = vrot.slane %v15427_v63, %v16807_v4  ;;  %v6592_v6 = vmul.f32 %v6455_v11, %v16872_v60  ;;  %v6593_v15 = vmul.f32 %v6459_v20, %v16875_v38 }
0x1778   : > { %v6594_v54 = vmul.f32 %v6463_v9, %v16878_v48  ;;  %v6595_v26 = vmul.f32 %v6467_v61, %v16881_v49  ;;  %v6596_v29 = vmul.f32 %v6471_v16, %v16884_v52  ;;  %v6597_v47 = vmul.f32 %v6475_v19, %v16887_v30 }
0x1779   : > { %v6598_v55 = vmul.f32 %v6479_v24, %v16890_v44  ;;  %v6599_v28 = vmul.f32 %v6483_v21, %v16894_v51  ;;  %v6683_v10 = vmul.f32 %v17027_v2, %v6592_v6  ;;  %v6684_v63 = vmul.f32 %v17033_v1, %v6593_v15 }
0x177a   : > { %v6685_v60 = vmul.f32 %v17052_v46, %v6594_v54  ;;  %v6686_v38 = vmul.f32 %v17060_v50, %v6595_v26  ;;  %v6687_v48 = vmul.f32 %v17030_v7, %v6596_v29  ;;  %v6688_v49 = vmul.f32 %v17036_v27, %v6597_v47 }
0x177b   : > { %v6689_v52 = vmul.f32 %v17056_v37, %v6598_v55  ;;  %v6690_v30 = vmul.f32 %v17064_v0, %v6599_v28  ;;  %v17159_v44 = vadd.f32 %v17039_v42, %v6683_v10  ;;  %v17162_v51 = vadd.f32 %v17045_v40, %v6684_v63 }
0x177c   : > { %v17165_v11 = vadd.f32 %v17068_v31, %v6685_v60  ;;  %v17168_v20 = vadd.f32 %v17076_v58, %v6686_v38  ;;  %v17171_v9 = vadd.f32 %v17042_v5, %v6687_v48  ;;  %v17174_v61 = vadd.f32 %v17048_v45, %v6688_v49 }
0x177d   : > { %v17177_v16 = vadd.f32 %v17072_v36, %v6689_v52  ;;  %v17180_v10 = vadd.f32 %v17080_v22, %v6690_v30  ;;  %v6836_v19 = vcombine.low %v17159_v44, %v17162_v51  ;;  %v6887_v24 = vcombine.low %v17119_v62, %v17122_v57 }
0x177e   : > { %19678 = vst [vmem:[#allocation29_spill] sm:$0xff] %v17165_v11  ;;  %19679 = vst [vmem:[#allocation30_spill] sm:$0xff] %v17171_v9  ;;  %v6888_v21 = vcombine.low %v17125_v33, %v17128_v56  ;;  %v6837_v15 = vcombine.low %v17165_v11, %v17168_v20  ;;  %v6838_v54 = vcombine.low %v17171_v9, %v17174_v61 }
0x177f   : > { %19680 = vst [vmem:[#allocation31_spill] sm:$0xff] %v17174_v61  ;;  %19681 = vst [vmem:[#allocation32_spill] sm:$0xff] %v17177_v16  ;;  %v15429_v6 = vpop.eup %15428  ;;  %v6895_v26 = vrot.slane %v6885_v59, %v16026_v12  ;;  %v6902_v29 = vrot.slane %v6886_v25, %v16026_v12  ;;  %v6839_v55 = vcombine.low %v17177_v16, %v17180_v10 }
0x1780   : > { %19682 = vst [vmem:[#allocation33_spill] sm:$0xff] %v17180_v10  ;;  %v17194_v47 = vpop.eup %15430  ;;  %v6846_v28 = vrot.slane %v6836_v19, %v16026_v12  ;;  %v6909_v63 = vrot.slane %v6887_v24, %v16026_v12  ;;  %v6916_v60 = vrot.slane %v6888_v21, %v16026_v12  ;;  %v6853_v38 = vrot.slane %v6837_v15, %v16026_v12 }
0x1781   : > { %v6860_v48 = vrot.slane %v6838_v54, %v16026_v12  ;;  %v6917_v49 = vcombine.low %v6895_v26, %v6902_v29  ;;  %v6519_v59 = vrot.slane %v15429_v6, %v16786_v53  ;;  %v6867_v25 = vrot.slane %v6839_v55, %v16026_v12 }
0x1782   : > { %v6918_v52 = vcombine.low %v6909_v63, %v6916_v60  ;;  %v6523_v30 = vrot.slane %v15429_v6, %v16789_v17  ;;  %v6527_v10 = vrot.slane %v15429_v6, %v16792_v43  ;;  %v6868_v16 = vcombine.low %v6846_v28, %v6853_v38 }
0x1783   : > { %v6925_v19 = vrot.slane %v6917_v49, %v16026_v12  ;;  %v6531_v24 = vrot.slane %v15429_v6, %v16795_v3  ;;  %v6535_v21 = vrot.slane %v15429_v6, %v16798_v13  ;;  %v6869_v15 = vcombine.low %v6860_v48, %v6867_v25  ;;  %v19683_v25 = vld [vmem:[#allocation17_spill] sm:$0xff] }
0x1784   : > { %v6932_v54 = vrot.slane %v6918_v52, %v16026_v12  ;;  %v6539_v26 = vrot.slane %v15429_v6, %v16801_v23  ;;  %v6543_v29 = vrot.slane %v15429_v6, %v16804_v8  ;;  %v6876_v55 = vrot.slane %v6868_v16, %v16026_v12  ;;  %v19684_v23 = vld [vmem:[#allocation19_spill] sm:$0xff]  ;;  %v19685_v8 = vld [vmem:[#allocation14_spill] sm:$0xff]  ;;  %v19686_v16 = vld [vmem:[#allocation20_spill] sm:$0xff] }
0x1785   : > { %v6547_v63 = vrot.slane %v15429_v6, %v16807_v4  ;;  %v6608_v60 = vmul.f32 %v6519_v59, %v16951_v34  ;;  %v6609_v28 = vmul.f32 %v6523_v30, %v16954_v39  ;;  %v6883_v38 = vrot.slane %v6869_v15, %v16026_v12 }
0x1786   : > { %v6933_v49 = vcombine.low %v6925_v19, %v6932_v54  ;;  %v6610_v13 = vmul.f32 %v6527_v10, %v16957_v41  ;;  %v6611_v48 = vmul.f32 %v6531_v24, %v16960_v14  ;;  %v6612_v52 = vmul.f32 %v6535_v21, %v19683_v25  ;;  %v19692_v25 = vld [vmem:[#allocation25_spill] sm:$0xff] }
0x1787   : > { %v6613_v61 = vmul.f32 %v6539_v26, %v19684_v23  ;;  %v6614_v9 = vmul.f32 %v6543_v29, %v19685_v8  ;;  %v6615_v11 = vmul.f32 %v6547_v63, %v19686_v16  ;;  %v6884_v6 = vcombine.low %v6876_v55, %v6883_v38  ;;  %v19689_v29 = vld [vmem:[#allocation23_spill] sm:$0xff]  ;;  %v19690_v63 = vld [vmem:[#allocation21_spill] sm:$0xff] }
0x1788   : > { %v6699_v34 = vmul.f32 %v17027_v2, %v6608_v60  ;;  %v6700_v39 = vmul.f32 %v17033_v1, %v6609_v28  ;;  %v6701_v59 = vmul.f32 %v17052_v46, %v6610_v13  ;;  %v6702_v30 = vmul.f32 %v17060_v50, %v6611_v48 }
0x1789   : > { %v6703_v41 = vmul.f32 %v17030_v7, %v6612_v52  ;;  %v6704_v14 = vmul.f32 %v17036_v27, %v6613_v61  ;;  %v6705_v10 = vmul.f32 %v17056_v37, %v6614_v9  ;;  %15185 = vmatprep.mubr.msk.f32.mxu1 %vm418_vm2, %v6884_v6  ;;  %v6706_v23 = vmul.f32 %v17064_v0, %v6615_v11  ;;  %v19687_v11 = vld [vmem:[#allocation16_spill] sm:$0xff] }
0x178a   : > { %v17234_v8 = vadd.f32 %v17039_v42, %v6699_v34  ;;  %v17237_v19 = vadd.f32 %v17045_v40, %v6700_v39  ;;  %v17240_v13 = vadd.f32 %v17068_v31, %v6701_v59  ;;  %15186 = vmatmul.mubr.msk.f32.vlgmr.msra.gmra.mrb[50].mxu1 %vm418_vm2, %v6933_v49  ;;  %v17244_v7 = vadd.f32 %v17076_v58, %v6702_v30  ;;  %v19691_v49 = vld [vmem:[#allocation26_spill] sm:$0xff] }
0x178b   : > { %v17247_v27 = vadd.f32 %v17042_v5, %v6703_v41  ;;  %v17250_v37 = vadd.f32 %v17048_v45, %v6704_v14  ;;  %v17253_v0 = vadd.f32 %v17072_v36, %v6705_v10  ;;  %15200 = vmatpush3.xpose.msk.msra.mxu1 %vm523_vm4, %v19687_v11  ;;  %v17258_v9 = vadd.f32 %v17080_v22, %v6706_v23 }
0x178c   : > { %v6934_v61 = vcombine.low %v17234_v8, %v17237_v19  ;;  %v6551_v24 = vrot.slane %v17194_v47, %v16786_v53  ;;  %v6555_v5 = vrot.slane %v17194_v47, %v16789_v17  ;;  %v6935_v45 = vcombine.low %v17240_v13, %v17244_v7 }
0x178d   : > { %v6936_v36 = vcombine.low %v17247_v27, %v17250_v37  ;;  %v6559_v21 = vrot.slane %v17194_v47, %v16792_v43  ;;  %v6563_v22 = vrot.slane %v17194_v47, %v16795_v3  ;;  %v19688_v15 = vmov 0.0  }
0x178e   : > { %15204 = vmatprep.subr.mxu1 %v19688_v15  ;;  %v6937_v54 = vcombine.low %v17253_v0, %v17258_v9  ;;  %v6944_v26 = vrot.slane %v6934_v61, %v16026_v12  ;;  %v6616_v55 = vmul.f32 %v6551_v24, %v19689_v29  ;;  %v6617_v60 = vmul.f32 %v6555_v5, %v19690_v63 }
0x178f   : > { %v6951_v28 = vrot.slane %v6935_v45, %v16026_v12  ;;  %v6958_v38 = vrot.slane %v6936_v36, %v16026_v12  ;;  %v6618_v48 = vmul.f32 %v6559_v21, %v19691_v49  ;;  %v6619_v52 = vmul.f32 %v6563_v22, %v19692_v25 }
0x1790   : > { %v6965_v47 = vrot.slane %v6937_v54, %v16026_v12  ;;  %v6707_v16 = vmul.f32 %v17027_v2, %v6616_v55  ;;  %v6708_v6 = vmul.f32 %v17033_v1, %v6617_v60 }
0x1791   : > { %v6966_v34 = vcombine.low %v6944_v26, %v6951_v28  ;;  %v6709_v39 = vmul.f32 %v17052_v46, %v6618_v48  ;;  %v6710_v59 = vmul.f32 %v17060_v50, %v6619_v52 }
0x1792   : > { %v6967_v30 = vcombine.low %v6958_v38, %v6965_v47  ;;  %v17290_v41 = vadd.f32 %v17039_v42, %v6707_v16  ;;  %v17293_v14 = vadd.f32 %v17045_v40, %v6708_v6 }
0x1793   : > { %v6974_v10 = vrot.slane %v6966_v34, %v16026_v12  ;;  %v17297_v23 = vadd.f32 %v17068_v31, %v6709_v39  ;;  %v17300_v2 = vadd.f32 %v17076_v58, %v6710_v59  ;;  %v17317_v58 = vld [vmem:[%s19527_s5 + $0x4] ss:$0 sm:$0xff] }
0x1794   : > { %v6981_v1 = vrot.slane %v6967_v30, %v16026_v12  ;;  %v6983_v46 = vcombine.low %v17290_v41, %v17293_v14 }
0x1795   : > { %v6984_v42 = vcombine.low %v17297_v23, %v17300_v2 }
0x1796   : > { %v6982_v50 = vcombine.low %v6974_v10, %v6981_v1  ;;  %v6991_v40 = vrot.slane %v6983_v46, %v16026_v12 }
0x1797   : > { %v6998_v61 = vrot.slane %v6984_v42, %v16026_v12 }
0x1798   : > { %15188 = vmatprep.mubr.msk.f32.mxu1 %vm418_vm2, %v6982_v50 }
0x1799   : > { %v6999_v31 = vcombine.low %v6991_v40, %v6998_v61 }
0x179b   : > { %v7006_v24 = vrot.slane %v6999_v31, %v16026_v12 }
0x179d   : > { %15189 = vmatmul.mubr.msk.f32.gmra.mrb[52].mxu1 %vm418_vm2, %v7006_v24 }
0x179e   : > { %15201 = vmatprep.mubr.msk.f32.mxu1 %vm15645_vm3, %v19688_v15 }
0x185d   : > { %v15187_v5 = vpop.f32.mrb[50].mxu1 }
0x185e   : > { %v7087_v45 = vadd.f32 %v15187_v5, %v17317_v58  ;;  %v7081_v36 = vpop.f32.mrb[51].mxu1 }
0x185f   : > { %v7082_v21 = vadd.f32 %v17317_v58, %v7081_v36 }
0x1860   : > { %v7153_v22 = vcombine.high %v7087_v45, %v7087_v45  ;;  %v7160_v54 = vrot.slane %v7087_v45, %v16026_v12 }
0x1861   : > { %v7104_v26 = vcombine.high %v7082_v21, %v7082_v21  ;;  %v7111_v29 = vrot.slane %v7082_v21, %v16026_v12 }
0x1862   : > { %v7167_v55 = vrot.slane %v7153_v22, %v16026_v12  ;;  %v7168_v63 = vcombine.high %v7160_v54, %v7160_v54  ;;  %v7176_v60 = vrot.slane %v7160_v54, %v16026_v12 }
0x1863   : > { %v7118_v28 = vrot.slane %v7104_v26, %v16026_v12  ;;  %v7119_v38 = vcombine.high %v7111_v29, %v7111_v29  ;;  %v7127_v49 = vrot.slane %v7111_v29, %v16026_v12 }
0x1864   : > { %v7169_v48 = vcombine.high %v7167_v55, %v7167_v55  ;;  %v7183_v25 = vrot.slane %v7167_v55, %v16026_v12  ;;  %v7190_v52 = vrot.slane %v7168_v63, %v16026_v12  ;;  %v7198_v47 = vcombine.high %v7176_v60, %v7176_v60 }
0x1865   : > { %v7120_v16 = vcombine.high %v7118_v28, %v7118_v28  ;;  %v7134_v6 = vrot.slane %v7118_v28, %v16026_v12  ;;  %v7141_v34 = vrot.slane %v7119_v38, %v16026_v12  ;;  %v7149_v46 = vcombine.high %v7127_v49, %v7127_v49 }
0x1866   : > { %v7197_v39 = vrot.slane %v7169_v48, %v16026_v12  ;;  %v7200_v59 = vcombine.high %v7190_v52, %v7190_v52  ;;  %v7415_v30 = vmul.f32 0.5, %v7190_v52  ;;  %v7416_v10 = vmul.f32 0.5, %v7198_v47 }
0x1867   : > { %v7148_v1 = vrot.slane %v7120_v16, %v16026_v12  ;;  %v7418_v40 = vmul.f32 0.5, %v7183_v25  ;;  %v7414_v61 = vmul.f32 0.5, %v7176_v60  ;;  %v7150_v31 = vcombine.high %v7134_v6, %v7134_v6 }
0x1868   : > { %v7201_v42 = vcombine.high %v7197_v39, %v7197_v39  ;;  %v7417_v50 = vmul.f32 0.5, %v7200_v59  ;;  %v7151_v24 = vcombine.high %v7141_v34, %v7141_v34  ;;  %v7199_v45 = vcombine.high %v7183_v25, %v7183_v25 }
0x1869   : > { %v7152_v5 = vcombine.high %v7148_v1, %v7148_v1  ;;  %v7419_v36 = vmul.f32 0.5, %v7197_v39  ;;  %v7588_v21 = vcombine.low %v7415_v30, %v7416_v10  ;;  %v7406_v54 = vmul.f32 0.5, %v7127_v49 }
0x186a   : > { %v7589_v22 = vcombine.low %v7417_v50, %v7418_v40  ;;  %v7407_v26 = vmul.f32 0.5, %v7141_v34  ;;  %v7408_v29 = vmul.f32 0.5, %v7149_v46  ;;  %v7409_v55 = vmul.f32 0.5, %v7151_v24 }
0x186b   : > { %v7421_v63 = vmul.f32 0.5, %v7201_v42  ;;  %v7410_v38 = vmul.f32 0.5, %v7134_v6  ;;  %v7411_v48 = vmul.f32 0.5, %v7148_v1  ;;  %v7412_v52 = vmul.f32 0.5, %v7150_v31 }
0x186c   : > { %v7610_v28 = vrot.slane %v7589_v22, %v16026_v12  ;;  %v7413_v47 = vmul.f32 0.5, %v7152_v5  ;;  %v7457_v16 = vcombine.low %v7406_v54, %v7407_v26  ;;  %v7458_v60 = vcombine.low %v7408_v29, %v7409_v55 }
0x186d   : > { %v7420_v59 = vmul.f32 0.5, %v7199_v45  ;;  %v7617_v4 = vrot.slane %v7419_v36, %v16026_v12  ;;  %v7459_v25 = vcombine.low %v7410_v38, %v7411_v48  ;;  %v7603_v39 = vrot.slane %v7588_v21, %v16026_v12 }
0x186e   : > { %v7466_v49 = vrot.slane %v7457_v16, %v16026_v12  ;;  %v7473_v34 = vrot.slane %v7458_v60, %v16026_v12  ;;  %v7587_v30 = vcombine.low %v7413_v47, %v7414_v61  ;;  %v7487_v1 = vrot.slane %v7412_v52, %v16026_v12 }
0x186f   : > { %v7717_v46 = vcombine.low %v7420_v59, %v7421_v63  ;;  %v7480_v6 = vrot.slane %v7459_v25, %v16026_v12  ;;  %v7619_v40 = vcombine.low %v7610_v28, %v7617_v4 }
0x1870   : > { %v15190_v10 = vpop.f32.mrb[52].mxu1  ;;  %v7488_v31 = vcombine.low %v7466_v49, %v7473_v34  ;;  %v7596_v24 = vrot.slane %v7587_v30, %v16026_v12 }
0x1871   : > { %v7097_v42 = vadd.f32 %v15190_v10, %v17317_v58  ;;  %v7091_v50 = vpop.f32.mrb[53].mxu1  ;;  %v7489_v45 = vcombine.low %v7480_v6, %v7487_v1  ;;  %v7726_v26 = vrot.slane %v7717_v46, %v16026_v12  ;;  %v7633_v38 = vrot.slane %v7619_v40, %v16026_v12 }
0x1872   : > { %v7092_v5 = vadd.f32 %v17317_v58, %v7091_v50  ;;  %v7496_v61 = vrot.slane %v7488_v31, %v16026_v12  ;;  %v7618_v54 = vcombine.low %v7596_v24, %v7603_v39  ;;  %v19693_v50 = vld [vmem:[#allocation15_spill] sm:$0xff] }
0x1873   : > { %v7257_v36 = vrot.slane %v7097_v42, %v16026_v12  ;;  %v7503_v29 = vrot.slane %v7489_v45, %v16026_v12 }
0x1874   : > { %v7202_v21 = vcombine.high %v7092_v5, %v7092_v5  ;;  %v7209_v22 = vrot.slane %v7092_v5, %v16026_v12  ;;  %v7626_v16 = vrot.slane %v7618_v54, %v16026_v12 }
0x1875   : > { %v7258_v55 = vcombine.high %v7257_v36, %v7257_v36  ;;  %v7265_v4 = vrot.slane %v7257_v36, %v16026_v12  ;;  %v17352_v48 = vcombine.low %v7496_v61, %v7503_v29 }
0x1876   : > { %v7216_v63 = vrot.slane %v7202_v21, %v16026_v12  ;;  %v7217_v28 = vcombine.high %v7209_v22, %v7209_v22  ;;  %v7225_v58 = vrot.slane %v7209_v22, %v16026_v12 }
0x1877   : > { %v7272_v52 = vrot.slane %v7258_v55, %v16026_v12  ;;  %v7273_v47 = vcombine.high %v7265_v4, %v7265_v4  ;;  %15202 = vmatmul.mubr.msk.f32.vlgmr.msra.gmra.mrb[54].mxu1 %vm523_vm4, %v17352_v48  ;;  %v7430_v22 = vmul.f32 0.5, %v7265_v4 }
0x1878   : > { %v7218_v60 = vcombine.high %v7216_v63, %v7216_v63  ;;  %v7232_v59 = vrot.slane %v7216_v63, %v16026_v12  ;;  %v7239_v25 = vrot.slane %v7217_v28, %v16026_v12  ;;  %v7247_v39 = vcombine.high %v7225_v58, %v7225_v58  ;;  %15205 = vmatpush3.xpose.msk.msra.mxu1 %vm523_vm4, %v19693_v50 }
0x1879   : > { %v7274_v49 = vcombine.high %v7272_v52, %v7272_v52  ;;  %v7431_v34 = vmul.f32 0.5, %v7272_v52  ;;  %v7432_v30 = vmul.f32 0.5, %v7273_v47  ;;  %v7422_v10 = vmul.f32 0.5, %v7225_v58  ;;  %15206 = vmatprep.mubr.msk.f32.mxu1 %vm15645_vm3, %v19688_v15  ;;  %15214 = vmatprep.subr.mxu1 %v19688_v15 }
0x187a   : > { %v7246_v46 = vrot.slane %v7218_v60, %v16026_v12  ;;  %v7248_v6 = vcombine.high %v7232_v59, %v7232_v59  ;;  %v7249_v1 = vcombine.high %v7239_v25, %v7239_v25  ;;  %v7423_v42 = vmul.f32 0.5, %v7239_v25 }
0x187b   : > { %v7433_v40 = vmul.f32 0.5, %v7274_v49  ;;  %v7849_v31 = vcombine.low %v7431_v34, %v7432_v30  ;;  %v7424_v24 = vmul.f32 0.5, %v7247_v39  ;;  %v7426_v5 = vmul.f32 0.5, %v7232_v59  ;;  %v19694_v39 = vld [vmem:[#allocation11_spill] sm:$0xff] }
0x187c   : > { %v7250_v45 = vcombine.high %v7246_v46, %v7246_v46  ;;  %v7425_v36 = vmul.f32 0.5, %v7249_v1  ;;  %v7427_v61 = vmul.f32 0.5, %v7246_v46  ;;  %v7428_v21 = vmul.f32 0.5, %v7248_v6 }
0x187d   : > { %v7870_v54 = vrot.slane %v7849_v31, %v16026_v12  ;;  %v7877_v29 = vrot.slane %v7433_v40, %v16026_v12  ;;  %v7718_v55 = vcombine.low %v7422_v10, %v7423_v42  ;;  %v17368_v52 = vcombine.low %v7626_v16, %v7633_v38  ;;  %v19695_v31 = vld [vmem:[#allocation27_spill] sm:$0xff] }
0x187e   : > { %v7429_v63 = vmul.f32 0.5, %v7250_v45  ;;  %v7719_v28 = vcombine.low %v7424_v24, %v7425_v36  ;;  %v7847_v58 = vcombine.low %v7427_v61, %v7428_v21  ;;  %v7747_v59 = vrot.slane %v7426_v5, %v16026_v12 }
0x187f   : > { %v7733_v47 = vrot.slane %v7718_v55, %v16026_v12  ;;  %15207 = vmatmul.mubr.msk.f32.vlgmr.msra.gmra.mrb[56].mxu1 %vm523_vm4, %v17368_v52  ;;  %v7879_v49 = vcombine.low %v7870_v54, %v7877_v29  ;;  %v267_v40 = vstv %s266_s13  ;;  %v15653_v24 = vmov -1e+30  }
0x1880   : > { %v7740_v60 = vrot.slane %v7719_v28, %v16026_v12  ;;  %v7848_v25 = vcombine.low %v7429_v63, %v7430_v22  ;;  %15215 = vmatpush3.xpose.msk.msra.mxu1 %vm523_vm4, %v19694_v39  ;;  %15216 = vmatprep.mubr.msk.f32.mxu1 %vm15645_vm3, %v19688_v15  ;;  %v7856_v16 = vrot.slane %v7847_v58, %v16026_v12  ;;  %v272_v45 = vstv %s271_s23 }
0x1881   : > { %v7748_v4 = vcombine.low %v7726_v26, %v7733_v47  ;;  %15224 = vmatprep.subr.mxu1 %v19688_v15  ;;  %v7893_v1 = vrot.slane %v7879_v49, %v16026_v12  ;;  %vm268_vm12 = vcmp.lt.s32.totalorder %v19695_v31, %v267_v40  ;;  %vm273_vm13 = vcmp.lt.s32.totalorder %v19695_v31, %v272_v45 }
0x1882   : > { %v7749_v38 = vcombine.low %v7740_v60, %v7747_v59  ;;  %v7863_v34 = vrot.slane %v7848_v25, %v16026_v12  ;;  %v269_v5 = vsel %vm268_vm12, 0.0, %v15653_v24  ;;  %v274_v54 = vsel %vm273_vm13, 0.0, %v15653_v24 }
0x1883   : > { %v7756_v30 = vrot.slane %v7748_v4, %v16026_v12  ;;  %v7437_v36 = vrot.slane %v269_v5, %v16786_v53  ;;  %v277_v55 = vstv %s276_s15  ;;  %v7441_v63 = vrot.slane %v274_v54, %v16786_v53  ;;  %v19696_v5 = vld [vmem:[#allocation12_spill] sm:$0xff] }
0x1884   : > { %v7763_v10 = vrot.slane %v7749_v38, %v16026_v12  ;;  %v7878_v26 = vcombine.low %v7856_v16, %v7863_v34  ;;  %v282_v28 = vstv %s281_s16  ;;  %vm278_vm15 = vcmp.lt.s32.totalorder %v19695_v31, %v277_v55 }
0x1885   : > { %vm283_vm0 = vcmp.lt.s32.totalorder %v19695_v31, %v282_v28  ;;  %v279_v59 = vsel %vm278_vm15, 0.0, %v15653_v24  ;;  %vm13522_vm12 = vcmask 1043459   ;;  %vm13524_vm13 = vcmask 1044484  }
0x1886   : > { %v17384_v46 = vcombine.low %v7756_v30, %v7763_v10  ;;  %v7886_v6 = vrot.slane %v7878_v26, %v16026_v12  ;;  %v284_v4 = vsel %vm283_vm0, 0.0, %v15653_v24  ;;  %v7445_v49 = vrot.slane %v279_v59, %v16786_v53 }
0x1887   : > { %v7449_v38 = vrot.slane %v284_v4, %v16786_v53  ;;  %vm13526_vm15 = vcmask 1045509   ;;  %vm13528_vm0 = vcmask 1046534  }
0x1888   : > { %15212 = vmatmul.mubr.msk.f32.vlgmr.msra.gmra.mrb[54].mxu0 %vm523_vm4, %v17384_v46  ;;  %v17390_v42 = vcombine.low %v7886_v6, %v7893_v1 }
0x1889   : > { %15221 = vmatprep.mubr.msk.f32.mxu0 %vm15645_vm3, %v19688_v15 }
0x188a   : > { %15217 = vmatmul.mubr.msk.f32.vlgmr.msra.gmra.mrb[58].mxu1 %vm523_vm4, %v17390_v42 }
0x188b   : > { %15226 = vmatprep.mubr.msk.f32.mxu1 %vm15645_vm3, %v19688_v15 }
0x194a   : > { %v7576_v61 = vpop.f32.mrb[54].mxu1 }
0x194b   : > { %v7577_v21 = vadd.f32 %v7576_v61, %v7437_v36  ;;  %v15203_v22 = vpop.f32.mrb[55].mxu1 }
0x194d   : > { %v7971_v29 = vsel %vm7970_vm14, %v7577_v21, -inf }
0x194e   : > { %7972 = vmax.xlane.f32.xlu1 %v7971_v29 }
0x1952   : > { %v7706_v58 = vpop.f32.mrb[56].mxu1 }
0x1953   : > { %v7707_v47 = vadd.f32 %v7706_v58, %v7441_v63  ;;  %v15208_v60 = vpop.f32.mrb[57].mxu1 }
0x1955   : > { %v7974_v25 = vsel %vm7970_vm14, %v7707_v47, -inf }
0x1956   : > { %7975 = vmax.xlane.f32.xlu0 %v7974_v25 }
0x195b   : > { %v7836_v16 = vpop.f32.mrb[54].mxu0 }
0x195c   : > { %v7837_v34 = vadd.f32 %v7836_v16, %v7445_v49  ;;  %v15213_v30 = vpop.f32.mrb[55].mxu0 }
0x195d   : > { %v7966_v10 = vpop.f32.mrb[58].mxu1 }
0x195e   : > { %v7977_v26 = vsel %vm7970_vm14, %v7837_v34, -inf  ;;  %v7967_v6 = vadd.f32 %v7966_v10, %v7449_v38  ;;  %v15218_v1 = vpop.f32.mrb[59].mxu1 }
0x195f   : > { %7978 = vmax.xlane.f32.xlu1 %v7977_v26 }
0x1960   : > { %v7980_v40 = vsel %vm7970_vm14, %v7967_v6, -inf }
0x1961   : > { %7981 = vmax.xlane.f32.xlu0 %v7980_v40 }
0x1970   : > { %8015 = vrot.lane.b32.xlu1 %v19687_v11, %s15646_s19 }
0x1974   : > { %8167 = vrot.lane.b32.xlu1 %v19696_v5, %s15646_s19 }
0x1977   : > { %8091 = vrot.lane.b32.xlu0 %v19693_v50, %s15646_s19 }
0x1978   : > { %8243 = vrot.lane.b32.xlu1 %v19694_v39, %s15646_s19  ;;  %s285_s19 = sadd.s32 1, %s17400_s12 }
0x1979   : > { %s286_s17 = sld [smem:[#allocation4 + %s285_s19]] }
0x197b   : > { %8337 = vrot.lane.b32.xlu0 %v19687_v11, %s15649_s22 }
0x197c   : > { %8415 = vrot.lane.b32.xlu1 %v19693_v50, %s15649_s22 }
0x197f   : > { %8335 = vrot.lane.b32.xlu0 %v17352_v48, %s15649_s22 }
0x1980   : > { %8493 = vrot.lane.b32.xlu1 %v19696_v5, %s15649_s22 }
0x19db   : > { %v7973_v45 = vpop.xlane.xlu1 %7972 }
0x19dc   : > { %v7983_v36 = vsub.f32 %v7577_v21, %v7973_v45 }
0x19de   : > { %v7987_v61 = vmul.f32 1.442695, %v7983_v36 }
0x19e0   : > { %15432 = vpow2.f32 %v7987_v61 }
0x19e3   : > { %v7976_v22 = vpop.xlane.xlu0 %7975 }
0x19e4   : > { %v7984_v54 = vsub.f32 %v7707_v47, %v7976_v22 }
0x19e6   : > { %v7989_v29 = vmul.f32 1.442695, %v7984_v54 }
0x19e8   : > { %15434 = vpow2.f32 %v7989_v29 }
0x19ea   : > { %v15433_v55 = vpop.eup %15432 }
0x19eb   : > { %v7995_v58 = vsel %vm7970_vm14, %v15433_v55, 0.0 }
0x19ec   : > { %v7979_v63 = vpop.xlane.xlu1 %7978  ;;  %7996 = vadd.xlane.f32.xlu1 %v7995_v58 }
0x19ed   : > { %v7985_v28 = vsub.f32 %v7837_v34, %v7979_v63 }
0x19ee   : > { %v7982_v60 = vpop.xlane.xlu0 %7981 }
0x19ef   : > { %v7991_v59 = vmul.f32 1.442695, %v7985_v28  ;;  %v7986_v48 = vsub.f32 %v7967_v6, %v7982_v60 }
0x19f0   : > { %v8016_v25 = vpop.permute.xlu1 %8015 }
0x19f1   : > { %15436 = vpow2.f32 %v7991_v59  ;;  %v7993_v4 = vmul.f32 1.442695, %v7986_v48  ;;  %15220 = vmatpush3.msra.mxu0 %v8016_v25 }
0x19f2   : > { %v8092_v21 = vpop.permute.xlu0 %8091  ;;  %15229 = vmatprep.subr.mxu0 %v19688_v15  ;;  %v15435_v49 = vpop.eup %15434 }
0x19f3   : > { %15438 = vpow2.f32 %v7993_v4  ;;  %15225 = vmatpush3.msra.mxu1 %v8092_v21  ;;  %v7998_v47 = vsel %vm7970_vm14, %v15435_v49, 0.0 }
0x19f4   : > { %15234 = vmatprep.subr.mxu1 %v19688_v15  ;;  %7999 = vadd.xlane.f32.xlu0 %v7998_v47  ;;  %v8168_v10 = vpop.permute.xlu1 %8167  ;;  %v287_v47 = vstv %s286_s17 }
0x19f5   : > { %vm288_vm1 = vcmp.lt.s32.totalorder %v19695_v31, %v287_v47 }
0x19f6   : > { %v8338_v40 = vpop.permute.xlu0 %8337 }
0x19f8   : > { %v8244_v26 = vpop.permute.xlu1 %8243 }
0x19fa   : > { %v8336_v36 = vpop.permute.xlu0 %8335 }
0x19fb   : > { %v15437_v38 = vpop.eup %15436 }
0x19fc   : > { %v8001_v16 = vsel %vm7970_vm14, %v15437_v38, 0.0  ;;  %v8416_v6 = vpop.permute.xlu1 %8415 }
0x19fd   : > { %v15439_v34 = vpop.eup %15438  ;;  %8002 = vadd.xlane.f32.xlu1 %v8001_v16 }
0x19fe   : > { %v8004_v30 = vsel %vm7970_vm14, %v15439_v34, 0.0 }
0x19ff   : > { %8005 = vadd.xlane.f32.xlu0 %v8004_v30  ;;  %v289_v30 = vsel %vm288_vm1, 0.0, %v15653_v24 }
0x1a00   : > { %v8494_v1 = vpop.permute.xlu1 %8493 }
0x1a0e   : > { %8491 = vrot.lane.b32.xlu1 %v17384_v46, %s15649_s22 }
0x1a12   : > { %8569 = vrot.lane.b32.xlu1 %v17390_v42, %s15649_s22 }
0x1a15   : > { %8413 = vrot.lane.b32.xlu0 %v17368_v52, %s15649_s22 }
0x1a19   : > { %8571 = vrot.lane.b32.xlu0 %v19694_v39, %s15649_s22  ;;  %s290_s22 = sadd.s32 1, %s14765_s20 }
0x1a1a   : > { %s291_s24 = sld [smem:[#allocation4 + %s290_s22]] }
0x1a20   : > { %v292_v16 = vstv %s291_s24 }
0x1a21   : > { %vm293_vm7 = vcmp.lt.s32.totalorder %v19695_v31, %v292_v16 }
0x1a79   : > { %v7997_v45 = vpop.xlane.xlu1 %7996 }
0x1a7a   : > { %15440 = vrcp.f32 %v7997_v45 }
0x1a81   : > { %v8000_v61 = vpop.xlane.xlu0 %7999 }
0x1a82   : > { %15442 = vrcp.f32 %v8000_v61 }
0x1a84   : > { %v15441_v46 = vpop.eup %15440 }
0x1a85   : > { %v8008_v22 = vmul.f32 %v15441_v46, %v15433_v55 }
0x1a87   : > { %15222 = vmatmul.mubr.msk.f32.vlgmr.msra.gmra.mrb[56].mxu0 %vm418_vm2, %v8008_v22 }
0x1a88   : > { %15230 = vmatpush3.msra.mxu0 %v8168_v10  ;;  %15231 = vmatprep.mubr.msk.f32.mxu0 %vm15645_vm3, %v19688_v15  ;;  %v302_v10 = vstv %s301_s28 }
0x1a89   : > { %15239 = vmatprep.subr.mxu0 %v19688_v15  ;;  %vm303_vm9 = vcmp.lt.s32.totalorder %v19695_v31, %v302_v10 }
0x1a8a   : > { %v8003_v42 = vpop.xlane.xlu1 %8002 }
0x1a8b   : > { %15444 = vrcp.f32 %v8003_v42  ;;  %v304_v42 = vsel %vm303_vm9, 0.0, %v15653_v24 }
0x1a8c   : > { %v8006_v52 = vpop.xlane.xlu0 %8005  ;;  %v15443_v54 = vpop.eup %15442 }
0x1a8d   : > { %15446 = vrcp.f32 %v8006_v52  ;;  %v8010_v29 = vmul.f32 %v15443_v54, %v15435_v49 }
0x1a8e   : > { %v8492_v59 = vpop.permute.xlu1 %8491 }
0x1a8f   : > { %15227 = vmatmul.mubr.msk.f32.vlgmr.msra.gmra.mrb[60].mxu1 %vm418_vm2, %v8010_v29 }
0x1a90   : > { %15235 = vmatpush3.msra.mxu1 %v8244_v26  ;;  %15236 = vmatprep.mubr.msk.f32.mxu1 %vm15645_vm3, %v19688_v15  ;;  %v8414_v58 = vpop.permute.xlu0 %8413 }
0x1a91   : > { %15244 = vmatprep.subr.mxu1 %v19688_v15 }
0x1a92   : > { %v8570_v25 = vpop.permute.xlu1 %8569 }
0x1a94   : > { %v8572_v48 = vpop.permute.xlu0 %8571 }
0x1a95   : > { %v15445_v55 = vpop.eup %15444 }
0x1a96   : > { %v8012_v63 = vmul.f32 %v15445_v55, %v15437_v38 }
0x1a97   : > { %v15447_v28 = vpop.eup %15446 }
0x1a98   : > { %15232 = vmatmul.mubr.msk.f32.vlgmr.msra.gmra.mrb[58].mxu0 %vm418_vm2, %v8012_v63  ;;  %v8014_v60 = vmul.f32 %v15447_v28, %v15439_v34  ;;  %v297_v34 = vstv %s296_s27  ;;  %s249_s27 = sadd.s32 2, %s15709_s9 }
0x1a99   : > { %15240 = vmatpush3.xpose.msk.msra.mxu0 %vm523_vm4, %v8338_v40  ;;  %15241 = vmatprep.mubr.msk.f32.mxu0 %vm15645_vm3, %v19688_v15  ;;  %vm298_vm8 = vcmp.lt.s32.totalorder %v19695_v31, %v297_v34  ;;  %v8322_v40 = vrot.slane %v289_v30, %v16786_v53  ;;  %s250_s28 = sld [smem:[#allocation3 + %s249_s27]] }
0x1a9a   : > { %15237 = vmatmul.mubr.msk.f32.vlgmr.msra.gmra.mrb[62].mxu1 %vm418_vm2, %v8014_v60  ;;  %15249 = vmatprep.subr.mxu0 %v19688_v15  ;;  %v8334_v60 = vrot.slane %v304_v42, %v16786_v53 }
0x1a9b   : > { %15245 = vmatpush3.xpose.msk.msra.mxu1 %vm523_vm4, %v8416_v6  ;;  %15246 = vmatprep.mubr.msk.f32.mxu1 %vm15645_vm3, %v19688_v15  ;;  %v294_v6 = vsel %vm293_vm7, 0.0, %v15653_v24 }
0x1a9c   : > { %15242 = vmatmul.mubr.msk.f32.vlgmr.msra.gmra.mrb[60].mxu0 %vm523_vm4, %v8336_v36  ;;  %15254 = vmatprep.subr.mxu1 %v19688_v15  ;;  %v299_v36 = vsel %vm298_vm8, 0.0, %v15653_v24  ;;  %v8326_v46 = vrot.slane %v294_v6, %v16786_v53 }
0x1a9d   : > { %15250 = vmatpush3.xpose.msk.msra.mxu0 %vm523_vm4, %v8494_v1  ;;  %15251 = vmatprep.mubr.msk.f32.mxu0 %vm15645_vm3, %v19688_v15  ;;  %v8330_v29 = vrot.slane %v299_v36, %v16786_v53 }
0x1a9e   : > { %15247 = vmatmul.mubr.msk.f32.vlgmr.msra.gmra.mrb[64].mxu1 %vm523_vm4, %v8414_v58  ;;  %15259 = vmatprep.subr.mxu0 %v19688_v15 }
0x1a9f   : > { %15255 = vmatpush3.xpose.msk.msra.mxu1 %vm523_vm4, %v8572_v48  ;;  %15256 = vmatprep.mubr.msk.f32.mxu1 %vm15645_vm3, %v19688_v15 }
0x1aa0   : > { %15252 = vmatmul.mubr.msk.f32.vlgmr.msra.gmra.mrb[62].mxu0 %vm523_vm4, %v8492_v59  ;;  %15264 = vmatprep.subr.mxu1 %v19688_v15 }
0x1aa1   : > { %15261 = vmatprep.mubr.msk.f32.mxu0 %vm15645_vm3, %v19688_v15 }
0x1aa2   : > { %15257 = vmatmul.mubr.msk.f32.vlgmr.msra.gmra.mrb[66].mxu1 %vm523_vm4, %v8570_v25 }
0x1aa3   : > { %15266 = vmatprep.mubr.msk.f32.mxu1 %vm15645_vm3, %v19688_v15 }
0x1b5a   : > { %v17495_v4 = vpop.f32.mrb[56].mxu0 }
0x1b5b   : > { %v15223_v21 = vpop.f32.mrb[57].mxu0 }
0x1b62   : > { %v17501_v49 = vpop.f32.mrb[60].mxu1 }
0x1b63   : > { %v15228_v38 = vpop.f32.mrb[61].mxu1 }
0x1b6b   : > { %v17507_v26 = vpop.f32.mrb[58].mxu0 }
0x1b6c   : > { %v15233_v1 = vpop.f32.mrb[59].mxu0 }
0x1b6d   : > { %v17512_v45 = vpop.f32.mrb[62].mxu1 }
0x1b6e   : > { %v15238_v61 = vpop.f32.mrb[63].mxu1 }
0x1b6f   : > { %v8409_v22 = vpop.f32.mrb[60].mxu0 }
0x1b70   : > { %v8410_v52 = vadd.f32 %v8409_v22, %v8322_v40  ;;  %v15243_v54 = vpop.f32.mrb[61].mxu0 }
0x1b71   : > { %v8487_v55 = vpop.f32.mrb[64].mxu1 }
0x1b72   : > { %v8647_v63 = vsel %vm7970_vm14, %v8410_v52, -inf  ;;  %v8488_v28 = vadd.f32 %v8487_v55, %v8326_v46  ;;  %v15248_v58 = vpop.f32.mrb[65].mxu1 }
0x1b73   : > { %8648 = vmax.xlane.f32.xlu0 %v8647_v63  ;;  %v8565_v59 = vpop.f32.mrb[62].mxu0 }
0x1b74   : > { %v8566_v48 = vadd.f32 %v8565_v59, %v8330_v29  ;;  %v15253_v25 = vpop.f32.mrb[63].mxu0  ;;  %v8650_v21 = vsel %vm7970_vm14, %v8488_v28, -inf }
0x1b75   : > { %8651 = vmax.xlane.f32.xlu1 %v8650_v21  ;;  %v8643_v47 = vpop.f32.mrb[66].mxu1 }
0x1b76   : > { %v8653_v24 = vsel %vm7970_vm14, %v8566_v48, -inf  ;;  %v8644_v38 = vadd.f32 %v8643_v47, %v8334_v60  ;;  %v15258_v16 = vpop.f32.mrb[67].mxu1 }
0x1b77   : > { %8654 = vmax.xlane.f32.xlu0 %v8653_v24 }
0x1b78   : > { %v8656_v34 = vsel %vm7970_vm14, %v8644_v38, -inf }
0x1b7b   : > { %8657 = vmax.xlane.f32.xlu0 %v8656_v34 }
0x1b86   : > { %8691 = vrot.lane.b32.xlu1 %v19687_v11, %s15648_s21 }
0x1c00   : > { %v8649_v30 = vpop.xlane.xlu0 %8648 }
0x1c01   : > { %v8659_v10 = vsub.f32 %v8410_v52, %v8649_v30 }
0x1c02   : > { %v8652_v6 = vpop.xlane.xlu1 %8651 }
0x1c03   : > { %v8663_v1 = vmul.f32 1.442695, %v8659_v10  ;;  %v8660_v40 = vsub.f32 %v8488_v28, %v8652_v6 }
0x1c04   : > { %v8655_v36 = vpop.xlane.xlu0 %8654 }
0x1c05   : > { %15448 = vpow2.f32 %v8663_v1  ;;  %v8661_v61 = vsub.f32 %v8566_v48, %v8655_v36  ;;  %v8665_v46 = vmul.f32 1.442695, %v8660_v40 }
0x1c06   : > { %v8692_v22 = vpop.permute.xlu1 %8691 }
0x1c07   : > { %v8667_v42 = vmul.f32 1.442695, %v8661_v61  ;;  %15450 = vpow2.f32 %v8665_v46  ;;  %15260 = vmatpush3.msra.mxu0 %v8692_v22 }
0x1c08   : > { %v8658_v54 = vpop.xlane.xlu0 %8657  ;;  %15269 = vmatprep.subr.mxu0 %v19688_v15 }
0x1c09   : > { %15452 = vpow2.f32 %v8667_v42  ;;  %v8662_v29 = vsub.f32 %v8644_v38, %v8658_v54 }
0x1c0b   : > { %v8669_v55 = vmul.f32 1.442695, %v8662_v29 }
0x1c0d   : > { %15454 = vpow2.f32 %v8669_v55 }
0x1c0f   : > { %v15449_v11 = vpop.eup %15448 }
0x1c10   : > { %v8671_v52 = vsel %vm7970_vm14, %v15449_v11, 0.0 }
0x1c11   : > { %v15451_v63 = vpop.eup %15450  ;;  %8672 = vadd.xlane.f32.xlu1 %v8671_v52 }
0x1c12   : > { %v8674_v28 = vsel %vm7970_vm14, %v15451_v63, 0.0 }
0x1c13   : > { %v15453_v58 = vpop.eup %15452  ;;  %8675 = vadd.xlane.f32.xlu0 %v8674_v28 }
0x1c14   : > { %v8677_v60 = vsel %vm7970_vm14, %v15453_v58, 0.0 }
0x1c15   : > { %8678 = vadd.xlane.f32.xlu1 %v8677_v60 }
0x1c17   : > { %v15455_v59 = vpop.eup %15454 }
0x1c18   : > { %v8680_v48 = vsel %vm7970_vm14, %v15455_v59, 0.0 }
0x1c19   : > { %8681 = vadd.xlane.f32.xlu0 %v8680_v48 }
0x1c26   : > { %8843 = vrot.lane.b32.xlu1 %v19696_v5, %s15648_s21 }
0x1c2a   : > { %8919 = vrot.lane.b32.xlu1 %v19694_v39, %s15648_s21 }
0x1c2f   : > { %8767 = vrot.lane.b32.xlu0 %v19693_v50, %s15648_s21  ;;  %s255_s21 = sadd.s32 3, %s15709_s9 }
0x1c30   : > { %s256_s29 = sld [smem:[#allocation3 + %s255_s21]] }
0x1c9e   : > { %v8673_v25 = vpop.xlane.xlu1 %8672 }
0x1c9f   : > { %15456 = vrcp.f32 %v8673_v25 }
0x1ca0   : > { %v8676_v21 = vpop.xlane.xlu0 %8675 }
0x1ca1   : > { %15458 = vrcp.f32 %v8676_v21 }
0x1ca2   : > { %v8679_v47 = vpop.xlane.xlu1 %8678 }
0x1ca3   : > { %15460 = vrcp.f32 %v8679_v47 }
0x1ca6   : > { %v8682_v24 = vpop.xlane.xlu0 %8681  ;;  %v8844_v38 = vpop.permute.xlu1 %8843 }
0x1ca7   : > { %15462 = vrcp.f32 %v8682_v24 }
0x1ca9   : > { %v15457_v16 = vpop.eup %15456 }
0x1caa   : > { %v8768_v34 = vpop.permute.xlu0 %8767  ;;  %v8684_v30 = vmul.f32 %v15457_v16, %v15449_v11  ;;  %v8920_v5 = vpop.permute.xlu1 %8919  ;;  %v9211_v11 = vld [vmem:[%s19526_s4 + $0x48] sm:$0xff] }
0x1cab   : > { %v15459_v10 = vpop.eup %15458  ;;  %15265 = vmatpush3.msra.mxu1 %v8768_v34 }
0x1cac   : > { %15262 = vmatmul.mubr.msk.f32.vlgmr.msra.gmra.mrb[64].mxu0 %vm418_vm2, %v8684_v30  ;;  %15274 = vmatprep.subr.mxu1 %v19688_v15  ;;  %v8686_v39 = vmul.f32 %v15459_v10, %v15451_v63 }
0x1cad   : > { %v15461_v50 = vpop.eup %15460  ;;  %15270 = vmatpush3.msra.mxu0 %v8844_v38  ;;  %15271 = vmatprep.mubr.msk.f32.mxu0 %vm15645_vm3, %v19688_v15 }
0x1cae   : > { %15267 = vmatmul.mubr.msk.f32.vlgmr.msra.gmra.mrb[68].mxu1 %vm418_vm2, %v8686_v39  ;;  %v8688_v6 = vmul.f32 %v15461_v50, %v15453_v58  ;;  %15279 = vmatprep.subr.mxu0 %v9211_v11 }
0x1caf   : > { %15275 = vmatpush3.msra.mxu1 %v8920_v5  ;;  %15276 = vmatprep.mubr.msk.f32.mxu1 %vm15645_vm3, %v19688_v15 }
0x1cb0   : > { %15272 = vmatmul.mubr.msk.f32.vlgmr.msra.gmra.mrb[66].mxu0 %vm418_vm2, %v8688_v6 }
0x1cb1   : > { %v15463_v1 = vpop.eup %15462  ;;  %15280 = vmatpush3.msra.mxu0 %v9211_v11 }
0x1cb2   : > { %v8690_v40 = vmul.f32 %v15463_v1, %v15455_v59 }
0x1cb4   : > { %15277 = vmatmul.mubr.msk.f32.vlgmr.msra.gmra.mrb[70].mxu1 %vm418_vm2, %v8690_v40 }
0x1d7f   : > { %v8763_v36 = vpop.f32.mrb[64].mxu0 }
0x1d80   : > { %v15263_v61 = vpop.f32.mrb[65].mxu0  ;;  %8999 = vrot.lane.b32.xlu0 %v8763_v36, %s15651_s26 }
0x1d81   : > { %v8839_v46 = vpop.f32.mrb[68].mxu1 }
0x1d82   : > { %9001 = vrot.lane.b32.xlu1 %v8839_v46, %s15651_s26  ;;  %v15268_v22 = vpop.f32.mrb[69].mxu1 }
0x1d83   : > { %v8915_v42 = vpop.f32.mrb[66].mxu0 }
0x1d84   : > { %v15273_v54 = vpop.f32.mrb[67].mxu0  ;;  %9003 = vrot.lane.b32.xlu0 %v8915_v42, %s15651_s26 }
0x1d87   : > { %v8991_v29 = vpop.f32.mrb[70].mxu1 }
0x1d88   : > { %9005 = vrot.lane.b32.xlu1 %v8991_v29, %s15651_s26  ;;  %v15278_v55 = vpop.f32.mrb[71].mxu1  ;;  %s243_s26 = sadd.s32 1, %s15709_s9 }
0x1d89   : > { %s244_s0 = sld [smem:[#allocation3 + %s243_s26]] }
0x1df2   : > { %v9000_v52 = vpop.permute.xlu0 %8999 }
0x1df3   : > { %v9011_v63 = vsel %vm523_vm4, %v17495_v4, %v9000_v52 }
0x1df4   : > { %v9019_v28 = vcombine.high %v9011_v63, %v9011_v63  ;;  %v9026_v58 = vrot.slane %v9011_v63, %v16026_v12  ;;  %v9002_v60 = vpop.permute.xlu1 %9001 }
0x1df5   : > { %v9012_v59 = vsel %vm523_vm4, %v17501_v49, %v9002_v60 }
0x1df6   : > { %v9033_v48 = vrot.slane %v9019_v28, %v16026_v12  ;;  %v9034_v25 = vcombine.high %v9026_v58, %v9026_v58  ;;  %v9004_v21 = vpop.permute.xlu0 %9003  ;;  %v9067_v47 = vcombine.high %v9012_v59, %v9012_v59  ;;  %v9042_v24 = vrot.slane %v9026_v58, %v16026_v12 }
0x1df7   : > { %v9013_v38 = vsel %vm523_vm4, %v17507_v26, %v9004_v21  ;;  %v9074_v16 = vrot.slane %v9012_v59, %v16026_v12 }
0x1df8   : > { %v9035_v4 = vcombine.high %v9033_v48, %v9033_v48  ;;  %v9049_v34 = vrot.slane %v9033_v48, %v16026_v12  ;;  %v9056_v30 = vrot.slane %v9034_v25, %v16026_v12  ;;  %v9115_v10 = vcombine.high %v9013_v38, %v9013_v38 }
0x1df9   : > { %v9122_v49 = vrot.slane %v9013_v38, %v16026_v12  ;;  %v9081_v39 = vrot.slane %v9067_v47, %v16026_v12  ;;  %v9082_v50 = vcombine.high %v9074_v16, %v9074_v16  ;;  %v9090_v46 = vrot.slane %v9074_v16, %v16026_v12 }
0x1dfa   : > { %v9063_v5 = vrot.slane %v9035_v4, %v16026_v12  ;;  %v9217_v6 = vcombine.low %v9042_v24, %v9056_v30  ;;  %v14732_v1 = vcombine.high %v9042_v24, %v9056_v30  ;;  %v9129_v40 = vrot.slane %v9115_v10, %v16026_v12  ;;  %v9006_v21 = vpop.permute.xlu1 %9005 }
0x1dfb   : > { %v9130_v26 = vcombine.high %v9122_v49, %v9122_v49  ;;  %v9138_v36 = vrot.slane %v9122_v49, %v16026_v12  ;;  %v9083_v61 = vcombine.high %v9081_v39, %v9081_v39  ;;  %v9065_v29 = vcombine.high %v9049_v34, %v9049_v34 }
0x1dfc   : > { %v9219_v22 = vcombine.low %v9049_v34, %v9063_v5  ;;  %v9227_v42 = vrot.slane %v9217_v6, %v16026_v12  ;;  %v9131_v54 = vcombine.high %v9129_v40, %v9129_v40  ;;  %v9234_v55 = vrot.slane %v14732_v1, %v16026_v12 }
0x1dfd   : > { %v9152_v11 = vrot.slane %v9130_v26, %v16026_v12  ;;  %v9097_v52 = vrot.slane %v9081_v39, %v16026_v12  ;;  %v9104_v63 = vrot.slane %v9082_v50, %v16026_v12  ;;  %v9145_v28 = vrot.slane %v9129_v40, %v16026_v12 }
0x1dfe   : > { %v9159_v58 = vrot.slane %v9131_v54, %v16026_v12  ;;  %v9111_v60 = vrot.slane %v9083_v61, %v16026_v12  ;;  %v9112_v48 = vcombine.high %v9090_v46, %v9090_v46  ;;  %v9241_v47 = vrot.slane %v9219_v22, %v16026_v12 }
0x1dff   : > { %v9269_v59 = vcombine.low %v9138_v36, %v9152_v11  ;;  %v9113_v25 = vcombine.high %v9097_v52, %v9097_v52  ;;  %v14733_v24 = vcombine.high %v9138_v36, %v9152_v11  ;;  %v9114_v38 = vcombine.high %v9104_v63, %v9104_v63 }
0x1e00   : > { %v9220_v16 = vcombine.low %v9065_v29, %v9090_v46  ;;  %v9249_v4 = vcombine.low %v9227_v42, %v9234_v55  ;;  %v9316_v34 = vcombine.low %v9145_v28, %v9159_v58  ;;  %v9266_v30 = vcombine.low %v9104_v63, %v9112_v48 }
0x1e01   : > { %v9268_v10 = vcombine.low %v9111_v60, %v9113_v25  ;;  %v9267_v39 = vcombine.low %v9114_v38, %v9097_v52  ;;  %v9161_v50 = vcombine.high %v9145_v28, %v9145_v28  ;;  %v9014_v5 = vsel %vm523_vm4, %v17512_v45, %v9006_v21 }
0x1e02   : > { %v9248_v49 = vrot.slane %v9220_v16, %v16026_v12  ;;  %v9297_v6 = vrot.slane %v9269_v59, %v16026_v12  ;;  %v9163_v40 = vcombine.high %v9014_v5, %v9014_v5  ;;  %v9170_v26 = vrot.slane %v9014_v5, %v16026_v12 }
0x1e03   : > { %v9290_v1 = vrot.slane %v9268_v10, %v16026_v12  ;;  %v9325_v36 = vrot.slane %v14733_v24, %v16026_v12  ;;  %v9276_v46 = vrot.slane %v9266_v30, %v16026_v12  ;;  %v9283_v22 = vrot.slane %v9267_v39, %v16026_v12 }
0x1e04   : > { %v9250_v61 = vcombine.low %v9241_v47, %v9248_v49  ;;  %v9177_v54 = vrot.slane %v9163_v40, %v16026_v12  ;;  %v9178_v29 = vcombine.high %v9170_v26, %v9170_v26  ;;  %v9186_v45 = vrot.slane %v9170_v26, %v16026_v12 }
0x1e05   : > { %v9299_v42 = vcombine.low %v9290_v1, %v9297_v6  ;;  %v9332_v55 = vrot.slane %v9316_v34, %v16026_v12  ;;  %v9298_v11 = vcombine.low %v9276_v46, %v9283_v22  ;;  %v9257_v52 = vrot.slane %v9249_v4, %v16026_v12  ;;  %v14731_v22 = vld [vmem:[%s19527_s5 + $0x6] ss:$0 sm:$0xff] }
0x1e06   : > { %v9264_v63 = vrot.slane %v9250_v61, %v16026_v12  ;;  %v9179_v28 = vcombine.high %v9177_v54, %v9177_v54  ;;  %v9193_v58 = vrot.slane %v9177_v54, %v16026_v12  ;;  %v9200_v60 = vrot.slane %v9178_v29, %v16026_v12 }
0x1e07   : > { %v9208_v59 = vcombine.high %v9186_v45, %v9186_v45  ;;  %v9317_v48 = vcombine.low %v9161_v50, %v9186_v45  ;;  %v9306_v21 = vrot.slane %v9298_v11, %v16026_v12  ;;  %v9313_v47 = vrot.slane %v9299_v42, %v16026_v12 }
0x1e08   : > { %v9265_v25 = vcombine.low %v9257_v52, %v9264_v63  ;;  %v9207_v24 = vrot.slane %v9179_v28, %v16026_v12  ;;  %v9209_v38 = vcombine.high %v9193_v58, %v9193_v58  ;;  %v9210_v16 = vcombine.high %v9200_v60, %v9200_v60 }
0x1e09   : > { %v9318_v34 = vcombine.low %v9200_v60, %v9208_v59  ;;  %v9347_v4 = vcombine.low %v9325_v36, %v9332_v55  ;;  %v9314_v30 = vcombine.low %v9306_v21, %v9313_v47  ;;  %v9339_v10 = vrot.slane %v9317_v48, %v16026_v12 }
0x1e0a   : > { %15281 = vmatprep.mubr.msk.f32.mxu0 %vm418_vm2, %v9265_v25  ;;  %v9364_v39 = vcombine.low %v9210_v16, %v9193_v58  ;;  %v9365_v50 = vcombine.low %v9207_v24, %v9209_v38 }
0x1e0b   : > { %v9346_v49 = vrot.slane %v9318_v34, %v16026_v12  ;;  %15282 = vmatmul.mubr.msk.f32.vlgmr.msra.gmra.mrb[68].mxu0 %vm418_vm2, %v9314_v30  ;;  %v9355_v40 = vrot.slane %v9347_v4, %v16026_v12 }
0x1e0c   : > { %v9372_v6 = vrot.slane %v9364_v39, %v16026_v12  ;;  %v9379_v1 = vrot.slane %v9365_v50, %v16026_v12 }
0x1e0d   : > { %v9348_v5 = vcombine.low %v9339_v10, %v9346_v49 }
0x1e0e   : > { %v9380_v36 = vcombine.low %v9372_v6, %v9379_v1 }
0x1e0f   : > { %v9362_v26 = vrot.slane %v9348_v5, %v16026_v12 }
0x1e10   : > { %v9387_v46 = vrot.slane %v9380_v36, %v16026_v12  ;;  %v19697_v36 = vld [vmem:[#allocation28_spill] sm:$0xff] }
0x1e11   : > { %v9363_v61 = vcombine.low %v9355_v40, %v9362_v26 }
0x1e13   : > { %15284 = vmatprep.mubr.msk.f32.mxu0 %vm418_vm2, %v9363_v61 }
0x1e14   : > { %15285 = vmatmul.mubr.msk.f32.gmra.mrb[70].mxu0 %vm418_vm2, %v9387_v46 }
0x1ede   : > { %v15283_v42 = vpop.f32.mrb[68].mxu0 }
0x1edf   : > { %v9468_v54 = vadd.f32 %v15283_v42, %v14731_v22  ;;  %v9462_v29 = vpop.f32.mrb[69].mxu0 }
0x1ee0   : > { %v9463_v45 = vadd.f32 %v14731_v22, %v9462_v29 }
0x1ee1   : > { %v9534_v55 = vcombine.high %v9468_v54, %v9468_v54  ;;  %v9541_v11 = vrot.slane %v9468_v54, %v16026_v12 }
0x1ee2   : > { %v9485_v52 = vcombine.high %v9463_v45, %v9463_v45  ;;  %v9492_v63 = vrot.slane %v9463_v45, %v16026_v12 }
0x1ee3   : > { %v9548_v28 = vrot.slane %v9534_v55, %v16026_v12  ;;  %v9549_v58 = vcombine.high %v9541_v11, %v9541_v11  ;;  %v9557_v60 = vrot.slane %v9541_v11, %v16026_v12 }
0x1ee4   : > { %v9499_v59 = vrot.slane %v9485_v52, %v16026_v12  ;;  %v9500_v48 = vcombine.high %v9492_v63, %v9492_v63  ;;  %v9508_v25 = vrot.slane %v9492_v63, %v16026_v12 }
0x1ee5   : > { %v9550_v21 = vcombine.high %v9548_v28, %v9548_v28  ;;  %v9564_v47 = vrot.slane %v9548_v28, %v16026_v12  ;;  %v9571_v24 = vrot.slane %v9549_v58, %v16026_v12  ;;  %v9579_v38 = vcombine.high %v9557_v60, %v9557_v60  ;;  %v19699_v28 = vld [vmem:[#allocation30_spill] sm:$0xff] }
0x1ee6   : > { %v9501_v16 = vcombine.high %v9499_v59, %v9499_v59  ;;  %v9515_v34 = vrot.slane %v9499_v59, %v16026_v12  ;;  %v9522_v4 = vrot.slane %v9500_v48, %v16026_v12  ;;  %v17627_v6 = vadd.f32 %v9557_v60, %v17107_v35  ;;  %v19700_v60 = vld [vmem:[#allocation31_spill] sm:$0xff] }
0x1ee7   : > { %v15286_v30 = vpop.f32.mrb[70].mxu0  ;;  %v9578_v10 = vrot.slane %v9550_v21, %v16026_v12  ;;  %v9580_v49 = vcombine.high %v9564_v47, %v9564_v47  ;;  %v9581_v39 = vcombine.high %v9571_v24, %v9571_v24  ;;  %v17624_v50 = vadd.f32 %v9571_v24, %v17110_v32  ;;  %v19701_v21 = vld [vmem:[#allocation32_spill] sm:$0xff] }
0x1ee8   : > { %v9472_v5 = vpop.f32.mrb[71].mxu0  ;;  %v17630_v1 = vadd.f32 %v9579_v38, %v17113_v18  ;;  %v9529_v40 = vrot.slane %v9501_v16, %v16026_v12  ;;  %v9530_v42 = vcombine.high %v9508_v25, %v9508_v25  ;;  %v17640_v32 = vadd.f32 %v9564_v47, %v17119_v62 }
0x1ee9   : > { %v9582_v26 = vcombine.high %v9578_v10, %v9578_v10  ;;  %v17634_v61 = vadd.f32 %v9581_v39, %v19697_v36  ;;  %v17637_v46 = vadd.f32 %v9578_v10, %v17122_v57  ;;  %v9531_v54 = vcombine.high %v9515_v34, %v9515_v34 }
0x1eea   : > { %v9532_v29 = vcombine.high %v9522_v4, %v9522_v4  ;;  %v9533_v35 = vcombine.high %v9529_v40, %v9529_v40  ;;  %v17643_v45 = vadd.f32 %v9580_v49, %v17125_v33  ;;  %v9789_v55 = vcombine.low %v17627_v6, %v17624_v50 }
0x1eeb   : > { %v17646_v18 = vadd.f32 %v9582_v26, %v17128_v56  ;;  %v9790_v57 = vcombine.low %v17630_v1, %v17634_v61  ;;  %v9791_v11 = vcombine.low %v17640_v32, %v17637_v46  ;;  %v17655_v62 = vadd.f32 %v9508_v25, %v17159_v44  ;;  %v19698_v56 = vld [vmem:[#allocation29_spill] sm:$0xff] }
0x1eec   : > { %v17658_v52 = vadd.f32 %v9522_v4, %v17162_v51  ;;  %v17661_v33 = vadd.f32 %v9532_v29, %v17168_v20  ;;  %v17664_v63 = vadd.f32 %v9530_v42, %v19698_v56  ;;  %v17667_v58 = vadd.f32 %v9515_v34, %v19699_v28  ;;  %v19702_v44 = vld [vmem:[#allocation33_spill] sm:$0xff] }
0x1eed   : > { %v17670_v59 = vadd.f32 %v9529_v40, %v19700_v60  ;;  %v9478_v48 = vadd.f32 %v15286_v30, %v14731_v22  ;;  %v17673_v47 = vadd.f32 %v9531_v54, %v19701_v21  ;;  %v17676_v25 = vadd.f32 %v9533_v35, %v19702_v44 }
0x1eee   : > { %v9473_v51 = vadd.f32 %v14731_v22, %v9472_v5  ;;  %v9792_v20 = vcombine.low %v17643_v45, %v17646_v18  ;;  %v9740_v24 = vcombine.low %v17655_v62, %v17658_v52  ;;  %v9799_v16 = vrot.slane %v9789_v55, %v16026_v12 }
0x1eef   : > { %v9638_v38 = vrot.slane %v9478_v48, %v16026_v12  ;;  %v9806_v34 = vrot.slane %v9790_v57, %v16026_v12  ;;  %v9741_v4 = vcombine.low %v17664_v63, %v17661_v33  ;;  %v9813_v5 = vrot.slane %v9791_v11, %v16026_v12 }
0x1ef0   : > { %v9583_v30 = vcombine.high %v9473_v51, %v9473_v51  ;;  %v9590_v10 = vrot.slane %v9473_v51, %v16026_v12  ;;  %v9820_v22 = vrot.slane %v9792_v20, %v16026_v12  ;;  %v9742_v26 = vcombine.low %v17667_v58, %v17670_v59 }
0x1ef1   : > { %v9639_v49 = vcombine.high %v9638_v38, %v9638_v38  ;;  %v9646_v39 = vrot.slane %v9638_v38, %v16026_v12  ;;  %v9821_v40 = vcombine.low %v9799_v16, %v9806_v34  ;;  %v9743_v57 = vcombine.low %v17673_v47, %v17676_v25 }
0x1ef2   : > { %v9597_v36 = vrot.slane %v9583_v30, %v16026_v12  ;;  %v9598_v42 = vcombine.high %v9590_v10, %v9590_v10  ;;  %v9606_v54 = vrot.slane %v9590_v10, %v16026_v12  ;;  %v9822_v55 = vcombine.low %v9813_v5, %v9820_v22 }
0x1ef3   : > { %v9653_v29 = vrot.slane %v9639_v49, %v16026_v12  ;;  %v9654_v35 = vcombine.high %v9646_v39, %v9646_v39  ;;  %v17701_v21 = vadd.f32 %v9646_v39, %v17290_v41  ;;  %v9829_v51 = vrot.slane %v9821_v40, %v16026_v12 }
0x1ef4   : > { %v9599_v56 = vcombine.high %v9597_v36, %v9597_v36  ;;  %v9613_v28 = vrot.slane %v9597_v36, %v16026_v12  ;;  %v9620_v11 = vrot.slane %v9598_v42, %v16026_v12  ;;  %v9628_v60 = vcombine.high %v9606_v54, %v9606_v54 }
0x1ef5   : > { %v9655_v48 = vcombine.high %v9653_v29, %v9653_v29  ;;  %v17704_v44 = vadd.f32 %v9653_v29, %v17293_v14  ;;  %v17712_v30 = vadd.f32 %v9654_v35, %v17297_v23  ;;  %v17718_v41 = vadd.f32 %v9606_v54, %v17234_v8 }
0x1ef6   : > { %v9627_v20 = vrot.slane %v9599_v56, %v16026_v12  ;;  %v9629_v38 = vcombine.high %v9613_v28, %v9613_v28  ;;  %v9630_v16 = vcombine.high %v9620_v11, %v9620_v11  ;;  %v17709_v34 = vadd.f32 %v9620_v11, %v17237_v19 }
0x1ef7   : > { %v17715_v10 = vadd.f32 %v9655_v48, %v17300_v2  ;;  %v17721_v14 = vadd.f32 %v9628_v60, %v17240_v13  ;;  %v17727_v39 = vadd.f32 %v9613_v28, %v17247_v27  ;;  %v9836_v2 = vrot.slane %v9822_v55, %v16026_v12 }
0x1ef8   : > { %v9631_v22 = vcombine.high %v9627_v20, %v9627_v20  ;;  %v17724_v49 = vadd.f32 %v9630_v16, %v17244_v7  ;;  %v17730_v19 = vadd.f32 %v9627_v20, %v17250_v37  ;;  %v9838_v23 = vcombine.low %v17718_v41, %v17709_v34 }
0x1ef9   : > { %v9750_v8 = vrot.slane %v9740_v24, %v16026_v12  ;;  %v9757_v13 = vrot.slane %v9741_v4, %v16026_v12  ;;  %v17738_v5 = vadd.f32 %v9629_v38, %v17253_v0  ;;  %v9837_v40 = vcombine.low %v9829_v51, %v9836_v2 }
0x1efa   : > { %v17741_v7 = vadd.f32 %v9631_v22, %v17258_v9  ;;  %v9839_v27 = vcombine.low %v17721_v14, %v17724_v49  ;;  %v9840_v37 = vcombine.low %v17727_v39, %v17730_v19  ;;  %v9764_v36 = vrot.slane %v9742_v26, %v16026_v12 }
0x1efb   : > { %v9771_v42 = vrot.slane %v9743_v57, %v16026_v12  ;;  %v9772_v24 = vcombine.low %v9750_v8, %v9757_v13  ;;  %v9848_v0 = vrot.slane %v9838_v23, %v16026_v12  ;;  %v9888_v54 = vcombine.low %v17712_v30, %v17715_v10 }
0x1efc   : > { %v9841_v4 = vcombine.low %v17738_v5, %v17741_v7  ;;  %v9855_v9 = vrot.slane %v9839_v27, %v16026_v12  ;;  %v9887_v29 = vcombine.low %v17701_v21, %v17704_v44  ;;  %v9918_v35 = vsel %vm418_vm2, %v9837_v40, 0.0 }
0x1efd   : > { %v9773_v55 = vcombine.low %v9764_v36, %v9771_v42  ;;  %9919 = vadd.xlane.f32.xlu1 %v9918_v35  ;;  %v9862_v26 = vrot.slane %v9840_v37, %v16026_v12  ;;  %v9780_v28 = vrot.slane %v9772_v24, %v16026_v12  ;;  %v9902_v60 = vrot.slane %v9888_v54, %v16026_v12  ;;  %v19704_v54 = vld [vmem:[#allocation24_spill] sm:$0xff]  ;;  %v19705_v35 = vld [vmem:[#allocation18_spill] sm:$0xff] }
0x1efe   : > { %v9869_v57 = vrot.slane %v9841_v4, %v16026_v12  ;;  %v9870_v56 = vcombine.low %v9848_v0, %v9855_v9  ;;  %v9895_v20 = vrot.slane %v9887_v29, %v16026_v12  ;;  %v19703_v0 = vld [vmem:[#allocation13_spill] sm:$0xff] }
0x1eff   : > { %v9787_v11 = vrot.slane %v9773_v55, %v16026_v12 }
0x1f00   : > { %v9871_v48 = vcombine.low %v9862_v26, %v9869_v57  ;;  %v9878_v38 = vrot.slane %v9870_v56, %v16026_v12  ;;  %v9903_v23 = vcombine.low %v9895_v20, %v9902_v60  ;;  %v19706_v26 = vld [vmem:[#allocation22_spill] sm:$0xff] }
0x1f01   : > { %v9788_v51 = vcombine.low %v9780_v28, %v9787_v11 }
0x1f02   : > { %v9885_v16 = vrot.slane %v9871_v48, %v16026_v12  ;;  %v9910_v13 = vrot.slane %v9903_v23, %v16026_v12 }
0x1f03   : > { %v9915_v22 = vsel %vm418_vm2, %v9788_v51, 0.0 }
0x1f04   : > { %9916 = vadd.xlane.f32.xlu0 %v9915_v22  ;;  %v9886_v2 = vcombine.low %v9878_v38, %v9885_v16  ;;  %v9924_v27 = vsel %vm6013_vm11, %v9910_v13, 0.0 }
0x1f06   : > { %v9921_v8 = vsel %vm418_vm2, %v9886_v2, 0.0 }
0x1f08   : > { %9922 = vadd.xlane.f32.xlu0 %v9921_v8 }
0x1f0c   : > { %9925 = vadd.xlane.f32.xlu0 %v9924_v27 }
0x1f8a   : > { %v9920_v37 = vpop.xlane.xlu1 %9919 }
0x1f8b   : > { %v9928_v40 = vmul.f32 0.125, %v9920_v37 }
0x1f8d   : > { %v9970_v36 = vrot.slane %v9928_v40, %v16786_v53  ;;  %v9974_v42 = vrot.slane %v9928_v40, %v16789_v17  ;;  %v9978_v24 = vrot.slane %v9928_v40, %v16792_v43  ;;  %v9982_v4 = vrot.slane %v9928_v40, %v16795_v3 }
0x1f8e   : > { %v9986_v9 = vrot.slane %v9928_v40, %v19703_v0  ;;  %v9990_v29 = vrot.slane %v9928_v40, %v19704_v54  ;;  %v9994_v55 = vrot.slane %v9928_v40, %v19705_v35  ;;  %v9998_v57 = vrot.slane %v9928_v40, %v19706_v26 }
0x1f8f   : > { %v17779_v56 = vsub.f32 %v17627_v6, %v9970_v36  ;;  %v17782_v28 = vsub.f32 %v17624_v50, %v9974_v42  ;;  %v17785_v11 = vsub.f32 %v17630_v1, %v9978_v24  ;;  %v17788_v60 = vsub.f32 %v17634_v61, %v9982_v4 }
0x1f90   : > { %v17791_v51 = vsub.f32 %v17640_v32, %v9986_v9  ;;  %v17794_v20 = vsub.f32 %v17637_v46, %v9990_v29  ;;  %v17797_v38 = vsub.f32 %v17643_v45, %v9994_v55  ;;  %v17800_v6 = vsub.f32 %v17646_v18, %v9998_v57 }
0x1f91   : > { %v9917_v48 = vpop.xlane.xlu0 %9916  ;;  %v10111_v1 = vmul.f32 %v17779_v56, %v17779_v56  ;;  %v10112_v61 = vmul.f32 %v17782_v28, %v17782_v28  ;;  %v10113_v32 = vmul.f32 %v17785_v11, %v17785_v11  ;;  %v10114_v46 = vmul.f32 %v17788_v60, %v17788_v60 }
0x1f92   : > { %v9927_v50 = vmul.f32 0.125, %v9917_v48  ;;  %v10115_v45 = vmul.f32 %v17791_v51, %v17791_v51  ;;  %v10116_v18 = vmul.f32 %v17794_v20, %v17794_v20  ;;  %v10117_v16 = vmul.f32 %v17797_v38, %v17797_v38 }
0x1f93   : > { %v10118_v22 = vmul.f32 %v17800_v6, %v17800_v6  ;;  %v10208_v23 = vcombine.low %v10111_v1, %v10112_v61  ;;  %v10209_v27 = vcombine.low %v10113_v32, %v10114_v46 }
0x1f94   : > { %v9938_v2 = vrot.slane %v9927_v50, %v16786_v53  ;;  %v9942_v8 = vrot.slane %v9927_v50, %v16789_v17  ;;  %v10210_v37 = vcombine.low %v10115_v45, %v10116_v18  ;;  %v9946_v40 = vrot.slane %v9927_v50, %v16792_v43 }
0x1f95   : > { %v9923_v13 = vpop.xlane.xlu0 %9922  ;;  %v9950_v36 = vrot.slane %v9927_v50, %v16795_v3  ;;  %v10211_v24 = vcombine.low %v10117_v16, %v10118_v22  ;;  %v10218_v4 = vrot.slane %v10208_v23, %v16026_v12  ;;  %v9954_v9 = vrot.slane %v9927_v50, %v19703_v0 }
0x1f96   : > { %v17822_v42 = vmul.f32 0.125, %v9923_v13  ;;  %v10225_v29 = vrot.slane %v10209_v27, %v16026_v12  ;;  %v10232_v55 = vrot.slane %v10210_v37, %v16026_v12  ;;  %v9958_v57 = vrot.slane %v9927_v50, %v19704_v54 }
0x1f97   : > { %v9962_v48 = vrot.slane %v9927_v50, %v19705_v35  ;;  %v10239_v1 = vrot.slane %v10211_v24, %v16026_v12  ;;  %v9966_v61 = vrot.slane %v9927_v50, %v19706_v26  ;;  %v17833_v32 = vsub.f32 %v17655_v62, %v9938_v2 }
0x1f98   : > { %v17836_v46 = vsub.f32 %v17658_v52, %v9942_v8  ;;  %v10240_v18 = vcombine.low %v10218_v4, %v10225_v29  ;;  %v17839_v16 = vsub.f32 %v17664_v63, %v9946_v40  ;;  %v17842_v22 = vsub.f32 %v17661_v33, %v9950_v36 }
0x1f99   : > { %v9926_v45 = vpop.xlane.xlu0 %9925  ;;  %v17845_v23 = vsub.f32 %v17667_v58, %v9954_v9  ;;  %v10241_v27 = vcombine.low %v10232_v55, %v10239_v1  ;;  %v17848_v50 = vsub.f32 %v17670_v59, %v9958_v57  ;;  %v17851_v62 = vsub.f32 %v17673_v47, %v9962_v48 }
0x1f9a   : > { %v9930_v13 = vmul.f32 0.125, %v9926_v45  ;;  %v10248_v52 = vrot.slane %v10240_v18, %v16026_v12  ;;  %v17855_v2 = vsub.f32 %v17676_v25, %v9966_v61  ;;  %v10103_v33 = vmul.f32 %v17833_v32, %v17833_v32 }
0x1f9b   : > { %v10104_v63 = vmul.f32 %v17836_v46, %v17836_v46  ;;  %v10255_v37 = vrot.slane %v10241_v27, %v16026_v12  ;;  %v10105_v25 = vmul.f32 %v17839_v16, %v17839_v16  ;;  %v10106_v40 = vmul.f32 %v17842_v22, %v17842_v22 }
0x1f9c   : > { %v10034_v58 = vrot.slane %v9930_v13, %v16786_v53  ;;  %v10038_v8 = vrot.slane %v9930_v13, %v16789_v17  ;;  %v10042_v59 = vrot.slane %v9930_v13, %v16792_v43  ;;  %v10046_v47 = vrot.slane %v9930_v13, %v16795_v3 }
0x1f9d   : > { %v10107_v36 = vmul.f32 %v17845_v23, %v17845_v23  ;;  %v10256_v55 = vcombine.low %v10248_v52, %v10255_v37  ;;  %v10108_v57 = vmul.f32 %v17848_v50, %v17848_v50  ;;  %v10109_v48 = vmul.f32 %v17851_v62, %v17851_v62 }
0x1f9e   : > { %v17873_v24 = vsub.f32 %v17701_v21, %v10034_v58  ;;  %v17876_v4 = vsub.f32 %v17704_v44, %v10038_v8  ;;  %v17879_v9 = vsub.f32 %v17712_v30, %v10042_v59  ;;  %v17882_v29 = vsub.f32 %v17715_v10, %v10046_v47 }
0x1f9f   : > { %v10110_v21 = vmul.f32 %v17855_v2, %v17855_v2  ;;  %v10159_v1 = vcombine.low %v10103_v33, %v10104_v63  ;;  %v10160_v61 = vcombine.low %v10105_v25, %v10106_v40  ;;  %v10002_v44 = vrot.slane %v17822_v42, %v16786_v53 }
0x1fa0   : > { %19707 = vst [vmem:[#allocation17_spill] sm:$0xff] %v17873_v24  ;;  %19708 = vst [vmem:[#allocation19_spill] sm:$0xff] %v17876_v4  ;;  %v10006_v30 = vrot.slane %v17822_v42, %v16789_v17  ;;  %v10337_v10 = vsel %vm418_vm2, %v10256_v55, 0.0  ;;  %v10161_v45 = vcombine.low %v10107_v36, %v10108_v57  ;;  %v10010_v13 = vrot.slane %v17822_v42, %v16792_v43 }
0x1fa1   : > { %19709 = vst [vmem:[#allocation14_spill] sm:$0xff] %v17879_v9  ;;  %19710 = vst [vmem:[#allocation20_spill] sm:$0xff] %v17882_v29  ;;  %v10162_v18 = vcombine.low %v10109_v48, %v10110_v21  ;;  %10338 = vadd.xlane.f32.xlu0 %v10337_v10  ;;  %v10169_v27 = vrot.slane %v10159_v1, %v16026_v12  ;;  %v10176_v52 = vrot.slane %v10160_v61, %v16026_v12 }
0x1fa2   : > { %v10014_v33 = vrot.slane %v17822_v42, %v16795_v3  ;;  %v10018_v63 = vrot.slane %v17822_v42, %v19703_v0  ;;  %v10183_v58 = vrot.slane %v10161_v45, %v16026_v12  ;;  %v10022_v59 = vrot.slane %v17822_v42, %v19704_v54 }
0x1fa3   : > { %v10190_v8 = vrot.slane %v10162_v18, %v16026_v12  ;;  %v10026_v47 = vrot.slane %v17822_v42, %v19705_v35  ;;  %v10191_v37 = vcombine.low %v10169_v27, %v10176_v52  ;;  %v10030_v25 = vrot.slane %v17822_v42, %v19706_v26 }
0x1fa4   : > { %v17912_v40 = vsub.f32 %v17718_v41, %v10002_v44  ;;  %v17915_v36 = vsub.f32 %v17709_v34, %v10006_v30  ;;  %v17918_v57 = vsub.f32 %v17721_v14, %v10010_v13  ;;  %v17921_v48 = vsub.f32 %v17724_v49, %v10014_v33 }
0x1fa5   : > { %v10192_v55 = vcombine.low %v10183_v58, %v10190_v8  ;;  %v17924_v21 = vsub.f32 %v17727_v39, %v10018_v63  ;;  %v10199_v1 = vrot.slane %v10191_v37, %v16026_v12  ;;  %v17928_v42 = vsub.f32 %v17730_v19, %v10022_v59 }
0x1fa6   : > { %v17931_v41 = vsub.f32 %v17738_v5, %v10026_v47  ;;  %v17934_v34 = vsub.f32 %v17741_v7, %v10030_v25  ;;  %v10119_v49 = vmul.f32 %v17912_v40, %v17912_v40  ;;  %v10120_v39 = vmul.f32 %v17915_v36, %v17915_v36 }
0x1fa7   : > { %19711 = vst [vmem:[#allocation16_spill] sm:$0xff] %v17924_v21  ;;  %19712 = vst [vmem:[#allocation23_spill] sm:$0xff] %v17928_v42  ;;  %v10206_v14 = vrot.slane %v10192_v55, %v16026_v12  ;;  %v10121_v61 = vmul.f32 %v17918_v57, %v17918_v57  ;;  %v10122_v19 = vmul.f32 %v17921_v48, %v17921_v48 }
0x1fa8   : > { %19713 = vst [vmem:[#allocation21_spill] sm:$0xff] %v17931_v41  ;;  %19714 = vst [vmem:[#allocation26_spill] sm:$0xff] %v17934_v34  ;;  %v10123_v5 = vmul.f32 %v17924_v21, %v17924_v21  ;;  %v10124_v7 = vmul.f32 %v17928_v42, %v17928_v42  ;;  %v10125_v44 = vmul.f32 %v17931_v41, %v17931_v41 }
0x1fa9   : > { %v10207_v30 = vcombine.low %v10199_v1, %v10206_v14  ;;  %v10126_v10 = vmul.f32 %v17934_v34, %v17934_v34  ;;  %v10257_v45 = vcombine.low %v10119_v49, %v10120_v39  ;;  %v10127_v18 = vmul.f32 %v17873_v24, %v17873_v24 }
0x1faa   : > { %v10258_v13 = vcombine.low %v10121_v61, %v10122_v19  ;;  %v10259_v27 = vcombine.low %v10123_v5, %v10124_v7  ;;  %v10128_v52 = vmul.f32 %v17876_v4, %v17876_v4  ;;  %v10129_v33 = vmul.f32 %v17879_v9, %v17879_v9 }
0x1fab   : > { %v10334_v63 = vsel %vm418_vm2, %v10207_v30, 0.0  ;;  %v10260_v58 = vcombine.low %v10125_v44, %v10126_v10  ;;  %v10267_v8 = vrot.slane %v10257_v45, %v16026_v12  ;;  %v10130_v59 = vmul.f32 %v17882_v29, %v17882_v29 }
0x1fac   : > { %10335 = vadd.xlane.f32.xlu1 %v10334_v63  ;;  %v10274_v47 = vrot.slane %v10258_v13, %v16026_v12  ;;  %v10281_v37 = vrot.slane %v10259_v27, %v16026_v12  ;;  %v10306_v25 = vcombine.low %v10127_v18, %v10128_v52  ;;  %v10712_v18 = vld [vmem:[%s19526_s4 + $0x50] sm:$0xff]  ;;  %v17979_v13 = vld [vmem:[%s19526_s4 + $0x60] sm:$0xff] }
0x1fad   : > { %v10288_v55 = vrot.slane %v10260_v58, %v16026_v12  ;;  %v10307_v1 = vcombine.low %v10129_v33, %v10130_v59  ;;  %15287 = vmatprep.subr.mxu1 %v10712_v18  ;;  %19715 = vst [vmem:[#allocation25_spill] sm:$0xff] %v17979_v13  ;;  %v14738_v27 = vld [vmem:[%s19527_s5 + $0x11] ss:$0 sm:$0xff]  ;;  %v14739_v52 = vld [vmem:[%s19527_s5 + $0x12] ss:$0 sm:$0xff] }
0x1fae   : > { %v10289_v14 = vcombine.low %v10267_v8, %v10274_v47  ;;  %v10314_v49 = vrot.slane %v10306_v25, %v16026_v12  ;;  %15288 = vmatpush3.msra.mxu1 %v10712_v18  ;;  %v10536_v33 = vcombine.high %v14738_v27, %v14738_v27  ;;  %v10627_v63 = vcombine.high %v14739_v52, %v14739_v52 }
0x1faf   : > { %v10290_v39 = vcombine.low %v10281_v37, %v10288_v55  ;;  %v10321_v61 = vrot.slane %v10307_v1, %v16026_v12  ;;  %15303 = vmatprep.subr.mxu1 %v17979_v13  ;;  %v10543_v59 = vrot.slane %v14738_v27, %v16026_v12  ;;  %v10634_v25 = vrot.slane %v14739_v52, %v16026_v12 }
0x1fb0   : > { %v10297_v19 = vrot.slane %v10289_v14, %v16026_v12  ;;  %v10550_v47 = vrot.slane %v10536_v33, %v16026_v12  ;;  %v10641_v55 = vrot.slane %v10627_v63, %v16026_v12 }
0x1fb1   : > { %v10304_v5 = vrot.slane %v10290_v39, %v16026_v12  ;;  %v10322_v7 = vcombine.low %v10314_v49, %v10321_v61  ;;  %v10551_v1 = vcombine.high %v10543_v59, %v10543_v59  ;;  %v10642_v49 = vcombine.high %v10634_v25, %v10634_v25 }
0x1fb2   : > { %v10552_v14 = vcombine.high %v10550_v47, %v10550_v47  ;;  %v10643_v39 = vcombine.high %v10641_v55, %v10641_v55  ;;  %v17993_v61 = vrot.slane %v10543_v59, %v16026_v12 }
0x1fb3   : > { %v10305_v44 = vcombine.low %v10297_v19, %v10304_v5  ;;  %v10329_v30 = vrot.slane %v10322_v7, %v16026_v12  ;;  %v17996_v5 = vrot.slane %v10550_v47, %v16026_v12  ;;  %v17999_v7 = vrot.slane %v10551_v1, %v16026_v12 }
0x1fb4   : > { %v18011_v18 = vrot.slane %v10642_v49, %v16026_v12  ;;  %v18014_v27 = vrot.slane %v10643_v39, %v16026_v12  ;;  %v18018_v33 = vcombine.high %v17993_v61, %v17993_v61 }
0x1fb5   : > { %v10340_v10 = vsel %vm418_vm2, %v10305_v44, 0.0  ;;  %v10343_v45 = vsel %vm6013_vm11, %v10329_v30, 0.0  ;;  %v18002_v44 = vrot.slane %v10552_v14, %v16026_v12  ;;  %v18005_v30 = vrot.slane %v10634_v25, %v16026_v12 }
0x1fb6   : > { %10341 = vadd.xlane.f32.xlu1 %v10340_v10  ;;  %10344 = vadd.xlane.f32.xlu0 %v10343_v45  ;;  %v18008_v45 = vrot.slane %v10641_v55, %v16026_v12  ;;  %v18022_v63 = vcombine.high %v17996_v5, %v17996_v5  ;;  %v18042_v25 = vcombine.high %v18011_v18, %v18011_v18 }
0x1fb7   : > { %v18034_v59 = vcombine.high %v18005_v30, %v18005_v30  ;;  %v18046_v55 = vcombine.high %v18014_v27, %v18014_v27 }
0x202e   : > { %v10339_v58 = vpop.xlane.xlu0 %10338 }
0x202f   : > { %v10347_v8 = vmul.f32 0.125, %v10339_v58  ;;  %v18026_v58 = vcombine.high %v17999_v7, %v17999_v7 }
0x2031   : > { %v10351_v37 = vadd.f32 1e-05, %v10347_v8  ;;  %v18030_v8 = vcombine.high %v18002_v44, %v18002_v44 }
0x2033   : > { %15464 = vrsqrt.f32 %v10351_v37  ;;  %v18038_v37 = vcombine.high %v18008_v45, %v18008_v45 }
0x2039   : > { %v10336_v19 = vpop.xlane.xlu1 %10335 }
0x203a   : > { %v10346_v10 = vmul.f32 0.125, %v10336_v19 }
0x203c   : > { %v10350_v52 = vadd.f32 1e-05, %v10346_v10 }
0x203d   : > { %v15465_v47 = vpop.eup %15464 }
0x203e   : > { %15466 = vrsqrt.f32 %v10350_v52  ;;  %v10397_v1 = vrot.slane %v15465_v47, %v16786_v53  ;;  %v10401_v14 = vrot.slane %v15465_v47, %v16789_v17  ;;  %v10405_v49 = vrot.slane %v15465_v47, %v16792_v43 }
0x203f   : > { %v10409_v39 = vrot.slane %v15465_v47, %v16795_v3  ;;  %v10413_v19 = vrot.slane %v15465_v47, %v19703_v0  ;;  %v10417_v10 = vrot.slane %v15465_v47, %v19704_v54  ;;  %v10421_v52 = vrot.slane %v15465_v47, %v19705_v35 }
0x2040   : > { %v10425_v15 = vrot.slane %v15465_v47, %v19706_v26  ;;  %v10510_v31 = vmul.f32 %v10397_v1, %v17779_v56  ;;  %v10511_v29 = vmul.f32 %v10401_v14, %v17782_v28  ;;  %v10512_v9 = vmul.f32 %v10405_v49, %v17785_v11 }
0x2041   : > { %v10513_v4 = vmul.f32 %v10409_v39, %v17788_v60  ;;  %v10514_v24 = vmul.f32 %v10413_v19, %v17791_v51  ;;  %v10515_v13 = vmul.f32 %v10417_v10, %v17794_v20  ;;  %v10516_v34 = vmul.f32 %v10421_v52, %v17797_v38 }
0x2042   : > { %v10517_v41 = vmul.f32 %v10425_v15, %v17800_v6  ;;  %v10601_v47 = vmul.f32 %v17993_v61, %v10510_v31  ;;  %v10602_v56 = vmul.f32 %v17999_v7, %v10511_v29  ;;  %v10603_v28 = vmul.f32 %v18018_v33, %v10512_v9 }
0x2043   : > { %v10342_v42 = vpop.xlane.xlu1 %10341  ;;  %v10345_v21 = vpop.xlane.xlu0 %10344  ;;  %v10604_v11 = vmul.f32 %v18026_v58, %v10513_v4  ;;  %v10605_v51 = vmul.f32 %v17996_v5, %v10514_v24  ;;  %v10606_v20 = vmul.f32 %v18002_v44, %v10515_v13  ;;  %v10607_v38 = vmul.f32 %v18022_v63, %v10516_v34 }
0x2044   : > { %v10348_v1 = vmul.f32 0.125, %v10342_v42  ;;  %v10349_v60 = vmul.f32 0.125, %v10345_v21  ;;  %v10608_v15 = vmul.f32 %v18030_v8, %v10517_v41  ;;  %v18073_v6 = vadd.f32 %v18005_v30, %v10601_v47 }
0x2045   : > { %v18076_v31 = vadd.f32 %v18011_v18, %v10602_v56  ;;  %v18079_v4 = vadd.f32 %v18034_v59, %v10603_v28  ;;  %v18082_v21 = vadd.f32 %v18042_v25, %v10604_v11  ;;  %v18085_v24 = vadd.f32 %v18008_v45, %v10605_v51 }
0x2046   : > { %v10352_v29 = vadd.f32 1e-05, %v10348_v1  ;;  %v10353_v9 = vadd.f32 1e-05, %v10349_v60  ;;  %v18088_v42 = vadd.f32 %v18014_v27, %v10606_v20  ;;  %v18091_v41 = vadd.f32 %v18038_v37, %v10607_v38 }
0x2047   : > { %19716 = vst [vmem:[#allocation15_spill] sm:$0xff] %v18082_v21  ;;  %v18094_v13 = vadd.f32 %v18046_v55, %v10608_v15  ;;  %v10795_v14 = vcombine.low %v18073_v6, %v18076_v31  ;;  %v10796_v49 = vcombine.low %v18079_v4, %v18082_v21 }
0x2048   : > { %v15467_v34 = vpop.eup %15466  ;;  %15468 = vrsqrt.f32 %v10352_v29 }
0x2049   : > { %15470 = vrsqrt.f32 %v10353_v9  ;;  %v10365_v39 = vrot.slane %v15467_v34, %v16786_v53  ;;  %v10369_v19 = vrot.slane %v15467_v34, %v16789_v17  ;;  %v10373_v10 = vrot.slane %v15467_v34, %v16792_v43 }
0x204a   : > { %v10377_v52 = vrot.slane %v15467_v34, %v16795_v3  ;;  %v10381_v47 = vrot.slane %v15467_v34, %v19703_v0  ;;  %v10385_v56 = vrot.slane %v15467_v34, %v19704_v54  ;;  %v10389_v28 = vrot.slane %v15467_v34, %v19705_v35 }
0x204b   : > { %v10393_v11 = vrot.slane %v15467_v34, %v19706_v26  ;;  %v10502_v1 = vmul.f32 %v10365_v39, %v17833_v32  ;;  %v10503_v60 = vmul.f32 %v10369_v19, %v17836_v46  ;;  %v10504_v51 = vmul.f32 %v10373_v10, %v17839_v16 }
0x204c   : > { %v10505_v20 = vmul.f32 %v10377_v52, %v17842_v22  ;;  %v10506_v38 = vmul.f32 %v10381_v47, %v17845_v23  ;;  %v10507_v15 = vmul.f32 %v10385_v56, %v17848_v50  ;;  %v10508_v29 = vmul.f32 %v10389_v28, %v17851_v62 }
0x204d   : > { %v10509_v9 = vmul.f32 %v10393_v11, %v17855_v2  ;;  %v10593_v21 = vmul.f32 %v17993_v61, %v10502_v1  ;;  %v10594_v34 = vmul.f32 %v17999_v7, %v10503_v60  ;;  %v10595_v32 = vmul.f32 %v18018_v33, %v10504_v51 }
0x204e   : > { %v10596_v46 = vmul.f32 %v18026_v58, %v10505_v20  ;;  %v10597_v16 = vmul.f32 %v17996_v5, %v10506_v38  ;;  %v10598_v22 = vmul.f32 %v18002_v44, %v10507_v15  ;;  %v10599_v23 = vmul.f32 %v18022_v63, %v10508_v29 }
0x204f   : > { %v10600_v50 = vmul.f32 %v18030_v8, %v10509_v9  ;;  %v18125_v62 = vadd.f32 %v18005_v30, %v10593_v21  ;;  %v18128_v2 = vadd.f32 %v18011_v18, %v10594_v34  ;;  %v18131_v39 = vadd.f32 %v18034_v59, %v10595_v32 }
0x2050   : > { %v18134_v19 = vadd.f32 %v18042_v25, %v10596_v46  ;;  %v18137_v10 = vadd.f32 %v18008_v45, %v10597_v16  ;;  %v18140_v52 = vadd.f32 %v18014_v27, %v10598_v22  ;;  %v18143_v47 = vadd.f32 %v18038_v37, %v10599_v23 }
0x2051   : > { %v18146_v21 = vadd.f32 %v18046_v55, %v10600_v50  ;;  %v10746_v56 = vcombine.low %v18125_v62, %v18128_v2  ;;  %v10797_v28 = vcombine.low %v18085_v24, %v18088_v42  ;;  %v10798_v11 = vcombine.low %v18091_v41, %v18094_v13 }
0x2052   : > { %19717 = vst [vmem:[#allocation11_spill] sm:$0xff] %v18134_v19  ;;  %19718 = vst [vmem:[#allocation12_spill] sm:$0xff] %v18137_v10  ;;  %v15469_v1 = vpop.eup %15468  ;;  %v10747_v60 = vcombine.low %v18131_v39, %v18134_v19  ;;  %v10748_v51 = vcombine.low %v18137_v10, %v18140_v52  ;;  %v10805_v20 = vrot.slane %v10795_v14, %v16026_v12 }
0x2053   : > { %19719 = vst [vmem:[#allocation28_spill] sm:$0xff] %v18140_v52  ;;  %19720 = vst [vmem:[#allocation29_spill] sm:$0xff] %v18143_v47  ;;  %v10812_v38 = vrot.slane %v10796_v49, %v16026_v12  ;;  %v18160_v15 = vpop.eup %15470  ;;  %v10749_v29 = vcombine.low %v18143_v47, %v18146_v21  ;;  %v10756_v9 = vrot.slane %v10746_v56, %v16026_v12 }
0x2054   : > { %19721 = vst [vmem:[#allocation30_spill] sm:$0xff] %v18146_v21  ;;  %v10819_v34 = vrot.slane %v10797_v28, %v16026_v12  ;;  %v10826_v32 = vrot.slane %v10798_v11, %v16026_v12  ;;  %v10763_v46 = vrot.slane %v10747_v60, %v16026_v12  ;;  %v10770_v16 = vrot.slane %v10748_v51, %v16026_v12 }
0x2055   : > { %v10827_v22 = vcombine.low %v10805_v20, %v10812_v38  ;;  %v10429_v14 = vrot.slane %v15469_v1, %v16786_v53  ;;  %v10777_v49 = vrot.slane %v10749_v29, %v16026_v12  ;;  %v10433_v50 = vrot.slane %v15469_v1, %v16789_v17 }
0x2056   : > { %v10828_v23 = vcombine.low %v10819_v34, %v10826_v32  ;;  %v10437_v21 = vrot.slane %v15469_v1, %v16792_v43  ;;  %v10778_v47 = vcombine.low %v10756_v9, %v10763_v46  ;;  %v10441_v28 = vrot.slane %v15469_v1, %v16795_v3 }
0x2057   : > { %v10835_v56 = vrot.slane %v10827_v22, %v16026_v12  ;;  %v10445_v11 = vrot.slane %v15469_v1, %v19703_v0  ;;  %v10779_v60 = vcombine.low %v10770_v16, %v10777_v49  ;;  %v10449_v20 = vrot.slane %v15469_v1, %v19704_v54  ;;  %v19722_v49 = vld [vmem:[#allocation16_spill] sm:$0xff]  ;;  %v19723_v54 = vld [vmem:[#allocation23_spill] sm:$0xff] }
0x2058   : > { %v10842_v51 = vrot.slane %v10828_v23, %v16026_v12  ;;  %v10453_v38 = vrot.slane %v15469_v1, %v19705_v35  ;;  %v10786_v29 = vrot.slane %v10778_v47, %v16026_v12  ;;  %v10457_v34 = vrot.slane %v15469_v1, %v19706_v26  ;;  %v19724_v35 = vld [vmem:[#allocation21_spill] sm:$0xff]  ;;  %v19725_v47 = vld [vmem:[#allocation26_spill] sm:$0xff] }
0x2059   : > { %v10518_v32 = vmul.f32 %v10429_v14, %v17912_v40  ;;  %v10519_v9 = vmul.f32 %v10433_v50, %v17915_v36  ;;  %v10793_v46 = vrot.slane %v10779_v60, %v16026_v12  ;;  %v10520_v0 = vmul.f32 %v10437_v21, %v17918_v57 }
0x205a   : > { %v10843_v22 = vcombine.low %v10835_v56, %v10842_v51  ;;  %v10521_v16 = vmul.f32 %v10441_v28, %v17921_v48  ;;  %v10522_v23 = vmul.f32 %v10445_v11, %v19722_v49  ;;  %v10523_v52 = vmul.f32 %v10449_v20, %v19723_v54  ;;  %v19727_v20 = vld [vmem:[#allocation17_spill] sm:$0xff] }
0x205b   : > { %v10524_v10 = vmul.f32 %v10453_v38, %v19724_v35  ;;  %v10525_v19 = vmul.f32 %v10457_v34, %v19725_v47  ;;  %v10794_v1 = vcombine.low %v10786_v29, %v10793_v46  ;;  %v10609_v40 = vmul.f32 %v17993_v61, %v10518_v32  ;;  %v19728_v29 = vld [vmem:[#allocation19_spill] sm:$0xff]  ;;  %v19729_v46 = vld [vmem:[#allocation14_spill] sm:$0xff] }
0x205c   : > { %v10610_v36 = vmul.f32 %v17999_v7, %v10519_v9  ;;  %v10611_v14 = vmul.f32 %v18018_v33, %v10520_v0  ;;  %v10612_v50 = vmul.f32 %v18026_v58, %v10521_v16  ;;  %v10613_v57 = vmul.f32 %v17996_v5, %v10522_v23  ;;  %v19730_v16 = vld [vmem:[#allocation20_spill] sm:$0xff] }
0x205d   : > { %v10614_v48 = vmul.f32 %v18002_v44, %v10523_v52  ;;  %v10615_v21 = vmul.f32 %v18022_v63, %v10524_v10  ;;  %15289 = vmatprep.mubr.msk.f32.mxu1 %vm418_vm2, %v10794_v1  ;;  %v10616_v54 = vmul.f32 %v18030_v8, %v10525_v19  ;;  %v18200_v35 = vadd.f32 %v18005_v30, %v10609_v40 }
0x205e   : > { %v18203_v56 = vadd.f32 %v18011_v18, %v10610_v36  ;;  %v18206_v0 = vadd.f32 %v18034_v59, %v10611_v14  ;;  %15290 = vmatmul.mubr.msk.f32.vlgmr.msra.gmra.mrb[72].mxu1 %vm418_vm2, %v10843_v22  ;;  %v18210_v5 = vadd.f32 %v18042_v25, %v10612_v50  ;;  %v18213_v44 = vadd.f32 %v18008_v45, %v10613_v57  ;;  %v19726_v45 = vld [vmem:[#allocation25_spill] sm:$0xff] }
0x205f   : > { %v18216_v63 = vadd.f32 %v18014_v27, %v10614_v48  ;;  %v18219_v8 = vadd.f32 %v18038_v37, %v10615_v21  ;;  %v18222_v19 = vadd.f32 %v18046_v55, %v10616_v54  ;;  %v10461_v52 = vrot.slane %v18160_v15, %v16786_v53  ;;  %15304 = vmatpush3.msra.mxu1 %v19726_v45  ;;  %v19734_v45 = vld [vmem:[#allocation8_spill] sm:$0xff] }
0x2060   : > { %v10844_v10 = vcombine.low %v18200_v35, %v18203_v56  ;;  %v10465_v28 = vrot.slane %v18160_v15, %v16789_v17  ;;  %v10845_v27 = vcombine.low %v18206_v0, %v18210_v5  ;;  %v10469_v55 = vrot.slane %v18160_v15, %v16792_v43 }
0x2061   : > { %v10846_v37 = vcombine.low %v18213_v44, %v18216_v63  ;;  %v10473_v11 = vrot.slane %v18160_v15, %v16795_v3  ;;  %v10847_v60 = vcombine.low %v18219_v8, %v18222_v19  ;;  %v10526_v38 = vmul.f32 %v10461_v52, %v19727_v20  ;;  %v19732_v52 = vld [vmem:[#allocation7_spill] sm:$0xff] }
0x2062   : > { %v10854_v51 = vrot.slane %v10844_v10, %v16026_v12  ;;  %v10527_v34 = vmul.f32 %v10465_v28, %v19728_v29  ;;  %v10861_v32 = vrot.slane %v10845_v27, %v16026_v12  ;;  %v10528_v22 = vmul.f32 %v10469_v55, %v19729_v46  ;;  %v19733_v28 = vld [vmem:[#allocation9_spill] sm:$0xff] }
0x2063   : > { %v10868_v9 = vrot.slane %v10846_v37, %v16026_v12  ;;  %v10529_v49 = vmul.f32 %v10473_v11, %v19730_v16  ;;  %v10875_v23 = vrot.slane %v10847_v60, %v16026_v12  ;;  %v10617_v15 = vmul.f32 %v17993_v61, %v10526_v38  ;;  %v11014_v27 = vld [vmem:[%s19526_s4 + $0x58] sm:$0x3]  ;;  %v14740_v37 = vld [vmem:[%s19527_s5 + $0x9] ss:$0 sm:$0xff] }
0x2064   : > { %v10618_v47 = vmul.f32 %v17999_v7, %v10527_v34  ;;  %v10876_v1 = vcombine.low %v10854_v51, %v10861_v32  ;;  %v10619_v40 = vmul.f32 %v18018_v33, %v10528_v22  ;;  %15295 = vmatprep.subr.msk.mxu0 %vm2165_vm5, %v11014_v27 }
0x2065   : > { %v10620_v36 = vmul.f32 %v18026_v58, %v10529_v49  ;;  %v10877_v14 = vcombine.low %v10868_v9, %v10875_v23  ;;  %v18254_v50 = vadd.f32 %v18005_v30, %v10617_v15  ;;  %15296 = vmatpush3.msk.msra.mxu0 %vm2165_vm5, %v11014_v27 }
0x2066   : > { %v18257_v57 = vadd.f32 %v18011_v18, %v10618_v47  ;;  %v10884_v48 = vrot.slane %v10876_v1, %v16026_v12  ;;  %v18261_v21 = vadd.f32 %v18034_v59, %v10619_v40  ;;  %v18307_v47 = vld [vmem:[%s19527_s5 + $0xa] ss:$0 sm:$0xff] }
0x2067   : > { %v18264_v61 = vadd.f32 %v18042_v25, %v10620_v36  ;;  %v10891_v7 = vrot.slane %v10877_v14, %v16026_v12  ;;  %v19731_v25 = vld [vmem:[#allocation6_spill] sm:$0xff] }
0x2068   : > { %v10893_v33 = vcombine.low %v18254_v50, %v18257_v57 }
0x2069   : > { %v10894_v30 = vcombine.low %v18261_v21, %v18264_v61  ;;  %v10892_v58 = vcombine.low %v10884_v48, %v10891_v7 }
0x206a   : > { %v10901_v18 = vrot.slane %v10893_v33, %v16026_v12 }
0x206b   : > { %v10908_v54 = vrot.slane %v10894_v30, %v16026_v12  ;;  %15292 = vmatprep.mubr.msk.f32.mxu1 %vm418_vm2, %v10892_v58 }
0x206d   : > { %v10909_v59 = vcombine.low %v10901_v18, %v10908_v54 }
0x206f   : > { %v10916_v10 = vrot.slane %v10909_v59, %v16026_v12 }
0x2071   : > { %15293 = vmatmul.mubr.msk.f32.gmra.mrb[74].mxu1 %vm418_vm2, %v10916_v10 }
0x2072   : > { %15305 = vmatprep.mubr.msk.f32.mxu1 %vm418_vm2, %v19731_v25 }
0x2075   : > { %15306 = vmatmul.mubr.msk.f32.vlgmr.msra.gmra.mrb[76].mxu1 %vm418_vm2, %v19732_v52 }
0x2076   : > { %15308 = vmatprep.mubr.msk.f32.mxu1 %vm418_vm2, %v19733_v28 }
0x2079   : > { %15309 = vmatmul.mubr.msk.f32.gmra.mrb[78].mxu1 %vm418_vm2, %v19734_v45 }
0x2131   : > { %v15291_v55 = vpop.f32.mrb[72].mxu1 }
0x2132   : > { %v10997_v11 = vadd.f32 %v15291_v55, %v14740_v37  ;;  %v10991_v60 = vpop.f32.mrb[73].mxu1 }
0x2133   : > { %v10992_v51 = vadd.f32 %v14740_v37, %v10991_v60 }
0x2134   : > { %v11011_v38 = vmax.f32 %v10997_v11, 0.0 }
0x2135   : > { %v11010_v20 = vmax.f32 %v10992_v51, 0.0 }
0x2137   : > { %15297 = vmatprep.mubr.msk.f32.mxu0 %vm2152_vm6, %v11010_v20 }
0x2138   : > { %15298 = vmatmul.mubr.msk.f32.vlgmr.msra.gmra.mrb[72].mxu0 %vm2152_vm6, %v11011_v38 }
0x2144   : > { %v15294_v29 = vpop.f32.mrb[74].mxu1 }
0x2145   : > { %v11007_v34 = vadd.f32 %v15294_v29, %v14740_v37  ;;  %v11001_v32 = vpop.f32.mrb[75].mxu1 }
0x2146   : > { %v11002_v9 = vadd.f32 %v14740_v37, %v11001_v32 }
0x2147   : > { %v11013_v16 = vmax.f32 %v11007_v34, 0.0 }
0x2148   : > { %v11012_v46 = vmax.f32 %v11002_v9, 0.0  ;;  %v18294_v22 = vpop.f32.mrb[76].mxu1 }
0x2149   : > { %19735 = vst [vmem:[#allocation31_spill] sm:$0xff] %v18294_v22  ;;  %v18296_v49 = vpop.f32.mrb[77].mxu1 }
0x214a   : > { %19736 = vst [vmem:[#allocation32_spill] sm:$0xff] %v18296_v49  ;;  %15300 = vmatprep.mubr.msk.f32.mxu0 %vm2152_vm6, %v11012_v46 }
0x214b   : > { %15301 = vmatmul.mubr.msk.f32.gmra.mrb[74].mxu0 %vm2152_vm6, %v11013_v16  ;;  %v19739_v16 = vld [vmem:[#allocation15_spill] sm:$0xff] }
0x214c   : > { %v18300_v23 = vpop.f32.mrb[78].mxu1 }
0x214d   : > { %19737 = vst [vmem:[#allocation33_spill] sm:$0xff] %v18300_v23  ;;  %v18302_v15 = vpop.f32.mrb[79].mxu1 }
0x214e   : > { %19738 = vst [vmem:[#allocation22_spill] sm:$0xff] %v18302_v15 }
0x220b   : > { %v15299_v1 = vpop.f32.mrb[72].mxu0 }
0x220c   : > { %v11107_v40 = vadd.f32 %v15299_v1, %v18307_v47  ;;  %v11101_v36 = vpop.f32.mrb[73].mxu0 }
0x220d   : > { %v11102_v14 = vadd.f32 %v18307_v47, %v11101_v36 }
0x220e   : > { %v11173_v48 = vcombine.high %v11107_v40, %v11107_v40  ;;  %v11180_v7 = vrot.slane %v11107_v40, %v16026_v12 }
0x220f   : > { %v11124_v33 = vcombine.high %v11102_v14, %v11102_v14  ;;  %v11131_v30 = vrot.slane %v11102_v14, %v16026_v12 }
0x2210   : > { %v11187_v58 = vrot.slane %v11173_v48, %v16026_v12  ;;  %v11188_v18 = vcombine.high %v11180_v7, %v11180_v7  ;;  %v11196_v54 = vrot.slane %v11180_v7, %v16026_v12 }
0x2211   : > { %v11138_v59 = vrot.slane %v11124_v33, %v16026_v12  ;;  %v11139_v10 = vcombine.high %v11131_v30, %v11131_v30  ;;  %v11147_v25 = vrot.slane %v11131_v30, %v16026_v12 }
0x2212   : > { %v11189_v52 = vcombine.high %v11187_v58, %v11187_v58  ;;  %v11203_v28 = vrot.slane %v11187_v58, %v16026_v12  ;;  %v11210_v45 = vrot.slane %v11188_v18, %v16026_v12  ;;  %v11218_v27 = vcombine.high %v11196_v54, %v11196_v54  ;;  %v19740_v58 = vld [vmem:[#allocation11_spill] sm:$0xff] }
0x2213   : > { %v18320_v37 = vadd.f32 %v11196_v54, %v18073_v6  ;;  %v11140_v55 = vcombine.high %v11138_v59, %v11138_v59  ;;  %v11154_v11 = vrot.slane %v11138_v59, %v16026_v12  ;;  %v11161_v60 = vrot.slane %v11139_v10, %v16026_v12  ;;  %v19742_v59 = vld [vmem:[#allocation28_spill] sm:$0xff] }
0x2214   : > { %v11217_v51 = vrot.slane %v11189_v52, %v16026_v12  ;;  %v11219_v20 = vcombine.high %v11203_v28, %v11203_v28  ;;  %v11220_v38 = vcombine.high %v11210_v45, %v11210_v45  ;;  %v18326_v29 = vadd.f32 %v11210_v45, %v18076_v31  ;;  %v19743_v52 = vld [vmem:[#allocation29_spill] sm:$0xff] }
0x2215   : > { %v18329_v34 = vadd.f32 %v11218_v27, %v18079_v4  ;;  %v18332_v32 = vadd.f32 %v11203_v28, %v18085_v24  ;;  %v11168_v6 = vrot.slane %v11140_v55, %v16026_v12  ;;  %v11169_v9 = vcombine.high %v11147_v25, %v11147_v25 }
0x2216   : > { %v11221_v46 = vcombine.high %v11217_v51, %v11217_v51  ;;  %v18336_v1 = vadd.f32 %v11220_v38, %v19739_v16  ;;  %v18339_v40 = vadd.f32 %v11217_v51, %v18088_v42  ;;  %v18342_v36 = vadd.f32 %v11219_v20, %v18091_v41 }
0x2217   : > { %v11428_v31 = vcombine.low %v18320_v37, %v18326_v29  ;;  %v11170_v4 = vcombine.high %v11154_v11, %v11154_v11  ;;  %v11171_v14 = vcombine.high %v11161_v60, %v11161_v60  ;;  %v11172_v24 = vcombine.high %v11168_v6, %v11168_v6 }
0x2218   : > { %v18347_v48 = vadd.f32 %v11221_v46, %v18094_v13  ;;  %v11429_v7 = vcombine.low %v18329_v34, %v18336_v1  ;;  %v11430_v33 = vcombine.low %v18332_v32, %v18339_v40  ;;  %v18354_v42 = vadd.f32 %v11147_v25, %v18125_v62  ;;  %v19741_v13 = vld [vmem:[#allocation12_spill] sm:$0xff]  ;;  %v19744_v62 = vld [vmem:[#allocation30_spill] sm:$0xff] }
0x2219   : > { %v18357_v41 = vadd.f32 %v11161_v60, %v18128_v2  ;;  %v18360_v30 = vadd.f32 %v11169_v9, %v18131_v39  ;;  %v18363_v18 = vadd.f32 %v11171_v14, %v19740_v58  ;;  %v18366_v54 = vadd.f32 %v11154_v11, %v19741_v13 }
0x221a   : > { %v18369_v10 = vadd.f32 %v11168_v6, %v19742_v59  ;;  %v18372_v28 = vadd.f32 %v11170_v4, %v19743_v52  ;;  %v18375_v25 = vadd.f32 %v11172_v24, %v19744_v62  ;;  %v11431_v2 = vcombine.low %v18342_v36, %v18347_v48 }
0x221b   : > { %v11379_v39 = vcombine.low %v18354_v42, %v18357_v41  ;;  %v11380_v45 = vcombine.low %v18360_v30, %v18363_v18  ;;  %v11438_v27 = vrot.slane %v11428_v31, %v16026_v12  ;;  %v11445_v55 = vrot.slane %v11429_v7, %v16026_v12 }
0x221c   : > { %v11381_v11 = vcombine.low %v18366_v54, %v18369_v10  ;;  %v11452_v60 = vrot.slane %v11430_v33, %v16026_v12  ;;  %v11459_v51 = vrot.slane %v11431_v2, %v16026_v12  ;;  %v11382_v20 = vcombine.low %v18372_v28, %v18375_v25 }
0x221d   : > { %v11460_v6 = vcombine.low %v11438_v27, %v11445_v55  ;;  %v11389_v9 = vrot.slane %v11379_v39, %v16026_v12  ;;  %v11396_v46 = vrot.slane %v11380_v45, %v16026_v12 }
0x221e   : > { %v15302_v38 = vpop.f32.mrb[74].mxu0  ;;  %v11461_v4 = vcombine.low %v11452_v60, %v11459_v51  ;;  %v11403_v14 = vrot.slane %v11381_v11, %v16026_v12  ;;  %v11410_v24 = vrot.slane %v11382_v20, %v16026_v12 }
0x221f   : > { %v11117_v16 = vadd.f32 %v15302_v38, %v18307_v47  ;;  %v11111_v31 = vpop.f32.mrb[75].mxu0  ;;  %v11411_v33 = vcombine.low %v11389_v9, %v11396_v46  ;;  %v11468_v13 = vrot.slane %v11460_v6, %v16026_v12 }
0x2220   : > { %v11112_v7 = vadd.f32 %v18307_v47, %v11111_v31  ;;  %v11475_v59 = vrot.slane %v11461_v4, %v16026_v12  ;;  %v11412_v52 = vcombine.low %v11403_v14, %v11410_v24 }
0x2221   : > { %v11277_v58 = vrot.slane %v11117_v16, %v16026_v12  ;;  %v11419_v60 = vrot.slane %v11411_v33, %v16026_v12 }
0x2222   : > { %v11222_v62 = vcombine.high %v11112_v7, %v11112_v7  ;;  %v11229_v2 = vrot.slane %v11112_v7, %v16026_v12  ;;  %v11476_v27 = vcombine.low %v11468_v13, %v11475_v59  ;;  %v11426_v6 = vrot.slane %v11412_v52, %v16026_v12 }
0x2223   : > { %v11278_v39 = vcombine.high %v11277_v58, %v11277_v58  ;;  %v11285_v45 = vrot.slane %v11277_v58, %v16026_v12 }
0x2224   : > { %v11236_v55 = vrot.slane %v11222_v62, %v16026_v12  ;;  %v11237_v11 = vcombine.high %v11229_v2, %v11229_v2  ;;  %v11245_v47 = vrot.slane %v11229_v2, %v16026_v12  ;;  %v11557_v38 = vsel %vm418_vm2, %v11476_v27, 0.0 }
0x2225   : > { %v11292_v51 = vrot.slane %v11278_v39, %v16026_v12  ;;  %v11293_v20 = vcombine.high %v11285_v45, %v11285_v45  ;;  %11558 = vadd.xlane.f32.xlu0 %v11557_v38  ;;  %v18411_v14 = vadd.f32 %v11285_v45, %v18254_v50  ;;  %v11427_v45 = vcombine.low %v11419_v60, %v11426_v6 }
0x2226   : > { %v11238_v9 = vcombine.high %v11236_v55, %v11236_v55  ;;  %v11252_v46 = vrot.slane %v11236_v55, %v16026_v12  ;;  %v11259_v16 = vrot.slane %v11237_v11, %v16026_v12  ;;  %v11267_v31 = vcombine.high %v11245_v47, %v11245_v47 }
0x2227   : > { %v11294_v4 = vcombine.high %v11292_v51, %v11292_v51  ;;  %v18414_v24 = vadd.f32 %v11292_v51, %v18257_v57  ;;  %v18417_v7 = vadd.f32 %v11293_v20, %v18261_v21  ;;  %v18429_v62 = vadd.f32 %v11245_v47, %v18200_v35 }
0x2228   : > { %v11266_v33 = vrot.slane %v11238_v9, %v16026_v12  ;;  %v11268_v58 = vcombine.high %v11252_v46, %v11252_v46  ;;  %v11269_v13 = vcombine.high %v11259_v16, %v11259_v16  ;;  %v18421_v59 = vadd.f32 %v11259_v16, %v18203_v56 }
0x2229   : > { %v18424_v52 = vadd.f32 %v11294_v4, %v18264_v61  ;;  %v11526_v50 = vcombine.low %v18411_v14, %v18414_v24  ;;  %v18432_v57 = vadd.f32 %v11267_v31, %v18206_v0  ;;  %v18438_v39 = vadd.f32 %v11252_v46, %v18213_v44 }
0x222a   : > { %v11270_v21 = vcombine.high %v11266_v33, %v11266_v33  ;;  %v18435_v2 = vadd.f32 %v11269_v13, %v18210_v5  ;;  %v18441_v56 = vadd.f32 %v11266_v33, %v18216_v63  ;;  %v11477_v61 = vcombine.low %v18429_v62, %v18421_v59 }
0x222b   : > { %v11527_v35 = vcombine.low %v18417_v7, %v18424_v52  ;;  %v18448_v0 = vadd.f32 %v11268_v58, %v18219_v8  ;;  %v11554_v63 = vsel %vm418_vm2, %v11427_v45, 0.0  ;;  %v11534_v55 = vrot.slane %v11526_v50, %v16026_v12 }
0x222c   : > { %v18451_v27 = vadd.f32 %v11270_v21, %v18222_v19  ;;  %v11478_v5 = vcombine.low %v18432_v57, %v18435_v2  ;;  %v11479_v44 = vcombine.low %v18438_v39, %v18441_v56  ;;  %11555 = vadd.xlane.f32.xlu1 %v11554_v63  ;;  %v11487_v47 = vrot.slane %v11477_v61, %v16026_v12 }
0x222d   : > { %v11541_v11 = vrot.slane %v11527_v35, %v16026_v12  ;;  %v19745_v35 = vld [vmem:[#allocation13_spill] sm:$0xff] }
0x222e   : > { %v11480_v8 = vcombine.low %v18448_v0, %v18451_v27  ;;  %v11494_v19 = vrot.slane %v11478_v5, %v16026_v12  ;;  %v11501_v51 = vrot.slane %v11479_v44, %v16026_v12  ;;  %v19746_v44 = vld [vmem:[#allocation24_spill] sm:$0xff] }
0x222f   : > { %v11542_v60 = vcombine.low %v11534_v55, %v11541_v11  ;;  %v19747_v55 = vld [vmem:[#allocation18_spill] sm:$0xff] }
0x2230   : > { %v11508_v20 = vrot.slane %v11480_v8, %v16026_v12  ;;  %v11509_v38 = vcombine.low %v11487_v47, %v11494_v19 }
0x2231   : > { %v11549_v6 = vrot.slane %v11542_v60, %v16026_v12 }
0x2232   : > { %v11510_v9 = vcombine.low %v11501_v51, %v11508_v20  ;;  %v11517_v16 = vrot.slane %v11509_v38, %v16026_v12 }
0x2233   : > { %v11563_v46 = vsel %vm6013_vm11, %v11549_v6, 0.0 }
0x2234   : > { %11564 = vadd.xlane.f32.xlu0 %v11563_v46  ;;  %v11524_v31 = vrot.slane %v11510_v9, %v16026_v12 }
0x2236   : > { %v11525_v4 = vcombine.low %v11517_v16, %v11524_v31 }
0x2238   : > { %v11560_v33 = vsel %vm418_vm2, %v11525_v4, 0.0 }
0x2239   : > { %11561 = vadd.xlane.f32.xlu1 %v11560_v33 }
0x22b2   : > { %v11559_v58 = vpop.xlane.xlu0 %11558 }
0x22b3   : > { %v11567_v13 = vmul.f32 0.125, %v11559_v58 }
0x22b5   : > { %v11609_v50 = vrot.slane %v11567_v13, %v16786_v53  ;;  %v11613_v21 = vrot.slane %v11567_v13, %v16789_v17  ;;  %v11617_v61 = vrot.slane %v11567_v13, %v16792_v43  ;;  %v11621_v45 = vrot.slane %v11567_v13, %v16795_v3 }
0x22b6   : > { %v11625_v5 = vrot.slane %v11567_v13, %v19745_v35  ;;  %v11629_v63 = vrot.slane %v11567_v13, %v19746_v44  ;;  %v11633_v11 = vrot.slane %v11567_v13, %v19747_v55  ;;  %v11637_v8 = vrot.slane %v11567_v13, %v19706_v26 }
0x22b7   : > { %v18480_v47 = vsub.f32 %v18320_v37, %v11609_v50  ;;  %v18483_v19 = vsub.f32 %v18326_v29, %v11613_v21  ;;  %v18486_v60 = vsub.f32 %v18329_v34, %v11617_v61  ;;  %v18489_v51 = vsub.f32 %v18336_v1, %v11621_v45 }
0x22b8   : > { %v18492_v20 = vsub.f32 %v18332_v32, %v11625_v5  ;;  %v18495_v38 = vsub.f32 %v18339_v40, %v11629_v63  ;;  %v18498_v6 = vsub.f32 %v18342_v36, %v11633_v11  ;;  %v18501_v37 = vsub.f32 %v18347_v48, %v11637_v8 }
0x22b9   : > { %v11750_v29 = vmul.f32 %v18480_v47, %v18480_v47  ;;  %v11751_v34 = vmul.f32 %v18483_v19, %v18483_v19  ;;  %v11752_v1 = vmul.f32 %v18486_v60, %v18486_v60  ;;  %v11753_v32 = vmul.f32 %v18489_v51, %v18489_v51  ;;  %v11556_v40 = vpop.xlane.xlu1 %11555 }
0x22ba   : > { %v11754_v36 = vmul.f32 %v18492_v20, %v18492_v20  ;;  %v11755_v48 = vmul.f32 %v18495_v38, %v18495_v38  ;;  %v11756_v9 = vmul.f32 %v18498_v6, %v18498_v6  ;;  %v11757_v46 = vmul.f32 %v18501_v37, %v18501_v37 }
0x22bb   : > { %v11566_v16 = vmul.f32 0.125, %v11556_v40  ;;  %v11847_v31 = vcombine.low %v11750_v29, %v11751_v34  ;;  %v11848_v4 = vcombine.low %v11752_v1, %v11753_v32 }
0x22bc   : > { %v11849_v33 = vcombine.low %v11754_v36, %v11755_v48  ;;  %v11850_v58 = vcombine.low %v11756_v9, %v11757_v46 }
0x22bd   : > { %v11857_v13 = vrot.slane %v11847_v31, %v16026_v12  ;;  %v11864_v50 = vrot.slane %v11848_v4, %v16026_v12  ;;  %v11577_v21 = vrot.slane %v11566_v16, %v16786_v53  ;;  %v11581_v61 = vrot.slane %v11566_v16, %v16789_v17 }
0x22be   : > { %v11871_v45 = vrot.slane %v11849_v33, %v16026_v12  ;;  %v11878_v5 = vrot.slane %v11850_v58, %v16026_v12  ;;  %v11585_v63 = vrot.slane %v11566_v16, %v16792_v43  ;;  %v11589_v11 = vrot.slane %v11566_v16, %v16795_v3 }
0x22bf   : > { %v11879_v8 = vcombine.low %v11857_v13, %v11864_v50  ;;  %v11593_v29 = vrot.slane %v11566_v16, %v19745_v35  ;;  %v11597_v34 = vrot.slane %v11566_v16, %v19746_v44  ;;  %v11601_v1 = vrot.slane %v11566_v16, %v19747_v55 }
0x22c0   : > { %v11880_v40 = vcombine.low %v11871_v45, %v11878_v5  ;;  %v11605_v36 = vrot.slane %v11566_v16, %v19706_v26  ;;  %v18532_v48 = vsub.f32 %v18354_v42, %v11577_v21  ;;  %v18535_v9 = vsub.f32 %v18357_v41, %v11581_v61 }
0x22c1   : > { %v11565_v32 = vpop.xlane.xlu0 %11564  ;;  %v11887_v31 = vrot.slane %v11879_v8, %v16026_v12  ;;  %v18539_v4 = vsub.f32 %v18360_v30, %v11585_v63  ;;  %v18542_v33 = vsub.f32 %v18363_v18, %v11589_v11  ;;  %v18546_v13 = vsub.f32 %v18366_v54, %v11593_v29 }
0x22c2   : > { %v11569_v46 = vmul.f32 0.125, %v11565_v32  ;;  %v11894_v58 = vrot.slane %v11880_v40, %v16026_v12  ;;  %v18549_v42 = vsub.f32 %v18369_v10, %v11597_v34  ;;  %v18552_v41 = vsub.f32 %v18372_v28, %v11601_v1 }
0x22c3   : > { %v18559_v61 = vsub.f32 %v18375_v25, %v11605_v36  ;;  %v11742_v54 = vmul.f32 %v18532_v48, %v18532_v48  ;;  %v11743_v10 = vmul.f32 %v18535_v9, %v18535_v9  ;;  %v11744_v29 = vmul.f32 %v18539_v4, %v18539_v4 }
0x22c4   : > { %v11673_v16 = vrot.slane %v11569_v46, %v16786_v53  ;;  %v11677_v50 = vrot.slane %v11569_v46, %v16789_v17  ;;  %v11681_v30 = vrot.slane %v11569_v46, %v16792_v43  ;;  %v11685_v18 = vrot.slane %v11569_v46, %v16795_v3 }
0x22c5   : > { %v11895_v21 = vcombine.low %v11887_v31, %v11894_v58  ;;  %v11749_v34 = vmul.f32 %v18559_v61, %v18559_v61  ;;  %v11798_v1 = vcombine.low %v11742_v54, %v11743_v10 }
0x22c6   : > { %v18566_v28 = vsub.f32 %v18411_v14, %v11673_v16  ;;  %v18569_v45 = vsub.f32 %v18414_v24, %v11677_v50  ;;  %v18572_v5 = vsub.f32 %v18417_v7, %v11681_v30  ;;  %v18575_v63 = vsub.f32 %v18424_v52, %v11685_v18  ;;  %v11562_v25 = vpop.xlane.xlu1 %11561 }
0x22c7   : > { %v11568_v11 = vmul.f32 0.125, %v11562_v25  ;;  %v11976_v8 = vsel %vm418_vm2, %v11895_v21, 0.0  ;;  %v11745_v14 = vmul.f32 %v18542_v33, %v18542_v33  ;;  %v11746_v24 = vmul.f32 %v18546_v13, %v18546_v13 }
0x22c8   : > { %19748 = vst [vmem:[#allocation16_spill] sm:$0xff] %v18569_v45  ;;  %19749 = vst [vmem:[#allocation23_spill] sm:$0xff] %v18572_v5  ;;  %11977 = vadd.xlane.f32.xlu0 %v11976_v8  ;;  %v11747_v7 = vmul.f32 %v18549_v42, %v18549_v42  ;;  %v11748_v52 = vmul.f32 %v18552_v41, %v18552_v41  ;;  %v11766_v40 = vmul.f32 %v18566_v28, %v18566_v28 }
0x22c9   : > { %19750 = vst [vmem:[#allocation21_spill] sm:$0xff] %v18575_v63  ;;  %v11799_v32 = vcombine.low %v11744_v29, %v11745_v14  ;;  %v11767_v36 = vmul.f32 %v18569_v45, %v18569_v45  ;;  %v11768_v58 = vmul.f32 %v18572_v5, %v18572_v5  ;;  %v11769_v16 = vmul.f32 %v18575_v63, %v18575_v63 }
0x22ca   : > { %v11800_v46 = vcombine.low %v11746_v24, %v11747_v7  ;;  %v11801_v31 = vcombine.low %v11748_v52, %v11749_v34  ;;  %v11808_v50 = vrot.slane %v11798_v1, %v16026_v12  ;;  %v11641_v21 = vrot.slane %v11568_v11, %v16786_v53 }
0x22cb   : > { %v11815_v30 = vrot.slane %v11799_v32, %v16026_v12  ;;  %v11945_v18 = vcombine.low %v11766_v40, %v11767_v36  ;;  %v11946_v25 = vcombine.low %v11768_v58, %v11769_v16  ;;  %v11645_v8 = vrot.slane %v11568_v11, %v16789_v17 }
0x22cc   : > { %v11822_v54 = vrot.slane %v11800_v46, %v16026_v12  ;;  %v11829_v10 = vrot.slane %v11801_v31, %v16026_v12  ;;  %v11649_v24 = vrot.slane %v11568_v11, %v16792_v43  ;;  %v11653_v7 = vrot.slane %v11568_v11, %v16795_v3 }
0x22cd   : > { %v11830_v29 = vcombine.low %v11808_v50, %v11815_v30  ;;  %v11953_v14 = vrot.slane %v11945_v18, %v16026_v12  ;;  %v11960_v34 = vrot.slane %v11946_v25, %v16026_v12  ;;  %v11657_v1 = vrot.slane %v11568_v11, %v19745_v35 }
0x22ce   : > { %v11831_v52 = vcombine.low %v11822_v54, %v11829_v10  ;;  %v11661_v32 = vrot.slane %v11568_v11, %v19746_v44  ;;  %v11665_v36 = vrot.slane %v11568_v11, %v19747_v55  ;;  %v11669_v46 = vrot.slane %v11568_v11, %v19706_v26 }
0x22cf   : > { %v11838_v40 = vrot.slane %v11830_v29, %v16026_v12  ;;  %v18614_v31 = vsub.f32 %v18429_v62, %v11641_v21  ;;  %v11961_v16 = vcombine.low %v11953_v14, %v11960_v34  ;;  %v18618_v50 = vsub.f32 %v18421_v59, %v11645_v8 }
0x22d0   : > { %v11845_v58 = vrot.slane %v11831_v52, %v16026_v12  ;;  %v18621_v30 = vsub.f32 %v18432_v57, %v11649_v24  ;;  %v18624_v18 = vsub.f32 %v18435_v2, %v11653_v7  ;;  %v18627_v54 = vsub.f32 %v18438_v39, %v11657_v1 }
0x22d1   : > { %v18630_v11 = vsub.f32 %v18441_v56, %v11661_v32  ;;  %v18633_v62 = vsub.f32 %v18448_v0, %v11665_v36  ;;  %v11968_v10 = vrot.slane %v11961_v16, %v16026_v12  ;;  %v18637_v59 = vsub.f32 %v18451_v27, %v11669_v46 }
0x22d2   : > { %19751 = vst [vmem:[#allocation26_spill] sm:$0xff] %v18624_v18  ;;  %19752 = vst [vmem:[#allocation25_spill] sm:$0xff] %v18627_v54  ;;  %v11846_v21 = vcombine.low %v11838_v40, %v11845_v58  ;;  %v11758_v57 = vmul.f32 %v18614_v31, %v18614_v31  ;;  %v11759_v2 = vmul.f32 %v18618_v50, %v18618_v50 }
0x22d3   : > { %19753 = vst [vmem:[#allocation17_spill] sm:$0xff] %v18630_v11  ;;  %19754 = vst [vmem:[#allocation19_spill] sm:$0xff] %v18633_v62  ;;  %v11760_v39 = vmul.f32 %v18621_v30, %v18621_v30  ;;  %v11761_v56 = vmul.f32 %v18624_v18, %v18624_v18  ;;  %v11762_v0 = vmul.f32 %v18627_v54, %v18627_v54  ;;  %v11982_v27 = vsel %vm6013_vm11, %v11968_v10, 0.0 }
0x22d4   : > { %19755 = vst [vmem:[#allocation14_spill] sm:$0xff] %v18637_v59  ;;  %v11973_v25 = vsel %vm418_vm2, %v11846_v21, 0.0  ;;  %v11763_v8 = vmul.f32 %v18630_v11, %v18630_v11  ;;  %v11764_v29 = vmul.f32 %v18633_v62, %v18633_v62  ;;  %11983 = vadd.xlane.f32.xlu0 %v11982_v27  ;;  %v11765_v14 = vmul.f32 %v18637_v59, %v18637_v59 }
0x22d5   : > { %11974 = vadd.xlane.f32.xlu1 %v11973_v25  ;;  %v11896_v24 = vcombine.low %v11758_v57, %v11759_v2  ;;  %v11897_v7 = vcombine.low %v11760_v39, %v11761_v56  ;;  %v12437_v2 = vld [vmem:[%s19526_s4 + $0x68] sm:$0xff]  ;;  %v239_v39 = vstv %s238_s25  ;;  %v19757_v25 = vmov 0.0  }
0x22d6   : > { %v11898_v52 = vcombine.low %v11762_v0, %v11763_v8  ;;  %v11899_v34 = vcombine.low %v11764_v29, %v11765_v14  ;;  %15311 = vmatprep.subr.mxu0 %v12437_v2  ;;  %v19756_v56 = vld [vmem:[#allocation27_spill] sm:$0xff]  ;;  %v251_v0 = vstv %s250_s28  ;;  %v257_v8 = vstv %s256_s29 }
0x22d7   : > { %v11906_v1 = vrot.slane %v11896_v24, %v16026_v12  ;;  %v11913_v32 = vrot.slane %v11897_v7, %v16026_v12  ;;  %15312 = vmatpush3.msra.mxu0 %v12437_v2  ;;  %vm240_vm3 = vcmp.lt.s32.totalorder %v19756_v56, %v239_v39  ;;  %vm252_vm4 = vcmp.lt.s32.totalorder %v19756_v56, %v251_v0 }
0x22d8   : > { %v11920_v40 = vrot.slane %v11898_v52, %v16026_v12  ;;  %v11927_v36 = vrot.slane %v11899_v34, %v16026_v12  ;;  %v14580_v27 = vsel %vm240_vm3, 1.0, %v19757_v25  ;;  %v14582_v14 = vsel %vm252_vm4, 1.0, %v19757_v25 }
0x22d9   : > { %v11928_v46 = vcombine.low %v11906_v1, %v11913_v32  ;;  %v13218_v29 = vadd.f32 1e-16, %v14580_v27  ;;  %vm258_vm5 = vcmp.lt.s32.totalorder %v19756_v56, %v257_v8  ;;  %v245_v24 = vstv %s244_s0  ;;  %v14751_v27 = vld [vmem:[%s19527_s5 + $0x13] ss:$0 sm:$0xff]  ;;  %v14752_v8 = vld [vmem:[%s19527_s5 + $0x14] ss:$0 sm:$0xff] }
0x22da   : > { %v11929_v58 = vcombine.low %v11920_v40, %v11927_v36  ;;  %v13220_v7 = vadd.f32 1e-16, %v14582_v14  ;;  %v14583_v52 = vsel %vm258_vm5, 1.0, %v19757_v25  ;;  %vm246_vm6 = vcmp.lt.s32.totalorder %v19756_v56, %v245_v24 }
0x22db   : > { %v11936_v16 = vrot.slane %v11928_v46, %v16026_v12  ;;  %15472 = vlog2.f32 %v13218_v29  ;;  %v13221_v34 = vadd.f32 1e-16, %v14583_v52  ;;  %v14581_v1 = vsel %vm246_vm6, 1.0, %v19757_v25 }
0x22dc   : > { %v11943_v21 = vrot.slane %v11929_v58, %v16026_v12  ;;  %15474 = vlog2.f32 %v13220_v7  ;;  %v13219_v32 = vadd.f32 1e-16, %v14581_v1  ;;  %v12175_v29 = vcombine.high %v14751_v27, %v14751_v27 }
0x22dd   : > { %15476 = vlog2.f32 %v13221_v34  ;;  %v12266_v24 = vcombine.high %v14752_v8, %v14752_v8  ;;  %v12182_v52 = vrot.slane %v14751_v27, %v16026_v12  ;;  %vm13520_vm11 = vcmask 1042434  }
0x22de   : > { %v11944_v10 = vcombine.low %v11936_v16, %v11943_v21  ;;  %15478 = vlog2.f32 %v13219_v32  ;;  %v12189_v34 = vrot.slane %v12175_v29, %v16026_v12  ;;  %v12273_v32 = vrot.slane %v14752_v8, %v16026_v12 }
0x22e0   : > { %v11979_v57 = vsel %vm418_vm2, %v11944_v10, 0.0 }
0x22e1   : > { %11980 = vadd.xlane.f32.xlu1 %v11979_v57 }
0x22e5   : > { %v15473_v40 = vpop.eup %15472 }
0x22e6   : > { %v15475_v36 = vpop.eup %15474  ;;  %v13223_v46 = vmul.f32 0.6931472, %v15473_v40  ;;  %v12280_v40 = vrot.slane %v12266_v24, %v16026_v12 }
0x22e7   : > { %v15477_v58 = vpop.eup %15476  ;;  %v13227_v16 = vmul.f32 0.6931472, %v15475_v36  ;;  %v12190_v36 = vcombine.high %v12182_v52, %v12182_v52 }
0x22e8   : > { %v15479_v21 = vpop.eup %15478  ;;  %v13233_v10 = vrot.slane %v13223_v46, %v16786_v53  ;;  %v13229_v39 = vmul.f32 0.6931472, %v15477_v58  ;;  %v12191_v46 = vcombine.high %v12189_v34, %v12189_v34  ;;  %v12281_v58 = vcombine.high %v12273_v32, %v12273_v32 }
0x22e9   : > { %v13225_v57 = vmul.f32 0.6931472, %v15479_v21  ;;  %v13241_v2 = vrot.slane %v13227_v16, %v16786_v53  ;;  %v12282_v16 = vcombine.high %v12280_v40, %v12280_v40  ;;  %v18694_v21 = vrot.slane %v12182_v52, %v16026_v12 }
0x22ea   : > { %v13245_v25 = vrot.slane %v13229_v39, %v16786_v53  ;;  %v18706_v39 = vrot.slane %v12273_v32, %v16026_v12 }
0x22eb   : > { %v13237_v0 = vrot.slane %v13225_v57, %v16786_v53  ;;  %v18700_v57 = vrot.slane %v12190_v36, %v16026_v12  ;;  %v18715_v27 = vrot.slane %v12282_v16, %v16026_v12 }
0x22ed   : > { %13254 = vbcast.lane.b32.xlu0 %v13237_v0, 256  ;;  %v18709_v0 = vrot.slane %v12280_v40, %v16026_v12  ;;  %v18727_v52 = vcombine.high %v18700_v57, %v18700_v57  ;;  %v18735_v40 = vcombine.high %v18706_v39, %v18706_v39 }
0x22ef   : > { %v18739_v36 = vcombine.high %v18709_v0, %v18709_v0 }
0x22f2   : > { %13251 = vbcast.lane.b32.xlu1 %v13233_v10, 256  ;;  %v18697_v10 = vrot.slane %v12189_v34, %v16026_v12 }
0x22f6   : > { %13257 = vbcast.lane.b32.xlu1 %v13241_v2, 256  ;;  %v18703_v2 = vrot.slane %v12191_v46, %v16026_v12 }
0x22f8   : > { %v18731_v34 = vcombine.high %v18703_v2, %v18703_v2 }
0x22fa   : > { %13260 = vbcast.lane.b32.xlu1 %v13245_v25, 256  ;;  %v18712_v25 = vrot.slane %v12281_v58, %v16026_v12 }
0x22fc   : > { %v18743_v46 = vcombine.high %v18712_v25, %v18712_v25 }
0x2355   : > { %v11978_v14 = vpop.xlane.xlu0 %11977 }
0x2356   : > { %v11986_v7 = vmul.f32 0.125, %v11978_v14  ;;  %v18719_v14 = vcombine.high %v18694_v21, %v18694_v21 }
0x2358   : > { %v11990_v1 = vadd.f32 1e-05, %v11986_v7  ;;  %v18723_v7 = vcombine.high %v18697_v10, %v18697_v10 }
0x235a   : > { %15480 = vrsqrt.f32 %v11990_v1 }
0x2361   : > { %v11984_v29 = vpop.xlane.xlu0 %11983 }
0x2362   : > { %v11975_v8 = vpop.xlane.xlu1 %11974  ;;  %v11988_v32 = vmul.f32 0.125, %v11984_v29  ;;  %v18749_v29 = vcombine.high %v18715_v27, %v18715_v27 }
0x2363   : > { %v11985_v24 = vmul.f32 0.125, %v11975_v8 }
0x2364   : > { %v15481_v1 = vpop.eup %15480  ;;  %v11992_v5 = vadd.f32 1e-05, %v11988_v32 }
0x2365   : > { %v11989_v58 = vadd.f32 1e-05, %v11985_v24  ;;  %v12060_v16 = vrot.slane %v15481_v1, %v19747_v55  ;;  %v12064_v8 = vrot.slane %v15481_v1, %v19706_v26  ;;  %v12036_v56 = vrot.slane %v15481_v1, %v16786_v53 }
0x2366   : > { %v12040_v23 = vrot.slane %v15481_v1, %v16789_v17  ;;  %v12044_v49 = vrot.slane %v15481_v1, %v16792_v43  ;;  %v12048_v15 = vrot.slane %v15481_v1, %v16795_v3  ;;  %v12052_v63 = vrot.slane %v15481_v1, %v19745_v35 }
0x2367   : > { %15482 = vrsqrt.f32 %v11989_v58  ;;  %v12155_v22 = vmul.f32 %v12060_v16, %v18498_v6  ;;  %v12156_v24 = vmul.f32 %v12064_v8, %v18501_v37  ;;  %v12056_v45 = vrot.slane %v15481_v1, %v19746_v44 }
0x2368   : > { %v12149_v59 = vmul.f32 %v12036_v56, %v18480_v47  ;;  %v12150_v62 = vmul.f32 %v12040_v23, %v18483_v19  ;;  %v12151_v18 = vmul.f32 %v12044_v49, %v18486_v60  ;;  %v12152_v58 = vmul.f32 %v12048_v15, %v18489_v51 }
0x2369   : > { %v12246_v11 = vmul.f32 %v18723_v7, %v12155_v22  ;;  %v12247_v54 = vmul.f32 %v18731_v34, %v12156_v24  ;;  %v12153_v6 = vmul.f32 %v12052_v63, %v18492_v20  ;;  %v12154_v37 = vmul.f32 %v12056_v45, %v18495_v38 }
0x236a   : > { %v12240_v32 = vmul.f32 %v18694_v21, %v12149_v59  ;;  %v12241_v1 = vmul.f32 %v18700_v57, %v12150_v62  ;;  %v12242_v22 = vmul.f32 %v18719_v14, %v12151_v18  ;;  %v12243_v19 = vmul.f32 %v18727_v52, %v12152_v58 }
0x236b   : > { %v12337_v47 = vadd.f32 %v18739_v36, %v12246_v11  ;;  %v12338_v23 = vadd.f32 %v18749_v29, %v12247_v54  ;;  %v12244_v49 = vmul.f32 %v18697_v10, %v12153_v6  ;;  %v12245_v15 = vmul.f32 %v18703_v2, %v12154_v37 }
0x236c   : > { %v12331_v60 = vadd.f32 %v18706_v39, %v12240_v32  ;;  %v12332_v51 = vadd.f32 %v18712_v25, %v12241_v1  ;;  %v12333_v20 = vadd.f32 %v18735_v40, %v12242_v22  ;;  %v12334_v38 = vadd.f32 %v18743_v46, %v12243_v19 }
0x236d   : > { %v12518_v45 = vcombine.low %v12337_v47, %v12338_v23  ;;  %15484 = vrsqrt.f32 %v11992_v5  ;;  %v12335_v63 = vadd.f32 %v18709_v0, %v12244_v49  ;;  %v12336_v18 = vadd.f32 %v18715_v27, %v12245_v15 }
0x236e   : > { %v12515_v54 = vcombine.low %v12331_v60, %v12332_v51  ;;  %v11981_v11 = vpop.xlane.xlu1 %11980  ;;  %v12516_v62 = vcombine.low %v12333_v20, %v12334_v38 }
0x236f   : > { %v11987_v59 = vmul.f32 0.125, %v11981_v11  ;;  %v12517_v16 = vcombine.low %v12335_v63, %v12336_v18  ;;  %v12546_v58 = vrot.slane %v12518_v45, %v16026_v12 }
0x2370   : > { %v12525_v8 = vrot.slane %v12515_v54, %v16026_v12  ;;  %v12532_v24 = vrot.slane %v12516_v62, %v16026_v12 }
0x2371   : > { %v15483_v56 = vpop.eup %15482  ;;  %v11991_v6 = vadd.f32 1e-05, %v11987_v59 }
0x2372   : > { %v12004_v37 = vrot.slane %v15483_v56, %v16786_v53  ;;  %v12008_v5 = vrot.slane %v15483_v56, %v16789_v17  ;;  %v12012_v32 = vrot.slane %v15483_v56, %v16792_v43  ;;  %v12016_v1 = vrot.slane %v15483_v56, %v16795_v3 }
0x2373   : > { %v12020_v47 = vrot.slane %v15483_v56, %v19745_v35  ;;  %v12024_v23 = vrot.slane %v15483_v56, %v19746_v44  ;;  %v12028_v22 = vrot.slane %v15483_v56, %v19747_v55  ;;  %15486 = vrsqrt.f32 %v11991_v6 }
0x2374   : > { %v12032_v19 = vrot.slane %v15483_v56, %v19706_v26  ;;  %v12141_v49 = vmul.f32 %v12004_v37, %v18532_v48  ;;  %v12142_v15 = vmul.f32 %v12008_v5, %v18535_v9  ;;  %v12143_v60 = vmul.f32 %v12012_v32, %v18539_v4 }
0x2375   : > { %v12144_v51 = vmul.f32 %v12016_v1, %v18542_v33  ;;  %v12145_v20 = vmul.f32 %v12020_v47, %v18546_v13  ;;  %v12146_v38 = vmul.f32 %v12024_v23, %v18549_v42  ;;  %v12147_v45 = vmul.f32 %v12028_v22, %v18552_v41 }
0x2376   : > { %v12148_v63 = vmul.f32 %v12032_v19, %v18559_v61  ;;  %v12232_v18 = vmul.f32 %v18694_v21, %v12141_v49  ;;  %v12233_v54 = vmul.f32 %v18700_v57, %v12142_v15  ;;  %v12234_v48 = vmul.f32 %v18719_v14, %v12143_v60 }
0x2377   : > { %v12235_v9 = vmul.f32 %v18727_v52, %v12144_v51  ;;  %v12236_v4 = vmul.f32 %v18697_v10, %v12145_v20  ;;  %v12237_v33 = vmul.f32 %v18703_v2, %v12146_v38  ;;  %v18806_v11 = vpop.eup %15484  ;;  %v12238_v13 = vmul.f32 %v18723_v7, %v12147_v45 }
0x2378   : > { %v12239_v42 = vmul.f32 %v18731_v34, %v12148_v63  ;;  %v12323_v41 = vadd.f32 %v18706_v39, %v12232_v18  ;;  %v12324_v61 = vadd.f32 %v18712_v25, %v12233_v54  ;;  %v12325_v62 = vadd.f32 %v18735_v40, %v12234_v48 }
0x2379   : > { %v12326_v59 = vadd.f32 %v18743_v46, %v12235_v9  ;;  %v12327_v56 = vadd.f32 %v18709_v0, %v12236_v4  ;;  %v12328_v6 = vadd.f32 %v18715_v27, %v12237_v33  ;;  %v12329_v37 = vadd.f32 %v18739_v36, %v12238_v13 }
0x237a   : > { %v12330_v5 = vadd.f32 %v18749_v29, %v12239_v42  ;;  %v12466_v32 = vcombine.low %v12323_v41, %v12324_v61  ;;  %v12539_v1 = vrot.slane %v12517_v16, %v16026_v12  ;;  %v12547_v22 = vcombine.low %v12525_v8, %v12532_v24 }
0x237b   : > { %v12467_v47 = vcombine.low %v12325_v62, %v12326_v59  ;;  %v12468_v23 = vcombine.low %v12327_v56, %v12328_v6  ;;  %v12100_v19 = vrot.slane %v18806_v11, %v16786_v53  ;;  %v12104_v51 = vrot.slane %v18806_v11, %v16789_v17 }
0x237c   : > { %v12469_v49 = vcombine.low %v12329_v37, %v12330_v5  ;;  %v12476_v15 = vrot.slane %v12466_v32, %v16026_v12  ;;  %v12548_v60 = vcombine.low %v12539_v1, %v12546_v58  ;;  %v12555_v45 = vrot.slane %v12547_v22, %v16026_v12  ;;  %v19758_v5 = vld [vmem:[#allocation26_spill] sm:$0xff]  ;;  %v19759_v1 = vld [vmem:[#allocation25_spill] sm:$0xff] }
0x237d   : > { %v12483_v20 = vrot.slane %v12467_v47, %v16026_v12  ;;  %v12490_v38 = vrot.slane %v12468_v23, %v16026_v12  ;;  %v12108_v16 = vrot.slane %v18806_v11, %v16792_v43  ;;  %v15487_v8 = vpop.eup %15486  ;;  %v12112_v58 = vrot.slane %v18806_v11, %v16795_v3  ;;  %v19760_v23 = vld [vmem:[#allocation17_spill] sm:$0xff] }
0x237e   : > { %v12497_v24 = vrot.slane %v12469_v49, %v16026_v12  ;;  %v12562_v63 = vrot.slane %v12548_v60, %v16026_v12  ;;  %v12165_v18 = vmul.f32 %v12100_v19, %v18566_v28  ;;  %v12068_v48 = vrot.slane %v15487_v8, %v16786_v53  ;;  %v19761_v19 = vld [vmem:[#allocation19_spill] sm:$0xff]  ;;  %v19762_v60 = vld [vmem:[#allocation14_spill] sm:$0xff] }
0x237f   : > { %v12498_v54 = vcombine.low %v12476_v15, %v12483_v20  ;;  %v12072_v9 = vrot.slane %v15487_v8, %v16789_v17  ;;  %v12076_v4 = vrot.slane %v15487_v8, %v16792_v43  ;;  %v12080_v42 = vrot.slane %v15487_v8, %v16795_v3 }
0x2380   : > { %v12499_v33 = vcombine.low %v12490_v38, %v12497_v24  ;;  %v12563_v13 = vcombine.low %v12555_v45, %v12562_v63  ;;  %v12084_v41 = vrot.slane %v15487_v8, %v19745_v35  ;;  %v12088_v62 = vrot.slane %v15487_v8, %v19746_v44 }
0x2381   : > { %v12506_v61 = vrot.slane %v12498_v54, %v16026_v12  ;;  %v12092_v11 = vrot.slane %v15487_v8, %v19747_v55  ;;  %v12096_v28 = vrot.slane %v15487_v8, %v19706_v26  ;;  %v12157_v56 = vmul.f32 %v12068_v48, %v18614_v31 }
0x2382   : > { %v12513_v59 = vrot.slane %v12499_v33, %v16026_v12  ;;  %v12158_v6 = vmul.f32 %v12072_v9, %v18618_v50  ;;  %v12159_v37 = vmul.f32 %v12076_v4, %v18621_v30  ;;  %v12160_v32 = vmul.f32 %v12080_v42, %v19758_v5 }
0x2383   : > { %v12161_v47 = vmul.f32 %v12084_v41, %v19759_v1  ;;  %v12162_v22 = vmul.f32 %v12088_v62, %v19760_v23  ;;  %v12163_v49 = vmul.f32 %v12092_v11, %v19761_v19  ;;  %v12164_v20 = vmul.f32 %v12096_v28, %v19762_v60  ;;  %v19764_v62 = vld [vmem:[#allocation23_spill] sm:$0xff] }
0x2384   : > { %v12514_v15 = vcombine.low %v12506_v61, %v12513_v59  ;;  %v12248_v26 = vmul.f32 %v18694_v21, %v12157_v56  ;;  %v12249_v38 = vmul.f32 %v18700_v57, %v12158_v6  ;;  %v12250_v31 = vmul.f32 %v18719_v14, %v12159_v37 }
0x2385   : > { %v12251_v50 = vmul.f32 %v18727_v52, %v12160_v32  ;;  %v12252_v30 = vmul.f32 %v18697_v10, %v12161_v47  ;;  %v12253_v45 = vmul.f32 %v18703_v2, %v12162_v22  ;;  %v12254_v8 = vmul.f32 %v18723_v7, %v12163_v49 }
0x2386   : > { %15313 = vmatprep.mubr.msk.f32.mxu0 %vm418_vm2, %v12514_v15  ;;  %v12255_v24 = vmul.f32 %v18731_v34, %v12164_v20  ;;  %v12339_v63 = vadd.f32 %v18706_v39, %v12248_v26  ;;  %v12340_v54 = vadd.f32 %v18712_v25, %v12249_v38  ;;  %v12341_v48 = vadd.f32 %v18735_v40, %v12250_v31  ;;  %v19763_v34 = vld [vmem:[#allocation16_spill] sm:$0xff] }
0x2387   : > { %15314 = vmatmul.mubr.msk.f32.vlgmr.msra.gmra.mrb[76].mxu0 %vm418_vm2, %v12563_v13  ;;  %v12342_v9 = vadd.f32 %v18743_v46, %v12251_v50  ;;  %v12343_v10 = vadd.f32 %v18709_v0, %v12252_v30  ;;  %v12344_v2 = vadd.f32 %v18715_v27, %v12253_v45  ;;  %v12345_v4 = vadd.f32 %v18739_v36, %v12254_v8  ;;  %v19765_v13 = vld [vmem:[#allocation21_spill] sm:$0xff] }
0x2388   : > { %v12346_v7 = vadd.f32 %v18749_v29, %v12255_v24  ;;  %v12564_v33 = vcombine.low %v12339_v63, %v12340_v54  ;;  %v12166_v42 = vmul.f32 %v12104_v51, %v19763_v34  ;;  %v12167_v11 = vmul.f32 %v12108_v16, %v19764_v62 }
0x2389   : > { %v12565_v41 = vcombine.low %v12341_v48, %v12342_v9  ;;  %v12566_v61 = vcombine.low %v12343_v10, %v12344_v2  ;;  %v12168_v28 = vmul.f32 %v12112_v58, %v19765_v13  ;;  %v12256_v0 = vmul.f32 %v18694_v21, %v12165_v18 }
0x238a   : > { %v12567_v59 = vcombine.low %v12345_v4, %v12346_v7  ;;  %v12574_v56 = vrot.slane %v12564_v33, %v16026_v12  ;;  %v12257_v27 = vmul.f32 %v18700_v57, %v12166_v42  ;;  %v12258_v6 = vmul.f32 %v18719_v14, %v12167_v11 }
0x238b   : > { %v12581_v36 = vrot.slane %v12565_v41, %v16026_v12  ;;  %v12588_v29 = vrot.slane %v12566_v61, %v16026_v12  ;;  %v12259_v51 = vmul.f32 %v18727_v52, %v12168_v28  ;;  %v12347_v16 = vadd.f32 %v18706_v39, %v12256_v0  ;;  %v19766_v41 = vld [vmem:[#allocation31_spill] sm:$0xff] }
0x238c   : > { %v12595_v37 = vrot.slane %v12567_v59, %v16026_v12  ;;  %v12348_v58 = vadd.f32 %v18712_v25, %v12257_v27  ;;  %v12349_v32 = vadd.f32 %v18735_v40, %v12258_v6 }
0x238d   : > { %v12596_v5 = vcombine.low %v12574_v56, %v12581_v36  ;;  %v12350_v21 = vadd.f32 %v18743_v46, %v12259_v51  ;;  %v19767_v51 = vld [vmem:[#allocation22_spill] sm:$0xff] }
0x238e   : > { %v12597_v57 = vcombine.low %v12588_v29, %v12595_v37  ;;  %v12613_v18 = vcombine.low %v12347_v16, %v12348_v58 }
0x238f   : > { %v12604_v1 = vrot.slane %v12596_v5, %v16026_v12  ;;  %v12614_v47 = vcombine.low %v12349_v32, %v12350_v21 }
0x2390   : > { %v12611_v14 = vrot.slane %v12597_v57, %v16026_v12  ;;  %v12621_v52 = vrot.slane %v12613_v18, %v16026_v12 }
0x2391   : > { %v12628_v23 = vrot.slane %v12614_v47, %v16026_v12 }
0x2392   : > { %v12612_v22 = vcombine.low %v12604_v1, %v12611_v14 }
0x2393   : > { %v12629_v39 = vcombine.low %v12621_v52, %v12628_v23 }
0x2394   : > { %15316 = vmatprep.mubr.msk.f32.mxu0 %vm418_vm2, %v12612_v22 }
0x2395   : > { %v12636_v25 = vrot.slane %v12629_v39, %v16026_v12  ;;  %v19768_v39 = vld [vmem:[#allocation32_spill] sm:$0xff] }
0x2397   : > { %15317 = vmatmul.mubr.msk.f32.gmra.mrb[78].mxu0 %vm418_vm2, %v12636_v25 }
0x245a   : > { %v15315_v40 = vpop.f32.mrb[76].mxu0 }
0x245b   : > { %v12783_v46 = vcombine.high %v15315_v40, %v15315_v40  ;;  %v12790_v19 = vrot.slane %v15315_v40, %v16026_v12  ;;  %v12711_v49 = vpop.f32.mrb[77].mxu0 }
0x245c   : > { %v12734_v15 = vcombine.high %v12711_v49, %v12711_v49  ;;  %v12741_v60 = vrot.slane %v12711_v49, %v16026_v12 }
0x245d   : > { %v12797_v20 = vrot.slane %v12783_v46, %v16026_v12  ;;  %v12798_v26 = vcombine.high %v12790_v19, %v12790_v19  ;;  %v12806_v38 = vrot.slane %v12790_v19, %v16026_v12 }
0x245e   : > { %v12748_v31 = vrot.slane %v12734_v15, %v16026_v12  ;;  %v12749_v50 = vcombine.high %v12741_v60, %v12741_v60  ;;  %v12757_v30 = vrot.slane %v12741_v60, %v16026_v12 }
0x245f   : > { %v12799_v45 = vcombine.high %v12797_v20, %v12797_v20  ;;  %v12813_v8 = vrot.slane %v12797_v20, %v16026_v12  ;;  %v12820_v24 = vrot.slane %v12798_v26, %v16026_v12  ;;  %v12828_v63 = vcombine.high %v12806_v38, %v12806_v38 }
0x2460   : > { %v12940_v54 = vrot.slane %v12806_v38, %v16786_v53  ;;  %v12750_v48 = vcombine.high %v12748_v31, %v12748_v31  ;;  %v12764_v9 = vrot.slane %v12748_v31, %v16026_v12  ;;  %v12771_v10 = vrot.slane %v12749_v50, %v16026_v12 }
0x2461   : > { %v12827_v2 = vrot.slane %v12799_v45, %v16026_v12  ;;  %v12829_v4 = vcombine.high %v12813_v8, %v12813_v8  ;;  %v12830_v7 = vcombine.high %v12820_v24, %v12820_v24  ;;  %v12944_v33 = vrot.slane %v12820_v24, %v16786_v53 }
0x2462   : > { %v12948_v34 = vrot.slane %v12828_v63, %v16786_v53  ;;  %v12956_v42 = vrot.slane %v12813_v8, %v16786_v53  ;;  %v13053_v61 = vadd.f32 %v19766_v41, %v12940_v54  ;;  %v12778_v62 = vrot.slane %v12750_v48, %v16026_v12 }
0x2463   : > { %v12831_v11 = vcombine.high %v12827_v2, %v12827_v2  ;;  %v12952_v13 = vrot.slane %v12830_v7, %v16786_v53  ;;  %v12960_v28 = vrot.slane %v12827_v2, %v16786_v53  ;;  %v12964_v59 = vrot.slane %v12829_v4, %v16786_v53 }
0x2464   : > { %v13054_v56 = vadd.f32 %v19766_v41, %v12944_v33  ;;  %v13055_v0 = vadd.f32 %v19766_v41, %v12948_v34  ;;  %v13057_v27 = vadd.f32 %v19766_v41, %v12956_v42  ;;  %v12779_v16 = vcombine.high %v12757_v30, %v12757_v30 }
0x2465   : > { %v12968_v36 = vrot.slane %v12831_v11, %v16786_v53  ;;  %v18917_v29 = vadd.f32 %v19766_v41, %v12952_v13  ;;  %v18920_v6 = vadd.f32 %v19766_v41, %v12960_v28  ;;  %v18923_v37 = vadd.f32 %v12964_v59, %v19767_v51 }
0x2466   : > { %v12780_v58 = vcombine.high %v12764_v9, %v12764_v9  ;;  %v12781_v5 = vcombine.high %v12771_v10, %v12771_v10  ;;  %v12782_v21 = vcombine.high %v12778_v62, %v12778_v62  ;;  %v12908_v57 = vrot.slane %v12757_v30, %v16786_v53 }
0x2467   : > { %v18926_v32 = vadd.f32 %v12968_v36, %v19767_v51  ;;  %v12912_v18 = vrot.slane %v12771_v10, %v16786_v53  ;;  %v12916_v1 = vrot.slane %v12779_v16, %v16786_v53  ;;  %v12924_v14 = vrot.slane %v12764_v9, %v16786_v53 }
0x2468   : > { %v12920_v47 = vrot.slane %v12781_v5, %v16786_v53  ;;  %v12928_v52 = vrot.slane %v12778_v62, %v16786_v53  ;;  %v12932_v23 = vrot.slane %v12780_v58, %v16786_v53  ;;  %v12936_v22 = vrot.slane %v12782_v21, %v16786_v53 }
0x2469   : > { %v13045_v25 = vadd.f32 %v12908_v57, %v19768_v39  ;;  %v13046_v40 = vadd.f32 %v12912_v18, %v19768_v39  ;;  %15488 = vtanh.f32 %v13053_v61  ;;  %v13047_v19 = vadd.f32 %v12916_v1, %v19768_v39 }
0x246a   : > { %v15318_v46 = vpop.f32.mrb[78].mxu0  ;;  %v18940_v49 = vadd.f32 %v12920_v47, %v19768_v39  ;;  %v13049_v15 = vadd.f32 %v12924_v14, %v19768_v39  ;;  %v18944_v20 = vadd.f32 %v12928_v52, %v19768_v39  ;;  %v18947_v26 = vadd.f32 %v12932_v23, %v19768_v39 }
0x246b   : > { %v12721_v60 = vpop.f32.mrb[79].mxu0  ;;  %v18950_v38 = vadd.f32 %v19766_v41, %v12936_v22  ;;  %v12887_v31 = vrot.slane %v15318_v46, %v16026_v12  ;;  %15490 = vtanh.f32 %v13055_v0  ;;  %v19769_v41 = vld [vmem:[#allocation33_spill] sm:$0xff] }
0x246c   : > { %v12832_v50 = vcombine.high %v12721_v60, %v12721_v60  ;;  %v12839_v30 = vrot.slane %v12721_v60, %v16026_v12  ;;  %15492 = vtanh.f32 %v13045_v25 }
0x246d   : > { %v12888_v45 = vcombine.high %v12887_v31, %v12887_v31  ;;  %v12895_v8 = vrot.slane %v12887_v31, %v16026_v12  ;;  %15494 = vtanh.f32 %v13054_v56 }
0x246e   : > { %v12846_v24 = vrot.slane %v12832_v50, %v16026_v12  ;;  %v12847_v63 = vcombine.high %v12839_v30, %v12839_v30  ;;  %v12855_v54 = vrot.slane %v12839_v30, %v16026_v12  ;;  %15496 = vtanh.f32 %v13057_v27  ;;  %v18975_v27 = vld [vmem:[%s19527_s5 + $0x15] ss:$0 sm:$0xff] }
0x246f   : > { %v12902_v48 = vrot.slane %v12888_v45, %v16026_v12  ;;  %v12903_v9 = vcombine.high %v12895_v8, %v12895_v8  ;;  %v13004_v10 = vrot.slane %v12895_v8, %v16786_v53  ;;  %15498 = vtanh.f32 %v13047_v19 }
0x2470   : > { %v12848_v2 = vcombine.high %v12846_v24, %v12846_v24  ;;  %v12862_v4 = vrot.slane %v12846_v24, %v16026_v12  ;;  %v12869_v7 = vrot.slane %v12847_v63, %v16026_v12  ;;  %v12877_v11 = vcombine.high %v12855_v54, %v12855_v54 }
0x2471   : > { %v12904_v33 = vcombine.high %v12902_v48, %v12902_v48  ;;  %v13008_v34 = vrot.slane %v12902_v48, %v16786_v53  ;;  %v13012_v42 = vrot.slane %v12903_v9, %v16786_v53  ;;  %v13069_v61 = vadd.f32 %v19769_v41, %v13004_v10 }
0x2472   : > { %v12876_v62 = vrot.slane %v12848_v2, %v16026_v12  ;;  %v12878_v0 = vcombine.high %v12862_v4, %v12862_v4  ;;  %v12879_v36 = vcombine.high %v12869_v7, %v12869_v7  ;;  %v12972_v12 = vrot.slane %v12855_v54, %v16786_v53 }
0x2473   : > { %v15489_v13 = vpop.eup %15488  ;;  %v13016_v28 = vrot.slane %v12904_v33, %v16786_v53  ;;  %v18967_v59 = vadd.f32 %v19769_v41, %v13008_v34  ;;  %v18970_v56 = vadd.f32 %v19769_v41, %v13012_v42  ;;  %15500 = vtanh.f32 %v13046_v40 }
0x2474   : > { %v12880_v16 = vcombine.high %v12876_v62, %v12876_v62  ;;  %v12976_v5 = vrot.slane %v12869_v7, %v16786_v53  ;;  %v12980_v21 = vrot.slane %v12877_v11, %v16786_v53  ;;  %v12984_v18 = vrot.slane %v12879_v36, %v16786_v53 }
0x2475   : > { %v18979_v58 = vadd.f32 %v19769_v41, %v13016_v28  ;;  %v15491_v57 = vpop.eup %15490  ;;  %v12988_v1 = vrot.slane %v12862_v4, %v16786_v53  ;;  %v12992_v47 = vrot.slane %v12876_v62, %v16786_v53  ;;  %v13114_v14 = vmul.f32 %v15489_v13, %v18975_v27 }
0x2476   : > { %v15493_v52 = vpop.eup %15492  ;;  %15502 = vtanh.f32 %v13049_v15  ;;  %v12996_v23 = vrot.slane %v12878_v0, %v16786_v53  ;;  %v13000_v22 = vrot.slane %v12880_v16, %v16786_v53  ;;  %v13061_v39 = vadd.f32 %v12972_v12, %v19767_v51 }
0x2477   : > { %v18991_v25 = vadd.f32 %v12976_v5, %v19767_v51  ;;  %v18994_v40 = vadd.f32 %v12980_v21, %v19767_v51  ;;  %v18997_v46 = vadd.f32 %v12984_v18, %v19767_v51  ;;  %v13065_v19 = vadd.f32 %v12988_v1, %v19767_v51  ;;  %v15495_v60 = vpop.eup %15494 }
0x2478   : > { %15504 = vtanh.f32 %v18923_v37  ;;  %v19002_v15 = vadd.f32 %v19769_v41, %v12992_v47  ;;  %v19005_v31 = vadd.f32 %v19769_v41, %v12996_v23  ;;  %v19008_v50 = vadd.f32 %v19769_v41, %v13000_v22  ;;  %v15497_v24 = vpop.eup %15496 }
0x2479   : > { %v13158_v30 = vsel %vm418_vm2, %v13114_v14, 0.0  ;;  %v13106_v45 = vmul.f32 %v15493_v52, %v18975_v27  ;;  %v13116_v8 = vmul.f32 %v15491_v57, %v18975_v27  ;;  %15506 = vtanh.f32 %v18920_v6  ;;  %v15499_v51 = vpop.eup %15498 }
0x247a   : > { %13159 = vadd.xlane.f32.xlu0 %v13158_v30  ;;  %v13115_v63 = vmul.f32 %v15495_v60, %v18975_v27  ;;  %15508 = vtanh.f32 %v18917_v29  ;;  %v13118_v48 = vmul.f32 %v15497_v24, %v18975_v27  ;;  %v13108_v6 = vmul.f32 %v15499_v51, %v18975_v27 }
0x247b   : > { %v13134_v37 = vsel %vm418_vm2, %v13106_v45, 0.0  ;;  %v13164_v54 = vsel %vm418_vm2, %v13116_v8, 0.0  ;;  %15510 = vtanh.f32 %v13061_v39  ;;  %v15654_v16 = vmov 0  }
0x247c   : > { %13135 = vadd.xlane.f32.xlu1 %v13134_v37  ;;  %v13161_v10 = vsel %vm418_vm2, %v13115_v63, 0.0  ;;  %15512 = vtanh.f32 %v13069_v61  ;;  %v13170_v4 = vsel %vm418_vm2, %v13118_v48, 0.0  ;;  %v13140_v33 = vsel %vm418_vm2, %v13108_v6, 0.0  ;;  %15343 = vset.pattern.permute.xlu0 %v15654_v16 }
0x247d   : > { %v15501_v9 = vpop.eup %15500  ;;  %15514 = vtanh.f32 %v18947_v26  ;;  %15342 = vset.pattern.permute.xlu1 %v15654_v16 }
0x247e   : > { %13165 = vadd.xlane.f32.xlu0 %v13164_v54  ;;  %v13107_v7 = vmul.f32 %v15501_v9, %v18975_v27  ;;  %15516 = vtanh.f32 %v18940_v49 }
0x247f   : > { %15518 = vtanh.f32 %v18926_v32 }
0x2480   : > { %v15503_v2 = vpop.eup %15502  ;;  %13162 = vadd.xlane.f32.xlu1 %v13161_v10  ;;  %v13137_v41 = vsel %vm418_vm2, %v13107_v7, 0.0  ;;  %15520 = vtanh.f32 %v18944_v20 }
0x2481   : > { %v13110_v34 = vmul.f32 %v15503_v2, %v18975_v27  ;;  %15522 = vtanh.f32 %v18967_v59 }
0x2482   : > { %v15505_v29 = vpop.eup %15504  ;;  %13171 = vadd.xlane.f32.xlu0 %v13170_v4  ;;  %15524 = vtanh.f32 %v13065_v19 }
0x2483   : > { %v15507_v42 = vpop.eup %15506  ;;  %v13120_v61 = vmul.f32 %v15505_v29, %v18975_v27  ;;  %v13146_v11 = vsel %vm418_vm2, %v13110_v34, 0.0  ;;  %15526 = vtanh.f32 %v18970_v56 }
0x2484   : > { %13141 = vadd.xlane.f32.xlu1 %v13140_v33  ;;  %v15509_v62 = vpop.eup %15508  ;;  %v13119_v26 = vmul.f32 %v15507_v42, %v18975_v27  ;;  %15528 = vtanh.f32 %v18979_v58 }
0x2485   : > { %v15511_v13 = vpop.eup %15510  ;;  %v13176_v28 = vsel %vm418_vm2, %v13120_v61, 0.0  ;;  %v13117_v49 = vmul.f32 %v15509_v62, %v18975_v27  ;;  %15530 = vtanh.f32 %v18950_v38 }
0x2486   : > { %13138 = vadd.xlane.f32.xlu0 %v13137_v41  ;;  %v15513_v0 = vpop.eup %15512  ;;  %v13173_v36 = vsel %vm418_vm2, %v13119_v26, 0.0  ;;  %v13122_v32 = vmul.f32 %v15511_v13, %v18975_v27  ;;  %15532 = vtanh.f32 %v19002_v15  ;;  %v13252_v13 = vpop.permute.xlu1 %13251 }
0x2487   : > { %v15515_v12 = vpop.eup %15514  ;;  %v13167_v20 = vsel %vm418_vm2, %v13117_v49, 0.0  ;;  %v13130_v5 = vmul.f32 %v15513_v0, %v18975_v27  ;;  %15534 = vtanh.f32 %v18991_v25  ;;  %v13255_v49 = vpop.permute.xlu0 %13254 }
0x2488   : > { %13147 = vadd.xlane.f32.xlu1 %v13146_v11  ;;  %v15517_v21 = vpop.eup %15516  ;;  %v13182_v59 = vsel %vm418_vm2, %v13122_v32, 0.0  ;;  %v13112_v57 = vmul.f32 %v15515_v12, %v18975_v27  ;;  %15536 = vtanh.f32 %v18997_v46 }
0x2489   : > { %v15519_v18 = vpop.eup %15518  ;;  %v13206_v1 = vsel %vm418_vm2, %v13130_v5, 0.0  ;;  %v13109_v47 = vmul.f32 %v15517_v21, %v18975_v27  ;;  %15538 = vtanh.f32 %v18994_v40 }
0x248a   : > { %13177 = vadd.xlane.f32.xlu0 %v13176_v28  ;;  %v15521_v14 = vpop.eup %15520  ;;  %v13152_v52 = vsel %vm418_vm2, %v13112_v57, 0.0  ;;  %v13121_v56 = vmul.f32 %v15519_v18, %v18975_v27  ;;  %15540 = vtanh.f32 %v19008_v50  ;;  %v19081_v28 = vpop.permute.xlu1 %13257 }
0x248b   : > { %v15523_v23 = vpop.eup %15522  ;;  %v13143_v22 = vsel %vm418_vm2, %v13109_v47, 0.0  ;;  %v13111_v58 = vmul.f32 %v15521_v14, %v18975_v27  ;;  %15542 = vtanh.f32 %v19005_v31 }
0x248c   : > { %13174 = vadd.xlane.f32.xlu1 %v13173_v36  ;;  %v15525_v39 = vpop.eup %15524  ;;  %v13179_v19 = vsel %vm418_vm2, %v13121_v56, 0.0  ;;  %v13131_v38 = vmul.f32 %v15523_v23, %v18975_v27 }
0x248d   : > { %v15527_v60 = vpop.eup %15526  ;;  %v13149_v30 = vsel %vm418_vm2, %v13111_v58, 0.0  ;;  %v13126_v15 = vmul.f32 %v15525_v39, %v18975_v27 }
0x248e   : > { %13168 = vadd.xlane.f32.xlu0 %v13167_v20  ;;  %v15529_v45 = vpop.eup %15528  ;;  %v13209_v8 = vsel %vm418_vm2, %v13131_v38, 0.0  ;;  %v13132_v25 = vmul.f32 %v15527_v60, %v18975_v27  ;;  %v19083_v0 = vpop.permute.xlu1 %13260 }
0x248f   : > { %v15531_v24 = vpop.eup %15530  ;;  %v13194_v51 = vsel %vm418_vm2, %v13126_v15, 0.0  ;;  %v13133_v46 = vmul.f32 %v15529_v45, %v18975_v27 }
0x2490   : > { %13183 = vadd.xlane.f32.xlu1 %v13182_v59  ;;  %v15533_v37 = vpop.eup %15532  ;;  %v13212_v63 = vsel %vm418_vm2, %v13132_v25, 0.0  ;;  %v13113_v40 = vmul.f32 %v15531_v24, %v18975_v27 }
0x2491   : > { %v15535_v54 = vpop.eup %15534  ;;  %v13215_v48 = vsel %vm418_vm2, %v13133_v46, 0.0  ;;  %v13127_v9 = vmul.f32 %v15533_v37, %v18975_v27 }
0x2492   : > { %13207 = vadd.xlane.f32.xlu0 %v13206_v1  ;;  %v15537_v50 = vpop.eup %15536  ;;  %v13155_v10 = vsel %vm418_vm2, %v13113_v40, 0.0  ;;  %v13123_v6 = vmul.f32 %v15535_v54, %v18975_v27 }
0x2493   : > { %v15539_v2 = vpop.eup %15538  ;;  %v13197_v31 = vsel %vm418_vm2, %v13127_v9, 0.0  ;;  %v13125_v4 = vmul.f32 %v15537_v50, %v18975_v27 }
0x2494   : > { %13153 = vadd.xlane.f32.xlu1 %v13152_v52  ;;  %v15541_v7 = vpop.eup %15540  ;;  %v13185_v29 = vsel %vm418_vm2, %v13123_v6, 0.0  ;;  %v13124_v33 = vmul.f32 %v15539_v2, %v18975_v27 }
0x2495   : > { %v15543_v34 = vpop.eup %15542  ;;  %v13191_v42 = vsel %vm418_vm2, %v13125_v4, 0.0  ;;  %v13129_v41 = vmul.f32 %v15541_v7, %v18975_v27 }
0x2496   : > { %13144 = vadd.xlane.f32.xlu0 %v13143_v22  ;;  %v13188_v61 = vsel %vm418_vm2, %v13124_v33, 0.0  ;;  %v13128_v62 = vmul.f32 %v15543_v34, %v18975_v27 }
0x2497   : > { %v13203_v11 = vsel %vm418_vm2, %v13129_v41, 0.0 }
0x2498   : > { %13180 = vadd.xlane.f32.xlu1 %v13179_v19  ;;  %v13200_v26 = vsel %vm418_vm2, %v13128_v62, 0.0 }
0x249a   : > { %13150 = vadd.xlane.f32.xlu0 %v13149_v30 }
0x249c   : > { %13210 = vadd.xlane.f32.xlu1 %v13209_v8 }
0x249e   : > { %13195 = vadd.xlane.f32.xlu0 %v13194_v51 }
0x24a0   : > { %13213 = vadd.xlane.f32.xlu1 %v13212_v63 }
0x24a2   : > { %13216 = vadd.xlane.f32.xlu0 %v13215_v48 }
0x24a4   : > { %13156 = vadd.xlane.f32.xlu1 %v13155_v10 }
0x24a6   : > { %13198 = vadd.xlane.f32.xlu0 %v13197_v31 }
0x24a8   : > { %13186 = vadd.xlane.f32.xlu1 %v13185_v29 }
0x24aa   : > { %13192 = vadd.xlane.f32.xlu0 %v13191_v42 }
0x24ac   : > { %13189 = vadd.xlane.f32.xlu1 %v13188_v61 }
0x24ae   : > { %13204 = vadd.xlane.f32.xlu0 %v13203_v11 }
0x24b0   : > { %13201 = vadd.xlane.f32.xlu1 %v13200_v26 }
0x2507   : > { %v13160_v36 = vpop.xlane.xlu0 %13159 }
0x2508   : > { %v19085_v32 = vadd.f32 %v13255_v49, %v13160_v36 }
0x2509   : > { %v13136_v16 = vpop.xlane.xlu1 %13135 }
0x250a   : > { %v19087_v12 = vadd.f32 %v13252_v13, %v13136_v16  ;;  %13347 = vperm.xlu1 %15342, %v19085_v32  }
0x250b   : > { %v13166_v27 = vpop.xlane.xlu0 %13165 }
0x250c   : > { %13323 = vperm.xlu0 %15343, %v19087_v12   ;;  %v19096_v18 = vadd.f32 %v13255_v49, %v13166_v27 }
0x250d   : > { %v13163_v20 = vpop.xlane.xlu1 %13162 }
0x250e   : > { %v19091_v5 = vadd.f32 %v13255_v49, %v13163_v20 }
0x250f   : > { %v13172_v21 = vpop.xlane.xlu0 %13171 }
0x2510   : > { %v19093_v59 = vadd.f32 %v13255_v49, %v13172_v21  ;;  %13350 = vperm.xlu1 %15342, %v19091_v5  }
0x2511   : > { %v13142_v57 = vpop.xlane.xlu1 %13141 }
0x2512   : > { %13359 = vperm.xlu0 %15343, %v19093_v59   ;;  %v19109_v58 = vadd.f32 %v13252_v13, %v13142_v57 }
0x2513   : > { %v13139_v1 = vpop.xlane.xlu0 %13138 }
0x2514   : > { %v19099_v47 = vadd.f32 %v13252_v13, %v13139_v1  ;;  %13353 = vperm.xlu1 %15342, %v19096_v18  }
0x2515   : > { %v13148_v14 = vpop.xlane.xlu1 %13147 }
0x2516   : > { %v19102_v52 = vadd.f32 %v13252_v13, %v13148_v14 }
0x2517   : > { %v13178_v56 = vpop.xlane.xlu0 %13177 }
0x2518   : > { %v19105_v23 = vadd.f32 %v19081_v28, %v13178_v56  ;;  %13326 = vperm.xlu1 %15342, %v19099_v47   ;;  %13335 = vperm.xlu0 %15343, %v19102_v52  }
0x2519   : > { %v13175_v22 = vpop.xlane.xlu1 %13174 }
0x251a   : > { %v19115_v60 = vadd.f32 %v13255_v49, %v13175_v22 }
0x251b   : > { %v13169_v39 = vpop.xlane.xlu0 %13168 }
0x251c   : > { %v19111_v19 = vadd.f32 %v13255_v49, %v13169_v39  ;;  %13329 = vperm.xlu1 %15342, %v19109_v58   ;;  %13365 = vperm.xlu0 %15343, %v19105_v23   ;;  %v19770_v39 = vld [vmem:[#allocation10_spill] sm:$0xff] }
0x251d   : > { %v13184_v38 = vpop.xlane.xlu1 %13183 }
0x251e   : > { %v19129_v63 = vadd.f32 %v19081_v28, %v13184_v38  ;;  %v19771_v38 = vld [vmem:[#allocation27_spill] sm:$0xff] }
0x251f   : > { %v13208_v30 = vpop.xlane.xlu0 %13207 }
0x2520   : > { %v19118_v15 = vadd.f32 %v19083_v0, %v13208_v30  ;;  %13356 = vperm.xlu0 %15343, %v19111_v19   ;;  %13362 = vperm.xlu1 %15342, %v19115_v60   ;;  %v19185_v30 = vsub.s32 %v19771_v38, %v19770_v39 }
0x2521   : > { %v13154_v45 = vpop.xlane.xlu1 %13153 }
0x2522   : > { %v19132_v54 = vadd.f32 %v13252_v13, %v13154_v45 }
0x2523   : > { %v13145_v8 = vpop.xlane.xlu0 %13144 }
0x2524   : > { %v19122_v25 = vadd.f32 %v13252_v13, %v13145_v8  ;;  %13395 = vperm.xlu0 %15343, %v19118_v15  }
0x2525   : > { %v13181_v24 = vpop.xlane.xlu1 %13180 }
0x2526   : > { %v19137_v9 = vadd.f32 %v19081_v28, %v13181_v24 }
0x2527   : > { %v13151_v51 = vpop.xlane.xlu0 %13150 }
0x2528   : > { %v19125_v46 = vadd.f32 %v13252_v13, %v13151_v51  ;;  %13332 = vperm.xlu0 %15343, %v19122_v25  }
0x2529   : > { %v13211_v37 = vpop.xlane.xlu1 %13210 }
0x252a   : > { %13338 = vperm.xlu1 %15342, %v19125_v46   ;;  %v19143_v2 = vadd.f32 %v19083_v0, %v13211_v37 }
0x252b   : > { %v13196_v40 = vpop.xlane.xlu0 %13195 }
0x252c   : > { %13371 = vperm.xlu0 %15343, %v19129_v63   ;;  %v19147_v4 = vadd.f32 %v19081_v28, %v13196_v40 }
0x252d   : > { %v13214_v48 = vpop.xlane.xlu1 %13213 }
0x252e   : > { %13341 = vperm.xlu1 %15342, %v19132_v54   ;;  %v19171_v13 = vadd.f32 %v19083_v0, %v13214_v48 }
0x252f   : > { %v13217_v50 = vpop.xlane.xlu0 %13216 }
0x2530   : > { %v19180_v36 = vadd.f32 %v19083_v0, %v13217_v50 }
0x2531   : > { %v13157_v10 = vpop.xlane.xlu1 %13156 }
0x2532   : > { %v19139_v6 = vadd.f32 %v13255_v49, %v13157_v10  ;;  %13368 = vperm.xlu1 %15342, %v19137_v9  }
0x2533   : > { %v13199_v7 = vpop.xlane.xlu0 %13198 }
0x2534   : > { %13344 = vperm.xlu0 %15343, %v19139_v6   ;;  %v19163_v62 = vadd.f32 %v19083_v0, %v13199_v7 }
0x2535   : > { %v13187_v31 = vpop.xlane.xlu1 %13186 }
0x2536   : > { %13398 = vperm.xlu1 %15342, %v19143_v2   ;;  %v19151_v29 = vadd.f32 %v19081_v28, %v13187_v31 }
0x2537   : > { %v13193_v42 = vpop.xlane.xlu0 %13192 }
0x2538   : > { %13383 = vperm.xlu0 %15343, %v19147_v4   ;;  %v19167_v11 = vadd.f32 %v19081_v28, %v13193_v42 }
0x2539   : > { %v13190_v33 = vpop.xlane.xlu1 %13189 }
0x253a   : > { %13374 = vperm.xlu1 %15342, %v19151_v29   ;;  %v19156_v34 = vadd.f32 %v19081_v28, %v13190_v33 }
0x253b   : > { %v13205_v26 = vpop.xlane.xlu0 %13204 }
0x253c   : > { %v19175_v49 = vadd.f32 %v19083_v0, %v13205_v26 }
0x253d   : > { %v13202_v41 = vpop.xlane.xlu1 %13201 }
0x253e   : > { %v19159_v61 = vadd.f32 %v19083_v0, %v13202_v41  ;;  %13377 = vperm.xlu1 %15342, %v19156_v34  }
0x2540   : > { %13389 = vperm.xlu0 %15343, %v19159_v61  }
0x2542   : > { %13386 = vperm.xlu1 %15342, %v19163_v62  }
0x2544   : > { %13380 = vperm.xlu0 %15343, %v19167_v11  }
0x2546   : > { %13401 = vperm.xlu1 %15342, %v19171_v13  }
0x2548   : > { %13392 = vperm.xlu0 %15343, %v19175_v49  }
0x254c   : > { %13404 = vperm.xlu0 %15343, %v19180_v36  }
0x2589   : > { %v13348_v28 = vpop.permute.xlu1 %13347 }
0x258b   : > { %v13324_v16 = vpop.permute.xlu0 %13323 }
0x258c   : > { %v13409_v51 = vrot.slane %v13324_v16, %v19185_v30 }
0x258f   : > { %v13351_v27 = vpop.permute.xlu1 %13350 }
0x2591   : > { %v13360_v20 = vpop.permute.xlu0 %13359 }
0x2593   : > { %v13354_v21 = vpop.permute.xlu1 %13353 }
0x2597   : > { %v13336_v57 = vpop.permute.xlu0 %13335  ;;  %v13327_v1 = vpop.permute.xlu1 %13326 }
0x2598   : > { %v13413_v0 = vrot.slane %v13327_v1, %v19185_v30  ;;  %v13425_v31 = vrot.slane %v13336_v57, %v19185_v30 }
0x259a   : > { %v13519_v40 = vsel %vm13518_vm10, %v13413_v0, %v13409_v51  ;;  %v13441_v0 = vrot.slane %v13348_v28, %v19185_v30  ;;  %v13445_v51 = vrot.slane %v13351_v27, %v19185_v30 }
0x259b   : > { %v13366_v14 = vpop.permute.xlu0 %13365  ;;  %v13330_v56 = vpop.permute.xlu1 %13329 }
0x259c   : > { %v13417_v8 = vrot.slane %v13330_v56, %v19185_v30 }
0x259e   : > { %v13521_v50 = vsel %vm13520_vm11, %v13417_v8, %v13519_v40  ;;  %v13449_v40 = vrot.slane %v13354_v21, %v19185_v30 }
0x259f   : > { %v13357_v22 = vpop.permute.xlu0 %13356  ;;  %v13363_v24 = vpop.permute.xlu1 %13362 }
0x25a3   : > { %v19187_v45 = vpop.permute.xlu0 %13395 }
0x25a7   : > { %v13333_v37 = vpop.permute.xlu0 %13332 }
0x25a8   : > { %v13421_v48 = vrot.slane %v13333_v37, %v19185_v30 }
0x25a9   : > { %v13339_v10 = vpop.permute.xlu1 %13338 }
0x25aa   : > { %v13523_v7 = vsel %vm13522_vm12, %v13421_v48, %v13521_v50  ;;  %v13429_v33 = vrot.slane %v13339_v10, %v19185_v30  ;;  %v13453_v50 = vrot.slane %v13357_v22, %v19185_v30 }
0x25ab   : > { %v13525_v42 = vsel %vm13524_vm13, %v13425_v31, %v13523_v7  ;;  %v13372_v16 = vpop.permute.xlu0 %13371  ;;  %v13457_v31 = vrot.slane %v13360_v20, %v19185_v30  ;;  %v13465_v20 = vrot.slane %v13366_v14, %v19185_v30 }
0x25ac   : > { %v13527_v1 = vsel %vm13526_vm15, %v13429_v33, %v13525_v42  ;;  %v13461_v33 = vrot.slane %v13363_v24, %v19185_v30 }
0x25ad   : > { %v13342_v41 = vpop.permute.xlu1 %13341 }
0x25ae   : > { %v13433_v26 = vrot.slane %v13342_v41, %v19185_v30 }
0x25b0   : > { %v13529_v56 = vsel %vm13528_vm0, %v13433_v26, %v13527_v1 }
0x25b1   : > { %v13369_v39 = vpop.permute.xlu1 %13368  ;;  %v13552_v38 = vsel %vm7970_vm14, %v13529_v56, -inf }
0x25b2   : > { %13553 = vmax.xlane.f32.xlu1 %v13552_v38  ;;  %v13469_v26 = vrot.slane %v13369_v39, %v19185_v30 }
0x25b3   : > { %v13345_v57 = vpop.permute.xlu0 %13344 }
0x25b4   : > { %v13437_v8 = vrot.slane %v13345_v57, %v19185_v30  ;;  %v13536_v38 = vsel %vm13518_vm10, %v13469_v26, %v13465_v20  ;;  %v13473_v57 = vrot.slane %v13372_v16, %v19185_v30 }
0x25b5   : > { %v13399_v37 = vpop.permute.xlu1 %13398 }
0x25b6   : > { %v13530_v48 = vsel %vm13518_vm10, %v13441_v0, %v13437_v8  ;;  %v13509_v26 = vrot.slane %v13399_v37, %v19185_v30 }
0x25b7   : > { %v13531_v10 = vsel %vm13520_vm11, %v13445_v51, %v13530_v48  ;;  %v13384_v41 = vpop.permute.xlu0 %13383  ;;  %v13537_v51 = vsel %vm13520_vm11, %v13473_v57, %v13536_v38 }
0x25b8   : > { %v13532_v7 = vsel %vm13522_vm12, %v13449_v40, %v13531_v10 }
0x25b9   : > { %v13375_v28 = vpop.permute.xlu1 %13374  ;;  %v13533_v42 = vsel %vm13524_vm13, %v13453_v50, %v13532_v7  ;;  %v13489_v50 = vrot.slane %v13384_v41, %v19185_v30 }
0x25ba   : > { %v13534_v27 = vsel %vm13526_vm15, %v13457_v31, %v13533_v42  ;;  %v13477_v24 = vrot.slane %v13375_v28, %v19185_v30 }
0x25bb   : > { %v13535_v21 = vsel %vm13528_vm0, %v13461_v33, %v13534_v27 }
0x25bc   : > { %v13555_v22 = vsel %vm7970_vm14, %v13535_v21, -inf  ;;  %v13538_v39 = vsel %vm13522_vm12, %v13477_v24, %v13537_v51  ;;  %v13505_v21 = vrot.slane %v19187_v45, %v19185_v30 }
0x25bd   : > { %13556 = vmax.xlane.f32.xlu0 %v13555_v22  ;;  %v13378_v1 = vpop.permute.xlu1 %13377 }
0x25be   : > { %v13481_v0 = vrot.slane %v13378_v1, %v19185_v30 }
0x25bf   : > { %v13390_v56 = vpop.permute.xlu0 %13389 }
0x25c0   : > { %v13539_v14 = vsel %vm13524_vm13, %v13481_v0, %v13538_v39  ;;  %v13497_v16 = vrot.slane %v13390_v56, %v19185_v30 }
0x25c1   : > { %v13387_v8 = vpop.permute.xlu1 %13386 }
0x25c2   : > { %v13493_v10 = vrot.slane %v13387_v8, %v19185_v30 }
0x25c3   : > { %v13381_v40 = vpop.permute.xlu0 %13380 }
0x25c4   : > { %v13485_v48 = vrot.slane %v13381_v40, %v19185_v30  ;;  %v13542_v41 = vsel %vm13518_vm10, %v13497_v16, %v13493_v10 }
0x25c5   : > { %v13402_v28 = vpop.permute.xlu1 %13401 }
0x25c6   : > { %v13540_v31 = vsel %vm13526_vm15, %v13485_v48, %v13539_v14  ;;  %v13513_v1 = vrot.slane %v13402_v28, %v19185_v30 }
0x25c7   : > { %v13393_v7 = vpop.permute.xlu0 %13392  ;;  %v13541_v33 = vsel %vm13528_vm0, %v13489_v50, %v13540_v31 }
0x25c8   : > { %v13501_v42 = vrot.slane %v13393_v7, %v19185_v30  ;;  %v13558_v27 = vsel %vm7970_vm14, %v13541_v33, -inf }
0x25c9   : > { %13559 = vmax.xlane.f32.xlu0 %v13558_v27 }
0x25ca   : > { %v13543_v22 = vsel %vm13520_vm11, %v13501_v42, %v13542_v41 }
0x25cb   : > { %v13544_v20 = vsel %vm13522_vm12, %v13505_v21, %v13543_v22  ;;  %v13405_v56 = vpop.permute.xlu0 %13404 }
0x25cc   : > { %v13517_v38 = vrot.slane %v13405_v56, %v19185_v30  ;;  %v13545_v24 = vsel %vm13524_vm13, %v13509_v26, %v13544_v20 }
0x25cd   : > { %v13546_v57 = vsel %vm13526_vm15, %v13513_v1, %v13545_v24 }
0x25ce   : > { %v13547_v45 = vsel %vm13528_vm0, %v13517_v38, %v13546_v57 }
0x25cf   : > { %v13561_v0 = vsel %vm7970_vm14, %v13547_v45, -inf }
0x25d0   : > { %13562 = vmax.xlane.f32.xlu1 %v13561_v0 }
0x263f   : > { %v19246_v8 = vpop.xlane.xlu1 %13553 }
0x2640   : > { %v13571_v37 = vrot.slane %v19246_v8, %v16786_v53  ;;  %v13575_v51 = vrot.slane %v19246_v8, %v16789_v17  ;;  %v13579_v40 = vrot.slane %v19246_v8, %v16792_v43  ;;  %v13583_v39 = vrot.slane %v19246_v8, %v16795_v3 }
0x2641   : > { %v13591_v48 = vrot.slane %v19246_v8, %v19746_v44  ;;  %v13587_v31 = vrot.slane %v19246_v8, %v19745_v35  ;;  %v13595_v27 = vrot.slane %v19246_v8, %v19747_v55 }
0x2642   : > { %v13708_v50 = vsub.f32 %v19087_v12, %v13571_v37  ;;  %v13709_v14 = vsub.f32 %v19099_v47, %v13575_v51  ;;  %v13711_v10 = vsub.f32 %v19122_v25, %v13583_v39  ;;  %v13710_v16 = vsub.f32 %v19109_v58, %v13579_v40 }
0x2643   : > { %v13713_v28 = vsub.f32 %v19125_v46, %v13591_v48  ;;  %v13712_v21 = vsub.f32 %v19102_v52, %v13587_v31  ;;  %v13714_v22 = vsub.f32 %v19132_v54, %v13595_v27 }
0x2644   : > { %v13736_v7 = vmul.f32 1.442695, %v13708_v50  ;;  %v13738_v33 = vmul.f32 1.442695, %v13709_v14  ;;  %v13742_v42 = vmul.f32 1.442695, %v13711_v10 }
0x2645   : > { %v13740_v41 = vmul.f32 1.442695, %v13710_v16  ;;  %v13746_v26 = vmul.f32 1.442695, %v13713_v28  ;;  %v13744_v1 = vmul.f32 1.442695, %v13712_v21 }
0x2646   : > { %15544 = vpow2.f32 %v13736_v7  ;;  %v13748_v20 = vmul.f32 1.442695, %v13714_v22 }
0x2647   : > { %15546 = vpow2.f32 %v13738_v33 }
0x2648   : > { %15548 = vpow2.f32 %v13742_v42 }
0x2649   : > { %15550 = vpow2.f32 %v13740_v41 }
0x264a   : > { %15552 = vpow2.f32 %v13746_v26  ;;  %v19269_v24 = vpop.xlane.xlu0 %13556 }
0x264b   : > { %15554 = vpow2.f32 %v13744_v1  ;;  %v13603_v21 = vrot.slane %v19269_v24, %v16789_v17 }
0x264c   : > { %15556 = vpow2.f32 %v13748_v20 }
0x2650   : > { %v15545_v56 = vpop.eup %15544 }
0x2651   : > { %v15547_v38 = vpop.eup %15546  ;;  %13821 = vperm.xlu0 %15343, %v15545_v56   ;;  %v13599_v56 = vrot.slane %v19269_v24, %v16786_v53 }
0x2652   : > { %13824 = vperm.xlu1 %15342, %v15547_v38   ;;  %v15549_v57 = vpop.eup %15548  ;;  %v13716_v38 = vsub.f32 %v19085_v32, %v13603_v21 }
0x2653   : > { %v15551_v45 = vpop.eup %15550 }
0x2654   : > { %v15553_v39 = vpop.eup %15552 }
0x2655   : > { %13830 = vperm.xlu0 %15343, %v15549_v57   ;;  %v15555_v50 = vpop.eup %15554 }
0x2656   : > { %v19271_v0 = vpop.xlane.xlu0 %13559  ;;  %13827 = vperm.xlu1 %15342, %v15551_v45   ;;  %v15557_v27 = vpop.eup %15556  ;;  %v13611_v45 = vrot.slane %v19269_v24, %v16795_v3 }
0x2657   : > { %v13627_v37 = vrot.slane %v19271_v0, %v16786_v53  ;;  %v13631_v51 = vrot.slane %v19271_v0, %v16789_v17  ;;  %v13635_v40 = vrot.slane %v19271_v0, %v16792_v43  ;;  %v13647_v48 = vrot.slane %v19271_v0, %v19746_v44 }
0x2658   : > { %v13639_v14 = vrot.slane %v19271_v0, %v16795_v3  ;;  %v13651_v7 = vrot.slane %v19271_v0, %v19747_v55  ;;  %v13643_v22 = vrot.slane %v19271_v0, %v19745_v35 }
0x2659   : > { %v13722_v10 = vsub.f32 %v19105_v23, %v13627_v37  ;;  %v13723_v31 = vsub.f32 %v19137_v9, %v13631_v51  ;;  %v13724_v16 = vsub.f32 %v19129_v63, %v13635_v40  ;;  %13836 = vperm.xlu0 %15343, %v15553_v39   ;;  %v13727_v33 = vsub.f32 %v19167_v11, %v13647_v48 }
0x265a   : > { %13833 = vperm.xlu1 %15342, %v15555_v50   ;;  %v13725_v41 = vsub.f32 %v19151_v29, %v13639_v14  ;;  %v13728_v1 = vsub.f32 %v19147_v4, %v13651_v7  ;;  %v13726_v37 = vsub.f32 %v19156_v34, %v13643_v22  ;;  %v13607_v40 = vrot.slane %v19269_v24, %v16792_v43 }
0x265b   : > { %v13764_v28 = vmul.f32 1.442695, %v13722_v10  ;;  %v13766_v42 = vmul.f32 1.442695, %v13723_v31  ;;  %v13768_v26 = vmul.f32 1.442695, %v13724_v16  ;;  %v13715_v39 = vsub.f32 %v19139_v6, %v13599_v56 }
0x265c   : > { %v13774_v20 = vmul.f32 1.442695, %v13727_v33  ;;  %v13770_v57 = vmul.f32 1.442695, %v13725_v41  ;;  %v13776_v51 = vmul.f32 1.442695, %v13728_v1  ;;  %v13615_v50 = vrot.slane %v19269_v24, %v19745_v35 }
0x265d   : > { %15558 = vpow2.f32 %v13764_v28  ;;  %v13752_v48 = vmul.f32 1.442695, %v13716_v38  ;;  %v13718_v14 = vsub.f32 %v19096_v18, %v13611_v45  ;;  %v13772_v10 = vmul.f32 1.442695, %v13726_v37  ;;  %v19313_v41 = vpop.xlane.xlu1 %13562 }
0x265e   : > { %15560 = vpow2.f32 %v13766_v42  ;;  %13839 = vperm.xlu1 %15342, %v15557_v27   ;;  %v13619_v7 = vrot.slane %v19269_v24, %v19746_v44  ;;  %v13717_v33 = vsub.f32 %v19091_v5, %v13607_v40  ;;  %v13750_v28 = vmul.f32 1.442695, %v13715_v39 }
0x265f   : > { %15562 = vpow2.f32 %v13768_v26  ;;  %v13623_v42 = vrot.slane %v19269_v24, %v19747_v55  ;;  %v13719_v27 = vsub.f32 %v19111_v19, %v13615_v50  ;;  %v13756_v21 = vmul.f32 1.442695, %v13718_v14 }
0x2660   : > { %15564 = vpow2.f32 %v13774_v20  ;;  %v13720_v1 = vsub.f32 %v19093_v59, %v13619_v7  ;;  %v13754_v20 = vmul.f32 1.442695, %v13717_v33  ;;  %v13655_v56 = vrot.slane %v19313_v41, %v16786_v53 }
0x2661   : > { %15566 = vpow2.f32 %v13770_v57  ;;  %v13721_v38 = vsub.f32 %v19115_v60, %v13623_v42  ;;  %v13758_v57 = vmul.f32 1.442695, %v13719_v27  ;;  %v13659_v45 = vrot.slane %v19313_v41, %v16789_v17 }
0x2662   : > { %15568 = vpow2.f32 %v13776_v51  ;;  %v13760_v40 = vmul.f32 1.442695, %v13720_v1  ;;  %v13663_v39 = vrot.slane %v19313_v41, %v16792_v43  ;;  %v13671_v14 = vrot.slane %v19313_v41, %v19745_v35 }
0x2663   : > { %15570 = vpow2.f32 %v13752_v48  ;;  %v13729_v48 = vsub.f32 %v19163_v62, %v13655_v56  ;;  %v13762_v50 = vmul.f32 1.442695, %v13721_v38  ;;  %v13667_v7 = vrot.slane %v19313_v41, %v16795_v3 }
0x2664   : > { %15572 = vpow2.f32 %v13772_v10  ;;  %v13730_v10 = vsub.f32 %v19159_v61, %v13659_v45  ;;  %v13731_v33 = vsub.f32 %v19175_v49, %v13663_v39  ;;  %v13675_v42 = vrot.slane %v19313_v41, %v19746_v44 }
0x2665   : > { %15574 = vpow2.f32 %v13750_v28  ;;  %v13778_v28 = vmul.f32 1.442695, %v13729_v48  ;;  %v13733_v27 = vsub.f32 %v19143_v2, %v13671_v14  ;;  %v13732_v1 = vsub.f32 %v19118_v15, %v13667_v7 }
0x2666   : > { %15576 = vpow2.f32 %v13756_v21  ;;  %v13780_v21 = vmul.f32 1.442695, %v13730_v10  ;;  %v13679_v56 = vrot.slane %v19313_v41, %v19747_v55  ;;  %v13734_v38 = vsub.f32 %v19171_v13, %v13675_v42 }
0x2667   : > { %v15559_v31 = vpop.eup %15558  ;;  %15578 = vpow2.f32 %v13754_v20  ;;  %v13782_v20 = vmul.f32 1.442695, %v13731_v33 }
0x2668   : > { %v15561_v16 = vpop.eup %15560  ;;  %13863 = vperm.xlu0 %15343, %v15559_v31   ;;  %15580 = vpow2.f32 %v13758_v57  ;;  %v13786_v57 = vmul.f32 1.442695, %v13733_v27  ;;  %v13788_v39 = vmul.f32 1.442695, %v13734_v38 }
0x2669   : > { %13866 = vperm.xlu1 %15342, %v15561_v16   ;;  %v15563_v26 = vpop.eup %15562  ;;  %15582 = vpow2.f32 %v13760_v40  ;;  %v13735_v40 = vsub.f32 %v19180_v36, %v13679_v56 }
0x266a   : > { %v15565_v22 = vpop.eup %15564  ;;  %15584 = vpow2.f32 %v13762_v50 }
0x266b   : > { %v15567_v37 = vpop.eup %15566  ;;  %15586 = vpow2.f32 %v13778_v28  ;;  %v13790_v14 = vmul.f32 1.442695, %v13735_v40 }
0x266c   : > { %13878 = vperm.xlu0 %15343, %v15565_v22   ;;  %v15569_v51 = vpop.eup %15568  ;;  %15588 = vpow2.f32 %v13780_v21 }
0x266d   : > { %13869 = vperm.xlu1 %15342, %v15563_v26   ;;  %v15571_v31 = vpop.eup %15570  ;;  %15590 = vpow2.f32 %v13782_v20 }
0x266e   : > { %v15573_v16 = vpop.eup %15572  ;;  %15592 = vpow2.f32 %v13786_v57 }
0x266f   : > { %v15575_v26 = vpop.eup %15574 }
0x2670   : > { %13881 = vperm.xlu0 %15343, %v15569_v51   ;;  %v15577_v22 = vpop.eup %15576  ;;  %v13784_v51 = vmul.f32 1.442695, %v13732_v1 }
0x2671   : > { %13872 = vperm.xlu1 %15342, %v15567_v37   ;;  %v15579_v45 = vpop.eup %15578 }
0x2672   : > { %v15581_v37 = vpop.eup %15580  ;;  %15594 = vpow2.f32 %v13784_v51 }
0x2673   : > { %v15583_v48 = vpop.eup %15582  ;;  %15596 = vpow2.f32 %v13788_v39 }
0x2674   : > { %13845 = vperm.xlu0 %15343, %v15571_v31   ;;  %v15585_v50 = vpop.eup %15584  ;;  %15598 = vpow2.f32 %v13790_v14 }
0x2675   : > { %13875 = vperm.xlu1 %15342, %v15573_v16   ;;  %v15587_v10 = vpop.eup %15586 }
0x2676   : > { %v15589_v31 = vpop.eup %15588 }
0x2677   : > { %v15591_v16 = vpop.eup %15590 }
0x2678   : > { %13851 = vperm.xlu0 %15343, %v15577_v22   ;;  %v15593_v7 = vpop.eup %15592 }
0x2679   : > { %13842 = vperm.xlu1 %15342, %v15575_v26  }
0x267c   : > { %13854 = vperm.xlu0 %15343, %v15581_v37   ;;  %v15595_v33 = vpop.eup %15594 }
0x267d   : > { %13848 = vperm.xlu1 %15342, %v15579_v45   ;;  %v15597_v28 = vpop.eup %15596 }
0x267e   : > { %v15599_v42 = vpop.eup %15598 }
0x2680   : > { %13857 = vperm.xlu0 %15343, %v15583_v48  }
0x2681   : > { %13860 = vperm.xlu1 %15342, %v15585_v50  }
0x2684   : > { %13884 = vperm.xlu0 %15343, %v15587_v10  }
0x2685   : > { %13887 = vperm.xlu1 %15342, %v15589_v31  }
0x2688   : > { %13890 = vperm.xlu0 %15343, %v15591_v16  }
0x2689   : > { %13896 = vperm.xlu1 %15342, %v15593_v7  }
0x268c   : > { %13893 = vperm.xlu0 %15343, %v15595_v33  }
0x268d   : > { %13899 = vperm.xlu1 %15342, %v15597_v28  }
0x2690   : > { %13902 = vperm.xlu0 %15343, %v15599_v42  }
0x26d0   : > { %v13822_v27 = vpop.permute.xlu0 %13821 }
0x26d1   : > { %v13825_v21 = vpop.permute.xlu1 %13824  ;;  %v13907_v26 = vrot.slane %v13822_v27, %v19185_v30 }
0x26d2   : > { %v13911_v22 = vrot.slane %v13825_v21, %v19185_v30 }
0x26d4   : > { %v13831_v1 = vpop.permute.xlu0 %13830  ;;  %v14016_v38 = vsel %vm13518_vm10, %v13911_v22, %v13907_v26 }
0x26d5   : > { %v13828_v20 = vpop.permute.xlu1 %13827  ;;  %v13919_v57 = vrot.slane %v13831_v1, %v19185_v30 }
0x26d6   : > { %v13915_v56 = vrot.slane %v13828_v20, %v19185_v30 }
0x26d8   : > { %v14017_v45 = vsel %vm13520_vm11, %v13915_v56, %v14016_v38  ;;  %v13837_v37 = vpop.permute.xlu0 %13836 }
0x26d9   : > { %v13834_v51 = vpop.permute.xlu1 %13833  ;;  %v13927_v39 = vrot.slane %v13837_v37, %v19185_v30  ;;  %v14018_v48 = vsel %vm13522_vm12, %v13919_v57, %v14017_v45 }
0x26da   : > { %v13923_v40 = vrot.slane %v13834_v51, %v19185_v30 }
0x26dc   : > { %v14019_v50 = vsel %vm13524_vm13, %v13923_v40, %v14018_v48 }
0x26dd   : > { %v13840_v14 = vpop.permute.xlu1 %13839  ;;  %v14020_v31 = vsel %vm13526_vm15, %v13927_v39, %v14019_v50 }
0x26de   : > { %v13931_v10 = vrot.slane %v13840_v14, %v19185_v30 }
0x26e0   : > { %v14021_v16 = vsel %vm13528_vm0, %v13931_v10, %v14020_v31 }
0x26e1   : > { %v14044_v7 = vsel %vm7970_vm14, %v14021_v16, 0.0 }
0x26e2   : > { %14045 = vadd.xlane.f32.xlu1 %v14044_v7 }
0x26e7   : > { %v13864_v33 = vpop.permute.xlu0 %13863 }
0x26e8   : > { %v13867_v28 = vpop.permute.xlu1 %13866  ;;  %v13963_v38 = vrot.slane %v13864_v33, %v19185_v30 }
0x26e9   : > { %v13967_v57 = vrot.slane %v13867_v28, %v19185_v30 }
0x26eb   : > { %v13879_v42 = vpop.permute.xlu0 %13878  ;;  %v14028_v14 = vsel %vm13518_vm10, %v13967_v57, %v13963_v38 }
0x26ec   : > { %v13870_v27 = vpop.permute.xlu1 %13869  ;;  %v13983_v38 = vrot.slane %v13879_v42, %v19185_v30 }
0x26ed   : > { %v13971_v45 = vrot.slane %v13870_v27, %v19185_v30 }
0x26ef   : > { %v13882_v21 = vpop.permute.xlu0 %13881  ;;  %v14029_v31 = vsel %vm13520_vm11, %v13971_v45, %v14028_v14 }
0x26f0   : > { %v13873_v26 = vpop.permute.xlu1 %13872 }
0x26f1   : > { %v13975_v51 = vrot.slane %v13873_v26, %v19185_v30 }
0x26f3   : > { %v13846_v22 = vpop.permute.xlu0 %13845  ;;  %v14030_v33 = vsel %vm13522_vm12, %v13975_v51, %v14029_v31 }
0x26f4   : > { %v13876_v1 = vpop.permute.xlu1 %13875  ;;  %v13939_v40 = vrot.slane %v13846_v22, %v19185_v30 }
0x26f5   : > { %v13979_v39 = vrot.slane %v13876_v1, %v19185_v30 }
0x26f7   : > { %v13852_v20 = vpop.permute.xlu0 %13851  ;;  %v14031_v26 = vsel %vm13524_vm13, %v13979_v39, %v14030_v33 }
0x26f8   : > { %v13843_v56 = vpop.permute.xlu1 %13842  ;;  %v13947_v16 = vrot.slane %v13852_v20, %v19185_v30  ;;  %v14032_v51 = vsel %vm13526_vm15, %v13983_v38, %v14031_v26 }
0x26f9   : > { %v13935_v37 = vrot.slane %v13843_v56, %v19185_v30 }
0x26fb   : > { %v13855_v48 = vpop.permute.xlu0 %13854  ;;  %v14022_v7 = vsel %vm13518_vm10, %v13939_v40, %v13935_v37  ;;  %v13987_v40 = vrot.slane %v13882_v21, %v19185_v30 }
0x26fc   : > { %v13849_v50 = vpop.permute.xlu1 %13848  ;;  %v13951_v28 = vrot.slane %v13855_v48, %v19185_v30 }
0x26fd   : > { %v13943_v10 = vrot.slane %v13849_v50, %v19185_v30  ;;  %v14033_v42 = vsel %vm13528_vm0, %v13987_v40, %v14032_v51 }
0x26fe   : > { %v14050_v33 = vsel %vm7970_vm14, %v14033_v42, 0.0 }
0x26ff   : > { %v14023_v27 = vsel %vm13520_vm11, %v13943_v10, %v14022_v7  ;;  %v13858_v1 = vpop.permute.xlu0 %13857 }
0x2700   : > { %v14024_v22 = vsel %vm13522_vm12, %v13947_v16, %v14023_v27  ;;  %v13861_v56 = vpop.permute.xlu1 %13860  ;;  %v13955_v57 = vrot.slane %v13858_v1, %v19185_v30 }
0x2701   : > { %v13959_v20 = vrot.slane %v13861_v56, %v19185_v30  ;;  %v14025_v45 = vsel %vm13524_vm13, %v13951_v28, %v14024_v22 }
0x2702   : > { %v14026_v37 = vsel %vm13526_vm15, %v13955_v57, %v14025_v45 }
0x2703   : > { %v13885_v48 = vpop.permute.xlu0 %13884  ;;  %v14027_v50 = vsel %vm13528_vm0, %v13959_v20, %v14026_v37 }
0x2704   : > { %v13888_v39 = vpop.permute.xlu1 %13887  ;;  %v14047_v14 = vsel %vm7970_vm14, %v14027_v50, 0.0  ;;  %v13991_v16 = vrot.slane %v13885_v48, %v19185_v30 }
0x2705   : > { %14048 = vadd.xlane.f32.xlu0 %v14047_v14  ;;  %v13995_v7 = vrot.slane %v13888_v39, %v19185_v30 }
0x2707   : > { %v13891_v10 = vpop.permute.xlu0 %13890  ;;  %v14034_v26 = vsel %vm13518_vm10, %v13995_v7, %v13991_v16 }
0x2708   : > { %v13897_v31 = vpop.permute.xlu1 %13896  ;;  %v13999_v28 = vrot.slane %v13891_v10, %v19185_v30 }
0x2709   : > { %14051 = vadd.xlane.f32.xlu0 %v14050_v33  ;;  %v14007_v56 = vrot.slane %v13897_v31, %v19185_v30 }
0x270a   : > { %v14035_v1 = vsel %vm13520_vm11, %v13999_v28, %v14034_v26 }
0x270b   : > { %v13894_v21 = vpop.permute.xlu0 %13893 }
0x270c   : > { %v13900_v27 = vpop.permute.xlu1 %13899  ;;  %v14003_v22 = vrot.slane %v13894_v21, %v19185_v30 }
0x270d   : > { %v14011_v57 = vrot.slane %v13900_v27, %v19185_v30 }
0x270e   : > { %v14036_v38 = vsel %vm13522_vm12, %v14003_v22, %v14035_v1 }
0x270f   : > { %v13903_v20 = vpop.permute.xlu0 %13902  ;;  %v14037_v45 = vsel %vm13524_vm13, %v14007_v56, %v14036_v38 }
0x2710   : > { %v14015_v37 = vrot.slane %v13903_v20, %v19185_v30  ;;  %v14038_v51 = vsel %vm13526_vm15, %v14011_v57, %v14037_v45 }
0x2712   : > { %v14039_v40 = vsel %vm13528_vm0, %v14015_v37, %v14038_v51 }
0x2713   : > { %v14053_v48 = vsel %vm7970_vm14, %v14039_v40, 0.0 }
0x2714   : > { %14054 = vadd.xlane.f32.xlu1 %v14053_v48 }
0x276f   : > { %v14046_v39 = vpop.xlane.xlu1 %14045 }
0x2770   : > { %15600 = vlog2.f32 %v14046_v39 }
0x277a   : > { %v15601_v50 = vpop.eup %15600 }
0x277b   : > { %v14057_v14 = vmul.f32 0.6931472, %v15601_v50 }
0x277d   : > { %v14064_v42 = vadd.f32 %v14057_v14, %v19246_v8 }
0x277f   : > { %v14079_v10 = vrot.slane %v14064_v42, %v16789_v17  ;;  %v14075_v31 = vrot.slane %v14064_v42, %v16786_v53  ;;  %v14083_v33 = vrot.slane %v14064_v42, %v16792_v43  ;;  %v14087_v28 = vrot.slane %v14064_v42, %v16795_v3 }
0x2780   : > { %v14091_v8 = vrot.slane %v14064_v42, %v19745_v35  ;;  %v14095_v26 = vrot.slane %v14064_v42, %v19746_v44  ;;  %v14099_v22 = vrot.slane %v14064_v42, %v19747_v55 }
0x2781   : > { %v14213_v16 = vsub.f32 %v19099_v47, %v14079_v10  ;;  %v14212_v7 = vsub.f32 %v19087_v12, %v14075_v31  ;;  %v14214_v21 = vsub.f32 %v19109_v58, %v14083_v33  ;;  %v14215_v27 = vsub.f32 %v19122_v25, %v14087_v28 }
0x2782   : > { %v14216_v47 = vsub.f32 %v19102_v52, %v14091_v8  ;;  %v14217_v12 = vsub.f32 %v19125_v46, %v14095_v26  ;;  %v14218_v1 = vsub.f32 %v19132_v54, %v14099_v22 }
0x2783   : > { %14272 = vperm.xlu1 %15342, %v14213_v16   ;;  %14269 = vperm.xlu0 %15343, %v14212_v7  }
0x2787   : > { %14275 = vperm.xlu1 %15342, %v14214_v21   ;;  %14278 = vperm.xlu0 %15343, %v14215_v27  }
0x278b   : > { %14281 = vperm.xlu1 %15342, %v14216_v47   ;;  %14284 = vperm.xlu0 %15343, %v14217_v12  }
0x278f   : > { %14287 = vperm.xlu1 %15342, %v14218_v1  }
0x2792   : > { %v14049_v58 = vpop.xlane.xlu0 %14048 }
0x2793   : > { %15602 = vlog2.f32 %v14049_v58 }
0x2796   : > { %v14052_v25 = vpop.xlane.xlu0 %14051 }
0x2797   : > { %15604 = vlog2.f32 %v14052_v25 }
0x279d   : > { %v15603_v56 = vpop.eup %15602 }
0x279e   : > { %v14059_v20 = vmul.f32 0.6931472, %v15603_v56 }
0x27a0   : > { %v14065_v51 = vadd.f32 %v14059_v20, %v19269_v24 }
0x27a1   : > { %v15605_v38 = vpop.eup %15604  ;;  %v14055_v52 = vpop.xlane.xlu1 %14054 }
0x27a2   : > { %v14061_v57 = vmul.f32 0.6931472, %v15605_v38  ;;  %15606 = vlog2.f32 %v14055_v52  ;;  %v14107_v14 = vrot.slane %v14065_v51, %v16789_v17  ;;  %v14115_v24 = vrot.slane %v14065_v51, %v16795_v3 }
0x27a3   : > { %v14103_v27 = vrot.slane %v14065_v51, %v16786_v53  ;;  %v14111_v8 = vrot.slane %v14065_v51, %v16792_v43 }
0x27a4   : > { %v14066_v45 = vadd.f32 %v14061_v57, %v19271_v0  ;;  %v14222_v16 = vsub.f32 %v19096_v18, %v14115_v24 }
0x27a6   : > { %v14131_v46 = vrot.slane %v14066_v45, %v16786_v53  ;;  %v14135_v37 = vrot.slane %v14066_v45, %v16789_v17  ;;  %v14147_v48 = vrot.slane %v14066_v45, %v19745_v35  ;;  %v14139_v39 = vrot.slane %v14066_v45, %v16792_v43 }
0x27a7   : > { %v14143_v42 = vrot.slane %v14066_v45, %v16795_v3  ;;  %v14151_v10 = vrot.slane %v14066_v45, %v19746_v44  ;;  %v14155_v33 = vrot.slane %v14066_v45, %v19747_v55 }
0x27a8   : > { %v14226_v54 = vsub.f32 %v19105_v23, %v14131_v46  ;;  %v14227_v40 = vsub.f32 %v19137_v9, %v14135_v37  ;;  %v14230_v0 = vsub.f32 %v19156_v34, %v14147_v48  ;;  %v14228_v50 = vsub.f32 %v19129_v63, %v14139_v39 }
0x27a9   : > { %v14220_v23 = vsub.f32 %v19085_v32, %v14107_v14  ;;  %v14229_v9 = vsub.f32 %v19151_v29, %v14143_v42  ;;  %v14119_v34 = vrot.slane %v14065_v51, %v19745_v35  ;;  %v14231_v7 = vsub.f32 %v19167_v11, %v14151_v10 }
0x27aa   : > { %14311 = vperm.xlu1 %15342, %v14226_v54   ;;  %14314 = vperm.xlu0 %15343, %v14227_v40   ;;  %v14127_v32 = vrot.slane %v14065_v51, %v19747_v55  ;;  %v14232_v21 = vsub.f32 %v19147_v4, %v14155_v33  ;;  %v14219_v11 = vsub.f32 %v19139_v6, %v14103_v27 }
0x27ab   : > { %v14223_v28 = vsub.f32 %v19111_v19, %v14119_v34  ;;  %v14123_v4 = vrot.slane %v14065_v51, %v19746_v44 }
0x27ac   : > { %v15607_v31 = vpop.eup %15606  ;;  %v14225_v18 = vsub.f32 %v19115_v60, %v14127_v32 }
0x27ad   : > { %v14063_v63 = vmul.f32 0.6931472, %v15607_v31  ;;  %v14224_v60 = vsub.f32 %v19093_v59, %v14123_v4 }
0x27ae   : > { %14323 = vperm.xlu1 %15342, %v14230_v0   ;;  %14317 = vperm.xlu0 %15343, %v14228_v50  }
0x27af   : > { %v14067_v29 = vadd.f32 %v14063_v63, %v19313_v41  ;;  %v14221_v41 = vsub.f32 %v19091_v5, %v14111_v8 }
0x27b1   : > { %v14159_v26 = vrot.slane %v14067_v29, %v16786_v53  ;;  %v14167_v47 = vrot.slane %v14067_v29, %v16792_v43  ;;  %v14163_v12 = vrot.slane %v14067_v29, %v16789_v17  ;;  %v14175_v53 = vrot.slane %v14067_v29, %v19745_v35 }
0x27b2   : > { %14293 = vperm.xlu1 %15342, %v14220_v23   ;;  %14320 = vperm.xlu0 %15343, %v14229_v9   ;;  %v14171_v22 = vrot.slane %v14067_v29, %v16795_v3  ;;  %v14179_v43 = vrot.slane %v14067_v29, %v19746_v44  ;;  %v14183_v17 = vrot.slane %v14067_v29, %v19747_v55 }
0x27b3   : > { %v14233_v19 = vsub.f32 %v19163_v62, %v14159_v26  ;;  %v14235_v6 = vsub.f32 %v19175_v49, %v14167_v47  ;;  %v14234_v5 = vsub.f32 %v19159_v61, %v14163_v12  ;;  %v14237_v62 = vsub.f32 %v19143_v2, %v14175_v53 }
0x27b4   : > { %v14236_v59 = vsub.f32 %v19118_v15, %v14171_v22  ;;  %v14238_v49 = vsub.f32 %v19171_v13, %v14179_v43  ;;  %v14239_v35 = vsub.f32 %v19180_v36, %v14183_v17 }
0x27b6   : > { %14299 = vperm.xlu1 %15342, %v14222_v16   ;;  %14326 = vperm.xlu0 %15343, %v14231_v7  }
0x27ba   : > { %14302 = vperm.xlu1 %15342, %v14223_v28   ;;  %14329 = vperm.xlu0 %15343, %v14232_v21  }
0x27be   : > { %14308 = vperm.xlu1 %15342, %v14225_v18   ;;  %14290 = vperm.xlu0 %15343, %v14219_v11  }
0x27c2   : > { %14296 = vperm.xlu0 %15343, %v14221_v41   ;;  %14332 = vperm.xlu1 %15342, %v14233_v19  }
0x27c6   : > { %14305 = vperm.xlu0 %15343, %v14224_v60   ;;  %14338 = vperm.xlu1 %15342, %v14235_v6  }
0x27ca   : > { %14335 = vperm.xlu0 %15343, %v14234_v5   ;;  %14344 = vperm.xlu1 %15342, %v14237_v62  }
0x27ce   : > { %14341 = vperm.xlu0 %15343, %v14236_v59   ;;  %14347 = vperm.xlu1 %15342, %v14238_v49  }
0x27d2   : > { %14350 = vperm.xlu0 %15343, %v14239_v35  }
0x2802   : > { %v14270_v61 = vpop.permute.xlu0 %14269  ;;  %v14273_v1 = vpop.permute.xlu1 %14272 }
0x2803   : > { %v14355_v2 = vrot.slane %v14270_v61, %v19185_v30  ;;  %v14359_v3 = vrot.slane %v14273_v1, %v19185_v30 }
0x2805   : > { %v14464_v13 = vsel %vm13518_vm10, %v14359_v3, %v14355_v2 }
0x2806   : > { %v14279_v44 = vpop.permute.xlu0 %14278  ;;  %v14276_v58 = vpop.permute.xlu1 %14275 }
0x2807   : > { %v14363_v15 = vrot.slane %v14276_v58, %v19185_v30  ;;  %v14367_v55 = vrot.slane %v14279_v44, %v19185_v30 }
0x2809   : > { %v14465_v25 = vsel %vm13520_vm11, %v14363_v15, %v14464_v13 }
0x280a   : > { %v14285_v56 = vpop.permute.xlu0 %14284  ;;  %v14282_v36 = vpop.permute.xlu1 %14281  ;;  %v14466_v20 = vsel %vm13522_vm12, %v14367_v55, %v14465_v25 }
0x280b   : > { %v14371_v38 = vrot.slane %v14282_v36, %v19185_v30  ;;  %v14375_v57 = vrot.slane %v14285_v56, %v19185_v30 }
0x280d   : > { %v14467_v45 = vsel %vm13524_vm13, %v14371_v38, %v14466_v20 }
0x280e   : > { %v14288_v52 = vpop.permute.xlu1 %14287  ;;  %v14468_v37 = vsel %vm13526_vm15, %v14375_v57, %v14467_v45 }
0x280f   : > { %v14379_v46 = vrot.slane %v14288_v52, %v19185_v30 }
0x2811   : > { %v14469_v51 = vsel %vm13528_vm0, %v14379_v46, %v14468_v37 }
0x2812   : > { %v14492_v54 = vsel %vm418_vm2, %v14469_v51, -1e+30 }
0x2813   : > { %14496 = vst [vmem:[%s19469_s14] sm:$0x7f] %v14492_v54 }
0x2829   : > { %v14315_v40 = vpop.permute.xlu0 %14314  ;;  %v14312_v48 = vpop.permute.xlu1 %14311 }
0x282a   : > { %v14415_v10 = vrot.slane %v14315_v40, %v19185_v30  ;;  %v14411_v31 = vrot.slane %v14312_v48, %v19185_v30 }
0x282c   : > { %v14476_v32 = vsel %vm13518_vm10, %v14415_v10, %v14411_v31 }
0x282d   : > { %v14318_v39 = vpop.permute.xlu0 %14317  ;;  %v14324_v0 = vpop.permute.xlu1 %14323 }
0x282e   : > { %v14419_v16 = vrot.slane %v14318_v39, %v19185_v30  ;;  %v14427_v19 = vrot.slane %v14324_v0, %v19185_v30 }
0x2830   : > { %v14477_v27 = vsel %vm13520_vm11, %v14419_v16, %v14476_v32 }
0x2831   : > { %v14321_v50 = vpop.permute.xlu0 %14320  ;;  %v14294_v14 = vpop.permute.xlu1 %14293 }
0x2832   : > { %v14423_v7 = vrot.slane %v14321_v50, %v19185_v30  ;;  %v14387_v29 = vrot.slane %v14294_v14, %v19185_v30 }
0x2834   : > { %v14478_v11 = vsel %vm13522_vm12, %v14423_v7, %v14477_v27 }
0x2835   : > { %v14327_v42 = vpop.permute.xlu0 %14326  ;;  %v14300_v23 = vpop.permute.xlu1 %14299  ;;  %v14479_v5 = vsel %vm13524_vm13, %v14427_v19, %v14478_v11 }
0x2836   : > { %v14431_v8 = vrot.slane %v14327_v42, %v19185_v30  ;;  %v14395_v26 = vrot.slane %v14300_v23, %v19185_v30 }
0x2838   : > { %v14480_v43 = vsel %vm13526_vm15, %v14431_v8, %v14479_v5 }
0x2839   : > { %v14330_v9 = vpop.permute.xlu0 %14329  ;;  %v14303_v24 = vpop.permute.xlu1 %14302 }
0x283a   : > { %v14435_v4 = vrot.slane %v14330_v9, %v19185_v30  ;;  %v14399_v47 = vrot.slane %v14303_v24, %v19185_v30 }
0x283c   : > { %v14481_v49 = vsel %vm13528_vm0, %v14435_v4, %v14480_v43 }
0x283d   : > { %v14291_v34 = vpop.permute.xlu0 %14290  ;;  %v14309_v63 = vpop.permute.xlu1 %14308  ;;  %v14494_v58 = vsel %vm418_vm2, %v14481_v49, -1e+30 }
0x283e   : > { %v14383_v33 = vrot.slane %v14291_v34, %v19185_v30  ;;  %v14407_v59 = vrot.slane %v14309_v63, %v19185_v30  ;;  %14498 = vst [vmem:[%s19469_s14 + $0x10] sm:$0x7f] %v14494_v58 }
0x2840   : > { %v14470_v41 = vsel %vm13518_vm10, %v14387_v29, %v14383_v33 }
0x2841   : > { %v14297_v28 = vpop.permute.xlu0 %14296  ;;  %v14333_v21 = vpop.permute.xlu1 %14332 }
0x2842   : > { %v14391_v18 = vrot.slane %v14297_v28, %v19185_v30  ;;  %v14439_v2 = vrot.slane %v14333_v21, %v19185_v30 }
0x2844   : > { %v14471_v60 = vsel %vm13520_vm11, %v14391_v18, %v14470_v41 }
0x2845   : > { %v14472_v6 = vsel %vm13522_vm12, %v14395_v26, %v14471_v60  ;;  %v14306_v12 = vpop.permute.xlu0 %14305  ;;  %v14339_v53 = vpop.permute.xlu1 %14338 }
0x2846   : > { %v14403_v62 = vrot.slane %v14306_v12, %v19185_v30  ;;  %v14473_v22 = vsel %vm13524_vm13, %v14399_v47, %v14472_v6  ;;  %v14447_v13 = vrot.slane %v14339_v53, %v19185_v30 }
0x2848   : > { %v14474_v17 = vsel %vm13526_vm15, %v14403_v62, %v14473_v22 }
0x2849   : > { %v14475_v35 = vsel %vm13528_vm0, %v14407_v59, %v14474_v17  ;;  %v14336_v61 = vpop.permute.xlu0 %14335  ;;  %v14345_v1 = vpop.permute.xlu1 %14344 }
0x284a   : > { %v14493_v3 = vsel %vm418_vm2, %v14475_v35, -1e+30  ;;  %v14443_v44 = vrot.slane %v14336_v61, %v19185_v30  ;;  %v14455_v36 = vrot.slane %v14345_v1, %v19185_v30 }
0x284b   : > { %14497 = vst [vmem:[%s19469_s14 + $0x8] sm:$0x7f] %v14493_v3 }
0x284c   : > { %v14482_v15 = vsel %vm13518_vm10, %v14443_v44, %v14439_v2 }
0x284d   : > { %v14342_v55 = vpop.permute.xlu0 %14341  ;;  %v14348_v25 = vpop.permute.xlu1 %14347  ;;  %v14483_v38 = vsel %vm13520_vm11, %v14447_v13, %v14482_v15 }
0x284e   : > { %v14451_v56 = vrot.slane %v14342_v55, %v19185_v30  ;;  %v14459_v20 = vrot.slane %v14348_v25, %v19185_v30 }
0x2850   : > { %v14484_v57 = vsel %vm13522_vm12, %v14451_v56, %v14483_v38 }
0x2851   : > { %v14485_v45 = vsel %vm13524_vm13, %v14455_v36, %v14484_v57  ;;  %v14351_v52 = vpop.permute.xlu0 %14350 }
0x2852   : > { %v14486_v46 = vsel %vm13526_vm15, %v14459_v20, %v14485_v45  ;;  %v14463_v37 = vrot.slane %v14351_v52, %v19185_v30 }
0x2854   : > { %v14487_v51 = vsel %vm13528_vm0, %v14463_v37, %v14486_v46 }
0x2855   : > { %v14495_v54 = vsel %vm418_vm2, %v14487_v51, -1e+30 }
0x2856   : > { %14499 = vst [vmem:[%s19469_s14 + $0x18] sm:$0x7f] %v14495_v54 }
0x2857 PF: > { %s26_s1 = sadd.s32 1, %s15640_s1  }
0x2858   : > { %p23_p0 = scmp.ge.s32.totalorder %s26_s1, 4  }
0x285a   :  { %25 = sbr.rel (!%p23_p0) target bundleno = 26 (0x1a), region = 69 }

</bundles_post_ra>
